<compile_context>
chip_gen: v5e
topology: v5e:2x2
jax: 0.10.0
libtpu: 0.0.40
codegen_flags: <defaults>
</compile_context>

<pallas_src>
import jax
import jax.numpy as jnp
from jax.experimental import pallas as pl
from jax.experimental.pallas import tpu as pltpu

_MiB = 1024 * 1024


# --------------------------------------------------------------------------- #
# Kernels
# --------------------------------------------------------------------------- #
def _layer_norm_f32(x, g, b, eps=1e-5):
    """Single-pass LayerNorm (torch semantics: biased variance, eps inside rsqrt)."""
    inv_d = 1.0 / x.shape[-1]
    s1 = jnp.sum(x, axis=-1, keepdims=True)
    s2 = jnp.sum(x * x, axis=-1, keepdims=True)
    mean = s1 * inv_d
    var = s2 * inv_d - mean * mean
    return (x - mean) * jax.lax.rsqrt(var + eps) * g + b


def _resnet_resident_kernel(x_ref, g_ref, b_ref, w1_ref, b1_ref, w2_ref, b2_ref,
                            o_ref):
    """Weights-resident path: one grid step per row tile, full fc1/fc2 in VMEM."""
    x = x_ref[...].astype(jnp.float32)                           # (tm, D)
    xn = _layer_norm_f32(x, g_ref[...].astype(jnp.float32),
                         b_ref[...].astype(jnp.float32))
    h = jnp.dot(xn.astype(w1_ref.dtype), w1_ref[...],
                preferred_element_type=jnp.float32) + b1_ref[...].astype(jnp.float32)
    h = h * jax.nn.sigmoid(h)                                    # SiLU (f32)
    # TODO(synk): dropout is p=0.0 (module default) / eval mode -> identity; a
    # nonzero-p training path would use pltpu.prng_seed + pltpu.prng_random_bits.
    y = jnp.dot(h.astype(w2_ref.dtype), w2_ref[...],
                preferred_element_type=jnp.float32) + b2_ref[...].astype(jnp.float32)
    o_ref[...] = (x + y).astype(o_ref.dtype)                     # residual add, lane-dense store


def _resnet_tiled_body(x_ref, g_ref, b_ref, w1_ref, b1_ref, w2_ref, b2_ref,
                       o_ref, xn_ref, acc_ref):
    """One (row-tile i, hidden-tile k) grid step; acc_ref may alias o_ref (f32)."""
    k = pl.program_id(1)

    # ---- init (once per row tile): LayerNorm in f32, stash bf16 copy for the MXU ----
    @pl.when(k == 0)
    def _():
        x = x_ref[...].astype(jnp.float32)
        xn = _layer_norm_f32(x, g_ref[...].astype(jnp.float32),
                             b_ref[...].astype(jnp.float32))
        xn_ref[...] = xn.astype(xn_ref.dtype)
        acc_ref[...] = jnp.zeros_like(acc_ref)

    # ---- fc1 slice (D x tk) + SiLU (f32 elementwise) ----
    h = jnp.dot(xn_ref[...], w1_ref[...],
                preferred_element_type=jnp.float32) + b1_ref[...].astype(jnp.float32)
    h = h * jax.nn.sigmoid(h)
    # TODO(synk): dropout p=0 -> identity (see resident kernel note).

    # ---- fc2 partial sum over this hidden tile ----
    acc_ref[...] += jnp.dot(h.astype(w2_ref.dtype), w2_ref[...],
                            preferred_element_type=jnp.float32).astype(acc_ref.dtype)

    # ---- finalize: bias2 + residual, single lane-dense store ----
    @pl.when(k == pl.num_programs(1) - 1)
    def _():
        x = x_ref[...].astype(jnp.float32)
        y = acc_ref[...].astype(jnp.float32) + b2_ref[...].astype(jnp.float32)
        o_ref[...] = (x + y).astype(o_ref.dtype)


def _resnet_tiled_kernel_f32out(x_ref, g_ref, b_ref, w1_ref, b1_ref, w2_ref, b2_ref,
                                o_ref, xn_ref):
    # Output block is resident across the k axis (index_map (i, 0)) and already f32,
    # so it doubles as the accumulator: saves tm*Do*4 VMEM and an epilogue copy.
    _resnet_tiled_body(x_ref, g_ref, b_ref, w1_ref, b1_ref, w2_ref, b2_ref,
                       o_ref, xn_ref, o_ref)


def _resnet_tiled_kernel_acc(x_ref, g_ref, b_ref, w1_ref, b1_ref, w2_ref, b2_ref,
                             o_ref, xn_ref, acc_ref):
    # Sub-f32 output dtype -> keep an explicit f32 accumulator scratch.
    _resnet_tiled_body(x_ref, g_ref, b_ref, w1_ref, b1_ref, w2_ref, b2_ref,
                       o_ref, xn_ref, acc_ref)


# --------------------------------------------------------------------------- #
# Wrapper
# --------------------------------------------------------------------------- #
def _vmem_budget_bytes():
    """Generation-aware usable-VMEM budget with headroom for compiler-internal scratch."""
    cap = None
    try:
        cap = getattr(pltpu.get_tpu_info(), "vmem_capacity_bytes", None)
    except Exception:
        cap = None
    if not cap or cap <= 0:
        cap = 64 * _MiB                       # conservative (v7x-sized) fallback
    if cap >= 96 * _MiB:                      # v5e / v6e: 128 MiB physical
        return cap - 16 * _MiB                # ~112 MiB usable
    # v7x: 64 MiB physical -> never request the whole thing
    return max(min(cap - 8 * _MiB, 56 * _MiB), 24 * _MiB)


def _pick_hidden_tile(H, budget):
    # Larger reduction tiles on 128-MiB parts; prefer 256 on v7x when it divides H.
    prefs = (512, 256, 128) if budget >= 80 * _MiB else (256, 512, 128)
    for cand in prefs:
        if H % cand == 0:
            return cand
    return H


def resnet_module_forward(x2d, gamma, beta, w1, b1, w2, b2, *,
                          tm=None, tk=None, mxu_dtype=jnp.bfloat16,
                          force_tiled=False):
    """x2d: (N, D) rows; w1:(D,H), w2:(H,Do) in (in,out) layout; returns (N, Do)."""
    N, D = x2d.shape
    H = w1.shape[1]
    Do = w2.shape[1]
    assert Do == D, "residual add requires out_dim == inp_dim"
    assert D % 128 == 0 and H % 128 == 0, \
        "pad feature dims to multiples of 128 for lane-dense tiles"

    budget = _vmem_budget_bytes()
    itemsize = jnp.dtype(x2d.dtype).itemsize
    mxu_itemsize = jnp.dtype(mxu_dtype).itemsize

    # Weights should arrive pre-cast via prepare_params (cast once, not per forward);
    # this is only a fallback.
    if w1.dtype != mxu_dtype:
        w1 = w1.astype(mxu_dtype)
    if w2.dtype != mxu_dtype:
        w2 = w2.astype(mxu_dtype)

    # Row tile: generation-aware default (bigger on 128-MiB parts), multiple of 8.
    if tm is None:
        tm = 512 if budget >= 80 * _MiB else 256
    tm = max(8, (min(tm, -(-N // 8) * 8) // 8) * 8)
    n_row_tiles = pl.cdiv(N, tm)
    N_pad = n_row_tiles * tm
    if N_pad != N:
        # TODO(synk): padded zero rows produce finite-but-garbage LayerNorm output that
        # is sliced off below; mask at finalize if eps / pad value ever changes.
        x2d = jnp.pad(x2d, ((0, N_pad - N), (0, 0)))

    weight_bytes = (D * H + H * Do) * mxu_itemsize
    small_vecs = 2 * (2 * D + H + Do) * 4        # gamma/beta/b1/b2 double-buffered (f32)

    # ---------------- weights-resident fast path ---------------- #
    resident = (not force_tiled) and (2 * weight_bytes <= budget // 3)
    if resident:
        est = (2 * tm * D * itemsize             # x row tile (double-buffered)
               + 2 * tm * Do * itemsize          # output tile (double-buffered)
               + 2 * weight_bytes                # w1 + w2 (worst-case 2 buffers)
               + small_vecs
               + tm * H * 4 + tm * D * 4)        # fc1 / LN f32 intermediates
        vmem_limit = int(min(max(1.25 * est, 24 * _MiB), budget))

        out = pl.pallas_call(
            _resnet_resident_kernel,
            out_shape=jax.ShapeDtypeStruct((N_pad, Do), x2d.dtype),
            grid_spec=pltpu.PrefetchScalarGridSpec(
                num_scalar_prefetch=0,
                grid=(n_row_tiles,),
                in_specs=[
                    pl.BlockSpec((tm, D), lambda i: (i, 0)),   # x rows
                    pl.BlockSpec((1, D), lambda i: (0, 0)),    # ln gamma
                    pl.BlockSpec((1, D), lambda i: (0, 0)),    # ln beta
                    pl.BlockSpec((D, H), lambda i: (0, 0)),    # fc1 weight (resident)
                    pl.BlockSpec((1, H), lambda i: (0, 0)),    # fc1 bias
                    pl.BlockSpec((H, Do), lambda i: (0, 0)),   # fc2 weight (resident)
                    pl.BlockSpec((1, Do), lambda i: (0, 0)),   # fc2 bias
                ],
                out_specs=pl.BlockSpec((tm, Do), lambda i: (i, 0)),
            ),
            compiler_params=pltpu.CompilerParams(
                dimension_semantics=("parallel",),
                vmem_limit_bytes=vmem_limit,
            ),
        )(x2d, gamma, beta, w1, b1, w2, b2)
        return out[:N] if N_pad != N else out

    # ---------------- tiled-hidden reduction path ---------------- #
    if tk is None:
        tk = _pick_hidden_tile(H, budget)
    assert H % tk == 0 and (tk % 128 == 0 or tk == H)

    use_acc_scratch = jnp.dtype(x2d.dtype) != jnp.dtype(jnp.float32)

    est = (2 * tm * D * itemsize                 # x (resident over k, re-fetched per i)
           + 2 * tm * Do * itemsize              # output tile
           + 2 * D * tk * mxu_itemsize           # fc1 weight slice (double-buffered)
           + 2 * tk * Do * mxu_itemsize          # fc2 weight slice (double-buffered)
           + 2 * tk * 4 + small_vecs             # fc1 bias slice + small vectors
           + tm * D * mxu_itemsize               # xn scratch
           + (tm * Do * 4 if use_acc_scratch else 0)
           + tm * tk * 4)                        # fc1/SiLU f32 intermediate
    vmem_limit = int(min(max(1.25 * est, 24 * _MiB), budget))

    scratch = [pltpu.VMEM((tm, D), mxu_dtype)]   # normalized x, MXU-ready
    if use_acc_scratch:
        scratch.append(pltpu.VMEM((tm, Do), jnp.float32))
        kernel = _resnet_tiled_kernel_acc
    else:
        kernel = _resnet_tiled_kernel_f32out

    # TODO(synk): if weight-slice DMA is ever exposed (small tm / small D), sweep
    # pipeline_mode=pl.Buffered(3) on the two weight BlockSpecs.
    out = pl.pallas_call(
        kernel,
        out_shape=jax.ShapeDtypeStruct((N_pad, Do), x2d.dtype),
        grid_spec=pltpu.PrefetchScalarGridSpec(
            num_scalar_prefetch=0,
            grid=(n_row_tiles, H // tk),
            in_specs=[
                pl.BlockSpec((tm, D), lambda i, k: (i, 0)),    # x rows (resident over k)
                pl.BlockSpec((1, D), lambda i, k: (0, 0)),     # ln gamma
                pl.BlockSpec((1, D), lambda i, k: (0, 0)),     # ln beta
                pl.BlockSpec((D, tk), lambda i, k: (0, k)),    # fc1 weight slice
                pl.BlockSpec((1, tk), lambda i, k: (0, k)),    # fc1 bias slice
                pl.BlockSpec((tk, Do), lambda i, k: (k, 0)),   # fc2 weight slice
                pl.BlockSpec((1, Do), lambda i, k: (0, 0)),    # fc2 bias
            ],
            out_specs=pl.BlockSpec((tm, Do), lambda i, k: (i, 0)),
            scratch_shapes=scratch,
        ),
        compiler_params=pltpu.CompilerParams(
            dimension_semantics=("parallel", "arbitrary"),
            vmem_limit_bytes=vmem_limit,
        ),
    )(x2d, gamma, beta, w1, b1, w2, b2)
    return out[:N] if N_pad != N else out


def resnet_module_apply(x, params, *, tm=None, tk=None, force_tiled=False):
    """x: (..., inp_dim) like the torch module; flattens leading dims to rows."""
    D = x.shape[-1]
    lead = x.shape[:-1]
    x2d = x.reshape((-1, D))
    out = resnet_module_forward(
        x2d,
        params["ln_gamma"], params["ln_beta"],
        params["w1"], params["b1"],
        params["w2"], params["b2"],
        tm=tm, tk=tk, force_tiled=force_tiled,
    )
    return out.reshape(lead + (D,))


# --------------------------------------------------------------------------- #
# Params / reference
# --------------------------------------------------------------------------- #
def init_params(key, inp_dim, hidden_dim=None, out_dim=None, dtype=jnp.float32):
    if hidden_dim is None:
        hidden_dim = inp_dim
    if out_dim is None:
        out_dim = inp_dim
    k1, k2, k3, k4 = jax.random.split(key, 4)
    # Torch defaults: LayerNorm(gamma=1, beta=0); Linear ~ U(-1/sqrt(fan_in), ...).
    bound1 = 1.0 / (inp_dim ** 0.5)
    bound2 = 1.0 / (hidden_dim ** 0.5)
    return {
        "ln_gamma": jnp.ones((1, inp_dim), dtype),
        "ln_beta": jnp.zeros((1, inp_dim), dtype),
        # stored as (in, out): transpose of torch's (out, in) Linear weight
        "w1": jax.random.uniform(k1, (inp_dim, hidden_dim), dtype, -bound1, bound1),
        "b1": jax.random.uniform(k2, (1, hidden_dim), dtype, -bound1, bound1),
        "w2": jax.random.uniform(k3, (hidden_dim, out_dim), dtype, -bound2, bound2),
        "b2": jax.random.uniform(k4, (1, out_dim), dtype, -bound2, bound2),
    }


def prepare_params(params, mxu_dtype=jnp.bfloat16):
    """Cast MXU weight operands ONCE (hoists the f32->bf16 HBM round-trip out of the
    per-forward path)."""
    p = dict(params)
    p["w1"] = params["w1"].astype(mxu_dtype)
    p["w2"] = params["w2"].astype(mxu_dtype)
    return p


def _reference(x, p, mxu_dtype=jnp.bfloat16):
    # Pure-JAX reference mirroring the kernel's bf16 MXU feed (f32 accumulation).
    xf = x.astype(jnp.float32)
    mean = jnp.mean(xf, axis=-1, keepdims=True)
    var = jnp.mean((xf - mean) ** 2, axis=-1, keepdims=True)
    xn = (xf - mean) * jax.lax.rsqrt(var + 1e-5) * p["ln_gamma"][0] + p["ln_beta"][0]
    h = jnp.dot(xn.astype(mxu_dtype), p["w1"].astype(mxu_dtype),
                preferred_element_type=jnp.float32) + p["b1"][0]
    h = h * jax.nn.sigmoid(h)
    y = jnp.dot(h.astype(mxu_dtype), p["w2"].astype(mxu_dtype),
                preferred_element_type=jnp.float32) + p["b2"][0]
    return xf + y


if __name__ == "__main__":
    key = jax.random.PRNGKey(0)
    kx, kp = jax.random.split(key)

    # Small but lane-dense shapes: D, H multiples of 128; 1024 rows.
    batch, seq, inp_dim, hidden_dim = 2, 512, 128, 512
    x = jax.random.normal(kx, (batch, seq, inp_dim), jnp.float32)
    master = init_params(kp, inp_dim, hidden_dim)
    params = prepare_params(master)          # bf16 weights, cast once (hoisted)
    ref = _reference(x, master)

    # 1) weights-resident fast path (weights DMA'd once, 1-D row-tile grid).
    out = jax.block_until_ready(resnet_module_apply(x, params))
    assert out.shape == x.shape
    err = float(jnp.max(jnp.abs(out - ref)))
    assert jnp.allclose(out, ref, atol=2e-2, rtol=2e-2), \
        f"resident path mismatch vs reference (max abs err {err})"

    # 2) tiled-hidden reduction path (what large D/H layers use); tk=256 -> 2 k-steps
    #    exercising init / accumulate-into-o_ref / finalize.
    out_t = jax.block_until_ready(
        resnet_module_apply(x, params, tm=256, tk=256, force_tiled=True))
    err_t = float(jnp.max(jnp.abs(out_t - ref)))
    assert jnp.allclose(out_t, ref, atol=2e-2, rtol=2e-2), \
        f"tiled path mismatch vs reference (max abs err {err_t})"

    print("KERNEL_OK")
</pallas_src>

<mosaic_0001>
module attributes {stable_mosaic.version = 11 : i64} {
  func.func @_resnet_resident_kernel(%arg0: i32, %arg1: memref<256x128xf32, #tpu.memory_space<vmem>>, %arg2: memref<1x128xf32, #tpu.memory_space<vmem>>, %arg3: memref<1x128xf32, #tpu.memory_space<vmem>>, %arg4: memref<128x512xbf16, #tpu.memory_space<vmem>>, %arg5: memref<1x512xf32, #tpu.memory_space<vmem>>, %arg6: memref<512x128xbf16, #tpu.memory_space<vmem>>, %arg7: memref<1x128xf32, #tpu.memory_space<vmem>>, %arg8: memref<256x128xf32, #tpu.memory_space<vmem>>) attributes {dimension_semantics = [#tpu.dimension_semantics<parallel>], iteration_bounds = array<i64: 4>, scalar_prefetch = 0 : i64, scratch_operands = 0 : i64, tpu.core_type = #tpu.core_type<tc>, window_params = [{transform_indices = @transform_0, window_bounds = array<i64: 256, 128>}, {pipeline_mode = #tpu.pipeline_mode<synchronous>, transform_indices = @transform_1, window_bounds = array<i64: 1, 128>}, {pipeline_mode = #tpu.pipeline_mode<synchronous>, transform_indices = @transform_2, window_bounds = array<i64: 1, 128>}, {pipeline_mode = #tpu.pipeline_mode<synchronous>, transform_indices = @transform_3, window_bounds = array<i64: 128, 512>}, {pipeline_mode = #tpu.pipeline_mode<synchronous>, transform_indices = @transform_4, window_bounds = array<i64: 1, 512>}, {pipeline_mode = #tpu.pipeline_mode<synchronous>, transform_indices = @transform_5, window_bounds = array<i64: 512, 128>}, {pipeline_mode = #tpu.pipeline_mode<synchronous>, transform_indices = @transform_6, window_bounds = array<i64: 1, 128>}, {transform_indices = @transform_7, window_bounds = array<i64: 256, 128>}]} {
    %c0 = arith.constant 0 : index
    %c0_0 = arith.constant 0 : index
    %0 = vector.load %arg1[%c0, %c0_0] : memref<256x128xf32, #tpu.memory_space<vmem>>, vector<256x128xf32>
    %c0_1 = arith.constant 0 : index
    %c0_2 = arith.constant 0 : index
    %1 = vector.load %arg2[%c0_1, %c0_2] : memref<1x128xf32, #tpu.memory_space<vmem>>, vector<1x128xf32>
    %c0_3 = arith.constant 0 : index
    %c0_4 = arith.constant 0 : index
    %2 = vector.load %arg3[%c0_3, %c0_4] : memref<1x128xf32, #tpu.memory_space<vmem>>, vector<1x128xf32>
    %cst = arith.constant dense<0.000000e+00> : vector<256xf32>
    %3 = vector.multi_reduction <add>, %0, %cst [1] : vector<256x128xf32> to vector<256xf32>
    %4 = vector.shape_cast %3 : vector<256xf32> to vector<256x1xf32>
    %5 = arith.mulf %0, %0 : vector<256x128xf32>
    %cst_5 = arith.constant dense<0.000000e+00> : vector<256xf32>
    %6 = vector.multi_reduction <add>, %5, %cst_5 [1] : vector<256x128xf32> to vector<256xf32>
    %7 = vector.shape_cast %6 : vector<256xf32> to vector<256x1xf32>
    %cst_6 = arith.constant 7.812500e-03 : f32
    %8 = vector.broadcast %cst_6 : f32 to vector<256x1xf32>
    %9 = arith.mulf %4, %8 : vector<256x1xf32>
    %cst_7 = arith.constant 7.812500e-03 : f32
    %10 = vector.broadcast %cst_7 : f32 to vector<256x1xf32>
    %11 = arith.mulf %7, %10 : vector<256x1xf32>
    %12 = arith.mulf %9, %9 : vector<256x1xf32>
    %13 = arith.subf %11, %12 : vector<256x1xf32>
    %14 = vector.broadcast %9 : vector<256x1xf32> to vector<256x128xf32>
    %15 = arith.subf %0, %14 : vector<256x128xf32>
    %cst_8 = arith.constant 9.99999974E-6 : f32
    %16 = vector.broadcast %cst_8 : f32 to vector<256x1xf32>
    %17 = arith.addf %13, %16 : vector<256x1xf32>
    %18 = math.rsqrt %17 : vector<256x1xf32>
    %19 = vector.broadcast %18 : vector<256x1xf32> to vector<256x128xf32>
    %20 = arith.mulf %15, %19 : vector<256x128xf32>
    %21 = vector.broadcast %1 : vector<1x128xf32> to vector<256x128xf32>
    %22 = arith.mulf %20, %21 : vector<256x128xf32>
    %23 = vector.broadcast %2 : vector<1x128xf32> to vector<256x128xf32>
    %24 = arith.addf %22, %23 : vector<256x128xf32>
    %25 = arith.truncf %24 : vector<256x128xf32> to vector<256x128xbf16>
    %c0_9 = arith.constant 0 : index
    %c0_10 = arith.constant 0 : index
    %26 = vector.load %arg4[%c0_9, %c0_10] : memref<128x512xbf16, #tpu.memory_space<vmem>>, vector<128x512xbf16>
    %cst_11 = arith.constant dense<0.000000e+00> : vector<256x512xf32>
    %27 = tpu.matmul %25, %26, %cst_11 {dimension_numbers = #tpu.dot_dimension_numbers<[1], [0], [0], [1], [0, 0, 1, 1], [], []>} : vector<256x128xbf16>, vector<128x512xbf16>, vector<256x512xf32> -> vector<256x512xf32>
    %c0_12 = arith.constant 0 : index
    %c0_13 = arith.constant 0 : index
    %28 = vector.load %arg5[%c0_12, %c0_13] : memref<1x512xf32, #tpu.memory_space<vmem>>, vector<1x512xf32>
    %29 = vector.broadcast %28 : vector<1x512xf32> to vector<256x512xf32>
    %30 = arith.addf %27, %29 : vector<256x512xf32>
    %31 = arith.negf %30 : vector<256x512xf32>
    %32 = math.exp %31 : vector<256x512xf32>
    %cst_14 = arith.constant 1.000000e+00 : f32
    %33 = vector.broadcast %cst_14 : f32 to vector<256x512xf32>
    %34 = arith.addf %33, %32 : vector<256x512xf32>
    %35 = arith.divf %33, %34 : vector<256x512xf32>
    %36 = arith.mulf %30, %35 : vector<256x512xf32>
    %37 = arith.truncf %36 : vector<256x512xf32> to vector<256x512xbf16>
    %c0_15 = arith.constant 0 : index
    %c0_16 = arith.constant 0 : index
    %38 = vector.load %arg6[%c0_15, %c0_16] : memref<512x128xbf16, #tpu.memory_space<vmem>>, vector<512x128xbf16>
    %cst_17 = arith.constant dense<0.000000e+00> : vector<256x128xf32>
    %39 = tpu.matmul %37, %38, %cst_17 {dimension_numbers = #tpu.dot_dimension_numbers<[1], [0], [0], [1], [0, 0, 1, 1], [], []>} : vector<256x512xbf16>, vector<512x128xbf16>, vector<256x128xf32> -> vector<256x128xf32>
    %c0_18 = arith.constant 0 : index
    %c0_19 = arith.constant 0 : index
    %40 = vector.load %arg7[%c0_18, %c0_19] : memref<1x128xf32, #tpu.memory_space<vmem>>, vector<1x128xf32>
    %41 = vector.broadcast %40 : vector<1x128xf32> to vector<256x128xf32>
    %42 = arith.addf %39, %41 : vector<256x128xf32>
    %43 = arith.addf %0, %42 : vector<256x128xf32>
    %c0_20 = arith.constant 0 : index
    %c0_21 = arith.constant 0 : index
    %44 = vector.load %arg8[%c0_20, %c0_21] : memref<256x128xf32, #tpu.memory_space<vmem>>, vector<256x128xf32>
    tpu.vector_store %arg8[%c0_20, %c0_21], %43 {strides = array<i32>} : memref<256x128xf32, #tpu.memory_space<vmem>>, vector<256x128xf32>,
    return
  }
  func.func @transform_0(%arg0: i32) -> (i32, i32) {
    %c0_i32 = arith.constant 0 : i32
    %c0_i32_0 = arith.constant 0 : i32
    return %arg0, %c0_i32 : i32, i32
  }
  func.func @transform_1(%arg0: i32) -> (i32, i32) {
    %c0_i32 = arith.constant 0 : i32
    %c0_i32_0 = arith.constant 0 : i32
    %c0_i32_1 = arith.constant 0 : i32
    return %c0_i32, %c0_i32_0 : i32, i32
  }
  func.func @transform_2(%arg0: i32) -> (i32, i32) {
    %c0_i32 = arith.constant 0 : i32
    %c0_i32_0 = arith.constant 0 : i32
    %c0_i32_1 = arith.constant 0 : i32
    return %c0_i32, %c0_i32_0 : i32, i32
  }
  func.func @transform_3(%arg0: i32) -> (i32, i32) {
    %c0_i32 = arith.constant 0 : i32
    %c0_i32_0 = arith.constant 0 : i32
    %c0_i32_1 = arith.constant 0 : i32
    return %c0_i32, %c0_i32_0 : i32, i32
  }
  func.func @transform_4(%arg0: i32) -> (i32, i32) {
    %c0_i32 = arith.constant 0 : i32
    %c0_i32_0 = arith.constant 0 : i32
    %c0_i32_1 = arith.constant 0 : i32
    return %c0_i32, %c0_i32_0 : i32, i32
  }
  func.func @transform_5(%arg0: i32) -> (i32, i32) {
    %c0_i32 = arith.constant 0 : i32
    %c0_i32_0 = arith.constant 0 : i32
    %c0_i32_1 = arith.constant 0 : i32
    return %c0_i32, %c0_i32_0 : i32, i32
  }
  func.func @transform_6(%arg0: i32) -> (i32, i32) {
    %c0_i32 = arith.constant 0 : i32
    %c0_i32_0 = arith.constant 0 : i32
    %c0_i32_1 = arith.constant 0 : i32
    return %c0_i32, %c0_i32_0 : i32, i32
  }
  func.func @transform_7(%arg0: i32) -> (i32, i32) {
    %c0_i32 = arith.constant 0 : i32
    %c0_i32_0 = arith.constant 0 : i32
    return %arg0, %c0_i32 : i32, i32
  }
}

</mosaic_0001>

<bundles_post_ra>
// kernel: tpu_custom_call.1
= control target key start
LH: loop header
LB: loop body
LE: loop exit
PB: predicated region body
PF: predicated region fallthrough
CT: control target
= control target key end

     0   :  { %s12988_s0 = inlined_call_operand.hbm [shape: f32[1024,128], index: 0, kind: input, shape index: {}]   ;;  %s12989_s1 = inlined_call_operand.hbm [shape: f32[1,128], index: 1, kind: input, shape index: {}]   ;;  %s12990_s2 = inlined_call_operand.vmem [shape: f32[1,128], index: 2, kind: input, shape index: {}]   ;;  %s12991_s3 = inlined_call_operand.hbm [shape: bf16[128,512], index: 3, kind: input, shape index: {}]   ;;  %s12992_s4 = inlined_call_operand.hbm [shape: f32[1,512], index: 4, kind: input, shape index: {}]   ;;  %s12993_s5 = inlined_call_operand.hbm [shape: bf16[512,128], index: 5, kind: input, shape index: {}]   ;;  %s12994_s6 = inlined_call_operand.vmem [shape: f32[1,128], index: 6, kind: input, shape index: {}]   ;;  %s12995_s7 = inlined_call_operand.hbm [shape: f32[1024,128], index: 7, kind: output, shape index: {}]  }
   0x1   :  { %13047 = sst [smem:[#allocation59_spill]] %s12989_s1 }
   0x2   :  { %12 = vsyncpa [#allocation3], 0 }
   0x3   :  { %14 = vsyncpa [#allocation3 + $0x1], 0 }
   0x4   :  { %15 = vsyncpa [#allocation6], 0 }
   0x5   :  { %16 = vsyncpa [#allocation9], 0 }
   0x6   :  { %17 = vsyncpa [#allocation4], 0 }
   0x7   :  { %19 = vsyncpa [#allocation4 + $0x1], 0  ;;  %s6661_s24 = smov 0   ;;  %s6663_s25 = smov 0  }
   0x8   :  { %s6665_s26 = smov 0   ;;  %s6667_s27 = smov 0  }
   0x9 LB: > { %s6682_s28 = sadd.s32 4294967295, %s6607_s27   ;;  %s5176_s29 = sadd.s32 4294967294, %s6607_s27   ;;  %s6607_s27 = sphi %s6667_s27, %s13866_s27   ;;  %s6603_s26 = sphi %s6665_s26, %s13865_s26   ;;  %s6599_s25 = sphi %s6663_s25, %s13864_s25   ;;  %s6595_s24 = sphi %s6661_s24, %s13863_s24  }
   0xa   : > { %p45_p0 = scmp.ne.s32.totalorder %s6599_s25, %s6595_s24  ;;  %p46_p1 = scmp.eq.s32.totalorder %s6682_s28, 0 }
   0xb   : > { %p195_p2 = scmp.eq.s32.totalorder %s6682_s28, 3  ;;  %p201_p3 = scmp.eq.s32.totalorder %s5176_s29, 3 }
   0xc   : > { %p6691_p4 = por %p46_p1, %p45_p0  ;;  %p5177_p5 = scmp.ge.s32.totalorder %s6607_s27, 1 }
   0xd   : > { %p6696_p6 = por %p201_p3, %p45_p0  ;;  %p208_p7 = scmp.lt.s32.totalorder %s6607_s27, 5 }
   0xe   : > { %s13050_s1 = sld [smem:[#allocation59_spill]]  ;;  %s6609_s13 = smov [#allocation5]  }
   0xf   : > { %p6704_p8 = pnand %p5177_p5, %p208_p7  ;;  %s222_s14 = sshll.u32 %s6609_s13, 4  ;;  %s223_s14 = int_to_ptr.vmem [resolvable:$true] %s222_s14 }
  0x10   : > { %s249_s17 = sshll.u32 %s12992_s4, 4  ;;  %s234_s21 = sshll.u32 %s12991_s3, 4  ;;  %s250_s17 = int_to_ptr.hbm [resolvable:$true] %s249_s17  ;;  %s235_s21 = int_to_ptr.hbm [resolvable:$true] %s234_s21 }
  0x11   : > { %p5668_p9 = pneg %p6704_p8  ;;  %s6610_s22 = smov [#allocation8]  }
  0x12   : > { %s251_s23 = sshll.u32 %s6610_s22, 4  ;;  %s6611_s29 = smov [#allocation7]   ;;  %s252_s23 = int_to_ptr.vmem [resolvable:$true] %s251_s23 }
  0x13   : > { %p6715_p10 = pnand %p5668_p9, %p46_p1  ;;  %s236_s9 = sshll.u32 %s6611_s29, 4  ;;  %s237_s9 = int_to_ptr.vmem [resolvable:$true] %s236_s9 }
  0x14   : > { %s220_s11 = sshll.u32 %s13050_s1, 4  ;;  %s260_s15 = sshll.u32 %s12993_s5, 4  ;;  %s221_s11 = int_to_ptr.hbm [resolvable:$true] %s220_s11  ;;  %s261_s15 = int_to_ptr.hbm [resolvable:$true] %s260_s15 }
  0x15   : > { %5671 = dma.hbm_to_vmem [thread:$0]  (!%p6715_p10), %s221_s11, 16, %s223_s14, [#allocation6]  }
  0x16   : > { %5677 = dma.hbm_to_vmem [thread:$0]  (!%p6715_p10), %s250_s17, 64, %s252_s23, [#allocation9]  }
  0x17   : > { %s6612_s16 = smov 256   ;;  %s6613_s11 = smov 16  }
  0x18   : > { %5674 = dma.hbm_to_vmem [thread:$0]  (!%p6715_p10), %s235_s21, 4096, %s237_s9, [#allocation6], %s6612_s16, %s6612_s16, %s6613_s11  }
  0x19   : > { %s6614_s14 = smov [#allocation10]   ;;  %s6615_s19 = smov 64  }
  0x1a   : > { %s262_s17 = sshll.u32 %s6614_s14, 4  ;;  %s6616_s20 = smov 4   ;;  %s263_s17 = int_to_ptr.vmem [resolvable:$true] %s262_s17 }
  0x1b   : > { %5680 = dma.hbm_to_vmem [thread:$0]  (!%p6715_p10), %s261_s15, 4096, %s263_s17, [#allocation9], %s6615_s19, %s6615_s19, %s6616_s20  }
  0x1c   : > { %s6734_s22 = sadd.s32 1, %s6607_s27   ;;  %s32_s29 = sadd.s32 1, %s6603_s26 }
  0x1d   : > { %s29_s23 = ssub.s32 %s6607_s27, %s6734_s22  ;;  %p39_p12 = scmp.ne.s32.totalorder %s6603_s26, %s6599_s25 }
  0x1e   : > { %p30_p11 = scmp.eq.s32.totalorder %s29_s23, 0  ;;  %p40_p13 = scmp.eq.s32.totalorder %s6607_s27, 0 }
  0x1f   : > { %p6747_p3 = por %p195_p2, %p39_p12  ;;  %p5693_p5 = scmp.lt.s32.totalorder %s6607_s27, 4 }
  0x20   : > { %s6743_s21 = scalar_select %p30_p11, %s6603_s26, %s32_s29  }
  0x21   : > { %p41_p0 = por %p40_p13, %p39_p12  ;;  %s279_s10 = sand.u32 1, %s6603_s26  }
  0x22   : > { %s5183_s18 = sshll.u32 %s279_s10, 8  ;;  %s5582_s13 = sshll.u32 %s6607_s27, 8 }
  0x23   : > { %s288_s11 = scalar_lea.hbm %s12988_s0, %s5582_s13  ;;  %s283_s14 = scalar_lea.vmem [#allocation2], %s5183_s18 }
  0x24   : > { %s291_s17 = sshll.u32 %s283_s14, 4  ;;  %s289_s19 = sshll.u32 %s288_s11, 4  ;;  %s292_s17 = int_to_ptr.vmem [resolvable:$true] %s291_s17  ;;  %s290_s19 = int_to_ptr.hbm [resolvable:$true] %s289_s19 }
  0x25   : > { %p6757_p7 = pnand %p5693_p5, %p41_p0  ;;  %s280_s23 = scalar_lea.sflag [#allocation3], %s279_s10 }
  0x26   : > { %s6503_s29 = sshra.s32 %s290_s19, 4  ;;  %s6510_s15 = scalar_lea.hbm %s12988_s0, 1024  ;;  %s6504_s29 = int_to_ptr.hbm [resolvable:$true] %s6503_s29 }
  0x27   : > { %s6505_s1 = scalar_lea.hbm %s6504_s29, 256  ;;  %p6507_p9 = pneg %p6757_p7 }
  0x28   : > { %p6506_p2 = scmp.ne.s32.totalorder %s6504_s29, %s6505_s1  ;;  %p6511_p12 = scmp.lt.s32.totalorder %s6504_s29, %s12988_s0 }
  0x29   : > { %p6512_p13 = scmp.lt.s32.totalorder %s6510_s15, %s6505_s1 }
  0x2a   : > { %p6508_p10 = pnand %p6507_p9, %p6506_p2 }
  0x2b   : > { %p6513_p0 = por %p6512_p13, %p6511_p12 }
  0x2c   : > { %p6509_p11 = pneg %p6508_p10 }
  0x2e   : > { %p6514_p5 = pnand %p6513_p0, %p6509_p11 }
  0x30   : > { %6517 = shalt.err (!%p6514_p5)
}
  0x31   : > { %s6617_s10 = smov 128   ;;  %s6618_s14 = smov 8  }
  0x32   : > { %5684 = dma.hbm_to_vmem [thread:$0]  (!%p6757_p7), %s290_s19, 4096, %s292_s17, %s280_s23, %s6617_s10, %s6617_s10, %s6618_s14  }
  0x33   : > { %303 = sbr.rel (%p6704_p8) target bundleno = 1191 (0x4a7), region = 48 }
  0x38   : > { %s6774_s13 = sand.u32 1, %s6599_s25  }
  0x39   : > { %s5187_s29 = sshll.u32 %s6774_s13, 8  ;;  %s306_s1 = scalar_lea.sflag [#allocation3], %s6774_s13 }
  0x3a   : > { %s6780_s18 = scalar_lea.vmem [#allocation2], %s5187_s29 }
  0x3b   : > { %6578 = dma.done.wait (%p6691_p4), %s306_s1, 4096  }
  0x3c   : > { %6580 = vsyncadd (%p6691_p4), %s306_s1, 4294963200 }
  0x3d   : > { %6582 = dma.done.wait (%p46_p1), [#allocation6], 4112  }
  0x3e   : > { %6584 = vsyncadd (%p46_p1), [#allocation6], 4294963184 }
  0x3f   : > { %6586 = dma.done.wait (%p46_p1), [#allocation9], 4160  }
  0x40   : > { %6588 = vsyncadd (%p46_p1), [#allocation9], 4294963136  ;;  %v6795_v0 = vld [vmem:[%s6780_s18] sm:$0xff]  ;;  %v6798_v1 = vld [vmem:[%s6780_s18 + $0x10] sm:$0xff]  ;;  %s12424_s11 = scalar_lea.vmem [#allocation11], %s5187_s29  ;;  %s5647_s29 = sshll.u32 %s6682_s28, 8 }
  0x41   : > { %397 = vadd.xlane.f32.xlu0 %v6795_v0  ;;  %401 = vadd.xlane.f32.xlu2 %v6798_v1  ;;  %v461_v2 = vmul.f32 %v6795_v0, %v6795_v0  ;;  %v6805_v3 = vld [vmem:[%s6780_s18 + $0x8] sm:$0xff]  ;;  %v6808_v4 = vld [vmem:[%s6780_s18 + $0x18] sm:$0xff]  ;;  %v463_v6 = vmul.f32 %v6798_v1, %v6798_v1  ;;  %v6817_v7 = vld [vmem:[%s6780_s18 + $0x20] sm:$0xff]  ;;  %s5061_s12 = scalar_lea.hbm %s12995_s7, %s5647_s29  ;;  %s5062_s17 = sshll.u32 %s12424_s11, 4  ;;  %s5063_s17 = int_to_ptr.vmem [resolvable:$true] %s5062_s17 }
  0x42   : > { %v462_v5 = vmul.f32 %v6805_v3, %v6805_v3  ;;  %v464_v8 = vmul.f32 %v6808_v4, %v6808_v4  ;;  %v6823_v9 = vld [vmem:[%s6780_s18 + $0x28] sm:$0xff]  ;;  %v465_v11 = vmul.f32 %v6817_v7, %v6817_v7  ;;  %v6831_v12 = vld [vmem:[%s6780_s18 + $0x30] sm:$0xff]  ;;  %v6836_v14 = vld [vmem:[%s6780_s18 + $0x38] sm:$0xff]  ;;  %s5064_s19 = sshll.u32 %s5061_s12, 4  ;;  %s5050_s28 = scalar_lea.sflag [#allocation4], %s6774_s13  ;;  %s5065_s19 = int_to_ptr.hbm [resolvable:$true] %s5064_s19 }
  0x43   : > { %493 = vadd.xlane.f32.xlu1 %v461_v2  ;;  %v466_v10 = vmul.f32 %v6823_v9, %v6823_v9  ;;  %v467_v13 = vmul.f32 %v6831_v12, %v6831_v12  ;;  %v468_v15 = vmul.f32 %v6836_v14, %v6836_v14  ;;  %v6843_v16 = vld [vmem:[%s6780_s18 + $0x48] sm:$0xff]  ;;  %v371_v17 = vld [vmem:[%s6780_s18 + $0x40] sm:$0xff]  ;;  %v373_v19 = vld [vmem:[%s6780_s18 + $0x50] sm:$0xff]  ;;  %s6547_s20 = sshra.s32 %s5065_s19, 4  ;;  %s6553_s10 = scalar_lea.hbm %s12995_s7, 1024  ;;  %s6548_s20 = int_to_ptr.hbm [resolvable:$true] %s6547_s20 }
  0x44   : > { %v469_v18 = vmul.f32 %v371_v17, %v371_v17  ;;  %v470_v20 = vmul.f32 %v6843_v16, %v6843_v16  ;;  %v374_v21 = vld [vmem:[%s6780_s18 + $0x58] sm:$0xff]  ;;  %v471_v23 = vmul.f32 %v373_v19, %v373_v19  ;;  %v375_v24 = vld [vmem:[%s6780_s18 + $0x60] sm:$0xff]  ;;  %v376_v26 = vld [vmem:[%s6780_s18 + $0x68] sm:$0xff]  ;;  %s6549_s23 = scalar_lea.hbm %s6548_s20, 256  ;;  %p6554_p7 = scmp.lt.s32.totalorder %s6548_s20, %s12995_s7 }
  0x45   : > { %v472_v22 = vmul.f32 %v374_v21, %v374_v21  ;;  %v473_v25 = vmul.f32 %v375_v24, %v375_v24  ;;  %v474_v27 = vmul.f32 %v376_v26, %v376_v26  ;;  %v378_v28 = vld [vmem:[%s6780_s18 + $0x78] sm:$0xff]  ;;  %v377_v29 = vld [vmem:[%s6780_s18 + $0x70] sm:$0xff]  ;;  %v379_v31 = vld [vmem:[%s6780_s18 + $0x80] sm:$0xff]  ;;  %p6550_p1 = scmp.ne.s32.totalorder %s6548_s20, %s6549_s23  ;;  %p6555_p2 = scmp.lt.s32.totalorder %s6553_s10, %s6549_s23 }
  0x46   : > { %v475_v30 = vmul.f32 %v377_v29, %v377_v29  ;;  %v476_v32 = vmul.f32 %v378_v28, %v378_v28  ;;  %v380_v33 = vld [vmem:[%s6780_s18 + $0x88] sm:$0xff]  ;;  %v477_v35 = vmul.f32 %v379_v31, %v379_v31  ;;  %v381_v36 = vld [vmem:[%s6780_s18 + $0x90] sm:$0xff]  ;;  %v5307_v38 = vld [vmem:[#allocation7 + $0xe0] sm:$0xf] }
  0x47   : > { %v478_v34 = vmul.f32 %v380_v33, %v380_v33  ;;  %v479_v37 = vmul.f32 %v381_v36, %v381_v36  ;;  %v5613_v39 = vld [vmem:[#allocation7 + $0xec] sm:$0xf0]  ;;  %v5611_v40 = vld [vmem:[#allocation7 + $0xe4] sm:$0xf]  ;;  %v5309_v42 = vld [vmem:[#allocation7 + $0xf0] sm:$0xf0]  ;;  %p6551_p4 = pnand %p6550_p1, %p6747_p3  ;;  %p6556_p9 = por %p6555_p2, %p6554_p7 }
  0x48   : > { %v5308_v41 = vor.u32 %v5613_v39, %v5307_v38  ;;  %v5315_v43 = vld [vmem:[#allocation7 + $0xe8] sm:$0xf]  ;;  %v5614_v44 = vld [vmem:[#allocation7 + $0xf4] sm:$0xf0]  ;;  %v5312_v46 = vor.u32 %v5611_v40, %v5309_v42  ;;  %v5612_v48 = vld [vmem:[#allocation7 + $0xec] sm:$0xf] }
  0x49   : > { %399 = vadd.xlane.f32.xlu0 %v6805_v3  ;;  %403 = vadd.xlane.f32.xlu2 %v6808_v4  ;;  %v382_v45 = vld [vmem:[%s6780_s18 + $0x98] sm:$0xff]  ;;  %v5316_v47 = vor.u32 %v5614_v44, %v5315_v43  ;;  %v5291_v51 = vld [vmem:[#allocation7 + $0xc0] sm:$0xf]  ;;  %v5609_v52 = vld [vmem:[#allocation7 + $0xcc] sm:$0xf0]  ;;  %p6552_p8 = pneg %p6551_p4 }
  0x4a   : > { %v5317_v49 = vld [vmem:[#allocation7 + $0xf8] sm:$0xf0]  ;;  %1389 = vmatpush.bf16.msra.mxu0 %v5308_v41  ;;  %1478 = vmatpush.bf16.msra.mxu1 %v5312_v46  ;;  %v5607_v53 = vld [vmem:[#allocation7 + $0xc4] sm:$0xf]  ;;  %v5292_v54 = vor.u32 %v5609_v52, %v5291_v51  ;;  %v5293_v55 = vld [vmem:[#allocation7 + $0xd0] sm:$0xf0]  ;;  %v480_v62 = vmul.f32 %v382_v45, %v382_v45 }
  0x4b   : > { %495 = vadd.xlane.f32.xlu1 %v462_v5  ;;  %v5320_v50 = vor.u32 %v5612_v48, %v5317_v49  ;;  %1567 = vmatpush.bf16.msra.mxu2 %v5316_v47  ;;  %v5299_v56 = vld [vmem:[#allocation7 + $0xc8] sm:$0xf]  ;;  %v5610_v57 = vld [vmem:[#allocation7 + $0xd4] sm:$0xf0]  ;;  %v5296_v58 = vor.u32 %v5607_v53, %v5293_v55  ;;  %v5608_v60 = vld [vmem:[#allocation7 + $0xcc] sm:$0xf]  ;;  %p6557_p10 = pnand %p6556_p9, %p6552_p8 }
  0x4c   : > { %v5300_v59 = vor.u32 %v5610_v57, %v5299_v56  ;;  %v5301_v61 = vld [vmem:[#allocation7 + $0xd8] sm:$0xf0]  ;;  %v5275_v2 = vld [vmem:[#allocation7 + $0xa0] sm:$0xf]  ;;  %v5605_v5 = vld [vmem:[#allocation7 + $0xac] sm:$0xf0] }
  0x4d   : > { %1656 = vmatpush.bf16.msra.mxu3 %v5320_v50  ;;  %v5304_v63 = vor.u32 %v5608_v60, %v5301_v61  ;;  %v5595_v38 = vld [vmem:[#allocation7 + $0x64] sm:$0xf]  ;;  %v5245_v41 = vld [vmem:[#allocation7 + $0x70] sm:$0xf0]  ;;  %v5251_v42 = vld [vmem:[#allocation7 + $0x68] sm:$0xf] }
  0x4e   : > { %1390 = vmatpush.bf16.msra.mxu0 %v5292_v54  ;;  %1479 = vmatpush.bf16.msra.mxu1 %v5296_v58  ;;  %v5598_v43 = vld [vmem:[#allocation7 + $0x74] sm:$0xf0]  ;;  %v5248_v44 = vor.u32 %v5595_v38, %v5245_v41  ;;  %v5596_v46 = vld [vmem:[#allocation7 + $0x6c] sm:$0xf]  ;;  %v5253_v47 = vld [vmem:[#allocation7 + $0x78] sm:$0xf0] }
  0x4f   : > { %1568 = vmatpush.bf16.msra.mxu2 %v5300_v59  ;;  %v5256_v48 = vor.u32 %v5596_v46, %v5253_v47  ;;  %v5227_v49 = vld [vmem:[#allocation7 + $0x40] sm:$0xf]  ;;  %v5593_v50 = vld [vmem:[#allocation7 + $0x4c] sm:$0xf0]  ;;  %v5591_v51 = vld [vmem:[#allocation7 + $0x44] sm:$0xf] }
  0x50   : > { %v5228_v52 = vor.u32 %v5593_v50, %v5227_v49  ;;  %v5229_v53 = vld [vmem:[#allocation7 + $0x50] sm:$0xf0]  ;;  %v5235_v54 = vld [vmem:[#allocation7 + $0x48] sm:$0xf]  ;;  %v5594_v55 = vld [vmem:[#allocation7 + $0x54] sm:$0xf0] }
  0x51   : > { %497 = vadd.xlane.f32.xlu0 %v463_v6  ;;  %405 = vadd.xlane.f32.xlu2 %v6817_v7  ;;  %v5603_v6 = vld [vmem:[#allocation7 + $0xa4] sm:$0xf]  ;;  %v5232_v58 = vor.u32 %v5591_v51, %v5229_v53  ;;  %v5236_v59 = vor.u32 %v5594_v55, %v5235_v54  ;;  %v5592_v60 = vld [vmem:[#allocation7 + $0x4c] sm:$0xf]  ;;  %v5237_v61 = vld [vmem:[#allocation7 + $0x58] sm:$0xf0] }
  0x52   : > { %1657 = vmatpush.bf16.msra.mxu3 %v5304_v63  ;;  %v5240_v63 = vor.u32 %v5592_v60, %v5237_v61  ;;  %v5586_v38 = vld [vmem:[#allocation7 + $0x14] sm:$0xf0] }
  0x53   : > { %499 = vadd.xlane.f32.xlu1 %v464_v8  ;;  %v383_v8 = vld [vmem:[%s6780_s18 + $0xa0] sm:$0xff] }
  0x59   : > { %407 = vadd.xlane.f32.xlu0 %v6823_v9  ;;  %503 = vadd.xlane.f32.xlu2 %v466_v10  ;;  %v5276_v10 = vor.u32 %v5605_v5, %v5275_v2 }
  0x5b   : > { %501 = vadd.xlane.f32.xlu1 %v465_v11  ;;  %v5277_v11 = vld [vmem:[#allocation7 + $0xb0] sm:$0xf0]  ;;  %1391 = vmatpush.bf16.msra.mxu0 %v5276_v10  ;;  %v5589_v10 = vld [vmem:[#allocation7 + $0x2c] sm:$0xf0] }
  0x61   : > { %409 = vadd.xlane.f32.xlu0 %v6831_v12  ;;  %505 = vadd.xlane.f32.xlu2 %v467_v13  ;;  %v5283_v13 = vld [vmem:[#allocation7 + $0xa8] sm:$0xf] }
  0x63   : > { %411 = vadd.xlane.f32.xlu1 %v6836_v14 }
  0x69   : > { %507 = vadd.xlane.f32.xlu0 %v468_v15  ;;  %415 = vadd.xlane.f32.xlu2 %v6843_v16  ;;  %v5280_v15 = vor.u32 %v5603_v6, %v5277_v11  ;;  %v385_v11 = vld [vmem:[%s6780_s18 + $0xb0] sm:$0xff] }
  0x6b   : > { %413 = vadd.xlane.f32.xlu1 %v371_v17  ;;  %v5606_v17 = vld [vmem:[#allocation7 + $0xb4] sm:$0xf0]  ;;  %1480 = vmatpush.bf16.msra.mxu1 %v5280_v15  ;;  %v5587_v15 = vld [vmem:[#allocation7 + $0x24] sm:$0xf] }
  0x71   : > { %509 = vadd.xlane.f32.xlu0 %v469_v18  ;;  %417 = vadd.xlane.f32.xlu2 %v373_v19  ;;  %v5604_v18 = vld [vmem:[#allocation7 + $0xac] sm:$0xf]  ;;  %v5285_v19 = vld [vmem:[#allocation7 + $0xb8] sm:$0xf0] }
  0x73   : > { %511 = vadd.xlane.f32.xlu1 %v470_v20  ;;  %v5284_v20 = vor.u32 %v5606_v17, %v5283_v13  ;;  %v5213_v17 = vld [vmem:[#allocation7 + $0x30] sm:$0xf0] }
  0x75   : > { %1569 = vmatpush.bf16.msra.mxu2 %v5284_v20  ;;  %v5219_v20 = vld [vmem:[#allocation7 + $0x28] sm:$0xf] }
  0x79   : > { %419 = vadd.xlane.f32.xlu0 %v374_v21  ;;  %515 = vadd.xlane.f32.xlu2 %v472_v22  ;;  %v5288_v21 = vor.u32 %v5604_v18, %v5285_v19  ;;  %v5259_v22 = vld [vmem:[#allocation7 + $0x80] sm:$0xf]  ;;  %v5216_v19 = vor.u32 %v5587_v15, %v5213_v17 }
  0x7b   : > { %513 = vadd.xlane.f32.xlu1 %v471_v23  ;;  %v5601_v23 = vld [vmem:[#allocation7 + $0x8c] sm:$0xf0]  ;;  %1658 = vmatpush.bf16.msra.mxu3 %v5288_v21  ;;  %v5590_v21 = vld [vmem:[#allocation7 + $0x34] sm:$0xf0] }
  0x81   : > { %421 = vadd.xlane.f32.xlu0 %v375_v24  ;;  %517 = vadd.xlane.f32.xlu2 %v473_v25  ;;  %v5599_v24 = vld [vmem:[#allocation7 + $0x84] sm:$0xf]  ;;  %v5260_v25 = vor.u32 %v5601_v23, %v5259_v22  ;;  %v5588_v22 = vld [vmem:[#allocation7 + $0x2c] sm:$0xf]  ;;  %v5220_v23 = vor.u32 %v5590_v21, %v5219_v20 }
  0x83   : > { %423 = vadd.xlane.f32.xlu1 %v376_v26  ;;  %v5261_v26 = vld [vmem:[#allocation7 + $0x90] sm:$0xf0]  ;;  %1392 = vmatpush.bf16.msra.mxu0 %v5260_v25 }
  0x89   : > { %519 = vadd.xlane.f32.xlu0 %v474_v27  ;;  %427 = vadd.xlane.f32.xlu2 %v378_v28  ;;  %v5267_v27 = vld [vmem:[#allocation7 + $0x88] sm:$0xf]  ;;  %v5602_v28 = vld [vmem:[#allocation7 + $0x94] sm:$0xf0] }
  0x8b   : > { %425 = vadd.xlane.f32.xlu1 %v377_v29  ;;  %v5264_v29 = vor.u32 %v5599_v24, %v5261_v26  ;;  %v5221_v24 = vld [vmem:[#allocation7 + $0x38] sm:$0xf0] }
  0x8d   : > { %1481 = vmatpush.bf16.msra.mxu1 %v5264_v29  ;;  %v5195_v29 = vld [vmem:[#allocation7] sm:$0xf] }
  0x91   : > { %521 = vadd.xlane.f32.xlu0 %v475_v30  ;;  %429 = vadd.xlane.f32.xlu2 %v379_v31  ;;  %v5268_v30 = vor.u32 %v5602_v28, %v5267_v27  ;;  %v5600_v31 = vld [vmem:[#allocation7 + $0x8c] sm:$0xf]  ;;  %v5224_v28 = vor.u32 %v5588_v22, %v5221_v24 }
  0x92   : > { %1482 = vmatpush.bf16.msra.mxu1 %v5248_v44 }
  0x93   : > { %523 = vadd.xlane.f32.xlu1 %v476_v32  ;;  %v5269_v32 = vld [vmem:[#allocation7 + $0x98] sm:$0xf0]  ;;  %1570 = vmatpush.bf16.msra.mxu2 %v5268_v30  ;;  %v5585_v30 = vld [vmem:[#allocation7 + $0xc] sm:$0xf0] }
  0x96   : > { %1483 = vmatpush.bf16.msra.mxu1 %v5232_v58 }
  0x99   : > { %431 = vadd.xlane.f32.xlu0 %v380_v33  ;;  %527 = vadd.xlane.f32.xlu2 %v478_v34  ;;  %v5272_v33 = vor.u32 %v5600_v31, %v5269_v32  ;;  %v384_v34 = vld [vmem:[%s6780_s18 + $0xa8] sm:$0xff]  ;;  %v5196_v32 = vor.u32 %v5585_v30, %v5195_v29 }
  0x9a   : > { %v482_v39 = vmul.f32 %v384_v34, %v384_v34  ;;  %1484 = vmatpush.bf16.msra.mxu1 %v5216_v19 }
  0x9b   : > { %525 = vadd.xlane.f32.xlu1 %v477_v35  ;;  %v481_v35 = vmul.f32 %v383_v8, %v383_v8  ;;  %1659 = vmatpush.bf16.msra.mxu3 %v5272_v33  ;;  %v5583_v33 = vld [vmem:[#allocation7 + $0x4] sm:$0xf] }
  0x9f   : > { %1660 = vmatpush.bf16.msra.mxu3 %v5256_v48  ;;  %v483_v48 = vmul.f32 %v385_v11, %v385_v11 }
  0xa1   : > { %433 = vadd.xlane.f32.xlu0 %v381_v36  ;;  %529 = vadd.xlane.f32.xlu2 %v479_v37  ;;  %v5243_v36 = vld [vmem:[#allocation7 + $0x60] sm:$0xf]  ;;  %v5597_v37 = vld [vmem:[#allocation7 + $0x6c] sm:$0xf0] }
  0xa2   : > { %v5244_v40 = vor.u32 %v5597_v37, %v5243_v36  ;;  %v5203_v37 = vld [vmem:[#allocation7 + $0x8] sm:$0xf] }
  0xa3   : > { %435 = vadd.xlane.f32.xlu1 %v382_v45  ;;  %v5252_v45 = vor.u32 %v5598_v43, %v5251_v42  ;;  %1661 = vmatpush.bf16.msra.mxu3 %v5240_v63  ;;  %v5205_v42 = vld [vmem:[#allocation7 + $0x18] sm:$0xf0] }
  0xa4   : > { %1393 = vmatpush.bf16.msra.mxu0 %v5244_v40  ;;  %v386_v43 = vld [vmem:[%s6780_s18 + $0xb8] sm:$0xff] }
  0xa5   : > { %1571 = vmatpush.bf16.msra.mxu2 %v5252_v45  ;;  %v5204_v45 = vor.u32 %v5586_v38, %v5203_v37  ;;  %v484_v47 = vmul.f32 %v386_v43, %v386_v43 }
  0xa7   : > { %1662 = vmatpush.bf16.msra.mxu3 %v5224_v28  ;;  %v388_v28 = vld [vmem:[%s6780_s18 + $0xc8] sm:$0xff] }
  0xa8   : > { %1394 = vmatpush.bf16.msra.mxu0 %v5228_v52 }
  0xa9   : > { %531 = vadd.xlane.f32.xlu0 %v480_v62  ;;  %439 = vadd.xlane.f32.xlu2 %v384_v34  ;;  %v5197_v34 = vld [vmem:[#allocation7 + $0x10] sm:$0xf0] }
  0xaa   : > { %1572 = vmatpush.bf16.msra.mxu2 %v5236_v59  ;;  %v5200_v36 = vor.u32 %v5583_v33, %v5197_v34  ;;  %v486_v33 = vmul.f32 %v388_v28, %v388_v28 }
  0xab   : > { %437 = vadd.xlane.f32.xlu1 %v383_v8  ;;  %v5211_v8 = vld [vmem:[#allocation7 + $0x20] sm:$0xf] }
  0xac   : > { %v5212_v13 = vor.u32 %v5589_v10, %v5211_v8  ;;  %1485 = vmatpush.bf16.msra.mxu1 %v5200_v36 }
  0xae   : > { %1395 = vmatpush.bf16.msra.mxu0 %v5212_v13  ;;  %1573 = vmatpush.bf16.msra.mxu2 %v5220_v23 }
  0xb1   : > { %533 = vadd.xlane.f32.xlu0 %v481_v35  ;;  %441 = vadd.xlane.f32.xlu2 %v385_v11 }
  0xb2   : > { %1396 = vmatpush.bf16.msra.mxu0 %v5196_v32  ;;  %1574 = vmatpush.bf16.msra.mxu2 %v5204_v45 }
  0xb3   : > { %535 = vadd.xlane.f32.xlu1 %v482_v39  ;;  %v5584_v39 = vld [vmem:[#allocation7 + $0xc] sm:$0xf] }
  0xb4   : > { %v398_v56 = vpop.xlane.xlu0 %397  ;;  %v402_v57 = vpop.xlane.xlu2 %401  ;;  %v5208_v46 = vor.u32 %v5584_v39, %v5205_v42 }
  0xb5   : > { %v6861_v62 = vmul.f32 0.0078125, %v398_v56  ;;  %v6871_v40 = vmul.f32 0.0078125, %v402_v57 }
  0xb6   : > { %v494_v2 = vpop.xlane.xlu1 %493  ;;  %1663 = vmatpush.bf16.msra.mxu3 %v5208_v46 }
  0xb7   : > { %v621_v5 = vmul.f32 %v6861_v62, %v6861_v62  ;;  %v589_v6 = vmul.f32 0.0078125, %v494_v2  ;;  %v623_v51 = vmul.f32 %v6871_v40, %v6871_v40  ;;  %v685_v37 = vsub.f32 %v6795_v0, %v6861_v62 }
  0xb9   : > { %v653_v18 = vsub.f32 %v589_v6, %v621_v5  ;;  %443 = vadd.xlane.f32.xlu0 %v386_v43  ;;  %539 = vadd.xlane.f32.xlu2 %v484_v47  ;;  %v387_v6 = vld [vmem:[%s6780_s18 + $0xc0] sm:$0xff] }
  0xba   : > { %v485_v32 = vmul.f32 %v387_v6, %v387_v6 }
  0xbb   : > { %v6866_v25 = vadd.f32 1e-05, %v653_v18  ;;  %537 = vadd.xlane.f32.xlu1 %v483_v48  ;;  %v6923_v48 = vld [vmem:[#allocation5] ss:$0 sm:$0xff] }
  0xbc   : > { %v400_v26 = vpop.xlane.xlu0 %399  ;;  %v404_v27 = vpop.xlane.xlu2 %403 }
  0xbd   : > { %v6868_v31 = vmul.f32 0.0078125, %v400_v26  ;;  %5746 = vrsqrt.f32 %v6866_v25  ;;  %v6876_v49 = vmul.f32 0.0078125, %v404_v27  ;;  %vm755_vm1 = vweird.f32 %v6866_v25 }
  0xbe   : > { %v496_v35 = vpop.xlane.xlu1 %495 }
  0xbf   : > { %v622_v41 = vmul.f32 %v6868_v31, %v6868_v31  ;;  %v590_v44 = vmul.f32 0.0078125, %v496_v35  ;;  %v624_v58 = vmul.f32 %v6876_v49, %v6876_v49 }
  0xc1   : > { %v654_v50 = vsub.f32 %v590_v44, %v622_v41  ;;  %445 = vadd.xlane.f32.xlu0 %v387_v6  ;;  %541 = vadd.xlane.f32.xlu2 %v485_v32  ;;  %v5636_v32 = vld [vmem:[#allocation10 + $0xa8] sm:$0xff] }
  0xc3   : > { %v5747_v52 = vpop.eup %5746  ;;  %v6880_v53 = vadd.f32 1e-05, %v654_v50  ;;  %447 = vadd.xlane.f32.xlu1 %v388_v28 }
  0xc4   : > { %v498_v54 = vpop.xlane.xlu0 %497  ;;  %v406_v55 = vpop.xlane.xlu2 %405  ;;  %v750_v56 = vmul.f32 %v5747_v52, %v6866_v25  ;;  %vm756_vm0 = vweird.f32 %v5747_v52 }
  0xc5   : > { %v591_v57 = vmul.f32 0.0078125, %v498_v54  ;;  %5748 = vrsqrt.f32 %v6880_v53  ;;  %v6889_v8 = vmul.f32 0.0078125, %v406_v55  ;;  %vm6904_vm2 = vmor %vm755_vm1, %vm756_vm0  ;;  %vm765_vm4 = vweird.f32 %v6880_v53 }
  0xc6   : > { %v500_v59 = vpop.xlane.xlu1 %499  ;;  %v751_v60 = vmul.f32 %v5747_v52, %v750_v56 }
  0xc7   : > { %v655_v61 = vsub.f32 %v591_v57, %v623_v51  ;;  %v592_v63 = vmul.f32 0.0078125, %v500_v59  ;;  %v625_v22 = vmul.f32 %v6889_v8, %v6889_v8  ;;  %v686_v51 = vsub.f32 %v6805_v3, %v6868_v31  ;;  %v5646_v59 = vld [vmem:[#allocation10 + $0xf8] sm:$0xff] }
  0xc8   : > { %v752_v2 = vmul.f32 0.5, %v751_v60  ;;  %v6939_v3 = vld [vmem:[%s12990_s2] ss:$0 sm:$0xff]  ;;  %4896 = vmatpush.bf16.msrb.mxu3 %v5646_v59 }
  0xc9   : > { %v6886_v5 = vadd.f32 1e-05, %v655_v61  ;;  %v656_v10 = vsub.f32 %v592_v63, %v624_v58  ;;  %543 = vadd.xlane.f32.xlu0 %v486_v33  ;;  %v5622_v58 = vld [vmem:[#allocation10 + $0x38] sm:$0xff] }
  0xca   : > { %v753_v11 = vsub.f32 1.5, %v752_v2  ;;  %v5630_v31 = vld [vmem:[#allocation10 + $0x78] sm:$0xff]  ;;  %4629 = vmatpush.bf16.msrb.mxu0 %v5622_v58 }
  0xcb   : > { %5750 = vrsqrt.f32 %v6886_v5  ;;  %v5749_v13 = vpop.eup %5748  ;;  %v6892_v15 = vadd.f32 1e-05, %v656_v10  ;;  %4718 = vmatpush.bf16.msrb.mxu1 %v5630_v31  ;;  %vm775_vm10 = vweird.f32 %v6886_v5 }
  0xcc   : > { %v408_v17 = vpop.xlane.xlu0 %407  ;;  %v504_v18 = vpop.xlane.xlu2 %503  ;;  %v754_v19 = vmul.f32 %v5747_v52, %v753_v11  ;;  %v760_v20 = vmul.f32 %v5749_v13, %v6880_v53  ;;  %vm766_vm3 = vweird.f32 %v5749_v13  ;;  %v5638_v53 = vld [vmem:[#allocation10 + $0xb8] sm:$0xff] }
  0xcd   : > { %v6895_v21 = vmul.f32 0.0078125, %v408_v17  ;;  %5752 = vrsqrt.f32 %v6892_v15  ;;  %v594_v23 = vmul.f32 0.0078125, %v504_v18  ;;  %vm767_vm5 = vmor %vm765_vm4, %vm766_vm3  ;;  %4807 = vmatpush.bf16.msrb.mxu2 %v5638_v53  ;;  %v389_v17 = vld [vmem:[%s6780_s18 + $0xd0] sm:$0xff]  ;;  %vm785_vm7 = vweird.f32 %v6892_v15 }
  0xce   : > { %v502_v24 = vpop.xlane.xlu1 %501  ;;  %v761_v26 = vmul.f32 %v5749_v13, %v760_v20  ;;  %v758_v35 = vsel %vm6904_vm2, %v5747_v52, %v754_v19  ;;  %449 = vadd.xlane.f32.xlu1 %v389_v17 }
  0xcf   : > { %v626_v27 = vmul.f32 %v6895_v21, %v6895_v21  ;;  %v593_v30 = vmul.f32 0.0078125, %v502_v24  ;;  %v1069_v44 = vmul.f32 %v758_v35, %v685_v37 }
  0xd0   : > { %v762_v36 = vmul.f32 0.5, %v761_v26 }
  0xd1   : > { %v6908_v34 = vpop.eup %5750  ;;  %v658_v25 = vsub.f32 %v594_v23, %v626_v27  ;;  %v657_v39 = vsub.f32 %v593_v30, %v625_v22  ;;  %v1104_v63 = vmul.f32 %v6923_v48, %v1069_v44  ;;  %v392_v44 = vld [vmem:[%s6780_s18 + $0xe8] sm:$0xff] }
  0xd2   : > { %v770_v38 = vmul.f32 %v6908_v34, %v6886_v5  ;;  %v763_v41 = vsub.f32 1.5, %v762_v36  ;;  %vm776_vm6 = vweird.f32 %v6908_v34  ;;  %v390_v5 = vld [vmem:[%s6780_s18 + $0xd8] sm:$0xff] }
  0xd3   : > { %v6916_v42 = vadd.f32 1e-05, %v658_v25  ;;  %v6918_v43 = vpop.eup %5752  ;;  %v6921_v46 = vadd.f32 1e-05, %v657_v39  ;;  %v1139_v26 = vadd.f32 %v6939_v3, %v1104_v63  ;;  %vm6978_vm11 = vmor %vm775_vm10, %vm776_vm6  ;;  %451 = vadd.xlane.f32.xlu2 %v390_v5 }
  0xd4   : > { %v771_v45 = vmul.f32 %v6908_v34, %v770_v38  ;;  %v410_v47 = vpop.xlane.xlu0 %409  ;;  %v764_v0 = vmul.f32 %v5749_v13, %v763_v41  ;;  %v780_v62 = vmul.f32 %v6918_v43, %v6892_v15  ;;  %v506_v50 = vpop.xlane.xlu2 %505  ;;  %vm786_vm8 = vweird.f32 %v6918_v43 }
  0xd5   : > { %5754 = vrsqrt.f32 %v6916_v42  ;;  %v6933_v57 = vmul.f32 0.0078125, %v410_v47  ;;  %v595_v61 = vmul.f32 0.0078125, %v506_v50  ;;  %vm6964_vm9 = vmor %vm785_vm7, %vm786_vm8  ;;  %v688_v41 = vsub.f32 %v6808_v4, %v6876_v49 }
  0xd6   : > { %v772_v52 = vmul.f32 0.5, %v771_v45  ;;  %5756 = vrsqrt.f32 %v6921_v46  ;;  %v412_v54 = vpop.xlane.xlu1 %411  ;;  %v768_v55 = vsel %vm767_vm5, %v5749_v13, %v764_v0  ;;  %v781_v56 = vmul.f32 %v6918_v43, %v780_v62 }
  0xd7   : > { %v1070_v60 = vmul.f32 %v768_v55, %v686_v51  ;;  %v627_v10 = vmul.f32 %v6933_v57, %v6933_v57  ;;  %v6943_v11 = vmul.f32 0.0078125, %v412_v54  ;;  %v687_v4 = vsub.f32 %v6798_v1, %v6871_v40 }
  0xd8   : > { %v773_v2 = vsub.f32 1.5, %v772_v52  ;;  %v782_v6 = vmul.f32 0.5, %v781_v56  ;;  %v487_v52 = vmul.f32 %v389_v17, %v389_v17  ;;  %vm805_vm12 = vweird.f32 %v6916_v42 }
  0xd9   : > { %v1105_v13 = vmul.f32 %v6923_v48, %v1070_v60  ;;  %v659_v23 = vsub.f32 %v595_v61, %v627_v10  ;;  %v628_v30 = vmul.f32 %v6943_v11, %v6943_v11  ;;  %v5621_v10 = vld [vmem:[#allocation10 + $0x30] sm:$0xff]  ;;  %vm795_vm14 = vweird.f32 %v6921_v46 }
  0xda   : > { %v783_v19 = vsub.f32 1.5, %v782_v6  ;;  %v774_v28 = vmul.f32 %v6908_v34, %v773_v2  ;;  %545 = vadd.xlane.f32.xlu0 %v487_v52  ;;  %v5637_v6 = vld [vmem:[#allocation10 + $0xb0] sm:$0xff]  ;;  %4630 = vmatpush.bf16.msrb.mxu0 %v5621_v10 }
  0xdb   : > { %v6947_v18 = vpop.eup %5754  ;;  %v1140_v27 = vadd.f32 %v6939_v3, %v1105_v13  ;;  %v6982_v45 = vadd.f32 1e-05, %v659_v23  ;;  %v5645_v13 = vld [vmem:[#allocation10 + $0xf0] sm:$0xff]  ;;  %4808 = vmatpush.bf16.msrb.mxu2 %v5637_v6  ;;  %v391_v23 = vld [vmem:[%s6780_s18 + $0xe0] sm:$0xff] }
  0xdc   : > { %v6952_v20 = vpop.eup %5756  ;;  %v800_v22 = vmul.f32 %v6947_v18, %v6916_v42  ;;  %v508_v24 = vpop.xlane.xlu0 %507  ;;  %v784_v29 = vmul.f32 %v6918_v43, %v783_v19  ;;  %vm806_vm13 = vweird.f32 %v6947_v18  ;;  %4897 = vmatpush.bf16.msrb.mxu3 %v5645_v13  ;;  %453 = vadd.xlane.f32.xlu2 %v391_v23  ;;  %v5629_v52 = vld [vmem:[#allocation10 + $0x70] sm:$0xff] }
  0xdd   : > { %v790_v15 = vmul.f32 %v6952_v20, %v6921_v46  ;;  %v596_v33 = vmul.f32 0.0078125, %v508_v24  ;;  %v1171_v36 = vpack.c.bf16 %v1140_v27, %v1139_v26  ;;  %v416_v25 = vpop.xlane.xlu2 %415  ;;  %5758 = vrsqrt.f32 %v6982_v45  ;;  %vm7020_vm0 = vmor %vm805_vm12, %vm806_vm13  ;;  %4719 = vmatpush.bf16.msrb.mxu1 %v5629_v52  ;;  %v393_v13 = vld [vmem:[%s6780_s18 + $0xf0] sm:$0xff] }
  0xde   : > { %v414_v35 = vpop.xlane.xlu1 %413  ;;  %v788_v37 = vsel %vm6964_vm9, %v6918_v43, %v784_v29  ;;  %v801_v38 = vmul.f32 %v6947_v18, %v800_v22  ;;  %v778_v43 = vsel %vm6978_vm11, %v6908_v34, %v774_v28  ;;  %v6990_v0 = vmul.f32 0.0078125, %v416_v25 }
  0xdf   : > { %v791_v39 = vmul.f32 %v6952_v20, %v790_v15  ;;  %1397 = vmatmul.bf16.vlgmr.msra.gmra.mxu0 %v1171_v36  ;;  %1486 = vmatmul.bf16.vlgmr.msra.gmra.mxu1 %v1171_v36  ;;  %v660_v47 = vsub.f32 %v596_v33, %v628_v30  ;;  %v1072_v49 = vmul.f32 %v788_v37, %v688_v41  ;;  %v6995_v55 = vmul.f32 0.0078125, %v414_v35 }
  0xe0   : > { %1575 = vmatmul.bf16.vlgmr.msra.gmra.mxu2 %v1171_v36  ;;  %1664 = vmatmul.bf16.vlgmr.msra.gmra.mxu3 %v1171_v36  ;;  %v802_v62 = vmul.f32 0.5, %v801_v38  ;;  %v1071_v54 = vmul.f32 %v778_v43, %v687_v4  ;;  %v488_v34 = vmul.f32 %v390_v5, %v390_v5  ;;  %v630_v1 = vmul.f32 %v6990_v0, %v6990_v0 }
  0xe1   : > { %v792_v50 = vmul.f32 0.5, %v791_v39  ;;  %v6992_v51 = vadd.f32 1e-05, %v660_v47  ;;  %v1107_v53 = vmul.f32 %v6923_v48, %v1072_v49  ;;  %v629_v60 = vmul.f32 %v6995_v55, %v6995_v55  ;;  %4809 = vmatpush.bf16.msrb.mxu2 %v5636_v32 }
  0xe2   : > { %547 = vadd.xlane.f32.xlu1 %v488_v34  ;;  %v803_v58 = vsub.f32 1.5, %v802_v62  ;;  %v1106_v2 = vmul.f32 %v6923_v48, %v1071_v54  ;;  %vm796_vm15 = vweird.f32 %v6952_v20  ;;  %v689_v38 = vsub.f32 %v6817_v7, %v6889_v8  ;;  %455 = vadd.xlane.f32.xlu0 %v392_v44 }
  0xe3   : > { %5760 = vrsqrt.f32 %v6992_v51  ;;  %v793_v59 = vsub.f32 1.5, %v792_v50  ;;  %v7006_v17 = vpop.eup %5758  ;;  %v1142_v22 = vadd.f32 %v6939_v3, %v1107_v53  ;;  %vm7029_vm1 = vmor %vm795_vm14, %vm796_vm15  ;;  %v690_v39 = vsub.f32 %v6823_v9, %v6895_v21 }
  0xe4   : > { %v510_v56 = vpop.xlane.xlu0 %509  ;;  %v804_v26 = vmul.f32 %v6947_v18, %v803_v58  ;;  %v1141_v30 = vadd.f32 %v6939_v3, %v1106_v2  ;;  %v810_v46 = vmul.f32 %v7006_v17, %v6982_v45  ;;  %v490_v43 = vmul.f32 %v392_v44, %v392_v44 }
  0xe5   : > { %v597_v61 = vmul.f32 0.0078125, %v510_v56  ;;  %v418_v31 = vpop.xlane.xlu2 %417  ;;  %v794_v27 = vmul.f32 %v6952_v20, %v793_v59  ;;  %v489_v9 = vmul.f32 %v391_v23, %v391_v23  ;;  %vm825_vm2 = vweird.f32 %v6992_v51 }
  0xe6   : > { %v512_v40 = vpop.xlane.xlu1 %511  ;;  %v1172_v42 = vpack.c.bf16 %v1142_v22, %v1141_v30  ;;  %v808_v36 = vsel %vm7020_vm0, %v6947_v18, %v804_v26  ;;  %v811_v5 = vmul.f32 %v7006_v17, %v810_v46  ;;  %v7050_v18 = vmul.f32 0.0078125, %v418_v31  ;;  %551 = vadd.xlane.f32.xlu2 %v490_v43  ;;  %v394_v46 = vld [vmem:[%s6780_s18 + $0xf8] sm:$0xff] }
  0xe7   : > { %v598_v63 = vmul.f32 0.0078125, %v512_v40  ;;  %v661_v15 = vsub.f32 %v597_v61, %v629_v60  ;;  %v798_v25 = vsel %vm7029_vm1, %v6952_v20, %v794_v27  ;;  %v1074_v47 = vmul.f32 %v808_v36, %v690_v39 }
  0xe8   : > { %v1073_v4 = vmul.f32 %v798_v25, %v689_v38  ;;  %v812_v49 = vmul.f32 0.5, %v811_v5  ;;  %v631_v54 = vmul.f32 %v7050_v18, %v7050_v18  ;;  %vm815_vm4 = vweird.f32 %v6982_v45  ;;  %v5644_v25 = vld [vmem:[#allocation10 + $0xe8] sm:$0xff]  ;;  %v6322_v45 = vld [vmem:[%s6780_s18 + $0x40] sm:$0xff] }
  0xe9   : > { %v662_v19 = vsub.f32 %v598_v63, %v630_v1  ;;  %v7010_v24 = vpop.eup %5760  ;;  %v7046_v41 = vadd.f32 1e-05, %v661_v15  ;;  %v1109_v1 = vmul.f32 %v6923_v48, %v1074_v47  ;;  %vm816_vm5 = vweird.f32 %v7006_v17  ;;  %4898 = vmatpush.bf16.msrb.mxu3 %v5644_v25 }
  0xea   : > { %v820_v29 = vmul.f32 %v7010_v24, %v6992_v51  ;;  %549 = vadd.xlane.f32.xlu1 %v489_v9  ;;  %v1108_v56 = vmul.f32 %v6923_v48, %v1073_v4  ;;  %v813_v58 = vsub.f32 1.5, %v812_v49  ;;  %vm826_vm3 = vweird.f32 %v7010_v24  ;;  %457 = vadd.xlane.f32.xlu0 %v393_v13  ;;  %vm7085_vm7 = vmor %vm815_vm4, %vm816_vm5 }
  0xeb   : > { %v7033_v33 = vadd.f32 1e-05, %v662_v19  ;;  %v1144_v2 = vadd.f32 %v6939_v3, %v1109_v1  ;;  %vm7075_vm6 = vmor %vm825_vm2, %vm826_vm3  ;;  %v692_v30 = vsub.f32 %v6836_v14, %v6943_v11  ;;  %v691_v14 = vsub.f32 %v6831_v12, %v6933_v57 }
  0xec   : > { %v420_v35 = vpop.xlane.xlu0 %419  ;;  %v821_v37 = vmul.f32 %v7010_v24, %v820_v29  ;;  %v1143_v31 = vadd.f32 %v6939_v3, %v1108_v56  ;;  %v814_v19 = vmul.f32 %v7006_v17, %v813_v58  ;;  %v491_v44 = vmul.f32 %v393_v13, %v393_v13 }
  0xed   : > { %v7052_v20 = vmul.f32 0.0078125, %v420_v35  ;;  %5762 = vrsqrt.f32 %v7033_v33  ;;  %v516_v7 = vpop.xlane.xlu2 %515  ;;  %v492_v43 = vmul.f32 %v394_v46, %v394_v46  ;;  %vm845_vm8 = vweird.f32 %v7033_v33 }
  0xee   : > { %v822_v8 = vmul.f32 0.5, %v821_v37  ;;  %v514_v21 = vpop.xlane.xlu1 %513  ;;  %5764 = vrsqrt.f32 %v7046_v41  ;;  %v600_v50 = vmul.f32 0.0078125, %v516_v7  ;;  %v1173_v27 = vpack.c.bf16 %v1144_v2, %v1143_v31  ;;  %553 = vadd.xlane.f32.xlu2 %v491_v44  ;;  %v5627_v2 = vld [vmem:[#allocation10 + $0x60] sm:$0xff] }
  0xef   : > { %1402 = vmatmul.bf16.gmra.mxu0 %v1172_v42  ;;  %1491 = vmatmul.bf16.gmra.mxu1 %v1172_v42  ;;  %v632_v62 = vmul.f32 %v7052_v20, %v7052_v20  ;;  %v599_v34 = vmul.f32 0.0078125, %v514_v21  ;;  %vm835_vm10 = vweird.f32 %v7046_v41  ;;  %v694_v31 = vsub.f32 %v6843_v16, %v6990_v0 }
  0xf0   : > { %1580 = vmatmul.bf16.gmra.mxu2 %v1172_v42  ;;  %1669 = vmatmul.bf16.gmra.mxu3 %v1172_v42  ;;  %v823_v40 = vsub.f32 1.5, %v822_v8  ;;  %v818_v42 = vsel %vm7085_vm7, %v7006_v17, %v814_v19 }
  0xf1   : > { %v664_v59 = vsub.f32 %v600_v50, %v632_v62  ;;  %v663_v63 = vsub.f32 %v599_v34, %v631_v54  ;;  %v1075_v5 = vmul.f32 %v818_v42, %v691_v14  ;;  %v5628_v50 = vld [vmem:[#allocation10 + $0x68] sm:$0xff] }
  0xf2   : > { %v824_v6 = vmul.f32 %v7010_v24, %v823_v40  ;;  %459 = vadd.xlane.f32.xlu1 %v394_v46  ;;  %555 = vadd.xlane.f32.xlu0 %v492_v43 }
  0xf3   : > { %v7062_v53 = vpop.eup %5762  ;;  %v7083_v23 = vadd.f32 1e-05, %v664_v59  ;;  %v7089_v26 = vadd.f32 1e-05, %v663_v63  ;;  %v1110_v62 = vmul.f32 %v6923_v48, %v1075_v5  ;;  %4720 = vmatpush.bf16.msrb.mxu1 %v5628_v50  ;;  %v6324_v50 = vld [vmem:[%s6780_s18 + $0x58] sm:$0xff]  ;;  %v5619_v59 = vld [vmem:[#allocation10 + $0x20] sm:$0xff] }
  0xf4   : > { %v422_v60 = vpop.xlane.xlu0 %421  ;;  %v7066_v61 = vpop.eup %5764  ;;  %v840_v51 = vmul.f32 %v7062_v53, %v7033_v33  ;;  %v828_v28 = vsel %vm7075_vm6, %v7010_v24, %v824_v6  ;;  %v5620_v24 = vld [vmem:[#allocation10 + $0x28] sm:$0xff]  ;;  %vm846_vm9 = vweird.f32 %v7062_v53 }
  0xf5   : > { %v830_v22 = vmul.f32 %v7066_v61, %v7046_v41  ;;  %5766 = vrsqrt.f32 %v7083_v23  ;;  %v7103_v36 = vmul.f32 0.0078125, %v422_v60  ;;  %v1076_v11 = vmul.f32 %v828_v28, %v692_v30  ;;  %v518_v38 = vpop.xlane.xlu2 %517  ;;  %4631 = vmatpush.bf16.msrb.mxu0 %v5620_v24  ;;  %vm7130_vm12 = vmor %vm845_vm8, %vm846_vm9 }
  0xf6   : > { %v841_v29 = vmul.f32 %v7062_v53, %v840_v51  ;;  %v424_v15 = vpop.xlane.xlu1 %423  ;;  %5768 = vrsqrt.f32 %v7089_v26  ;;  %v601_v12 = vmul.f32 0.0078125, %v518_v38  ;;  %vm836_vm11 = vweird.f32 %v7066_v61 }
  0xf7   : > { %v831_v35 = vmul.f32 %v7066_v61, %v830_v22  ;;  %v7108_v37 = vmul.f32 0.0078125, %v424_v15  ;;  %v633_v4 = vmul.f32 %v7103_v36, %v7103_v36  ;;  %v1111_v9 = vmul.f32 %v6923_v48, %v1076_v11  ;;  %vm7140_vm13 = vmor %vm835_vm10, %vm836_vm11  ;;  %4721 = vmatpush.bf16.msrb.mxu1 %v5627_v2 }
  0xf8   : > { %v842_v17 = vmul.f32 0.5, %v841_v29  ;;  %v1145_v41 = vadd.f32 %v6939_v3, %v1110_v62  ;;  %vm865_vm14 = vweird.f32 %v7083_v23  ;;  %vm855_vm0 = vweird.f32 %v7089_v26 }
  0xf9   : > { %v832_v47 = vmul.f32 0.5, %v831_v35  ;;  %v634_v57 = vmul.f32 %v7108_v37, %v7108_v37  ;;  %v665_v54 = vsub.f32 %v601_v12, %v633_v4  ;;  %v1146_v1 = vadd.f32 %v6939_v3, %v1111_v9  ;;  %4632 = vmatpush.bf16.msrb.mxu0 %v5619_v59 }
  0xfa   : > { %v843_v21 = vsub.f32 1.5, %v842_v17 }
  0xfb   : > { %v7115_v8 = vpop.eup %5766  ;;  %v833_v52 = vsub.f32 1.5, %v832_v47  ;;  %v7136_v63 = vadd.f32 1e-05, %v665_v54  ;;  %v1174_v51 = vpack.c.bf16 %v1146_v1, %v1145_v41  ;;  %v5643_v41 = vld [vmem:[#allocation10 + $0xe0] sm:$0xff] }
  0xfc   : > { %v520_v39 = vpop.xlane.xlu0 %519  ;;  %v7117_v49 = vpop.eup %5768  ;;  %v844_v40 = vmul.f32 %v7062_v53, %v843_v21  ;;  %v860_v58 = vmul.f32 %v7115_v8, %v7083_v23  ;;  %vm866_vm15 = vweird.f32 %v7115_v8  ;;  %v6323_v21 = vld [vmem:[%s6780_s18 + $0x50] sm:$0xff]  ;;  %4899 = vmatpush.bf16.msrb.mxu3 %v5643_v41 }
  0xfd   : > { %v602_v7 = vmul.f32 0.0078125, %v520_v39  ;;  %v850_v33 = vmul.f32 %v7117_v49, %v7089_v26  ;;  %v834_v60 = vmul.f32 %v7066_v61, %v833_v52  ;;  %v428_v22 = vpop.xlane.xlu2 %427  ;;  %5770 = vrsqrt.f32 %v7136_v63  ;;  %vm7178_vm2 = vmor %vm865_vm14, %vm866_vm15 }
  0xfe   : > { %v426_v34 = vpop.xlane.xlu1 %425  ;;  %v848_v10 = vsel %vm7130_vm12, %v7062_v53, %v844_v40  ;;  %v861_v13 = vmul.f32 %v7115_v8, %v860_v58  ;;  %v693_v53 = vsub.f32 %v6322_v45, %v6995_v55  ;;  %v7160_v28 = vmul.f32 0.0078125, %v428_v22 }
  0xff   : > { %1407 = vmatmul.bf16.gmra.mxu0 %v1173_v27  ;;  %1496 = vmatmul.bf16.gmra.mxu1 %v1173_v27  ;;  %v666_v56 = vsub.f32 %v602_v7, %v634_v57  ;;  %v851_v19 = vmul.f32 %v7117_v49, %v850_v33  ;;  %v838_v16 = vsel %vm7140_vm13, %v7066_v61, %v834_v60  ;;  %v7155_v0 = vmul.f32 0.0078125, %v426_v34 }
 0x100   : > { %1585 = vmatmul.bf16.gmra.mxu2 %v1173_v27  ;;  %1674 = vmatmul.bf16.gmra.mxu3 %v1173_v27  ;;  %v1078_v27 = vmul.f32 %v848_v10, %v694_v31  ;;  %v862_v15 = vmul.f32 0.5, %v861_v13  ;;  %v1077_v32 = vmul.f32 %v838_v16, %v693_v53  ;;  %v636_v35 = vmul.f32 %v7160_v28, %v7160_v28 }
 0x101   : > { %v7144_v6 = vadd.f32 1e-05, %v666_v56  ;;  %v852_v30 = vmul.f32 0.5, %v851_v19  ;;  %v635_v61 = vmul.f32 %v7155_v0, %v7155_v0  ;;  %vm856_vm1 = vweird.f32 %v7117_v49 }
 0x102   : > { %v1113_v55 = vmul.f32 %v6923_v48, %v1078_v27  ;;  %v863_v14 = vsub.f32 1.5, %v862_v15  ;;  %v1112_v39 = vmul.f32 %v6923_v48, %v1077_v32  ;;  %vm7187_vm3 = vmor %vm855_vm0, %vm856_vm1  ;;  %v695_v62 = vsub.f32 %v6323_v21, %v7050_v18 }
 0x103   : > { %5772 = vrsqrt.f32 %v7144_v6  ;;  %v7167_v25 = vpop.eup %5770  ;;  %v853_v11 = vsub.f32 1.5, %v852_v30  ;;  %v696_v52 = vsub.f32 %v6324_v50, %v7052_v20  ;;  %v5635_v20 = vld [vmem:[#allocation10 + $0xa0] sm:$0xff]  ;;  %vm875_vm4 = vweird.f32 %v7136_v63 }
 0x104   : > { %v522_v29 = vpop.xlane.xlu0 %521  ;;  %v1148_v43 = vadd.f32 %v6939_v3, %v1113_v55  ;;  %v864_v47 = vmul.f32 %v7115_v8, %v863_v14  ;;  %v870_v12 = vmul.f32 %v7167_v25, %v7136_v63  ;;  %v1147_v7 = vadd.f32 %v6939_v3, %v1112_v39  ;;  %4810 = vmatpush.bf16.msrb.mxu2 %v5635_v20 }
 0x105   : > { %v603_v42 = vmul.f32 0.0078125, %v522_v29  ;;  %v430_v17 = vpop.xlane.xlu2 %429  ;;  %v854_v23 = vmul.f32 %v7117_v49, %v853_v11  ;;  %vm876_vm5 = vweird.f32 %v7167_v25  ;;  %vm885_vm6 = vweird.f32 %v7144_v6 }
 0x106   : > { %v524_v46 = vpop.xlane.xlu1 %523  ;;  %v1175_v34 = vpack.c.bf16 %v1148_v43, %v1147_v7  ;;  %v868_v1 = vsel %vm7178_vm2, %v7115_v8, %v864_v47  ;;  %v871_v58 = vmul.f32 %v7167_v25, %v870_v12  ;;  %vm7231_vm8 = vmor %vm875_vm4, %vm876_vm5  ;;  %v6326_v43 = vld [vmem:[%s6780_s18 + $0x68] sm:$0xff] }
 0x107   : > { %v604_v24 = vmul.f32 0.0078125, %v524_v46  ;;  %v667_v44 = vsub.f32 %v603_v42, %v635_v61  ;;  %v858_v40 = vsel %vm7187_vm3, %v7117_v49, %v854_v23  ;;  %v1080_v8 = vmul.f32 %v868_v1, %v696_v52 }
 0x108   : > { %v1079_v60 = vmul.f32 %v858_v40, %v695_v62  ;;  %v7212_v49 = vmul.f32 0.0078125, %v430_v17  ;;  %v698_v47 = vsub.f32 %v6326_v43, %v7108_v37 }
 0x109   : > { %v7169_v38 = vpop.eup %5772  ;;  %v668_v5 = vsub.f32 %v604_v24, %v636_v35  ;;  %v7192_v9 = vadd.f32 1e-05, %v667_v44  ;;  %v1115_v27 = vmul.f32 %v6923_v48, %v1080_v8  ;;  %v6325_v44 = vld [vmem:[%s6780_s18 + $0x60] sm:$0xff] }
 0x10a   : > { %v880_v26 = vmul.f32 %v7169_v38, %v7144_v6  ;;  %v637_v16 = vmul.f32 %v7212_v49, %v7212_v49  ;;  %v1114_v53 = vmul.f32 %v6923_v48, %v1079_v60  ;;  %vm886_vm7 = vweird.f32 %v7169_v38 }
 0x10b   : > { %v7198_v54 = vadd.f32 1e-05, %v668_v5  ;;  %5774 = vrsqrt.f32 %v7192_v9  ;;  %v1150_v24 = vadd.f32 %v6939_v3, %v1115_v27  ;;  %vm7240_vm9 = vmor %vm885_vm6, %vm886_vm7  ;;  %v697_v5 = vsub.f32 %v6325_v44, %v7103_v36 }
 0x10c   : > { %v432_v56 = vpop.xlane.xlu0 %431  ;;  %v881_v33 = vmul.f32 %v7169_v38, %v880_v26  ;;  %v1149_v35 = vadd.f32 %v6939_v3, %v1114_v53  ;;  %vm895_vm10 = vweird.f32 %v7192_v9  ;;  %v6327_v53 = vld [vmem:[%s6780_s18 + $0x70] sm:$0xff] }
 0x10d   : > { %v7209_v18 = vmul.f32 0.0078125, %v432_v56  ;;  %5776 = vrsqrt.f32 %v7198_v54  ;;  %v528_v31 = vpop.xlane.xlu2 %527  ;;  %vm905_vm12 = vweird.f32 %v7198_v54  ;;  %v699_v27 = vsub.f32 %v6327_v53, %v7155_v0 }
 0x10e   : > { %v882_v10 = vmul.f32 0.5, %v881_v33  ;;  %v526_v13 = vpop.xlane.xlu1 %525  ;;  %v606_v22 = vmul.f32 0.0078125, %v528_v31  ;;  %v1176_v23 = vpack.c.bf16 %v1150_v24, %v1149_v35 }
 0x10f   : > { %1412 = vmatmul.bf16.gmra.mxu0 %v1174_v51  ;;  %1501 = vmatmul.bf16.gmra.mxu1 %v1174_v51  ;;  %v638_v19 = vmul.f32 %v7209_v18, %v7209_v18  ;;  %v605_v45 = vmul.f32 0.0078125, %v526_v13 }
 0x110   : > { %1590 = vmatmul.bf16.gmra.mxu2 %v1174_v51  ;;  %1679 = vmatmul.bf16.gmra.mxu3 %v1174_v51  ;;  %v872_v51 = vmul.f32 0.5, %v871_v58  ;;  %v883_v30 = vsub.f32 1.5, %v882_v10 }
 0x111   : > { %v7220_v29 = vpop.eup %5774  ;;  %v670_v32 = vsub.f32 %v606_v22, %v638_v19  ;;  %v669_v42 = vsub.f32 %v605_v45, %v637_v16  ;;  %v6332_v19 = vld [vmem:[%s6780_s18 + $0x98] sm:$0xff] }
 0x112   : > { %v873_v15 = vsub.f32 1.5, %v872_v51  ;;  %v884_v63 = vmul.f32 %v7169_v38, %v883_v30  ;;  %v890_v6 = vmul.f32 %v7220_v29, %v7192_v9  ;;  %vm896_vm11 = vweird.f32 %v7220_v29 }
 0x113   : > { %v7222_v46 = vpop.eup %5776  ;;  %v7244_v39 = vadd.f32 1e-05, %v670_v32  ;;  %v7250_v4 = vadd.f32 1e-05, %v669_v42  ;;  %vm7283_vm14 = vmor %vm895_vm10, %vm896_vm11 }
 0x114   : > { %v434_v61 = vpop.xlane.xlu0 %433  ;;  %v874_v55 = vmul.f32 %v7167_v25, %v873_v15  ;;  %v900_v11 = vmul.f32 %v7222_v46, %v7198_v54  ;;  %v888_v26 = vsel %vm7240_vm9, %v7169_v38, %v884_v63  ;;  %v891_v57 = vmul.f32 %v7220_v29, %v890_v6  ;;  %v6328_v15 = vld [vmem:[%s6780_s18 + $0x78] sm:$0xff] }
 0x115   : > { %5778 = vrsqrt.f32 %v7244_v39  ;;  %v7261_v36 = vmul.f32 0.0078125, %v434_v61  ;;  %v1082_v62 = vmul.f32 %v888_v26, %v698_v47  ;;  %v530_v38 = vpop.xlane.xlu2 %529  ;;  %vm906_vm13 = vweird.f32 %v7222_v46 }
 0x116   : > { %v878_v12 = vsel %vm7231_vm8, %v7167_v25, %v874_v55  ;;  %v901_v7 = vmul.f32 %v7222_v46, %v900_v11  ;;  %v436_v21 = vpop.xlane.xlu1 %435  ;;  %5780 = vrsqrt.f32 %v7250_v4  ;;  %v892_v50 = vmul.f32 0.5, %v891_v57  ;;  %vm7292_vm15 = vmor %vm905_vm12, %vm906_vm13 }
 0x117   : > { %v1081_v37 = vmul.f32 %v878_v12, %v697_v5  ;;  %v7264_v25 = vmul.f32 0.0078125, %v436_v21  ;;  %v639_v56 = vmul.f32 %v7261_v36, %v7261_v36  ;;  %v607_v1 = vmul.f32 0.0078125, %v530_v38 }
 0x118   : > { %v902_v52 = vmul.f32 0.5, %v901_v7  ;;  %v1117_v20 = vmul.f32 %v6923_v48, %v1082_v62  ;;  %v893_v41 = vsub.f32 1.5, %v892_v50  ;;  %v700_v30 = vsub.f32 %v6328_v15, %v7160_v28  ;;  %v6330_v7 = vld [vmem:[%s6780_s18 + $0x88] sm:$0xff] }
 0x119   : > { %v640_v40 = vmul.f32 %v7264_v25, %v7264_v25  ;;  %v1116_v33 = vmul.f32 %v6923_v48, %v1081_v37  ;;  %v671_v31 = vsub.f32 %v607_v1, %v639_v56  ;;  %vm925_vm0 = vweird.f32 %v7244_v39 }
 0x11a   : > { %v903_v8 = vsub.f32 1.5, %v902_v52  ;;  %v1152_v10 = vadd.f32 %v6939_v3, %v1117_v20  ;;  %v894_v13 = vmul.f32 %v7220_v29, %v893_v41  ;;  %vm915_vm2 = vweird.f32 %v7250_v4 }
 0x11b   : > { %v7272_v59 = vpop.eup %5778  ;;  %v1151_v51 = vadd.f32 %v6939_v3, %v1116_v33  ;;  %v7296_v45 = vadd.f32 1e-05, %v671_v31  ;;  %v702_v21 = vsub.f32 %v6330_v7, %v7209_v18 }
 0x11c   : > { %v7274_v60 = vpop.eup %5780  ;;  %v904_v9 = vmul.f32 %v7222_v46, %v903_v8  ;;  %v920_v22 = vmul.f32 %v7272_v59, %v7244_v39  ;;  %v898_v42 = vsel %vm7283_vm14, %v7220_v29, %v894_v13  ;;  %vm926_vm1 = vweird.f32 %v7272_v59 }
 0x11d   : > { %v910_v54 = vmul.f32 %v7274_v60, %v7250_v4  ;;  %v1177_v61 = vpack.c.bf16 %v1152_v10, %v1151_v51  ;;  %5782 = vrsqrt.f32 %v7296_v45  ;;  %v1083_v0 = vmul.f32 %v898_v42, %v699_v27  ;;  %vm7325_vm4 = vmor %vm925_vm0, %vm926_vm1  ;;  %v6329_v4 = vld [vmem:[%s6780_s18 + $0x80] sm:$0xff]  ;;  %v6331_v10 = vld [vmem:[%s6780_s18 + $0x90] sm:$0xff]  ;;  %v440_v42 = vpop.xlane.xlu2 %439 }
 0x11e   : > { %v908_v35 = vsel %vm7292_vm15, %v7222_v46, %v904_v9  ;;  %v921_v24 = vmul.f32 %v7272_v59, %v920_v22  ;;  %vm916_vm3 = vweird.f32 %v7274_v60  ;;  %v701_v57 = vsub.f32 %v6329_v4, %v7212_v49  ;;  %v5618_v51 = vld [vmem:[#allocation10 + $0x18] sm:$0xff] }
 0x11f   : > { %1417 = vmatmul.bf16.gmra.mxu0 %v1175_v34  ;;  %1506 = vmatmul.bf16.gmra.mxu1 %v1175_v34  ;;  %v911_v55 = vmul.f32 %v7274_v60, %v910_v54  ;;  %v1084_v28 = vmul.f32 %v908_v35, %v700_v30  ;;  %v1118_v63 = vmul.f32 %v6923_v48, %v1083_v0  ;;  %vm917_vm5 = vmor %vm915_vm2, %vm916_vm3  ;;  %vm935_vm6 = vweird.f32 %v7296_v45  ;;  %v5642_v54 = vld [vmem:[#allocation10 + $0xd8] sm:$0xff] }
 0x120   : > { %1595 = vmatmul.bf16.gmra.mxu2 %v1175_v34  ;;  %1684 = vmatmul.bf16.gmra.mxu3 %v1175_v34  ;;  %v532_v34 = vpop.xlane.xlu0 %531  ;;  %v922_v14 = vmul.f32 0.5, %v921_v24  ;;  %v703_v13 = vsub.f32 %v6331_v10, %v7261_v36  ;;  %v704_v9 = vsub.f32 %v6332_v19, %v7264_v25  ;;  %v5626_v27 = vld [vmem:[#allocation10 + $0x58] sm:$0xff] }
 0x121   : > { %v608_v58 = vmul.f32 0.0078125, %v532_v34  ;;  %v912_v29 = vmul.f32 0.5, %v911_v55  ;;  %v1119_v46 = vmul.f32 %v6923_v48, %v1084_v28  ;;  %v1153_v5 = vadd.f32 %v6939_v3, %v1118_v63  ;;  %4633 = vmatpush.bf16.msrb.mxu0 %v5618_v51  ;;  %4900 = vmatpush.bf16.msrb.mxu3 %v5642_v54 }
 0x122   : > { %v923_v11 = vsub.f32 1.5, %v922_v14  ;;  %4722 = vmatpush.bf16.msrb.mxu1 %v5626_v27 }
 0x123   : > { %v672_v2 = vsub.f32 %v608_v58, %v640_v40  ;;  %v7316_v6 = vpop.eup %5782  ;;  %v913_v17 = vsub.f32 1.5, %v912_v29  ;;  %v1154_v43 = vadd.f32 %v6939_v3, %v1119_v46  ;;  %v7373_v29 = vmul.f32 0.0078125, %v440_v42 }
 0x124   : > { %v924_v47 = vmul.f32 %v7272_v59, %v923_v11  ;;  %v930_v39 = vmul.f32 %v7316_v6, %v7296_v45  ;;  %vm936_vm7 = vweird.f32 %v7316_v6 }
 0x125   : > { %v7302_v32 = vadd.f32 1e-05, %v672_v2  ;;  %v914_v12 = vmul.f32 %v7274_v60, %v913_v17  ;;  %v1178_v37 = vpack.c.bf16 %v1154_v43, %v1153_v5  ;;  %vm7350_vm10 = vmor %vm935_vm6, %vm936_vm7  ;;  %v5634_v2 = vld [vmem:[#allocation10 + $0x98] sm:$0xff]  ;;  %v442_v0 = vpop.xlane.xlu2 %441 }
 0x126   : > { %v928_v62 = vsel %vm7325_vm4, %v7272_v59, %v924_v47  ;;  %v931_v50 = vmul.f32 %v7316_v6, %v930_v39  ;;  %4811 = vmatpush.bf16.msrb.mxu2 %v5634_v2 }
 0x127   : > { %5784 = vrsqrt.f32 %v7302_v32  ;;  %v918_v38 = vsel %vm917_vm5, %v7274_v60, %v914_v12  ;;  %v1086_v34 = vmul.f32 %v928_v62, %v702_v21  ;;  %vm945_vm8 = vweird.f32 %v7302_v32 }
 0x128   : > { %v1085_v56 = vmul.f32 %v918_v38, %v701_v57  ;;  %v932_v49 = vmul.f32 0.5, %v931_v50  ;;  %v534_v24 = vpop.xlane.xlu0 %533  ;;  %v7385_v12 = vmul.f32 0.0078125, %v442_v0 }
 0x129   : > { %v1121_v40 = vmul.f32 %v6923_v48, %v1086_v34  ;;  %v609_v63 = vmul.f32 0.0078125, %v534_v24 }
 0x12a   : > { %v1120_v18 = vmul.f32 %v6923_v48, %v1085_v56  ;;  %v933_v58 = vsub.f32 1.5, %v932_v49  ;;  %v1219_v56 = vld [vmem:[#allocation8] sm:$0xf] }
 0x12b   : > { %v1156_v59 = vadd.f32 %v6939_v3, %v1121_v40 }
 0x12c   : > { %v1155_v20 = vadd.f32 %v6939_v3, %v1120_v18  ;;  %v934_v41 = vmul.f32 %v7316_v6, %v933_v58 }
 0x12d   : > { %v5785_v44 = vpop.eup %5784  ;;  %v540_v17 = vpop.xlane.xlu2 %539 }
 0x12e   : > { %v940_v26 = vmul.f32 %v5785_v44, %v7302_v32  ;;  %vm946_vm9 = vweird.f32 %v5785_v44  ;;  %v1179_v22 = vpack.c.bf16 %v1156_v59, %v1155_v20  ;;  %v938_v16 = vsel %vm7350_vm10, %v7316_v6, %v934_v41 }
 0x12f   : > { %1422 = vmatmul.bf16.gmra.mxu0 %v1176_v23  ;;  %1511 = vmatmul.bf16.gmra.mxu1 %v1176_v23  ;;  %vm7354_vm11 = vmor %vm945_vm8, %vm946_vm9  ;;  %v1087_v53 = vmul.f32 %v938_v16, %v703_v13  ;;  %v612_v57 = vmul.f32 0.0078125, %v540_v17 }
 0x130   : > { %1600 = vmatmul.bf16.gmra.mxu2 %v1176_v23  ;;  %1689 = vmatmul.bf16.gmra.mxu3 %v1176_v23  ;;  %v941_v52 = vmul.f32 %v5785_v44, %v940_v26  ;;  %v444_v14 = vpop.xlane.xlu0 %443 }
 0x131   : > { %v1122_v25 = vmul.f32 %v6923_v48, %v1087_v53  ;;  %v7381_v47 = vmul.f32 0.0078125, %v444_v14 }
 0x132   : > { %v942_v1 = vmul.f32 0.5, %v941_v52 }
 0x133   : > { %v1157_v30 = vadd.f32 %v6939_v3, %v1122_v25  ;;  %v644_v4 = vmul.f32 %v7381_v47, %v7381_v47 }
 0x134   : > { %v943_v33 = vsub.f32 1.5, %v942_v1 }
 0x135   : > { %v542_v7 = vpop.xlane.xlu2 %541  ;;  %v676_v34 = vsub.f32 %v612_v57, %v644_v4 }
 0x136   : > { %v944_v60 = vmul.f32 %v5785_v44, %v943_v33  ;;  %v613_v52 = vmul.f32 0.0078125, %v542_v7  ;;  %v7405_v33 = vperm.slane %v1219_v56, 0 }
 0x137   : > { %v7407_v59 = vadd.f32 1e-05, %v676_v34 }
 0x138   : > { %v948_v45 = vsel %vm7354_vm11, %v5785_v44, %v944_v60  ;;  %v446_v44 = vpop.xlane.xlu0 %445  ;;  %v7411_v60 = vperm.slane %v1219_v56, 1 }
 0x139   : > { %v1088_v36 = vmul.f32 %v948_v45, %v704_v9  ;;  %v7387_v26 = vmul.f32 0.0078125, %v446_v44  ;;  %v7431_v45 = vperm.slane %v1219_v56, 2  ;;  %vm985_vm2 = vweird.f32 %v7407_v59 }
 0x13b   : > { %v1123_v15 = vmul.f32 %v6923_v48, %v1088_v36  ;;  %v645_v50 = vmul.f32 %v7387_v26, %v7387_v26 }
 0x13d   : > { %v1158_v32 = vadd.f32 %v6939_v3, %v1123_v15  ;;  %v642_v3 = vmul.f32 %v7373_v29, %v7373_v29  ;;  %v677_v20 = vsub.f32 %v613_v52, %v645_v50  ;;  %v6333_v50 = vld [vmem:[%s6780_s18 + $0xa0] sm:$0xff] }
 0x13f   : > { %1427 = vmatmul.bf16.gmra.mxu0 %v1177_v61  ;;  %1516 = vmatmul.bf16.gmra.mxu1 %v1177_v61  ;;  %v1180_v35 = vpack.c.bf16 %v1158_v32, %v1157_v30  ;;  %v7420_v19 = vadd.f32 1e-05, %v677_v20 }
 0x140   : > { %1605 = vmatmul.bf16.gmra.mxu2 %v1177_v61  ;;  %1694 = vmatmul.bf16.gmra.mxu3 %v1177_v61  ;;  %v438_v61 = vpop.xlane.xlu1 %437  ;;  %v544_v38 = vpop.xlane.xlu0 %543 }
 0x141   : > { %v7371_v28 = vmul.f32 0.0078125, %v438_v61  ;;  %v614_v1 = vmul.f32 0.0078125, %v544_v38  ;;  %v7442_v61 = vperm.slane %v1219_v56, 3  ;;  %vm995_vm6 = vweird.f32 %v7420_v19 }
 0x143   : > { %v641_v48 = vmul.f32 %v7371_v28, %v7371_v28  ;;  %v705_v52 = vsub.f32 %v6333_v50, %v7371_v28 }
 0x145   : > { %v673_v11 = vsub.f32 %v609_v63, %v641_v48 }
 0x147   : > { %v7379_v43 = vadd.f32 1e-05, %v673_v11 }
 0x148   : > { %v536_v55 = vpop.xlane.xlu1 %535 }
 0x149   : > { %v610_v46 = vmul.f32 0.0078125, %v536_v55  ;;  %5786 = vrsqrt.f32 %v7379_v43  ;;  %vm955_vm12 = vweird.f32 %v7379_v43 }
 0x14b   : > { %v674_v5 = vsub.f32 %v610_v46, %v642_v3 }
 0x14d   : > { %v7383_v23 = vadd.f32 1e-05, %v674_v5 }
 0x14f   : > { %1432 = vmatmul.bf16.gmra.mxu0 %v1178_v37  ;;  %1521 = vmatmul.bf16.gmra.mxu1 %v1178_v37  ;;  %5788 = vrsqrt.f32 %v7383_v23  ;;  %v7401_v18 = vpop.eup %5786  ;;  %vm965_vm14 = vweird.f32 %v7383_v23 }
 0x150   : > { %1610 = vmatmul.bf16.gmra.mxu2 %v1178_v37  ;;  %1699 = vmatmul.bf16.gmra.mxu3 %v1178_v37  ;;  %v538_v6 = vpop.xlane.xlu1 %537  ;;  %v643_v37 = vmul.f32 %v7385_v12, %v7385_v12  ;;  %v950_v8 = vmul.f32 %v7401_v18, %v7379_v43  ;;  %5790 = vrsqrt.f32 %v7407_v59  ;;  %vm956_vm13 = vweird.f32 %v7401_v18 }
 0x151   : > { %v611_v62 = vmul.f32 0.0078125, %v538_v6  ;;  %vm7466_vm0 = vmor %vm955_vm12, %vm956_vm13 }
 0x152   : > { %v951_v9 = vmul.f32 %v7401_v18, %v950_v8 }
 0x153   : > { %v675_v40 = vsub.f32 %v611_v62, %v643_v37 }
 0x154   : > { %v952_v27 = vmul.f32 0.5, %v951_v9 }
 0x155   : > { %v7403_v58 = vpop.eup %5788  ;;  %v7415_v51 = vadd.f32 1e-05, %v675_v40 }
 0x156   : > { %v960_v2 = vmul.f32 %v7403_v58, %v7383_v23  ;;  %v7437_v15 = vpop.eup %5790  ;;  %v953_v55 = vsub.f32 1.5, %v952_v27  ;;  %vm966_vm15 = vweird.f32 %v7403_v58 }
 0x157   : > { %5792 = vrsqrt.f32 %v7415_v51  ;;  %v980_v0 = vmul.f32 %v7437_v15, %v7407_v59  ;;  %vm7474_vm1 = vmor %vm965_vm14, %vm966_vm15  ;;  %vm975_vm3 = vweird.f32 %v7415_v51  ;;  %vm986_vm4 = vweird.f32 %v7437_v15 }
 0x158   : > { %v448_v39 = vpop.xlane.xlu1 %447  ;;  %v961_v16 = vmul.f32 %v7403_v58, %v960_v2  ;;  %5794 = vrsqrt.f32 %v7420_v19  ;;  %v954_v44 = vmul.f32 %v7401_v18, %v953_v55  ;;  %vm7533_vm8 = vmor %vm985_vm2, %vm986_vm4 }
 0x159   : > { %v7393_v21 = vmul.f32 0.0078125, %v448_v39  ;;  %v981_v5 = vmul.f32 %v7437_v15, %v980_v0 }
 0x15a   : > { %v962_v30 = vmul.f32 0.5, %v961_v16  ;;  %v958_v20 = vsel %vm7466_vm0, %v7401_v18, %v954_v44 }
 0x15b   : > { %v646_v49 = vmul.f32 %v7393_v21, %v7393_v21 }
 0x15c   : > { %v1398_v41 = vpop.f32.mrf.mxu0  ;;  %v1487_v10 = vpop.f32.mrf.mxu1  ;;  %v963_v14 = vsub.f32 1.5, %v962_v30 }
 0x15d   : > { %v678_v31 = vsub.f32 %v614_v1, %v646_v49  ;;  %v7418_v13 = vadd.f32 %v1398_v41, %v7405_v33  ;;  %v6334_v1 = vld [vmem:[%s6780_s18 + $0xa8] sm:$0xff]  ;;  %v982_v41 = vmul.f32 0.5, %v981_v5 }
 0x15e   : > { %v964_v23 = vmul.f32 %v7403_v58, %v963_v14  ;;  %v706_v40 = vsub.f32 %v6334_v1, %v7373_v29  ;;  %v1089_v29 = vmul.f32 %v958_v20, %v705_v52 }
 0x15f   : > { %1437 = vmatmul.bf16.gmra.mxu0 %v1179_v22  ;;  %1526 = vmatmul.bf16.gmra.mxu1 %v1179_v22  ;;  %v7427_v54 = vadd.f32 1e-05, %v678_v31  ;;  %v5321_v53 = vmul.f32 -1.442695, %v7418_v13  ;;  %v983_v27 = vsub.f32 1.5, %v982_v41 }
 0x160   : > { %1615 = vmatmul.bf16.gmra.mxu2 %v1179_v22  ;;  %1704 = vmatmul.bf16.gmra.mxu3 %v1179_v22  ;;  %v7425_v22 = vadd.f32 %v1487_v10, %v7411_v60  ;;  %v968_v8 = vsel %vm7474_vm1, %v7403_v58, %v964_v23 }
 0x161   : > { %5796 = vrsqrt.f32 %v7427_v54  ;;  %v984_v44 = vmul.f32 %v7437_v15, %v983_v27  ;;  %vm1005_vm10 = vweird.f32 %v7427_v54  ;;  %v452_v27 = vpop.xlane.xlu2 %451 }
 0x162   : > { %v5322_v25 = vmul.f32 -1.442695, %v7425_v22  ;;  %5798 = vpow2.f32 %v5321_v53 }
 0x163   : > { %v1576_v36 = vpop.f32.mrf.mxu2  ;;  %v1665_v42 = vpop.f32.mrf.mxu3 }
 0x164   : > { %v7440_v32 = vadd.f32 %v1576_v36, %v7431_v45  ;;  %5800 = vpow2.f32 %v5322_v25  ;;  %v7452_v63 = vadd.f32 %v1665_v42, %v7442_v61  ;;  %v1400_v11 = vpop.f32.mrf.mxu0  ;;  %v1489_v43 = vpop.f32.mrf.mxu1  ;;  %v1090_v36 = vmul.f32 %v968_v8, %v706_v40 }
 0x165   : > { %v7480_v38 = vadd.f32 %v1400_v11, %v7405_v33  ;;  %v7488_v49 = vadd.f32 %v1489_v43, %v7411_v60  ;;  %v5617_v11 = vld [vmem:[#allocation10 + $0x10] sm:$0xff] }
 0x166   : > { %v5323_v48 = vmul.f32 -1.442695, %v7440_v32  ;;  %v5324_v57 = vmul.f32 -1.442695, %v7452_v63  ;;  %4634 = vmatpush.bf16.msrb.mxu0 %v5617_v11 }
 0x167   : > { %v5325_v10 = vmul.f32 -1.442695, %v7480_v38  ;;  %v5326_v18 = vmul.f32 -1.442695, %v7488_v49 }
 0x168   : > { %5802 = vpow2.f32 %v5323_v48  ;;  %v7513_v48 = vld [vmem:[#allocation5] ss:$0 sm:$0xff] }
 0x169   : > { %5804 = vpow2.f32 %v5324_v57  ;;  %v1125_v43 = vmul.f32 %v7513_v48, %v1090_v36  ;;  %v6336_v57 = vld [vmem:[%s6780_s18 + $0xb0] sm:$0xff] }
 0x16b   : > { %v1578_v9 = vpop.f32.mrf.mxu2  ;;  %v1667_v30 = vpop.f32.mrf.mxu3 }
 0x16c   : > { %v7507_v25 = vadd.f32 %v1578_v9, %v7431_v45  ;;  %v7519_v5 = vadd.f32 %v1667_v30, %v7442_v61 }
 0x16f   : > { %1442 = vmatmul.bf16.gmra.mxu0 %v1180_v35  ;;  %1531 = vmatmul.bf16.gmra.mxu1 %v1180_v35 }
 0x170   : > { %1620 = vmatmul.bf16.gmra.mxu2 %v1180_v35  ;;  %1709 = vmatmul.bf16.gmra.mxu3 %v1180_v35  ;;  %v7444_v35 = vpop.eup %5792 }
 0x171   : > { %v7446_v24 = vpop.eup %5794  ;;  %v970_v46 = vmul.f32 %v7444_v35, %v7415_v51  ;;  %vm976_vm5 = vweird.f32 %v7444_v35  ;;  %v6338_v51 = vld [vmem:[%s6780_s18 + $0xb8] sm:$0xff] }
 0x172   : > { %v7454_v3 = vpop.eup %5796  ;;  %v990_v6 = vmul.f32 %v7446_v24, %v7420_v19  ;;  %vm996_vm7 = vweird.f32 %v7446_v24  ;;  %vm7547_vm9 = vmor %vm975_vm3, %vm976_vm5  ;;  %v708_v20 = vsub.f32 %v6338_v51, %v7381_v47  ;;  %v988_v47 = vsel %vm7533_vm8, %v7437_v15, %v984_v44  ;;  %v450_v19 = vpop.xlane.xlu1 %449 }
 0x173   : > { %v5799_v17 = vpop.eup %5798  ;;  %v1000_v4 = vmul.f32 %v7454_v3, %v7427_v54  ;;  %v971_v62 = vmul.f32 %v7444_v35, %v970_v46  ;;  %v1124_v46 = vmul.f32 %v7513_v48, %v1089_v29  ;;  %vm1006_vm11 = vweird.f32 %v7454_v3  ;;  %vm7568_vm12 = vmor %vm995_vm6, %vm996_vm7 }
 0x174   : > { %v5801_v7 = vpop.eup %5800  ;;  %v7484_v34 = vadd.f32 1.0, %v5799_v17  ;;  %v991_v56 = vmul.f32 %v7446_v24, %v990_v6  ;;  %v5633_v6 = vld [vmem:[#allocation10 + $0x90] sm:$0xff]  ;;  %vm7589_vm13 = vmor %vm1005_vm10, %vm1006_vm11  ;;  %v7615_v44 = vmul.f32 0.0078125, %v452_v27 }
 0x175   : > { %v7498_v28 = vadd.f32 1.0, %v5801_v7  ;;  %v1001_v31 = vmul.f32 %v7454_v3, %v1000_v4  ;;  %v972_v2 = vmul.f32 0.5, %v971_v62  ;;  %v5803_v16 = vpop.eup %5802  ;;  %v5641_v17 = vld [vmem:[#allocation10 + $0xd0] sm:$0xff]  ;;  %v5327_v4 = vmul.f32 -1.442695, %v7507_v25  ;;  %4812 = vmatpush.bf16.msrb.mxu2 %v5633_v6 }
 0x176   : > { %5806 = vrcp.f32 %v7484_v34  ;;  %v992_v53 = vmul.f32 0.5, %v991_v56  ;;  %v7510_v55 = vadd.f32 1.0, %v5803_v16  ;;  %v5805_v0 = vpop.eup %5804  ;;  %v707_v7 = vsub.f32 %v6336_v57, %v7385_v12  ;;  %4901 = vmatpush.bf16.msrb.mxu3 %v5641_v17  ;;  %v7557_v56 = vld [vmem:[%s12990_s2] ss:$0 sm:$0xff] }
 0x177   : > { %5808 = vrcp.f32 %v7498_v28  ;;  %v1002_v58 = vmul.f32 0.5, %v1001_v31  ;;  %v973_v42 = vsub.f32 1.5, %v972_v2  ;;  %v7539_v50 = vadd.f32 1.0, %v5805_v0  ;;  %v1403_v2 = vpop.f32.mrf.mxu0  ;;  %v6339_v16 = vld [vmem:[%s6780_s18 + $0xc0] sm:$0xff] }
 0x178   : > { %5810 = vpow2.f32 %v5325_v10  ;;  %v993_v14 = vsub.f32 1.5, %v992_v53  ;;  %v1159_v1 = vadd.f32 %v7557_v56, %v1124_v46  ;;  %v5328_v31 = vmul.f32 -1.442695, %v7519_v5  ;;  %v6340_v46 = vld [vmem:[%s6780_s18 + $0xc8] sm:$0xff] }
 0x179   : > { %5812 = vpow2.f32 %v5326_v18  ;;  %v1003_v23 = vsub.f32 1.5, %v1002_v58  ;;  %v974_v62 = vmul.f32 %v7444_v35, %v973_v42  ;;  %v1160_v10 = vadd.f32 %v7557_v56, %v1125_v43  ;;  %v1492_v42 = vpop.f32.mrf.mxu1 }
 0x17a   : > { %5814 = vrcp.f32 %v7510_v55  ;;  %v994_v59 = vmul.f32 %v7446_v24, %v993_v14  ;;  %v709_v29 = vsub.f32 %v6339_v16, %v7387_v26  ;;  %v7594_v26 = vmul.f32 0.0078125, %v450_v19  ;;  %v548_v27 = vpop.xlane.xlu1 %547 }
 0x17b   : > { %v1004_v53 = vmul.f32 %v7454_v3, %v1003_v23  ;;  %5816 = vpow2.f32 %v5327_v4  ;;  %v978_v18 = vsel %vm7547_vm9, %v7444_v35, %v974_v62  ;;  %v7602_v30 = vadd.f32 %v1403_v2, %v7405_v33  ;;  %v546_v62 = vpop.xlane.xlu0 %545 }
 0x17c   : > { %v7522_v39 = vpop.eup %5806  ;;  %5818 = vrcp.f32 %v7539_v50  ;;  %v998_v35 = vsel %vm7568_vm12, %v7446_v24, %v994_v59  ;;  %v1181_v54 = vpack.c.bf16 %v1160_v10, %v1159_v1  ;;  %v710_v6 = vsub.f32 %v6340_v46, %v7393_v21 }
 0x17d   : > { %v7541_v52 = vpop.eup %5808  ;;  %v2258_v41 = vmul.f32 %v7522_v39, %v7484_v34  ;;  %5820 = vpow2.f32 %v5328_v31  ;;  %v7610_v17 = vmul.f32 %v988_v47, %v708_v20  ;;  %v1008_v24 = vsel %vm7589_vm13, %v7454_v3, %v1004_v53 }
 0x17e   : > { %v5811_v40 = vpop.eup %5810  ;;  %v2273_v36 = vmul.f32 %v7541_v52, %v7498_v28  ;;  %v7617_v43 = vmul.f32 %v978_v18, %v707_v7  ;;  %v7619_v4 = vmul.f32 %v998_v35, %v709_v29  ;;  %v7622_v21 = vadd.f32 %v1492_v42, %v7411_v60  ;;  %v5625_v18 = vld [vmem:[#allocation10 + $0x50] sm:$0xff] }
 0x17f   : > { %v5813_v9 = vpop.eup %5812  ;;  %v7599_v58 = vadd.f32 1.0, %v5811_v40  ;;  %v2259_v14 = vsub.f32 1.0, %v2258_v41  ;;  %1447 = vmatmul.bf16.gmra.mxu0 %v1181_v54  ;;  %1536 = vmatmul.bf16.gmra.mxu1 %v1181_v54  ;;  %v7629_v3 = vmul.f32 %v7594_v26, %v7594_v26  ;;  %v5329_v7 = vmul.f32 -1.442695, %v7602_v30 }
 0x180   : > { %v7604_v0 = vpop.eup %5814  ;;  %v7608_v11 = vadd.f32 1.0, %v5813_v9  ;;  %v2274_v23 = vsub.f32 1.0, %v2273_v36  ;;  %1625 = vmatmul.bf16.gmra.mxu2 %v1181_v54  ;;  %1714 = vmatmul.bf16.gmra.mxu3 %v1181_v54  ;;  %v2266_v1 = vand.u32 2147483647, %v7484_v34  ;;  %v7636_v40 = vmul.f32 %v1008_v24, %v710_v6 }
 0x181   : > { %v5817_v57 = vpop.eup %5816  ;;  %v2288_v37 = vmul.f32 %v7604_v0, %v7510_v55  ;;  %5822 = vrcp.f32 %v7599_v58  ;;  %v2260_v59 = vmul.f32 %v7522_v39, %v2259_v14  ;;  %v2268_v51 = vand.u32 2147483648, %v7484_v34  ;;  %4723 = vmatpush.bf16.msrb.mxu1 %v5625_v18 }
 0x182   : > { %v7632_v12 = vpop.eup %5818  ;;  %5824 = vrcp.f32 %v7608_v11  ;;  %v2281_v20 = vand.u32 2147483647, %v7498_v28  ;;  %v2283_v41 = vand.u32 2147483648, %v7498_v28  ;;  %v7644_v8 = vmul.f32 %v7615_v44, %v7615_v44 }
 0x183   : > { %v5821_v31 = vpop.eup %5820  ;;  %vm2262_vm14 = vweird.f32 %v7484_v34  ;;  %v2275_v2 = vmul.f32 %v7541_v52, %v2274_v23  ;;  %v5330_v10 = vmul.f32 -1.442695, %v7622_v21  ;;  %v7649_v9 = vmul.f32 0.0078125, %v546_v62 }
 0x184   : > { %v2289_v47 = vsub.f32 1.0, %v2288_v37  ;;  %v2303_v16 = vmul.f32 %v7632_v12, %v7539_v50  ;;  %v7653_v29 = vadd.f32 1.0, %v5817_v57  ;;  %5826 = vpow2.f32 %v5329_v7 }
 0x185   : > { %v2261_v53 = vadd.f32 %v7522_v39, %v2260_v59  ;;  %vm2263_vm15 = vweird.f32 %v7522_v39  ;;  %vm7657_vm0 = vcmp.eq.f32.partialorder %v2266_v1, 8.507059e+37  ;;  %vm2277_vm1 = vweird.f32 %v7498_v28 }
 0x186   : > { %v2269_v15 = vor.u32 1.1754944e-38, %v2268_v51  ;;  %vm7664_vm2 = vcmp.eq.f32.partialorder %v2281_v20, 8.507059e+37  ;;  %v2284_v35 = vor.u32 1.1754944e-38, %v2283_v41  ;;  %v7668_v42 = vadd.f32 1.0, %v5821_v31  ;;  %vm7679_vm4 = vmor %vm2262_vm14, %vm2263_vm15  ;;  %v1581_v20 = vpop.f32.mrf.mxu2 }
 0x187   : > { %v7662_v36 = vpop.eup %5822  ;;  %vm2278_vm3 = vweird.f32 %v7541_v52  ;;  %v2296_v14 = vand.u32 2147483647, %v7510_v55  ;;  %v2298_v46 = vand.u32 2147483648, %v7510_v55  ;;  %5828 = vpow2.f32 %v5330_v10 }
 0x188   : > { %v7670_v54 = vpop.eup %5824  ;;  %v2276_v24 = vadd.f32 %v7541_v52, %v2275_v2  ;;  %v2290_v23 = vmul.f32 %v7604_v0, %v2289_v47  ;;  %v2304_v57 = vsub.f32 1.0, %v2303_v16  ;;  %5830 = vrcp.f32 %v7653_v29  ;;  %vm7703_vm6 = vmor %vm2277_vm1, %vm2278_vm3  ;;  %v1670_v2 = vpop.f32.mrf.mxu3 }
 0x189   : > { %v2265_v37 = vsel %vm7679_vm4, %v7522_v39, %v2261_v53  ;;  %v2313_v7 = vand.u32 2147483648, %v7539_v50  ;;  %v2318_v34 = vmul.f32 %v7662_v36, %v7599_v58  ;;  %v679_v62 = vsub.f32 %v7649_v9, %v7629_v3 }
 0x18a   : > { %v5827_v59 = vpop.eup %5826  ;;  %vm2292_vm5 = vweird.f32 %v7510_v55  ;;  %v2311_v1 = vand.u32 2147483647, %v7539_v50  ;;  %v2333_v51 = vmul.f32 %v7670_v54, %v7608_v11  ;;  %5832 = vrcp.f32 %v7668_v42 }
 0x18b   : > { %vm2293_vm7 = vweird.f32 %v7604_v0  ;;  %vm7708_vm8 = vcmp.eq.f32.partialorder %v2296_v14, 8.507059e+37  ;;  %v2299_v41 = vor.u32 1.1754944e-38, %v2298_v46  ;;  %vm2307_vm9 = vweird.f32 %v7539_v50  ;;  %v1494_v50 = vpop.f32.mrf.mxu1 }
 0x18c   : > { %v2328_v31 = vand.u32 2147483648, %v7599_v58  ;;  %v2270_v28 = vsel %vm7657_vm0, %v2269_v15, %v2265_v37  ;;  %v2280_v10 = vsel %vm7703_vm6, %v7541_v52, %v2276_v24  ;;  %v2291_v9 = vadd.f32 %v7604_v0, %v2290_v23  ;;  %v7730_v37 = vld [vmem:[%s6780_s18 + $0xd0] sm:$0xff]  ;;  %vm7746_vm10 = vmor %vm2292_vm5, %vm2293_vm7 }
 0x18d   : > { %v2305_v47 = vmul.f32 %v7632_v12, %v2304_v57  ;;  %v5829_v16 = vpop.eup %5828  ;;  %v2314_v53 = vor.u32 1.1754944e-38, %v2313_v7  ;;  %v2319_v18 = vsub.f32 1.0, %v2318_v34  ;;  %v7721_v14 = vadd.f32 1.0, %v5827_v59 }
 0x18e   : > { %v7724_v46 = vadd.f32 %v1581_v20, %v7431_v45  ;;  %v7726_v6 = vpop.eup %5830  ;;  %v2326_v19 = vand.u32 2147483647, %v7599_v58  ;;  %v2334_v15 = vsub.f32 1.0, %v2333_v51  ;;  %v7735_v24 = vadd.f32 %v1670_v2, %v7442_v61 }
 0x18f   : > { %v7738_v23 = vmul.f32 %v2270_v28, %v7418_v13  ;;  %v2285_v57 = vsel %vm7664_vm2, %v2284_v35, %v2280_v10  ;;  %vm2308_vm11 = vweird.f32 %v7632_v12  ;;  %vm7751_vm12 = vcmp.eq.f32.partialorder %v2311_v1, 8.507059e+37 }
 0x190   : > { %vm2322_vm13 = vweird.f32 %v7599_v58  ;;  %v7756_v13 = vadd.f32 1e-05, %v679_v62  ;;  %v7758_v35 = vpop.eup %5832  ;;  %v2295_v55 = vsel %vm7746_vm10, %v7604_v0, %v2291_v9  ;;  %v2306_v59 = vadd.f32 %v7632_v12, %v2305_v47  ;;  %vm7792_vm0 = vmor %vm2307_vm9, %vm2308_vm11  ;;  %v1672_v10 = vpop.f32.mrf.mxu3 }
 0x191   : > { %13113 = vst [vmem:[#allocation16_spill] sm:$0xff] %v7738_v23  ;;  %v2329_v51 = vor.u32 1.1754944e-38, %v2328_v31  ;;  %vm2337_vm14 = vweird.f32 %v7608_v11  ;;  %v7765_v1 = vadd.f32 1.0, %v5829_v16  ;;  %v2320_v20 = vmul.f32 %v7662_v36, %v2319_v18 }
 0x192   : > { %v2348_v62 = vmul.f32 %v7726_v6, %v7653_v29  ;;  %5834 = vrcp.f32 %v7721_v14  ;;  %v5331_v39 = vmul.f32 -1.442695, %v7724_v46  ;;  %v7773_v2 = vmul.f32 %v2285_v57, %v7425_v22 }
 0x193   : > { %v2335_v0 = vmul.f32 %v7670_v54, %v2334_v15  ;;  %v5332_v31 = vmul.f32 -1.442695, %v7735_v24  ;;  %v616_v28 = vmul.f32 0.0078125, %v548_v27  ;;  %vm7777_vm15 = vcmp.eq.f32.partialorder %v2326_v19, 8.507059e+37  ;;  %v1405_v19 = vpop.f32.mrf.mxu0 }
 0x194   : > { %13118 = vst [vmem:[#allocation17_spill] sm:$0xff] %v7773_v2  ;;  %v2341_v9 = vand.u32 2147483647, %v7608_v11  ;;  %v2343_v47 = vand.u32 2147483648, %v7608_v11  ;;  %v2363_v16 = vmul.f32 %v7758_v35, %v7668_v42  ;;  %5836 = vrsqrt.f32 %v7756_v13  ;;  %v1583_v11 = vpop.f32.mrf.mxu2 }
 0x195   : > { %v2300_v22 = vsel %vm7708_vm8, %v2299_v41, %v2295_v55  ;;  %vm2323_vm1 = vweird.f32 %v7662_v36  ;;  %vm2338_vm2 = vweird.f32 %v7670_v54  ;;  %5838 = vrcp.f32 %v7765_v1 }
 0x196   : > { %v2310_v3 = vsel %vm7792_vm0, %v7632_v12, %v2306_v59  ;;  %v2321_v41 = vadd.f32 %v7662_v36, %v2320_v20  ;;  %v2349_v15 = vsub.f32 1.0, %v2348_v62  ;;  %5840 = vpow2.f32 %v5331_v39  ;;  %vm7821_vm4 = vmor %vm2322_vm13, %vm2323_vm1 }
 0x197   : > { %v2336_v57 = vadd.f32 %v7670_v54, %v2335_v0  ;;  %v2358_v7 = vand.u32 2147483648, %v7653_v29  ;;  %5842 = vpow2.f32 %v5332_v31  ;;  %v680_v27 = vsub.f32 %v616_v28, %v7644_v8  ;;  %vm7843_vm6 = vmor %vm2337_vm14, %vm2338_vm2 }
 0x198   : > { %v7806_v55 = vpop.eup %5834  ;;  %vm7808_vm3 = vcmp.eq.f32.partialorder %v2341_v9, 8.507059e+37  ;;  %v2344_v18 = vor.u32 1.1754944e-38, %v2343_v47  ;;  %v2364_v12 = vsub.f32 1.0, %v2363_v16  ;;  %v7813_v59 = vadd.f32 %v1405_v19, %v7405_v33 }
 0x199   : > { %v2315_v20 = vsel %vm7751_vm12, %v2314_v53, %v2310_v3  ;;  %vm2352_vm5 = vweird.f32 %v7653_v29  ;;  %v2356_v62 = vand.u32 2147483647, %v7653_v29  ;;  %v2373_v39 = vand.u32 2147483648, %v7668_v42 }
 0x19a   : > { %v7829_v0 = vadd.f32 %v1494_v50, %v7411_v60  ;;  %v7831_v31 = vpop.eup %5836  ;;  %v7834_v53 = vmul.f32 %v2300_v22, %v7440_v32  ;;  %v2325_v58 = vsel %vm7821_vm4, %v7662_v36, %v2321_v41  ;;  %v2350_v28 = vmul.f32 %v7726_v6, %v2349_v15 }
 0x19b   : > { %v2371_v9 = vand.u32 2147483647, %v7668_v42  ;;  %v7849_v47 = vpop.eup %5838  ;;  %v2340_v32 = vsel %vm7843_vm6, %v7670_v54, %v2336_v57  ;;  %v2359_v16 = vor.u32 1.1754944e-38, %v2358_v7  ;;  %v2378_v36 = vmul.f32 %v7806_v55, %v7721_v14 }
 0x19c   : > { %13127 = vst [vmem:[#allocation18_spill] sm:$0xff] %v7834_v53  ;;  %v7856_v22 = vadd.f32 1e-05, %v680_v27  ;;  %v5841_v19 = vpop.eup %5840  ;;  %v7859_v3 = vmul.f32 %v2315_v20, %v7452_v63  ;;  %v2365_v41 = vmul.f32 %v7758_v35, %v2364_v12  ;;  %vm2367_vm7 = vweird.f32 %v7668_v42 }
 0x19d   : > { %v5333_v15 = vmul.f32 -1.442695, %v7813_v59  ;;  %v5843_v50 = vpop.eup %5842  ;;  %v2330_v54 = vsel %vm7777_vm15, %v2329_v51, %v2325_v58  ;;  %vm2353_vm8 = vweird.f32 %v7726_v6  ;;  %vm7867_vm9 = vcmp.eq.f32.partialorder %v2356_v62, 8.507059e+37 }
 0x19e   : > { %13130 = vst [vmem:[#allocation19_spill] sm:$0xff] %v7859_v3  ;;  %v2374_v7 = vor.u32 1.1754944e-38, %v2373_v39  ;;  %v5334_v63 = vmul.f32 -1.442695, %v7829_v0  ;;  %v2345_v27 = vsel %vm7808_vm3, %v2344_v18, %v2340_v32  ;;  %v2351_v12 = vadd.f32 %v7726_v6, %v2350_v28  ;;  %vm7907_vm12 = vmor %vm2352_vm5, %vm2353_vm8 }
 0x19f   : > { %vm2368_vm10 = vweird.f32 %v7758_v35  ;;  %vm7876_vm11 = vcmp.eq.f32.partialorder %v2371_v9, 8.507059e+37  ;;  %v7881_v51 = vadd.f32 %v1583_v11, %v7431_v45  ;;  %v2379_v8 = vsub.f32 1.0, %v2378_v36 }
 0x1a0   : > { %v1010_v62 = vmul.f32 %v7831_v31, %v7756_v13  ;;  %v7885_v39 = vadd.f32 1.0, %v5841_v19  ;;  %5844 = vrsqrt.f32 %v7856_v22  ;;  %v2366_v52 = vadd.f32 %v7758_v35, %v2365_v41  ;;  %vm7921_vm14 = vmor %vm2367_vm7, %vm2368_vm10 }
 0x1a1   : > { %v2393_v18 = vmul.f32 %v7849_v47, %v7765_v1  ;;  %v7891_v58 = vadd.f32 1.0, %v5843_v50  ;;  %5846 = vpow2.f32 %v5333_v15  ;;  %v7894_v34 = vmul.f32 %v2330_v54, %v7480_v38 }
 0x1a2   : > { %v2388_v28 = vand.u32 2147483648, %v7721_v14  ;;  %5848 = vpow2.f32 %v5334_v63  ;;  %v7898_v9 = vadd.f32 %v1672_v10, %v7442_v61  ;;  %v7901_v32 = vmul.f32 %v2345_v27, %v7488_v49  ;;  %v1408_v10 = vpop.f32.mrf.mxu0 }
 0x1a3   : > { %13135 = vst [vmem:[#allocation20_spill] sm:$0xff] %v7894_v34  ;;  %vm2382_vm13 = vweird.f32 %v7721_v14  ;;  %v2386_v38 = vand.u32 2147483647, %v7721_v14  ;;  %v5335_v11 = vmul.f32 -1.442695, %v7881_v51  ;;  %v2355_v19 = vsel %vm7907_vm12, %v7726_v6, %v2351_v12  ;;  %v7932_v6 = vld [vmem:[%s6780_s18 + $0xd8] sm:$0xff] }
 0x1a4   : > { %13136 = vst [vmem:[#allocation21_spill] sm:$0xff] %v7901_v32  ;;  %v2380_v29 = vmul.f32 %v7806_v55, %v2379_v8  ;;  %v1011_v41 = vmul.f32 %v7831_v31, %v1010_v62  ;;  %5850 = vrcp.f32 %v7885_v39  ;;  %v2370_v15 = vsel %vm7921_vm14, %v7758_v35, %v2366_v52 }
 0x1a5   : > { %v2394_v50 = vsub.f32 1.0, %v2393_v18  ;;  %5852 = vrcp.f32 %v7891_v58  ;;  %v2389_v27 = vor.u32 1.1754944e-38, %v2388_v28  ;;  %v5336_v12 = vmul.f32 -1.442695, %v7898_v9 }
 0x1a6   : > { %v7937_v54 = vpop.eup %5844  ;;  %v1126_v35 = vmul.f32 %v7513_v48, %v7617_v43  ;;  %v2360_v52 = vsel %vm7867_vm9, %v2359_v16, %v2355_v19  ;;  %vm2383_vm15 = vweird.f32 %v7806_v55  ;;  %vm7949_vm0 = vcmp.eq.f32.partialorder %v2386_v38, 8.507059e+37  ;;  %v1497_v16 = vpop.f32.mrf.mxu1 }
 0x1a7   : > { %v5847_v8 = vpop.eup %5846  ;;  %5854 = vpow2.f32 %v5335_v11  ;;  %v2375_v36 = vsel %vm7876_vm11, %v2374_v7, %v2370_v15  ;;  %v2381_v43 = vadd.f32 %v7806_v55, %v2380_v29  ;;  %vm2397_vm1 = vweird.f32 %v7765_v1  ;;  %v454_v15 = vpop.xlane.xlu2 %453  ;;  %vm7981_vm3 = vmor %vm2382_vm13, %vm2383_vm15 }
 0x1a8   : > { %v5849_v28 = vpop.eup %5848  ;;  %v2401_v49 = vand.u32 2147483647, %v7765_v1  ;;  %v1012_v62 = vmul.f32 0.5, %v1011_v41  ;;  %vm1015_vm2 = vweird.f32 %v7756_v13  ;;  %v2395_v57 = vmul.f32 %v7849_v47, %v2394_v50 }
 0x1a9   : > { %v7961_v38 = vadd.f32 %v1408_v10, %v7405_v33  ;;  %v1127_v11 = vmul.f32 %v7513_v48, %v7610_v17  ;;  %v1161_v7 = vadd.f32 %v7557_v56, %v1126_v35  ;;  %v7969_v19 = vmul.f32 %v2360_v52, %v7507_v25 }
 0x1aa   : > { %v7966_v20 = vpop.eup %5850  ;;  %v1020_v29 = vmul.f32 %v7937_v54, %v7856_v22  ;;  %v7973_v41 = vadd.f32 1.0, %v5847_v8  ;;  %5856 = vpow2.f32 %v5336_v12  ;;  %v2403_v25 = vand.u32 2147483648, %v7765_v1 }
 0x1ab   : > { %13143 = vst [vmem:[#allocation22_spill] sm:$0xff] %v7969_v19  ;;  %v7975_v50 = vpop.eup %5852  ;;  %v7986_v17 = vadd.f32 1.0, %v5849_v28  ;;  %v7989_v10 = vadd.f32 %v1497_v16, %v7411_v60  ;;  %v1162_v35 = vadd.f32 %v7557_v56, %v1127_v11  ;;  %v7993_v12 = vmul.f32 %v2375_v36, %v7519_v5 }
 0x1ac   : > { %v2385_v14 = vsel %vm7981_vm3, %v7806_v55, %v2381_v43  ;;  %vm2398_vm4 = vweird.f32 %v7849_v47  ;;  %vm7999_vm5 = vcmp.eq.f32.partialorder %v2401_v49, 8.507059e+37  ;;  %v2396_v28 = vadd.f32 %v7849_v47, %v2395_v57 }
 0x1ad   : > { %13146 = vst [vmem:[#allocation23_spill] sm:$0xff] %v7993_v12  ;;  %v5855_v52 = vpop.eup %5854  ;;  %v1013_v16 = vsub.f32 1.5, %v1012_v62  ;;  %v5337_v63 = vmul.f32 -1.442695, %v7961_v38  ;;  %v1182_v11 = vpack.c.bf16 %v1162_v35, %v1161_v7  ;;  %v2408_v5 = vmul.f32 %v7966_v20, %v7885_v39  ;;  %v456_v35 = vpop.xlane.xlu0 %455  ;;  %vm8028_vm7 = vmor %vm2397_vm1, %vm2398_vm4 }
 0x1ae   : > { %v2423_v36 = vmul.f32 %v7975_v50, %v7891_v58  ;;  %v1021_v55 = vmul.f32 %v7937_v54, %v1020_v29  ;;  %5858 = vrcp.f32 %v7973_v41  ;;  %v2404_v49 = vor.u32 1.1754944e-38, %v2403_v25 }
 0x1af   : > { %5860 = vrcp.f32 %v7986_v17  ;;  %v5338_v62 = vmul.f32 -1.442695, %v7989_v10  ;;  %1452 = vmatmul.bf16.gmra.mxu0 %v1182_v11  ;;  %1541 = vmatmul.bf16.gmra.mxu1 %v1182_v11  ;;  %v2390_v7 = vsel %vm7949_vm0, %v2389_v27, %v2385_v14  ;;  %vm1016_vm6 = vweird.f32 %v7831_v31 }
 0x1b0   : > { %v5857_v57 = vpop.eup %5856  ;;  %v8018_v48 = vmul.f32 0.0078125, %v454_v15  ;;  %v8020_v29 = vadd.f32 1.0, %v5855_v52  ;;  %1630 = vmatmul.bf16.gmra.mxu2 %v1182_v11  ;;  %1719 = vmatmul.bf16.gmra.mxu3 %v1182_v11  ;;  %v1014_v27 = vmul.f32 %v7831_v31, %v1013_v16  ;;  %vm1025_vm8 = vweird.f32 %v7856_v22  ;;  %vm8044_vm9 = vmor %vm1015_vm2, %vm1016_vm6 }
 0x1b1   : > { %5862 = vpow2.f32 %v5337_v63  ;;  %v2400_v18 = vsel %vm8028_vm7, %v7849_v47, %v2396_v28  ;;  %v2409_v15 = vsub.f32 1.0, %v2408_v5  ;;  %v2424_v14 = vsub.f32 1.0, %v2423_v36  ;;  %v8060_v5 = vld [vmem:[%s6780_s18 + $0xe0] sm:$0xff]  ;;  %v552_v36 = vpop.xlane.xlu2 %551 }
 0x1b2   : > { %v1022_v52 = vmul.f32 0.5, %v1021_v55  ;;  %v8038_v11 = vmul.f32 %v2390_v7, %v7602_v30  ;;  %v8048_v16 = vadd.f32 1.0, %v5857_v57  ;;  %5864 = vpow2.f32 %v5338_v62 }
 0x1b3   : > { %v8050_v63 = vmul.f32 0.0078125, %v456_v35  ;;  %v2418_v28 = vand.u32 2147483648, %v7885_v39  ;;  %v8057_v30 = vmul.f32 %v8018_v48, %v8018_v48  ;;  %5866 = vrcp.f32 %v8020_v29 }
 0x1b4   : > { %13151 = vst [vmem:[#allocation24_spill] sm:$0xff] %v8038_v11  ;;  %v8052_v47 = vpop.eup %5858  ;;  %v2405_v43 = vsel %vm7999_vm5, %v2404_v49, %v2400_v18  ;;  %vm2412_vm10 = vweird.f32 %v7885_v39  ;;  %v2416_v62 = vand.u32 2147483647, %v7885_v39  ;;  %v2431_v57 = vand.u32 2147483647, %v7891_v58 }
 0x1b5   : > { %v8065_v55 = vpop.eup %5860  ;;  %v1018_v7 = vsel %vm8044_vm9, %v7831_v31, %v1014_v27  ;;  %v2410_v35 = vmul.f32 %v7966_v20, %v2409_v15  ;;  %v2425_v25 = vmul.f32 %v7975_v50, %v2424_v14  ;;  %v1023_v13 = vsub.f32 1.5, %v1022_v52 }
 0x1b6   : > { %v2438_v8 = vmul.f32 %v8052_v47, %v7973_v41  ;;  %5868 = vrcp.f32 %v8048_v16  ;;  %v650_v49 = vmul.f32 %v8050_v63, %v8050_v63  ;;  %v618_v18 = vmul.f32 0.0078125, %v552_v36 }
 0x1b7   : > { %v5863_v42 = vpop.eup %5862  ;;  %v2419_v11 = vor.u32 1.1754944e-38, %v2418_v28  ;;  %v2433_v3 = vand.u32 2147483648, %v7891_v58  ;;  %vm1026_vm11 = vweird.f32 %v7937_v54  ;;  %v2453_v31 = vmul.f32 %v8065_v55, %v7986_v17  ;;  %v1499_v28 = vpop.f32.mrf.mxu1 }
 0x1b8   : > { %v5865_v27 = vpop.eup %5864  ;;  %v8087_v15 = vmul.f32 %v2405_v43, %v7622_v21  ;;  %v13155_v14 = vsub.f32 %v7730_v37, %v7594_v26  ;;  %vm8094_vm12 = vcmp.eq.f32.partialorder %v2416_v62, 8.507059e+37  ;;  %vm2427_vm13 = vweird.f32 %v7891_v58  ;;  %vm8116_vm1 = vmor %vm1025_vm8, %vm1026_vm11  ;;  %v1675_v62 = vpop.f32.mrf.mxu3 }
 0x1b9   : > { %vm8099_vm14 = vcmp.eq.f32.partialorder %v2431_v57, 8.507059e+37  ;;  %v8103_v36 = vpop.eup %5866  ;;  %v2411_v21 = vadd.f32 %v7966_v20, %v2410_v35  ;;  %vm2413_vm15 = vweird.f32 %v7966_v20  ;;  %v1024_v26 = vmul.f32 %v7937_v54, %v1023_v13 }
 0x1ba   : > { %13154 = vst [vmem:[#allocation25_spill] sm:$0xff] %v8087_v15  ;;  %v8092_v52 = vmul.f32 %v1018_v7, %v13155_v14  ;;  %v8108_v37 = vadd.f32 1.0, %v5863_v42  ;;  %v2426_v43 = vadd.f32 %v7975_v50, %v2425_v25  ;;  %vm2428_vm0 = vweird.f32 %v7975_v50  ;;  %v1586_v15 = vpop.f32.mrf.mxu2  ;;  %vm8127_vm2 = vmor %vm2412_vm10, %vm2413_vm15 }
 0x1bb   : > { %v2439_v57 = vsub.f32 1.0, %v2438_v8  ;;  %v682_v7 = vsub.f32 %v618_v18, %v650_v49  ;;  %v2434_v35 = vor.u32 1.1754944e-38, %v2433_v3  ;;  %v2448_v14 = vand.u32 2147483648, %v7973_v41  ;;  %vm8143_vm4 = vmor %vm2427_vm13, %vm2428_vm0 }
 0x1bc   : > { %v2454_v13 = vsub.f32 1.0, %v2453_v31  ;;  %v8121_v42 = vadd.f32 1.0, %v5865_v27  ;;  %v8123_v25 = vpop.eup %5868  ;;  %vm2442_vm3 = vweird.f32 %v7973_v41  ;;  %v2446_v22 = vand.u32 2147483647, %v7973_v41 }
 0x1bd   : > { %v2463_v3 = vand.u32 2147483648, %v7986_v17  ;;  %v2468_v8 = vmul.f32 %v8103_v36, %v8020_v29  ;;  %v2415_v49 = vsel %vm8127_vm2, %v7966_v20, %v2411_v21  ;;  %v1028_v18 = vsel %vm8116_vm1, %v7937_v54, %v1024_v26 }
 0x1be   : > { %vm2457_vm5 = vweird.f32 %v7986_v17  ;;  %v2461_v31 = vand.u32 2147483647, %v7986_v17  ;;  %5870 = vrcp.f32 %v8108_v37  ;;  %v2430_v20 = vsel %vm8143_vm4, %v7975_v50, %v2426_v43 }
 0x1bf   : > { %v2440_v58 = vmul.f32 %v8052_v47, %v2439_v57  ;;  %v8157_v12 = vadd.f32 1e-05, %v682_v7  ;;  %v8160_v27 = vadd.f32 %v1586_v15, %v7431_v45  ;;  %v2449_v21 = vor.u32 1.1754944e-38, %v2448_v14  ;;  %v1410_v14 = vpop.f32.mrf.mxu0 }
 0x1c0   : > { %v2455_v54 = vmul.f32 %v8065_v55, %v2454_v13  ;;  %v2483_v26 = vmul.f32 %v8123_v25, %v8048_v16  ;;  %5872 = vrcp.f32 %v8121_v42  ;;  %v13166_v39 = vsub.f32 %v7932_v6, %v7615_v44 }
 0x1c1   : > { %vm8171_vm6 = vcmp.eq.f32.partialorder %v2446_v22, 8.507059e+37  ;;  %v2464_v15 = vor.u32 1.1754944e-38, %v2463_v3  ;;  %v2469_v57 = vsub.f32 1.0, %v2468_v8  ;;  %v2478_v7 = vand.u32 2147483648, %v8020_v29 }
 0x1c2   : > { %v8169_v50 = vmul.f32 %v1028_v18, %v13166_v39  ;;  %v2420_v13 = vsel %vm8094_vm12, %v2419_v11, %v2415_v49  ;;  %v2435_v53 = vsel %vm8099_vm14, %v2434_v35, %v2430_v20  ;;  %vm2443_vm7 = vweird.f32 %v8052_v47  ;;  %v550_v11 = vpop.xlane.xlu1 %549 }
 0x1c3   : > { %vm8181_vm8 = vcmp.eq.f32.partialorder %v2461_v31, 8.507059e+37  ;;  %v2476_v6 = vand.u32 2147483647, %v8020_v29  ;;  %v2441_v22 = vadd.f32 %v8052_v47, %v2440_v58  ;;  %5874 = vrsqrt.f32 %v8157_v12  ;;  %vm8213_vm11 = vmor %vm2442_vm3, %vm2443_vm7 }
 0x1c4   : > { %v5339_v3 = vmul.f32 -1.442695, %v8160_v27  ;;  %v8190_v1 = vadd.f32 %v1675_v62, %v7442_v61  ;;  %v8192_v35 = vpop.eup %5870  ;;  %v2456_v8 = vadd.f32 %v8065_v55, %v2455_v54  ;;  %vm2458_vm9 = vweird.f32 %v8065_v55 }
 0x1c5   : > { %v2484_v49 = vsub.f32 1.0, %v2483_v26  ;;  %v8197_v18 = vadd.f32 %v1410_v14, %v7405_v33  ;;  %v8200_v31 = vmul.f32 %v2420_v13, %v7724_v46  ;;  %v2470_v20 = vmul.f32 %v8103_v36, %v2469_v57  ;;  %vm8228_vm12 = vmor %vm2457_vm5, %vm2458_vm9 }
 0x1c6   : > { %vm2472_vm10 = vweird.f32 %v8020_v29  ;;  %v2479_v58 = vor.u32 1.1754944e-38, %v2478_v7  ;;  %v8204_v62 = vpop.eup %5872  ;;  %v8207_v39 = vmul.f32 %v2435_v53, %v7735_v24  ;;  %v2491_v46 = vand.u32 2147483647, %v8048_v16  ;;  %v1588_v7 = vpop.f32.mrf.mxu2 }
 0x1c7   : > { %13171 = vst [vmem:[#allocation26_spill] sm:$0xff] %v8200_v31  ;;  %v617_v26 = vmul.f32 0.0078125, %v550_v11  ;;  %v8219_v57 = vadd.f32 %v1499_v28, %v7411_v60  ;;  %v2445_v24 = vsel %vm8213_vm11, %v8052_v47, %v2441_v22  ;;  %vm8232_vm13 = vcmp.eq.f32.partialorder %v2476_v6, 8.507059e+37 }
 0x1c8   : > { %13172 = vst [vmem:[#allocation27_spill] sm:$0xff] %v8207_v39  ;;  %v2498_v14 = vmul.f32 %v8192_v35, %v8108_v37  ;;  %5876 = vpow2.f32 %v5339_v3  ;;  %v5340_v13 = vmul.f32 -1.442695, %v8190_v1  ;;  %v2460_v47 = vsel %vm8228_vm12, %v8065_v55, %v2456_v8 }
 0x1c9   : > { %vm2473_vm14 = vweird.f32 %v8103_v36  ;;  %v2485_v17 = vmul.f32 %v8123_v25, %v2484_v49  ;;  %v5341_v22 = vmul.f32 -1.442695, %v8197_v18  ;;  %v8245_v6 = vpop.eup %5874  ;;  %v2471_v11 = vadd.f32 %v8103_v36, %v2470_v20 }
 0x1ca   : > { %vm2487_vm15 = vweird.f32 %v8048_v16  ;;  %v2513_v3 = vmul.f32 %v8204_v62, %v8121_v42  ;;  %v8252_v28 = vadd.f32 %v1588_v7, %v7431_v45  ;;  %v2450_v55 = vsel %vm8171_vm6, %v2449_v21, %v2445_v24  ;;  %vm8269_vm1 = vmor %vm2472_vm10, %vm2473_vm14 }
 0x1cb   : > { %v2493_v8 = vand.u32 2147483648, %v8048_v16  ;;  %v681_v49 = vsub.f32 %v617_v26, %v8057_v30  ;;  %v5342_v54 = vmul.f32 -1.442695, %v8219_v57  ;;  %v2465_v20 = vsel %vm8181_vm8, %v2464_v15, %v2460_v47 }
 0x1cc   : > { %vm8261_vm0 = vcmp.eq.f32.partialorder %v2491_v46, 8.507059e+37  ;;  %v2499_v39 = vsub.f32 1.0, %v2498_v14  ;;  %5878 = vpow2.f32 %v5340_v13  ;;  %v2486_v30 = vadd.f32 %v8123_v25, %v2485_v17 }
 0x1cd   : > { %vm2488_vm2 = vweird.f32 %v8123_v25  ;;  %v1040_v43 = vmul.f32 %v8245_v6, %v8157_v12  ;;  %5880 = vpow2.f32 %v5341_v22  ;;  %v2475_v44 = vsel %vm8269_vm1, %v8103_v36, %v2471_v11  ;;  %v8299_v22 = vld [vmem:[%s6780_s18 + $0xe8] sm:$0xff]  ;;  %v1502_v36 = vpop.f32.mrf.mxu1 }
 0x1ce   : > { %v5877_v15 = vpop.eup %5876  ;;  %v2506_v29 = vand.u32 2147483647, %v8108_v37  ;;  %v2514_v46 = vsub.f32 1.0, %v2513_v3  ;;  %v5343_v26 = vmul.f32 -1.442695, %v8252_v28  ;;  %v2494_v7 = vor.u32 1.1754944e-38, %v2493_v8  ;;  %vm8293_vm3 = vmor %vm2487_vm15, %vm2488_vm2 }
 0x1cf   : > { %v2508_v24 = vand.u32 2147483648, %v8108_v37  ;;  %v8283_v14 = vadd.f32 1e-05, %v681_v49  ;;  %5882 = vpow2.f32 %v5342_v54  ;;  %v8286_v13 = vmul.f32 %v2450_v55, %v7813_v59  ;;  %v1677_v54 = vpop.f32.mrf.mxu3 }
 0x1d0   : > { %v8289_v47 = vmul.f32 %v2465_v20, %v7829_v0  ;;  %v2500_v17 = vmul.f32 %v8192_v35, %v2499_v39  ;;  %v714_v11 = vsub.f32 %v8299_v22, %v8050_v63  ;;  %v2480_v59 = vsel %vm8232_vm13, %v2479_v58, %v2475_v44  ;;  %v1591_v22 = vpop.f32.mrf.mxu2 }
 0x1d1   : > { %13183 = vst [vmem:[#allocation28_spill] sm:$0xff] %v8286_v13  ;;  %v2490_v0 = vsel %vm8293_vm3, %v8123_v25, %v2486_v30  ;;  %v1041_v16 = vmul.f32 %v8245_v6, %v1040_v43  ;;  %v8309_v3 = vadd.f32 1.0, %v5877_v15  ;;  %vm2502_vm4 = vweird.f32 %v8108_v37 }
 0x1d2   : > { %13184 = vst [vmem:[#allocation29_spill] sm:$0xff] %v8289_v47  ;;  %v5879_v55 = vpop.eup %5878  ;;  %vm8312_vm5 = vcmp.eq.f32.partialorder %v2506_v29, 8.507059e+37  ;;  %v2515_v8 = vmul.f32 %v8204_v62, %v2514_v46  ;;  %5884 = vpow2.f32 %v5343_v26  ;;  %v2509_v58 = vor.u32 1.1754944e-38, %v2508_v24  ;;  %v1413_v29 = vpop.f32.mrf.mxu0  ;;  %v5632_v46 = vld [vmem:[#allocation10 + $0x88] sm:$0xff] }
 0x1d3   : > { %v5881_v41 = vpop.eup %5880  ;;  %v2521_v49 = vand.u32 2147483647, %v8121_v42  ;;  %v2523_v25 = vand.u32 2147483648, %v8121_v42  ;;  %5886 = vrsqrt.f32 %v8283_v14  ;;  %v8321_v20 = vmul.f32 %v2480_v59, %v7881_v51  ;;  %v5616_v26 = vld [vmem:[#allocation10 + $0x8] sm:$0xff]  ;;  %4813 = vmatpush.bf16.msrb.mxu2 %v5632_v46 }
 0x1d4   : > { %v2495_v21 = vsel %vm8261_vm0, %v2494_v7, %v2490_v0  ;;  %v2501_v30 = vadd.f32 %v8192_v35, %v2500_v17  ;;  %vm2503_vm6 = vweird.f32 %v8192_v35  ;;  %vm2517_vm7 = vweird.f32 %v8121_v42  ;;  %v5640_v51 = vld [vmem:[#allocation10 + $0xc8] sm:$0xff]  ;;  %4635 = vmatpush.bf16.msrb.mxu0 %v5616_v26 }
 0x1d5   : > { %13189 = vst [vmem:[#allocation30_spill] sm:$0xff] %v8321_v20  ;;  %v5883_v43 = vpop.eup %5882  ;;  %v1042_v15 = vmul.f32 0.5, %v1041_v16  ;;  %5888 = vrcp.f32 %v8309_v3  ;;  %v8329_v44 = vadd.f32 1.0, %v5879_v55  ;;  %v2516_v24 = vadd.f32 %v8204_v62, %v2515_v8  ;;  %vm8345_vm9 = vmor %vm2502_vm4, %vm2503_vm6  ;;  %v458_v55 = vpop.xlane.xlu0 %457  ;;  %4902 = vmatpush.bf16.msrb.mxu3 %v5640_v51 }
 0x1d6   : > { %vm2518_vm8 = vweird.f32 %v8204_v62  ;;  %v8333_v53 = vadd.f32 1.0, %v5881_v41  ;;  %v8336_v7 = vadd.f32 %v1677_v54, %v7442_v61  ;;  %v8339_v17 = vmul.f32 %v2495_v21, %v7898_v9 }
 0x1d7   : > { %vm8349_vm10 = vcmp.eq.f32.partialorder %v2521_v49, 8.507059e+37  ;;  %v2524_v16 = vor.u32 1.1754944e-38, %v2523_v25  ;;  %vm1045_vm11 = vweird.f32 %v8157_v12  ;;  %v2505_v8 = vsel %vm8345_vm9, %v8192_v35, %v2501_v30  ;;  %vm8370_vm12 = vmor %vm2517_vm7, %vm2518_vm8  ;;  %v8378_v30 = vld [vmem:[#allocation5] ss:$0 sm:$0xff]  ;;  %v8426_v12 = vld [vmem:[%s6780_s18 + $0xf0] sm:$0xff]  ;;  %v1680_v2 = vpop.f32.mrf.mxu3 }
 0x1d8   : > { %13190 = vst [vmem:[#allocation31_spill] sm:$0xff] %v8339_v17  ;;  %v5885_v9 = vpop.eup %5884  ;;  %v8357_v37 = vadd.f32 1.0, %v5883_v43  ;;  %v8359_v41 = vmul.f32 0.0078125, %v458_v55  ;;  %v8362_v49 = vadd.f32 %v1413_v29, %v7405_v33  ;;  %v1043_v21 = vsub.f32 1.5, %v1042_v15 }
 0x1d9   : > { %v8364_v54 = vpop.eup %5886  ;;  %5890 = vrcp.f32 %v8329_v44  ;;  %v8376_v35 = vadd.f32 %v1502_v36, %v7411_v60  ;;  %v1128_v43 = vmul.f32 %v8378_v30, %v7619_v4  ;;  %v2520_v29 = vsel %vm8370_vm12, %v8204_v62, %v2516_v24  ;;  %v5624_v36 = vld [vmem:[#allocation10 + $0x48] sm:$0xff] }
 0x1da   : > { %5892 = vrcp.f32 %v8333_v53  ;;  %v5344_v42 = vmul.f32 -1.442695, %v8336_v7  ;;  %v1129_v15 = vmul.f32 %v8378_v30, %v7636_v40  ;;  %v2510_v26 = vsel %vm8312_vm5, %v2509_v58, %v2505_v8  ;;  %4724 = vmatpush.bf16.msrb.mxu1 %v5624_v36 }
 0x1db   : > { %v8389_v46 = vpop.eup %5888  ;;  %vm1046_vm13 = vweird.f32 %v8245_v6  ;;  %v8394_v51 = vadd.f32 1.0, %v5885_v9  ;;  %v1163_v4 = vadd.f32 %v7557_v56, %v1128_v43  ;;  %v1030_v62 = vmul.f32 %v8364_v54, %v8283_v14 }
 0x1dc   : > { %5894 = vrcp.f32 %v8357_v37  ;;  %v5345_v24 = vmul.f32 -1.442695, %v8362_v49  ;;  %v1164_v40 = vadd.f32 %v7557_v56, %v1129_v15  ;;  %v2525_v39 = vsel %vm8349_vm10, %v2524_v16, %v2520_v29  ;;  %vm8412_vm14 = vmor %vm1045_vm11, %vm1046_vm13  ;;  %v460_v16 = vpop.xlane.xlu1 %459 }
 0x1dd   : > { %v1044_v58 = vmul.f32 %v8245_v6, %v1043_v21  ;;  %v8407_v59 = vmul.f32 %v8359_v41, %v8359_v41  ;;  %v5346_v55 = vmul.f32 -1.442695, %v8376_v35  ;;  %v2528_v56 = vmul.f32 %v8389_v46, %v8309_v3  ;;  %v556_v9 = vpop.xlane.xlu0 %555 }
 0x1de   : > { %v2538_v0 = vand.u32 2147483648, %v8309_v3  ;;  %5896 = vpow2.f32 %v5344_v42  ;;  %v1183_v8 = vpack.c.bf16 %v1164_v40, %v1163_v4  ;;  %v8422_v21 = vmul.f32 %v2510_v26, %v7961_v38  ;;  %v554_v38 = vpop.xlane.xlu2 %553 }
 0x1df   : > { %v8419_v25 = vpop.eup %5890  ;;  %v2553_v43 = vand.u32 2147483648, %v8329_v44  ;;  %5898 = vrcp.f32 %v8394_v51  ;;  %v8434_v42 = vmul.f32 %v2525_v39, %v7989_v10  ;;  %v2536_v4 = vand.u32 2147483647, %v8309_v3 }
 0x1e0   : > { %13199 = vst [vmem:[#allocation32_spill] sm:$0xff] %v8422_v21  ;;  %v8431_v15 = vpop.eup %5892  ;;  %v1031_v36 = vmul.f32 %v8364_v54, %v1030_v62  ;;  %5900 = vpow2.f32 %v5345_v24  ;;  %1457 = vmatmul.bf16.gmra.mxu0 %v1183_v8  ;;  %1546 = vmatmul.bf16.gmra.mxu1 %v1183_v8  ;;  %v1048_v26 = vsel %vm8412_vm14, %v8245_v6, %v1044_v58  ;;  %vm1035_vm15 = vweird.f32 %v8283_v14 }
 0x1e1   : > { %13200 = vst [vmem:[#allocation33_spill] sm:$0xff] %v8434_v42  ;;  %v2568_v40 = vand.u32 2147483648, %v8333_v53  ;;  %5902 = vpow2.f32 %v5346_v55  ;;  %v8443_v29 = vmul.f32 0.0078125, %v460_v16  ;;  %1635 = vmatmul.bf16.gmra.mxu2 %v1183_v8  ;;  %1724 = vmatmul.bf16.gmra.mxu3 %v1183_v8  ;;  %v2529_v62 = vsub.f32 1.0, %v2528_v56 }
 0x1e2   : > { %v8445_v10 = vpop.eup %5894  ;;  %v8447_v24 = vor.u32 1.1754944e-38, %v2538_v0  ;;  %vm1036_vm0 = vweird.f32 %v8364_v54  ;;  %v2543_v6 = vmul.f32 %v8419_v25, %v8329_v44  ;;  %v8453_v58 = vor.u32 1.1754944e-38, %v2553_v43 }
 0x1e3   : > { %v2558_v55 = vmul.f32 %v8431_v15, %v8333_v53  ;;  %v619_v16 = vmul.f32 0.0078125, %v554_v38  ;;  %v8460_v56 = vmul.f32 %v1048_v26, %v714_v11  ;;  %vm2532_vm1 = vweird.f32 %v8309_v3  ;;  %vm8517_vm7 = vmor %vm1035_vm15, %vm1036_vm0 }
 0x1e4   : > { %v5897_v8 = vpop.eup %5896  ;;  %vm2533_vm2 = vweird.f32 %v8389_v46  ;;  %v1032_v0 = vmul.f32 0.5, %v1031_v36  ;;  %v2566_v39 = vand.u32 2147483647, %v8333_v53  ;;  %v8467_v43 = vor.u32 1.1754944e-38, %v2568_v40 }
 0x1e5   : > { %v8465_v42 = vpop.eup %5898  ;;  %v2573_v38 = vmul.f32 %v8445_v10, %v8357_v37  ;;  %v652_v21 = vmul.f32 %v8443_v29, %v8443_v29  ;;  %v620_v63 = vmul.f32 0.0078125, %v556_v9  ;;  %v2530_v26 = vmul.f32 %v8389_v46, %v2529_v62  ;;  %vm8527_vm9 = vmor %vm2532_vm1, %vm2533_vm2 }
 0x1e6   : > { %v5901_v11 = vpop.eup %5900  ;;  %vm2548_vm3 = vweird.f32 %v8419_v25  ;;  %v1130_v36 = vmul.f32 %v8378_v30, %v8092_v52  ;;  %v1131_v40 = vmul.f32 %v8378_v30, %v8169_v50  ;;  %v2544_v20 = vsub.f32 1.0, %v2543_v6 }
 0x1e7   : > { %v5903_v17 = vpop.eup %5902  ;;  %v2559_v31 = vsub.f32 1.0, %v2558_v55  ;;  %v8479_v47 = vadd.f32 1.0, %v5897_v8  ;;  %v683_v13 = vsub.f32 %v619_v16, %v8407_v59  ;;  %vm2547_vm4 = vweird.f32 %v8329_v44 }
 0x1e8   : > { %v1033_v9 = vsub.f32 1.5, %v1032_v0  ;;  %v2581_v62 = vand.u32 2147483647, %v8357_v37  ;;  %v2588_v19 = vmul.f32 %v8465_v42, %v8394_v51  ;;  %v8487_v52 = vadd.f32 %v1591_v22, %v7431_v45  ;;  %vm8573_vm14 = vmor %vm2547_vm4, %vm2548_vm3 }
 0x1e9   : > { %vm8489_vm5 = vcmp.eq.f32.partialorder %v2536_v4, 8.507059e+37  ;;  %vm2562_vm6 = vweird.f32 %v8333_v53  ;;  %v2574_v6 = vsub.f32 1.0, %v2573_v38  ;;  %v2583_v59 = vand.u32 2147483648, %v8357_v37  ;;  %v8503_v4 = vld [vmem:[%s12990_s2] ss:$0 sm:$0xff] }
 0x1ea   : > { %v8495_v55 = vadd.f32 1.0, %v5901_v11  ;;  %v684_v16 = vsub.f32 %v620_v63, %v652_v21  ;;  %v2531_v8 = vadd.f32 %v8389_v46, %v2530_v26  ;;  %v8498_v0 = vadd.f32 1.0, %v5903_v17 }
 0x1eb   : > { %v1165_v22 = vadd.f32 %v8503_v4, %v1130_v36  ;;  %v1166_v32 = vadd.f32 %v8503_v4, %v1131_v40  ;;  %v2545_v38 = vmul.f32 %v8419_v25, %v2544_v20  ;;  %v2560_v11 = vmul.f32 %v8431_v15, %v2559_v31  ;;  %v1415_v36 = vpop.f32.mrf.mxu0 }
 0x1ec   : > { %5904 = vrcp.f32 %v8479_v47  ;;  %v8510_v21 = vadd.f32 1e-05, %v683_v13  ;;  %v1034_v17 = vmul.f32 %v8364_v54, %v1033_v9  ;;  %vm2577_vm8 = vweird.f32 %v8357_v37 }
 0x1ed   : > { %v2589_v26 = vsub.f32 1.0, %v2588_v19  ;;  %v5347_v20 = vmul.f32 -1.442695, %v8487_v52  ;;  %vm2563_vm10 = vweird.f32 %v8431_v15  ;;  %v2575_v14 = vmul.f32 %v8445_v10, %v2574_v6 }
 0x1ee   : > { %5906 = vrcp.f32 %v8495_v55  ;;  %v8534_v13 = vadd.f32 1e-05, %v684_v16  ;;  %v2535_v19 = vsel %vm8527_vm9, %v8389_v46, %v2531_v8  ;;  %v13207_v40 = vand.u32 2147483647, %v8329_v44  ;;  %v1504_v16 = vpop.f32.mrf.mxu1  ;;  %v1593_v8 = vpop.f32.mrf.mxu2  ;;  %vm8590_vm0 = vmor %vm2562_vm6, %vm2563_vm10 }
 0x1ef   : > { %vm8545_vm12 = vcmp.eq.f32.partialorder %v2566_v39, 8.507059e+37  ;;  %v2584_v6 = vor.u32 1.1754944e-38, %v2583_v59  ;;  %5908 = vrcp.f32 %v8498_v0  ;;  %v1184_v23 = vpack.c.bf16 %v1166_v32, %v1165_v22 }
 0x1f0   : > { %vm8541_vm11 = vcmp.eq.f32.partialorder %v13207_v40, 8.507059e+37  ;;  %v2546_v34 = vadd.f32 %v8419_v25, %v2545_v38  ;;  %v2561_v31 = vadd.f32 %v8431_v15, %v2560_v11  ;;  %vm8552_vm13 = vcmp.eq.f32.partialorder %v2581_v62, 8.507059e+37 }
 0x1f1   : > { %5910 = vrsqrt.f32 %v8510_v21  ;;  %v8558_v39 = vadd.f32 %v1680_v2, %v7442_v61  ;;  %v1038_v59 = vsel %vm8517_vm7, %v8364_v54, %v1034_v17  ;;  %v2590_v32 = vmul.f32 %v8465_v42, %v2589_v26  ;;  %1462 = vmatmul.bf16.gmra.mxu0 %v1184_v23  ;;  %1551 = vmatmul.bf16.gmra.mxu1 %v1184_v23 }
 0x1f2   : > { %5912 = vpow2.f32 %v5347_v20  ;;  %v8565_v22 = vadd.f32 %v1415_v36, %v7405_v33  ;;  %v8567_v62 = vpop.eup %5904  ;;  %v2576_v54 = vadd.f32 %v8445_v10, %v2575_v14  ;;  %vm2578_vm15 = vweird.f32 %v8445_v10  ;;  %1640 = vmatmul.bf16.gmra.mxu2 %v1184_v23  ;;  %1729 = vmatmul.bf16.gmra.mxu3 %v1184_v23  ;;  %v1682_v36 = vpop.f32.mrf.mxu3 }
 0x1f3   : > { %5914 = vrsqrt.f32 %v8534_v13  ;;  %v8581_v38 = vadd.f32 %v1504_v16, %v7411_v60  ;;  %v2540_v11 = vsel %vm8489_vm5, %v8447_v24, %v2535_v19  ;;  %v2596_v17 = vand.u32 2147483647, %v8394_v51  ;;  %vm8615_vm2 = vmor %vm2577_vm8, %vm2578_vm15 }
 0x1f4   : > { %v2598_v63 = vand.u32 2147483648, %v8394_v51  ;;  %v8597_v26 = vadd.f32 %v1593_v8, %v7431_v45  ;;  %v8599_v23 = vpop.eup %5906  ;;  %v2550_v24 = vsel %vm8573_vm14, %v8419_v25, %v2546_v34  ;;  %v2565_v53 = vsel %vm8590_vm0, %v8431_v15, %v2561_v31 }
 0x1f5   : > { %vm2592_vm1 = vweird.f32 %v8394_v51  ;;  %v5348_v50 = vmul.f32 -1.442695, %v8558_v39  ;;  %v8609_v20 = vpop.eup %5908  ;;  %v2591_v34 = vadd.f32 %v8465_v42, %v2590_v32  ;;  %vm2593_vm3 = vweird.f32 %v8465_v42 }
 0x1f6   : > { %v2603_v25 = vmul.f32 %v8567_v62, %v8479_v47  ;;  %v5349_v15 = vmul.f32 -1.442695, %v8565_v22  ;;  %v8627_v40 = vmul.f32 %v2540_v11, %v8160_v27  ;;  %v13221_v37 = vsub.f32 %v8060_v5, %v8018_v48  ;;  %vm8657_vm5 = vmor %vm2592_vm1, %vm2593_vm3 }
 0x1f7   : > { %v8624_v19 = vpop.eup %5910  ;;  %v2580_v31 = vsel %vm8615_vm2, %v8445_v10, %v2576_v54  ;;  %v5350_v8 = vmul.f32 -1.442695, %v8581_v38  ;;  %vm8638_vm4 = vcmp.eq.f32.partialorder %v2596_v17, 8.507059e+37  ;;  %v2599_v44 = vor.u32 1.1754944e-38, %v2598_v63 }
 0x1f8   : > { %13220 = vst [vmem:[#allocation34_spill] sm:$0xff] %v8627_v40  ;;  %v8632_v16 = vmul.f32 %v1038_v59, %v13221_v37  ;;  %v5913_v32 = vpop.eup %5912  ;;  %v2618_v27 = vmul.f32 %v8599_v23, %v8495_v55  ;;  %v5351_v11 = vmul.f32 -1.442695, %v8597_v26  ;;  %v2555_v5 = vsel %vm8541_vm11, %v8453_v58, %v2550_v24  ;;  %v8694_v37 = vld [vmem:[%s6780_s18 + $0xf8] sm:$0xff] }
 0x1f9   : > { %v8645_v48 = vpop.eup %5914  ;;  %v2570_v10 = vsel %vm8545_vm12, %v8467_v43, %v2565_v53  ;;  %5916 = vpow2.f32 %v5348_v50  ;;  %v8662_v54 = vadd.f32 %v1682_v36, %v7442_v61  ;;  %v2585_v3 = vsel %vm8552_vm13, %v2584_v6, %v2580_v31 }
 0x1fa   : > { %v2595_v58 = vsel %vm8657_vm5, %v8465_v42, %v2591_v34  ;;  %v2604_v43 = vsub.f32 1.0, %v2603_v25  ;;  %5918 = vpow2.f32 %v5349_v15  ;;  %v2613_v9 = vand.u32 2147483648, %v8479_v47 }
 0x1fb   : > { %v2633_v51 = vmul.f32 %v8609_v20, %v8498_v0  ;;  %v1050_v17 = vmul.f32 %v8624_v19, %v8510_v21  ;;  %5920 = vpow2.f32 %v5350_v8  ;;  %v2619_v63 = vsub.f32 1.0, %v2618_v27 }
 0x1fc   : > { %v1060_v6 = vmul.f32 %v8645_v48, %v8534_v13  ;;  %v8676_v46 = vadd.f32 1.0, %v5913_v32  ;;  %5922 = vpow2.f32 %v5351_v11  ;;  %v8679_v42 = vmul.f32 %v2555_v5, %v8190_v1 }
 0x1fd   : > { %v2600_v24 = vsel %vm8638_vm4, %v2599_v44, %v2595_v58  ;;  %v2611_v53 = vand.u32 2147483647, %v8479_v47  ;;  %v5352_v50 = vmul.f32 -1.442695, %v8662_v54  ;;  %v8686_v14 = vmul.f32 %v2570_v10, %v8197_v18 }
 0x1fe   : > { %13226 = vst [vmem:[#allocation35_spill] sm:$0xff] %v8679_v42  ;;  %v8689_v34 = vmul.f32 %v2585_v3, %v8219_v57  ;;  %v2605_v25 = vmul.f32 %v8567_v62, %v2604_v43  ;;  %vm2607_vm6 = vweird.f32 %v8479_v47  ;;  %v2614_v1 = vor.u32 1.1754944e-38, %v2613_v9 }
 0x1ff   : > { %v5917_v15 = vpop.eup %5916  ;;  %v2634_v36 = vsub.f32 1.0, %v2633_v51  ;;  %v716_v31 = vsub.f32 %v8694_v37, %v8443_v29  ;;  %v1051_v8 = vmul.f32 %v8624_v19, %v1050_v17  ;;  %v8700_v18 = vmul.f32 %v2600_v24, %v8252_v28 }
 0x200   : > { %v5919_v32 = vpop.eup %5918  ;;  %v2620_v57 = vmul.f32 %v8599_v23, %v2619_v63  ;;  %v1061_v2 = vmul.f32 %v8645_v48, %v1060_v6  ;;  %5924 = vrcp.f32 %v8676_v46  ;;  %vm2608_vm7 = vweird.f32 %v8567_v62  ;;  %v1418_v6 = vpop.f32.mrf.mxu0 }
 0x201   : > { %13227 = vst [vmem:[#allocation36_spill] sm:$0xff] %v8700_v18  ;;  %v5921_v44 = vpop.eup %5920  ;;  %vm8706_vm8 = vcmp.eq.f32.partialorder %v2611_v53, 8.507059e+37  ;;  %v2626_v11 = vand.u32 2147483647, %v8495_v55  ;;  %v2628_v5 = vand.u32 2147483648, %v8495_v55  ;;  %5926 = vpow2.f32 %v5352_v50  ;;  %vm8729_vm12 = vmor %vm2607_vm6, %vm2608_vm7 }
 0x202   : > { %v5923_v28 = vpop.eup %5922  ;;  %v2606_v10 = vadd.f32 %v8567_v62, %v2605_v25  ;;  %vm2622_vm9 = vweird.f32 %v8495_v55  ;;  %vm2637_vm10 = vweird.f32 %v8498_v0  ;;  %v8715_v59 = vadd.f32 1.0, %v5917_v15 }
 0x203   : > { %v2635_v3 = vmul.f32 %v8609_v20, %v2634_v36  ;;  %v2641_v58 = vand.u32 2147483647, %v8498_v0  ;;  %v1052_v43 = vmul.f32 0.5, %v1051_v8  ;;  %v8719_v9 = vadd.f32 1.0, %v5919_v32  ;;  %v1507_v36 = vpop.f32.mrf.mxu1 }
 0x204   : > { %v2621_v51 = vadd.f32 %v8599_v23, %v2620_v57  ;;  %vm2623_vm11 = vweird.f32 %v8599_v23  ;;  %v1062_v17 = vmul.f32 0.5, %v1061_v2  ;;  %v8723_v63 = vadd.f32 1.0, %v5921_v44 }
 0x205   : > { %vm8733_vm13 = vcmp.eq.f32.partialorder %v2626_v11, 8.507059e+37  ;;  %v2629_v50 = vor.u32 1.1754944e-38, %v2628_v5  ;;  %v2643_v25 = vand.u32 2147483648, %v8498_v0  ;;  %v8738_v15 = vadd.f32 1.0, %v5923_v28  ;;  %vm8752_vm0 = vmor %vm2622_vm9, %vm2623_vm11 }
 0x206   : > { %v8740_v8 = vpop.eup %5924  ;;  %v2610_v47 = vsel %vm8729_vm12, %v8567_v62, %v2606_v10  ;;  %vm2638_vm14 = vweird.f32 %v8609_v20  ;;  %vm1055_vm15 = vweird.f32 %v8510_v21  ;;  %5928 = vrcp.f32 %v8715_v59  ;;  %v1596_v10 = vpop.f32.mrf.mxu2 }
 0x207   : > { %v5927_v32 = vpop.eup %5926  ;;  %v2636_v2 = vadd.f32 %v8609_v20, %v2635_v3  ;;  %v1053_v44 = vsub.f32 1.5, %v1052_v43  ;;  %5930 = vrcp.f32 %v8719_v9  ;;  %v8759_v62 = vadd.f32 %v1418_v6, %v7405_v33  ;;  %vm8779_vm3 = vmor %vm2637_vm10, %vm2638_vm14 }
 0x208   : > { %v2625_v11 = vsel %vm8752_vm0, %v8599_v23, %v2621_v51  ;;  %v1063_v5 = vsub.f32 1.5, %v1062_v17  ;;  %5932 = vrcp.f32 %v8723_v63  ;;  %v8766_v55 = vadd.f32 %v1507_v36, %v7411_v60  ;;  %v1685_v17 = vpop.f32.mrf.mxu3 }
 0x209   : > { %vm1056_vm1 = vweird.f32 %v8624_v19  ;;  %vm1065_vm2 = vweird.f32 %v8534_v13  ;;  %v2648_v28 = vmul.f32 %v8740_v8, %v8676_v46  ;;  %5934 = vrcp.f32 %v8738_v15 }
 0x20a   : > { %v2615_v3 = vsel %vm8706_vm8, %v2614_v1, %v2610_v47  ;;  %vm1066_vm4 = vweird.f32 %v8645_v48  ;;  %v2658_v43 = vand.u32 2147483648, %v8676_v46  ;;  %v8785_v51 = vadd.f32 1.0, %v5927_v32  ;;  %vm8800_vm5 = vmor %vm1055_vm15, %vm1056_vm1 }
 0x20b   : > { %v2630_v6 = vsel %vm8733_vm13, %v2629_v50, %v2625_v11  ;;  %v2640_v1 = vsel %vm8779_vm3, %v8609_v20, %v2636_v2  ;;  %v1054_v0 = vmul.f32 %v8624_v19, %v1053_v44  ;;  %v5353_v27 = vmul.f32 -1.442695, %v8759_v62  ;;  %vm8818_vm7 = vmor %vm1065_vm2, %vm1066_vm4 }
 0x20c   : > { %v8794_v24 = vpop.eup %5928  ;;  %v2644_v36 = vor.u32 1.1754944e-38, %v2643_v25  ;;  %v1064_v53 = vmul.f32 %v8645_v48, %v1063_v5  ;;  %v5354_v50 = vmul.f32 -1.442695, %v8766_v55  ;;  %v8807_v20 = vadd.f32 %v1596_v10, %v7431_v45 }
 0x20d   : > { %v8809_v32 = vpop.eup %5930  ;;  %v8812_v57 = vmul.f32 %v2615_v3, %v8336_v7  ;;  %vm2642_vm6 = vcmp.eq.f32.partialorder %v2641_v58, 8.507059e+37  ;;  %v2649_v25 = vsub.f32 1.0, %v2648_v28  ;;  %v8823_v2 = vadd.f32 %v1685_v17, %v7442_v61 }
 0x20e   : > { %v8825_v44 = vpop.eup %5932  ;;  %v8828_v11 = vmul.f32 %v2630_v6, %v8362_v49  ;;  %v2645_v7 = vsel %vm2642_vm6, %v2644_v36, %v2640_v1  ;;  %v2656_v58 = vand.u32 2147483647, %v8676_v46  ;;  %5936 = vrcp.f32 %v8785_v51  ;;  %v1420_v49 = vpop.f32.mrf.mxu0 }
 0x20f   : > { %13240 = vst [vmem:[#allocation37_spill] sm:$0xff] %v8812_v57  ;;  %v8832_v5 = vpop.eup %5934  ;;  %v1058_v13 = vsel %vm8800_vm5, %v8624_v19, %v1054_v0  ;;  %vm2652_vm8 = vweird.f32 %v8676_v46  ;;  %v8838_v28 = vor.u32 1.1754944e-38, %v2658_v43  ;;  %v2663_v10 = vmul.f32 %v8794_v24, %v8715_v59 }
 0x210   : > { %13243 = vst [vmem:[#allocation38_spill] sm:$0xff] %v8828_v11  ;;  %5938 = vpow2.f32 %v5353_v27  ;;  %v1068_v3 = vsel %vm8818_vm7, %v8645_v48, %v1064_v53  ;;  %v2673_v23 = vand.u32 2147483648, %v8715_v59  ;;  %v5355_v17 = vmul.f32 -1.442695, %v8807_v20 }
 0x211   : > { %5940 = vpow2.f32 %v5354_v50  ;;  %v2650_v19 = vmul.f32 %v8740_v8, %v2649_v25  ;;  %v2678_v43 = vmul.f32 %v8809_v32, %v8719_v9  ;;  %v2693_v6 = vmul.f32 %v8825_v44, %v8723_v63  ;;  %v1509_v25 = vpop.f32.mrf.mxu1 }
 0x212   : > { %v5356_v1 = vmul.f32 -1.442695, %v8823_v2  ;;  %v8854_v0 = vmul.f32 %v2645_v7, %v8376_v35  ;;  %v2671_v48 = vand.u32 2147483647, %v8715_v59  ;;  %v2708_v27 = vmul.f32 %v8832_v5, %v8738_v15 }
 0x213   : > { %v8860_v36 = vadd.f32 %v1420_v49, %v7405_v33  ;;  %v13245_v47 = vsub.f32 %v8426_v12, %v8359_v41  ;;  %vm2653_vm9 = vweird.f32 %v8740_v8  ;;  %vm8868_vm10 = vcmp.eq.f32.partialorder %v2656_v58, 8.507059e+37 }
 0x214   : > { %13244 = vst [vmem:[#allocation39_spill] sm:$0xff] %v8854_v0  ;;  %v2664_v35 = vsub.f32 1.0, %v2663_v10  ;;  %v2688_v21 = vand.u32 2147483648, %v8719_v9  ;;  %v8873_v7 = vpop.eup %5936  ;;  %v8878_v49 = vmul.f32 %v1068_v3, %v716_v31  ;;  %v8880_v41 = vor.u32 1.1754944e-38, %v2673_v23  ;;  %vm8901_vm13 = vmor %vm2652_vm8, %vm2653_vm9 }
 0x215   : > { %v8865_v53 = vmul.f32 %v1058_v13, %v13245_v47  ;;  %v2686_v12 = vand.u32 2147483647, %v8719_v9  ;;  %5942 = vpow2.f32 %v5355_v17  ;;  %v2651_v13 = vadd.f32 %v8740_v8, %v2650_v19 }
 0x216   : > { %v5939_v58 = vpop.eup %5938  ;;  %vm2667_vm11 = vweird.f32 %v8715_v59  ;;  %v2679_v10 = vsub.f32 1.0, %v2678_v43  ;;  %v2694_v47 = vsub.f32 1.0, %v2693_v6  ;;  %5944 = vpow2.f32 %v5356_v1 }
 0x217   : > { %v5941_v0 = vpop.eup %5940  ;;  %vm2682_vm12 = vweird.f32 %v8719_v9  ;;  %v2703_v29 = vand.u32 2147483648, %v8723_v63  ;;  %v2709_v37 = vsub.f32 1.0, %v2708_v27  ;;  %v5357_v31 = vmul.f32 -1.442695, %v8860_v36  ;;  %v1598_v27 = vpop.f32.mrf.mxu2 }
 0x218   : > { %v8889_v3 = vadd.f32 %v1509_v25, %v7411_v60  ;;  %v2665_v23 = vmul.f32 %v8794_v24, %v2664_v35  ;;  %v8892_v17 = vor.u32 1.1754944e-38, %v2688_v21  ;;  %v2701_v19 = vand.u32 2147483647, %v8723_v63 }
 0x219   : > { %v2723_v43 = vmul.f32 %v8873_v7, %v8785_v51  ;;  %vm2668_vm14 = vweird.f32 %v8794_v24  ;;  %vm2683_vm15 = vweird.f32 %v8809_v32  ;;  %vm2697_vm0 = vweird.f32 %v8723_v63 }
 0x21a   : > { %v8908_v1 = vadd.f32 1.0, %v5939_v58  ;;  %v2655_v35 = vsel %vm8901_vm13, %v8740_v8, %v2651_v13  ;;  %vm8913_vm1 = vcmp.eq.f32.partialorder %v2671_v48, 8.507059e+37  ;;  %v2680_v46 = vmul.f32 %v8809_v32, %v2679_v10  ;;  %vm8951_vm6 = vmor %vm2667_vm11, %vm2668_vm14 }
 0x21b   : > { %v2695_v25 = vmul.f32 %v8825_v44, %v2694_v47  ;;  %v8919_v11 = vadd.f32 1.0, %v5941_v0  ;;  %v5943_v57 = vpop.eup %5942  ;;  %v2704_v42 = vor.u32 1.1754944e-38, %v2703_v29  ;;  %v2710_v58 = vmul.f32 %v8832_v5, %v2709_v37  ;;  %vm8966_vm8 = vmor %vm2682_vm12, %vm2683_vm15 }
 0x21c   : > { %5946 = vpow2.f32 %v5357_v31  ;;  %v5358_v18 = vmul.f32 -1.442695, %v8889_v3  ;;  %v5945_v40 = vpop.eup %5944  ;;  %v2666_v8 = vadd.f32 %v8794_v24, %v2665_v23  ;;  %vm8924_vm2 = vcmp.eq.f32.partialorder %v2686_v12, 8.507059e+37  ;;  %v1687_v23 = vpop.f32.mrf.mxu3 }
 0x21d   : > { %vm8928_vm3 = vcmp.eq.f32.partialorder %v2701_v19, 8.507059e+37  ;;  %vm2712_vm4 = vweird.f32 %v8738_v15  ;;  %v2724_v0 = vsub.f32 1.0, %v2723_v43  ;;  %v8934_v10 = vadd.f32 %v1598_v27, %v7431_v45 }
 0x21e   : > { %v2660_v47 = vsel %vm8868_vm10, %v8838_v28, %v2655_v35  ;;  %vm2698_vm5 = vweird.f32 %v8825_v44  ;;  %v2718_v12 = vand.u32 2147483648, %v8738_v15  ;;  %5948 = vrcp.f32 %v8908_v1  ;;  %v5639_v28 = vld [vmem:[#allocation10 + $0xc0] sm:$0xff] }
 0x21f   : > { %v2681_v29 = vadd.f32 %v8809_v32, %v2680_v46  ;;  %v2696_v37 = vadd.f32 %v8825_v44, %v2695_v25  ;;  %5950 = vrcp.f32 %v8919_v11  ;;  %v8945_v31 = vadd.f32 1.0, %v5943_v57  ;;  %vm8980_vm9 = vmor %vm2697_vm0, %vm2698_vm5  ;;  %4903 = vmatpush.bf16.msrb.mxu3 %v5639_v28 }
 0x220   : > { %v2711_v50 = vadd.f32 %v8832_v5, %v2710_v58  ;;  %vm2713_vm7 = vweird.f32 %v8832_v5  ;;  %v8957_v19 = vadd.f32 1.0, %v5945_v40  ;;  %5952 = vpow2.f32 %v5358_v18 }
 0x221   : > { %v2670_v57 = vsel %vm8951_vm6, %v8794_v24, %v2666_v8  ;;  %v2716_v43 = vand.u32 2147483647, %v8738_v15  ;;  %v2725_v6 = vmul.f32 %v8873_v7, %v2724_v0  ;;  %v5359_v40 = vmul.f32 -1.442695, %v8934_v10  ;;  %vm8998_vm11 = vmor %vm2712_vm4, %vm2713_vm7  ;;  %v1423_v8 = vpop.f32.mrf.mxu0 }
 0x222   : > { %v5947_v27 = vpop.eup %5946  ;;  %v8974_v18 = vmul.f32 %v2660_v47, %v8487_v52  ;;  %v2719_v24 = vor.u32 1.1754944e-38, %v2718_v12  ;;  %vm2727_vm10 = vweird.f32 %v8785_v51  ;;  %v8986_v35 = vadd.f32 %v1687_v23, %v7442_v61  ;;  %v5615_v23 = vld [vmem:[#allocation10] sm:$0xff] }
 0x223   : > { %v2685_v46 = vsel %vm8966_vm8, %v8809_v32, %v2681_v29  ;;  %v2700_v52 = vsel %vm8980_vm9, %v8825_v44, %v2696_v37  ;;  %v2731_v25 = vand.u32 2147483647, %v8785_v51  ;;  %5954 = vrcp.f32 %v8945_v31  ;;  %v5631_v37 = vld [vmem:[#allocation10 + $0x80] sm:$0xff]  ;;  %4636 = vmatpush.bf16.msrb.mxu0 %v5615_v23 }
 0x224   : > { %13260 = vst [vmem:[#allocation40_spill] sm:$0xff] %v8974_v18  ;;  %v9004_v58 = vpop.eup %5948  ;;  %v2675_v32 = vsel %vm8913_vm1, %v8880_v41, %v2670_v57  ;;  %v2715_v44 = vsel %vm8998_vm11, %v8832_v5, %v2711_v50  ;;  %v2733_v15 = vand.u32 2147483648, %v8785_v51  ;;  %5956 = vrcp.f32 %v8957_v19  ;;  %4814 = vmatpush.bf16.msrb.mxu2 %v5631_v37  ;;  %v13386_v18 = vld [vmem:[#allocation35_spill] sm:$0xff] }
 0x225   : > { %v9014_v0 = vpop.eup %5950  ;;  %v2726_v47 = vadd.f32 %v8873_v7, %v2725_v6  ;;  %vm2728_vm12 = vweird.f32 %v8873_v7  ;;  %v9018_v12 = vadd.f32 1.0, %v5947_v27  ;;  %5958 = vpow2.f32 %v5359_v40  ;;  %v1512_v40 = vpop.f32.mrf.mxu1 }
 0x226   : > { %v5953_v21 = vpop.eup %5952  ;;  %v2690_v41 = vsel %vm8924_vm2, %v8892_v17, %v2685_v46  ;;  %v2705_v5 = vsel %vm8928_vm3, %v2704_v42, %v2700_v52  ;;  %vm2717_vm13 = vcmp.eq.f32.partialorder %v2716_v43, 8.507059e+37  ;;  %v5360_v29 = vmul.f32 -1.442695, %v8986_v35  ;;  %vm9040_vm14 = vmor %vm2727_vm10, %vm2728_vm12 }
 0x227   : > { %v2720_v50 = vsel %vm2717_vm13, %v2719_v24, %v2715_v44  ;;  %v2738_v57 = vmul.f32 %v9004_v58, %v8908_v1  ;;  %v9029_v59 = vadd.f32 %v1423_v8, %v7405_v33  ;;  %v1132_v48 = vmul.f32 %v8378_v30, %v8632_v16 }
 0x228   : > { %v9034_v17 = vmul.f32 %v2675_v32, %v8558_v39  ;;  %vm9044_vm15 = vcmp.eq.f32.partialorder %v2731_v25, 8.507059e+37  ;;  %v2734_v43 = vor.u32 1.1754944e-38, %v2733_v15  ;;  %v2753_v6 = vmul.f32 %v9014_v0, %v8919_v11 }
 0x229   : > { %v9050_v39 = vpop.eup %5954  ;;  %v2730_v16 = vsel %vm9040_vm14, %v8873_v7, %v2726_v47  ;;  %5960 = vrcp.f32 %v9018_v12  ;;  %v9056_v51 = vadd.f32 1.0, %v5953_v21  ;;  %v1133_v27 = vmul.f32 %v8378_v30, %v8460_v56  ;;  %v5623_v56 = vld [vmem:[#allocation10 + $0x40] sm:$0xff]  ;;  %v1601_v47 = vpop.f32.mrf.mxu2 }
 0x22a   : > { %13265 = vst [vmem:[#allocation41_spill] sm:$0xff] %v9034_v17  ;;  %v9060_v9 = vpop.eup %5956  ;;  %v9063_v24 = vmul.f32 %v2690_v41, %v8565_v22  ;;  %v9066_v46 = vmul.f32 %v2705_v5, %v8581_v38  ;;  %v9069_v52 = vmul.f32 %v2720_v50, %v8597_v26  ;;  %5962 = vpow2.f32 %v5360_v29  ;;  %4725 = vmatpush.bf16.msrb.mxu1 %v5623_v56  ;;  %v13338_v17 = vld [vmem:[#allocation23_spill] sm:$0xff] }
 0x22b   : > { %v5959_v7 = vpop.eup %5958  ;;  %v2739_v63 = vsub.f32 1.0, %v2738_v57  ;;  %v5361_v25 = vmul.f32 -1.442695, %v9029_v59  ;;  %v1167_v32 = vadd.f32 %v8503_v4, %v1132_v48  ;;  %v1168_v30 = vadd.f32 %v8503_v4, %v1133_v27 }
 0x22c   : > { %13270 = vst [vmem:[#allocation42_spill] sm:$0xff] %v9066_v46  ;;  %v2735_v22 = vsel %vm9044_vm15, %v2734_v43, %v2730_v16  ;;  %v2746_v44 = vand.u32 2147483647, %v8908_v1  ;;  %v2754_v38 = vsub.f32 1.0, %v2753_v6  ;;  %v9078_v15 = vadd.f32 %v1512_v40, %v7411_v60  ;;  %v13387_v46 = vld [vmem:[#allocation37_spill] sm:$0xff] }
 0x22d   : > { %13271 = vst [vmem:[#allocation43_spill] sm:$0xff] %v9069_v52  ;;  %v2748_v26 = vand.u32 2147483648, %v8908_v1  ;;  %v2768_v8 = vmul.f32 %v9050_v39, %v8945_v31  ;;  %5964 = vrcp.f32 %v9056_v51  ;;  %v1185_v21 = vpack.c.bf16 %v1168_v30, %v1167_v32  ;;  %v1514_v40 = vpop.f32.mrf.mxu1 }
 0x22e   : > { %v2761_v41 = vand.u32 2147483647, %v8919_v11  ;;  %v2763_v5 = vand.u32 2147483648, %v8919_v11  ;;  %v2783_v29 = vmul.f32 %v9060_v9, %v8957_v19  ;;  %v9088_v37 = vadd.f32 1.0, %v5959_v7 }
 0x22f   : > { %v9090_v23 = vpop.eup %5960  ;;  %v9093_v28 = vmul.f32 %v2735_v22, %v8662_v54  ;;  %v2740_v50 = vmul.f32 %v9004_v58, %v2739_v63  ;;  %vm2742_vm0 = vweird.f32 %v8908_v1  ;;  %5966 = vpow2.f32 %v5361_v25  ;;  %1467 = vmatmul.bf16.gmra.mxu0 %v1185_v21  ;;  %1556 = vmatmul.bf16.gmra.mxu1 %v1185_v21  ;;  %v1690_v22 = vpop.f32.mrf.mxu3 }
 0x230   : > { %v5963_v57 = vpop.eup %5962  ;;  %v2755_v48 = vmul.f32 %v9014_v0, %v2754_v38  ;;  %vm2757_vm1 = vweird.f32 %v8919_v11  ;;  %v5362_v42 = vmul.f32 -1.442695, %v9078_v15  ;;  %v9101_v13 = vadd.f32 %v1601_v47, %v7431_v45  ;;  %1645 = vmatmul.bf16.gmra.mxu2 %v1185_v21  ;;  %1734 = vmatmul.bf16.gmra.mxu3 %v1185_v21 }
 0x231   : > { %13272 = vst [vmem:[#allocation44_spill] sm:$0xff] %v9093_v28  ;;  %vm9103_vm2 = vcmp.eq.f32.partialorder %v2746_v44, 8.507059e+37  ;;  %v2749_v43 = vor.u32 1.1754944e-38, %v2748_v26  ;;  %v2769_v6 = vsub.f32 1.0, %v2768_v8  ;;  %v2778_v16 = vand.u32 2147483648, %v8945_v31 }
 0x232   : > { %vm9108_vm3 = vcmp.eq.f32.partialorder %v2761_v41, 8.507059e+37  ;;  %v2764_v27 = vor.u32 1.1754944e-38, %v2763_v5  ;;  %v2784_v7 = vsub.f32 1.0, %v2783_v29  ;;  %v2798_v63 = vmul.f32 %v9090_v23, %v9018_v12 }
 0x233   : > { %5968 = vrcp.f32 %v9088_v37  ;;  %v9115_v25 = vpop.eup %5964  ;;  %v2741_v32 = vadd.f32 %v9004_v58, %v2740_v50  ;;  %vm2743_vm4 = vweird.f32 %v9004_v58  ;;  %vm2772_vm5 = vweird.f32 %v8945_v31 }
 0x234   : > { %v2776_v30 = vand.u32 2147483647, %v8945_v31  ;;  %v9121_v56 = vadd.f32 1.0, %v5963_v57  ;;  %v2756_v44 = vadd.f32 %v9014_v0, %v2755_v48  ;;  %vm2758_vm6 = vweird.f32 %v9014_v0  ;;  %vm9131_vm8 = vmor %vm2742_vm0, %vm2743_vm4 }
 0x235   : > { %5970 = vpow2.f32 %v5362_v42  ;;  %v5363_v38 = vmul.f32 -1.442695, %v9101_v13  ;;  %v5967_v26 = vpop.eup %5966  ;;  %v2770_v8 = vmul.f32 %v9050_v39, %v2769_v6  ;;  %v2779_v47 = vor.u32 1.1754944e-38, %v2778_v16  ;;  %vm9144_vm9 = vmor %vm2757_vm1, %vm2758_vm6 }
 0x236   : > { %vm2787_vm7 = vweird.f32 %v8957_v19  ;;  %v2791_v21 = vand.u32 2147483647, %v8957_v19  ;;  %v2785_v5 = vmul.f32 %v9060_v9, %v2784_v7  ;;  %v2793_v29 = vand.u32 2147483648, %v8957_v19 }
 0x237   : > { %v2799_v50 = vsub.f32 1.0, %v2798_v63  ;;  %v2813_v57 = vmul.f32 %v9115_v25, %v9056_v51  ;;  %v2745_v48 = vsel %vm9131_vm8, %v9004_v58, %v2741_v32  ;;  %vm9148_vm10 = vcmp.eq.f32.partialorder %v2776_v30, 8.507059e+37  ;;  %v1425_v32 = vpop.f32.mrf.mxu0 }
 0x238   : > { %v2806_v6 = vand.u32 2147483647, %v9018_v12  ;;  %5972 = vrcp.f32 %v9121_v56  ;;  %v9155_v16 = vadd.f32 %v1690_v22, %v7442_v61  ;;  %v2760_v11 = vsel %vm9144_vm9, %v9014_v0, %v2756_v44 }
 0x239   : > { %v9157_v7 = vpop.eup %5968  ;;  %vm2802_vm11 = vweird.f32 %v9018_v12  ;;  %v2808_v58 = vand.u32 2147483648, %v9018_v12  ;;  %v9164_v63 = vadd.f32 1.0, %v5967_v26  ;;  %5974 = vpow2.f32 %v5363_v38 }
 0x23a   : > { %v2771_v30 = vadd.f32 %v9050_v39, %v2770_v8  ;;  %vm2773_vm12 = vweird.f32 %v9050_v39  ;;  %vm2788_vm13 = vweird.f32 %v9060_v9  ;;  %vm9169_vm14 = vcmp.eq.f32.partialorder %v2791_v21, 8.507059e+37 }
 0x23b   : > { %v5971_v41 = vpop.eup %5970  ;;  %v2750_v0 = vsel %vm9103_vm2, %v2749_v43, %v2745_v48  ;;  %v2786_v44 = vadd.f32 %v9060_v9, %v2785_v5  ;;  %v2800_v26 = vmul.f32 %v9090_v23, %v2799_v50  ;;  %v2814_v38 = vsub.f32 1.0, %v2813_v57  ;;  %vm9187_vm15 = vmor %vm2772_vm5, %vm2773_vm12 }
 0x23c   : > { %v2765_v8 = vsel %vm9108_vm3, %v2764_v27, %v2760_v11  ;;  %v2828_v1 = vmul.f32 %v9157_v7, %v9088_v37  ;;  %v5364_v21 = vmul.f32 -1.442695, %v9155_v16  ;;  %v9183_v28 = vadd.f32 %v1425_v32, %v7405_v33  ;;  %vm9205_vm0 = vmor %vm2787_vm7, %vm2788_vm13  ;;  %v1603_v11 = vpop.f32.mrf.mxu2 }
 0x23d   : > { %v2794_v43 = vor.u32 1.1754944e-38, %v2793_v29  ;;  %v2809_v5 = vor.u32 1.1754944e-38, %v2808_v58  ;;  %v2821_v50 = vand.u32 2147483647, %v9056_v51  ;;  %5976 = vrcp.f32 %v9164_v63 }
 0x23e   : > { %v9193_v27 = vpop.eup %5972  ;;  %v9196_v57 = vmul.f32 %v2750_v0, %v8759_v62  ;;  %v2775_v31 = vsel %vm9187_vm15, %v9050_v39, %v2771_v30  ;;  %vm2803_vm1 = vweird.f32 %v9090_v23  ;;  %vm9210_vm2 = vcmp.eq.f32.partialorder %v2806_v6, 8.507059e+37  ;;  %v1692_v39 = vpop.f32.mrf.mxu3 }
 0x23f   : > { %vm2817_vm3 = vweird.f32 %v9056_v51  ;;  %v9215_v62 = vadd.f32 1.0, %v5971_v41  ;;  %v5975_v58 = vpop.eup %5974  ;;  %v9218_v32 = vmul.f32 %v2765_v8, %v8766_v55  ;;  %v2790_v19 = vsel %vm9205_vm0, %v9060_v9, %v2786_v44  ;;  %vm9242_vm4 = vmor %vm2802_vm11, %vm2803_vm1  ;;  %v6349_v44 = vld [vmem:[#allocation5] ss:$0 sm:$0xff] }
 0x240   : > { %13287 = vst [vmem:[#allocation45_spill] sm:$0xff] %v9196_v57  ;;  %v2801_v30 = vadd.f32 %v9090_v23, %v2800_v26  ;;  %v2815_v6 = vmul.f32 %v9115_v25, %v2814_v38  ;;  %v2829_v0 = vsub.f32 1.0, %v2828_v1  ;;  %5978 = vpow2.f32 %v5364_v21 }
 0x241   : > { %13292 = vst [vmem:[#allocation46_spill] sm:$0xff] %v9218_v32  ;;  %v5365_v54 = vmul.f32 -1.442695, %v9183_v28  ;;  %v9227_v41 = vadd.f32 %v1514_v40, %v7411_v60  ;;  %v2780_v57 = vsel %vm9148_vm10, %v2779_v47, %v2775_v31  ;;  %v2823_v55 = vand.u32 2147483648, %v9056_v51  ;;  %v1428_v31 = vpop.f32.mrf.mxu0  ;;  %v13329_v32 = vld [vmem:[#allocation20_spill] sm:$0xff] }
 0x242   : > { %v9233_v8 = vadd.f32 %v1603_v11, %v7431_v45  ;;  %v9236_v9 = vadd.f32 %v1692_v39, %v7442_v61  ;;  %vm2818_vm5 = vweird.f32 %v9115_v25  ;;  %v2843_v47 = vmul.f32 %v9193_v27, %v9121_v56 }
 0x243   : > { %5980 = vrcp.f32 %v9215_v62  ;;  %v9250_v42 = vadd.f32 1.0, %v5975_v58  ;;  %v9252_v26 = vpop.eup %5976  ;;  %v2795_v38 = vsel %vm9169_vm14, %v2794_v43, %v2790_v19  ;;  %v2805_v12 = vsel %vm9242_vm4, %v9090_v23, %v2801_v30  ;;  %vm9288_vm7 = vmor %vm2817_vm3, %vm2818_vm5 }
 0x244   : > { %vm9259_vm6 = vcmp.eq.f32.partialorder %v2821_v50, 8.507059e+37  ;;  %v2836_v21 = vand.u32 2147483647, %v9088_v37  ;;  %v2838_v40 = vand.u32 2147483648, %v9088_v37  ;;  %v2816_v29 = vadd.f32 %v9115_v25, %v2815_v6 }
 0x245   : > { %v2830_v11 = vmul.f32 %v9157_v7, %v2829_v0  ;;  %5982 = vpow2.f32 %v5365_v54  ;;  %v5366_v22 = vmul.f32 -1.442695, %v9227_v41  ;;  %v9269_v43 = vmul.f32 %v2780_v57, %v8807_v20 }
 0x246   : > { %v2824_v23 = vor.u32 1.1754944e-38, %v2823_v55  ;;  %v5367_v50 = vmul.f32 -1.442695, %v9233_v8  ;;  %v5368_v39 = vmul.f32 -1.442695, %v9236_v9  ;;  %v5979_v58 = vpop.eup %5978  ;;  %v2844_v19 = vsub.f32 1.0, %v2843_v47 }
 0x247   : > { %13297 = vst [vmem:[#allocation47_spill] sm:$0xff] %v9269_v43  ;;  %v2858_v30 = vmul.f32 %v9252_v26, %v9164_v63  ;;  %5984 = vrcp.f32 %v9250_v42  ;;  %v9277_v6 = vadd.f32 %v1428_v31, %v7405_v33  ;;  %v9280_v0 = vmul.f32 %v2795_v38, %v8823_v2 }
 0x248   : > { %v2810_v20 = vsel %vm9210_vm2, %v2809_v5, %v2805_v12  ;;  %vm2832_vm8 = vweird.f32 %v9088_v37  ;;  %v2839_v54 = vor.u32 1.1754944e-38, %v2838_v40  ;;  %v2820_v2 = vsel %vm9288_vm7, %v9115_v25, %v2816_v29 }
 0x249   : > { %13298 = vst [vmem:[#allocation48_spill] sm:$0xff] %v9280_v0  ;;  %v9293_v55 = vpop.eup %5980  ;;  %v2831_v48 = vadd.f32 %v9157_v7, %v2830_v11  ;;  %vm2833_vm9 = vweird.f32 %v9157_v7  ;;  %vm9300_vm10 = vcmp.eq.f32.partialorder %v2836_v21, 8.507059e+37  ;;  %5986 = vpow2.f32 %v5366_v22 }
 0x24a   : > { %v9304_v51 = vadd.f32 1.0, %v5979_v58  ;;  %5988 = vpow2.f32 %v5367_v50  ;;  %v1134_v47 = vmul.f32 %v6349_v44, %v8865_v53  ;;  %v1135_v38 = vmul.f32 %v6349_v44, %v8878_v49  ;;  %vm9328_vm12 = vmor %vm2832_vm8, %vm2833_vm9 }
 0x24b   : > { %v5983_v12 = vpop.eup %5982  ;;  %v2845_v25 = vmul.f32 %v9193_v27, %v2844_v19  ;;  %v2859_v40 = vsub.f32 1.0, %v2858_v30  ;;  %5990 = vpow2.f32 %v5368_v39  ;;  %v5369_v31 = vmul.f32 -1.442695, %v9277_v6 }
 0x24c   : > { %v9311_v21 = vmul.f32 %v2810_v20, %v8860_v36  ;;  %v2851_v29 = vand.u32 2147483647, %v9121_v56  ;;  %v2853_v11 = vand.u32 2147483648, %v9121_v56  ;;  %v2873_v22 = vmul.f32 %v9293_v55, %v9215_v62 }
 0x24d   : > { %v9317_v53 = vpop.eup %5984  ;;  %v2825_v49 = vsel %vm9259_vm6, %v2824_v23, %v2820_v2  ;;  %vm2848_vm11 = vweird.f32 %v9193_v27  ;;  %v2866_v50 = vand.u32 2147483647, %v9164_v63  ;;  %v2868_v39 = vand.u32 2147483648, %v9164_v63  ;;  %v1695_v2 = vpop.f32.mrf.mxu3 }
 0x24e   : > { %13303 = vst [vmem:[#allocation49_spill] sm:$0xff] %v9311_v21  ;;  %5992 = vrcp.f32 %v9304_v51  ;;  %v9333_v58 = vadd.f32 1.0, %v5983_v12  ;;  %v1169_v1 = vadd.f32 %v8503_v4, %v1134_v47  ;;  %v1170_v23 = vadd.f32 %v8503_v4, %v1135_v38 }
 0x24f   : > { %v5987_v19 = vpop.eup %5986  ;;  %v2835_v30 = vsel %vm9328_vm12, %v9157_v7, %v2831_v48  ;;  %v2846_v20 = vadd.f32 %v9193_v27, %v2845_v25  ;;  %v2860_v37 = vmul.f32 %v9252_v26, %v2859_v40  ;;  %5994 = vpow2.f32 %v5369_v31  ;;  %v1517_v40 = vpop.f32.mrf.mxu1 }
 0x250   : > { %v5989_v57 = vpop.eup %5988  ;;  %vm2847_vm13 = vweird.f32 %v9121_v56  ;;  %vm9343_vm14 = vcmp.eq.f32.partialorder %v2851_v29, 8.507059e+37  ;;  %v2874_v44 = vsub.f32 1.0, %v2873_v22  ;;  %v2888_v4 = vmul.f32 %v9317_v53, %v9250_v42 }
 0x251   : > { %v5991_v47 = vpop.eup %5990  ;;  %v9350_v38 = vmul.f32 %v2825_v49, %v8889_v3  ;;  %v2854_v7 = vor.u32 1.1754944e-38, %v2853_v11  ;;  %vm2862_vm15 = vweird.f32 %v9164_v63  ;;  %v2869_v48 = vor.u32 1.1754944e-38, %v2868_v39  ;;  %vm9357_vm0 = vmor %vm2847_vm13, %vm2848_vm11 }
 0x252   : > { %v2840_v12 = vsel %vm9300_vm10, %v2839_v54, %v2835_v30  ;;  %vm9361_vm1 = vcmp.eq.f32.partialorder %v2866_v50, 8.507059e+37  ;;  %5996 = vrcp.f32 %v9333_v58  ;;  %v9366_v3 = vadd.f32 1.0, %v5987_v19 }
 0x253   : > { %13308 = vst [vmem:[#allocation50_spill] sm:$0xff] %v9350_v38  ;;  %v1186_v31 = vpack.c.bf16 %v1170_v23, %v1169_v1  ;;  %v2850_v54 = vsel %vm9357_vm0, %v9193_v27, %v2846_v20  ;;  %v2861_v5 = vadd.f32 %v9252_v26, %v2860_v37  ;;  %vm2863_vm2 = vweird.f32 %v9252_v26  ;;  %v1606_v37 = vpop.f32.mrf.mxu2 }
 0x254   : > { %v9373_v29 = vadd.f32 1.0, %v5989_v57  ;;  %v9375_v11 = vpop.eup %5992  ;;  %v2875_v22 = vmul.f32 %v9293_v55, %v2874_v44  ;;  %vm2877_vm3 = vweird.f32 %v9215_v62  ;;  %v2889_v49 = vsub.f32 1.0, %v2888_v4  ;;  %vm9395_vm4 = vmor %vm2862_vm15, %vm2863_vm2 }
 0x255   : > { %v9379_v50 = vadd.f32 1.0, %v5991_v47  ;;  %1472 = vmatmul.bf16.gmra.mxu0 %v1186_v31  ;;  %1561 = vmatmul.bf16.gmra.mxu1 %v1186_v31  ;;  %v5995_v39 = vpop.eup %5994  ;;  %v9382_v27 = vmul.f32 %v2840_v12, %v8934_v10  ;;  %v2881_v36 = vand.u32 2147483647, %v9215_v62  ;;  %v2883_v1 = vand.u32 2147483648, %v9215_v62 }
 0x256   : > { %v9387_v23 = vadd.f32 %v1517_v40, %v7411_v60  ;;  %1650 = vmatmul.bf16.gmra.mxu2 %v1186_v31  ;;  %1739 = vmatmul.bf16.gmra.mxu3 %v1186_v31  ;;  %v2855_v19 = vsel %vm9343_vm14, %v2854_v7, %v2850_v54  ;;  %v2896_v10 = vand.u32 2147483647, %v9250_v42  ;;  %v2898_v20 = vand.u32 2147483648, %v9250_v42  ;;  %v13332_v40 = vld [vmem:[#allocation21_spill] sm:$0xff] }
 0x257   : > { %13313 = vst [vmem:[#allocation51_spill] sm:$0xff] %v9382_v27  ;;  %5998 = vrcp.f32 %v9366_v3  ;;  %v2865_v57 = vsel %vm9395_vm4, %v9252_v26, %v2861_v5  ;;  %vm2878_vm5 = vweird.f32 %v9293_v55  ;;  %v2903_v63 = vmul.f32 %v9375_v11, %v9304_v51 }
 0x258   : > { %6000 = vrcp.f32 %v9373_v29  ;;  %v9409_v44 = vpop.eup %5996  ;;  %v2876_v4 = vadd.f32 %v9293_v55, %v2875_v22  ;;  %v2890_v47 = vmul.f32 %v9317_v53, %v2889_v49  ;;  %v9414_v7 = vadd.f32 1.0, %v5995_v39  ;;  %vm9439_vm9 = vmor %vm2877_vm3, %vm2878_vm5 }
 0x259   : > { %6002 = vrcp.f32 %v9379_v50  ;;  %vm9416_vm6 = vcmp.eq.f32.partialorder %v2881_v36, 8.507059e+37  ;;  %v2884_v12 = vor.u32 1.1754944e-38, %v2883_v1  ;;  %vm2892_vm7 = vweird.f32 %v9250_v42 }
 0x25a   : > { %v5370_v56 = vmul.f32 -1.442695, %v9387_v23  ;;  %vm9422_vm8 = vcmp.eq.f32.partialorder %v2896_v10, 8.507059e+37  ;;  %v2899_v31 = vor.u32 1.1754944e-38, %v2898_v20  ;;  %v2913_v54 = vand.u32 2147483648, %v9304_v51  ;;  %v1430_v20 = vpop.f32.mrf.mxu0 }
 0x25b   : > { %v9428_v5 = vadd.f32 %v1606_v37, %v7431_v45  ;;  %v9431_v22 = vmul.f32 %v2855_v19, %v8986_v35  ;;  %v2870_v49 = vsel %vm9361_vm1, %v2869_v48, %v2865_v57  ;;  %v2904_v36 = vsub.f32 1.0, %v2903_v63 }
 0x25c   : > { %v2918_v1 = vmul.f32 %v9409_v44, %v9333_v58  ;;  %v2880_v35 = vsel %vm9439_vm9, %v9293_v55, %v2876_v4  ;;  %v2891_v48 = vadd.f32 %v9317_v53, %v2890_v47  ;;  %vm2893_vm10 = vweird.f32 %v9317_v53  ;;  %v1519_v47 = vpop.f32.mrf.mxu1 }
 0x25d   : > { %13320 = vst [vmem:[#allocation52_spill] sm:$0xff] %v9431_v22  ;;  %v9445_v30 = vpop.eup %5998  ;;  %6004 = vrcp.f32 %v9414_v7  ;;  %vm2907_vm11 = vweird.f32 %v9304_v51  ;;  %v2911_v25 = vand.u32 2147483647, %v9304_v51  ;;  %v2928_v19 = vand.u32 2147483648, %v9333_v58  ;;  %vm9476_vm12 = vmor %vm2892_vm7, %vm2893_vm10 }
 0x25e   : > { %v9453_v62 = vpop.eup %6000  ;;  %6006 = vpow2.f32 %v5370_v56  ;;  %v9459_v10 = vadd.f32 %v1695_v2, %v7442_v61  ;;  %v9464_v37 = vmul.f32 %v2870_v49, %v9029_v59  ;;  %v9466_v57 = vor.u32 1.1754944e-38, %v2913_v54  ;;  %v1608_v49 = vpop.f32.mrf.mxu2 }
 0x25f   : > { %v9461_v55 = vpop.eup %6002  ;;  %v2926_v63 = vand.u32 2147483647, %v9333_v58  ;;  %v5371_v4 = vmul.f32 -1.442695, %v9428_v5  ;;  %v2885_v39 = vsel %vm9416_vm6, %v2884_v12, %v2880_v35  ;;  %v2905_v59 = vmul.f32 %v9375_v11, %v2904_v36 }
 0x260   : > { %13323 = vst [vmem:[#allocation53_spill] sm:$0xff] %v9464_v37  ;;  %vm2908_vm13 = vweird.f32 %v9375_v11  ;;  %v2919_v56 = vsub.f32 1.0, %v2918_v1  ;;  %v2895_v54 = vsel %vm9476_vm12, %v9317_v53, %v2891_v48  ;;  %v2933_v26 = vmul.f32 %v9445_v30, %v9366_v3  ;;  %v1697_v53 = vpop.f32.mrf.mxu3 }
 0x261   : > { %v2948_v12 = vmul.f32 %v9453_v62, %v9373_v29  ;;  %v9490_v42 = vadd.f32 %v1430_v20, %v7405_v33  ;;  %v9492_v35 = vor.u32 1.1754944e-38, %v2928_v19  ;;  %v2963_v36 = vmul.f32 %v9461_v55, %v9379_v50  ;;  %vm9543_vm1 = vmor %vm2907_vm11, %vm2908_vm13 }
 0x262   : > { %v5372_v1 = vmul.f32 -1.442695, %v9459_v10  ;;  %v9498_v2 = vadd.f32 %v1519_v47, %v7411_v60  ;;  %v9503_v37 = vmul.f32 %v2885_v39, %v9078_v15  ;;  %vm9505_vm14 = vcmp.eq.f32.partialorder %v2911_v25, 8.507059e+37 }
 0x263   : > { %v9500_v48 = vpop.eup %6004  ;;  %vm2922_vm15 = vweird.f32 %v9333_v58  ;;  %v2941_v19 = vand.u32 2147483647, %v9366_v3  ;;  %v2943_v22 = vand.u32 2147483648, %v9366_v3  ;;  %6008 = vpow2.f32 %v5371_v4  ;;  %v13330_v4 = vld [vmem:[#allocation16_spill] sm:$0xff] }
 0x264   : > { %13326 = vst [vmem:[#allocation54_spill] sm:$0xff] %v9503_v37  ;;  %v6007_v0 = vpop.eup %6006  ;;  %v2900_v47 = vsel %vm9422_vm8, %v2899_v31, %v2895_v54  ;;  %v2906_v27 = vadd.f32 %v9375_v11, %v2905_v59  ;;  %v2920_v15 = vmul.f32 %v9409_v44, %v2919_v56  ;;  %v9517_v25 = vadd.f32 %v1608_v49, %v7431_v45  ;;  %v13333_v31 = vld [vmem:[#allocation17_spill] sm:$0xff]  ;;  %v13336_v49 = vld [vmem:[#allocation18_spill] sm:$0xff] }
 0x265   : > { %v2934_v39 = vsub.f32 1.0, %v2933_v26  ;;  %v2949_v37 = vsub.f32 1.0, %v2948_v12  ;;  %v5373_v43 = vmul.f32 -1.442695, %v9490_v42  ;;  %v9521_v38 = vadd.f32 %v1697_v53, %v7442_v61  ;;  %v13335_v12 = vld [vmem:[#allocation22_spill] sm:$0xff] }
 0x266   : > { %v13331_v21 = vpack.c.bf16 %v13329_v32, %v13330_v4  ;;  %v13334_v54 = vpack.c.bf16 %v13332_v40, %v13333_v31  ;;  %vm2937_vm0 = vweird.f32 %v9366_v3  ;;  %v2964_v59 = vsub.f32 1.0, %v2963_v36  ;;  %v13339_v32 = vld [vmem:[#allocation19_spill] sm:$0xff] }
 0x267   : > { %v2978_v56 = vmul.f32 %v9500_v48, %v9414_v7  ;;  %6010 = vpow2.f32 %v5372_v1  ;;  %v5374_v26 = vmul.f32 -1.442695, %v9498_v2  ;;  %v13337_v53 = vpack.c.bf16 %v13335_v12, %v13336_v49 }
 0x268   : > { %4637 = vmatmul.bf16.vlgmr.msrb.gmra.mxu0 %v13331_v21  ;;  %4726 = vmatmul.bf16.vlgmr.msrb.gmra.mxu1 %v13334_v54  ;;  %v13340_v21 = vpack.c.bf16 %v13338_v17, %v13339_v32  ;;  %vm2923_vm2 = vweird.f32 %v9409_v44  ;;  %vm9548_vm3 = vcmp.eq.f32.partialorder %v2926_v63, 8.507059e+37  ;;  %v9552_v4 = vor.u32 1.1754944e-38, %v2943_v22 }
 0x269   : > { %4815 = vmatmul.bf16.vlgmr.msrb.gmra.mxu2 %v13337_v53  ;;  %vm2952_vm4 = vweird.f32 %v9373_v29  ;;  %v9555_v17 = vadd.f32 1.0, %v6007_v0  ;;  %v9558_v40 = vmul.f32 %v2900_v47, %v9101_v13  ;;  %v2910_v51 = vsel %vm9543_vm1, %v9375_v11, %v2906_v27  ;;  %v6009_v54 = vpop.eup %6008  ;;  %vm9581_vm6 = vmor %vm2922_vm15, %vm2923_vm2 }
 0x26a   : > { %4904 = vmatmul.bf16.vlgmr.msrb.gmra.mxu3 %v13340_v21  ;;  %v2956_v31 = vand.u32 2147483647, %v9373_v29  ;;  %v5375_v63 = vmul.f32 -1.442695, %v9517_v25  ;;  %v2921_v12 = vadd.f32 %v9409_v44, %v2920_v15  ;;  %v2935_v22 = vmul.f32 %v9445_v30, %v2934_v39 }
 0x26b   : > { %13345 = vst [vmem:[#allocation20_spill] sm:$0xff] %v9558_v40  ;;  %6012 = vpow2.f32 %v5373_v43  ;;  %v5376_v0 = vmul.f32 -1.442695, %v9521_v38  ;;  %v2950_v49 = vmul.f32 %v9453_v62, %v2949_v37  ;;  %v2965_v13 = vmul.f32 %v9461_v55, %v2964_v59  ;;  %v13363_v37 = vld [vmem:[#allocation25_spill] sm:$0xff] }
 0x26c   : > { %v2979_v47 = vsub.f32 1.0, %v2978_v56  ;;  %6014 = vpow2.f32 %v5374_v26  ;;  %vm2938_vm5 = vweird.f32 %v9445_v30  ;;  %v2958_v11 = vand.u32 2147483648, %v9373_v29 }
 0x26d   : > { %v2971_v27 = vand.u32 2147483647, %v9379_v50  ;;  %6016 = vrcp.f32 %v9555_v17  ;;  %v6011_v15 = vpop.eup %6010  ;;  %v2915_v43 = vsel %vm9505_vm14, %v9466_v57, %v2910_v51  ;;  %vm9585_vm7 = vcmp.eq.f32.partialorder %v2941_v19, 8.507059e+37  ;;  %vm9609_vm11 = vmor %vm2937_vm0, %vm2938_vm5 }
 0x26e   : > { %vm9589_vm8 = vcmp.eq.f32.partialorder %v2956_v31, 8.507059e+37  ;;  %v2973_v56 = vand.u32 2147483648, %v9379_v50  ;;  %v9594_v20 = vadd.f32 1.0, %v6009_v54  ;;  %6018 = vpow2.f32 %v5375_v63 }
 0x26f   : > { %v2925_v58 = vsel %vm9581_vm6, %v9409_v44, %v2921_v12  ;;  %v2936_v57 = vadd.f32 %v9445_v30, %v2935_v22  ;;  %vm2953_vm9 = vweird.f32 %v9453_v62  ;;  %6020 = vpow2.f32 %v5376_v0  ;;  %v13367_v44 = vld [vmem:[#allocation27_spill] sm:$0xff] }
 0x270   : > { %v2951_v19 = vadd.f32 %v9453_v62, %v2950_v49  ;;  %v2966_v26 = vadd.f32 %v9461_v55, %v2965_v13  ;;  %vm2968_vm10 = vweird.f32 %v9461_v55  ;;  %v2980_v53 = vmul.f32 %v9500_v48, %v2979_v47  ;;  %vm9630_vm14 = vmor %vm2952_vm4, %vm2953_vm9  ;;  %v1433_v13 = vpop.f32.mrf.mxu0 }
 0x271   : > { %v6013_v32 = vpop.eup %6012  ;;  %v2959_v21 = vor.u32 1.1754944e-38, %v2958_v11  ;;  %vm2967_vm12 = vweird.f32 %v9379_v50  ;;  %vm9614_vm13 = vcmp.eq.f32.partialorder %v2971_v27, 8.507059e+37  ;;  %v9618_v51 = vadd.f32 1.0, %v6011_v15  ;;  %v13361_v27 = vld [vmem:[#allocation24_spill] sm:$0xff]  ;;  %v13368_v50 = vld [vmem:[#allocation31_spill] sm:$0xff] }
 0x272   : > { %v6015_v31 = vpop.eup %6014  ;;  %v9621_v63 = vmul.f32 %v2915_v43, %v9155_v16  ;;  %v2930_v3 = vsel %vm9548_vm3, %v9492_v35, %v2925_v58  ;;  %v2974_v54 = vor.u32 1.1754944e-38, %v2973_v56  ;;  %6022 = vrcp.f32 %v9594_v20  ;;  %vm9642_vm15 = vmor %vm2967_vm12, %vm2968_vm10  ;;  %v13362_v15 = vld [vmem:[#allocation28_spill] sm:$0xff]  ;;  %v13364_v56 = vld [vmem:[#allocation29_spill] sm:$0xff] }
 0x273   : > { %v9635_v12 = vpop.eup %6016  ;;  %v2940_v16 = vsel %vm9609_vm11, %v9445_v30, %v2936_v57  ;;  %vm2982_vm0 = vweird.f32 %v9414_v7  ;;  %v2986_v29 = vand.u32 2147483647, %v9414_v7  ;;  %v2988_v1 = vand.u32 2147483648, %v9414_v7  ;;  %v1522_v57 = vpop.f32.mrf.mxu1 }
 0x274   : > { %13356 = vst [vmem:[#allocation16_spill] sm:$0xff] %v9621_v63  ;;  %v6019_v22 = vpop.eup %6018  ;;  %v2955_v0 = vsel %vm9630_vm14, %v9453_v62, %v2951_v19  ;;  %v2970_v30 = vsel %vm9642_vm15, %v9461_v55, %v2966_v26  ;;  %v2981_v49 = vadd.f32 %v9500_v48, %v2980_v53  ;;  %vm2983_vm1 = vweird.f32 %v9500_v48  ;;  %v13365_v19 = vld [vmem:[#allocation26_spill] sm:$0xff]  ;;  %v13383_v63 = vld [vmem:[#allocation33_spill] sm:$0xff] }
 0x275   : > { %v6021_v47 = vpop.eup %6020  ;;  %6024 = vrcp.f32 %v9618_v51  ;;  %v9658_v11 = vadd.f32 1.0, %v6013_v32  ;;  %v4309_v43 = vpack.c.bf16 %v13362_v15, %v13361_v27  ;;  %v4310_v62 = vpack.c.bf16 %v13364_v56, %v13363_v37  ;;  %v13366_v26 = vld [vmem:[#allocation30_spill] sm:$0xff]  ;;  %vm9679_vm2 = vmor %vm2982_vm0, %vm2983_vm1 }
 0x276   : > { %v2993_v58 = vmul.f32 %v9635_v12, %v9555_v17  ;;  %v9666_v55 = vadd.f32 1.0, %v6015_v31  ;;  %v4311_v53 = vpack.c.bf16 %v13366_v26, %v13365_v19  ;;  %v4312_v35 = vpack.c.bf16 %v13368_v50, %v13367_v44 }
 0x277   : > { %v2945_v32 = vsel %vm9585_vm7, %v9552_v4, %v2940_v16  ;;  %v2960_v27 = vsel %vm9589_vm8, %v2959_v21, %v2955_v0  ;;  %v9683_v31 = vadd.f32 1.0, %v6019_v22  ;;  %v9686_v37 = vadd.f32 %v1433_v13, %v7405_v33 }
 0x278   : > { %4642 = vmatmul.bf16.gmra.mxu0 %v4309_v43  ;;  %4731 = vmatmul.bf16.gmra.mxu1 %v4310_v62  ;;  %v9688_v56 = vpop.eup %6022  ;;  %v9691_v4 = vmul.f32 %v2930_v3, %v9183_v28  ;;  %v2985_v7 = vsel %vm9679_vm2, %v9500_v48, %v2981_v49  ;;  %vm2987_vm3 = vcmp.eq.f32.partialorder %v2986_v29, 8.507059e+37  ;;  %v9696_v39 = vadd.f32 1.0, %v6021_v47  ;;  %v1611_v29 = vpop.f32.mrf.mxu2 }
 0x279   : > { %4820 = vmatmul.bf16.gmra.mxu2 %v4311_v53  ;;  %v2975_v59 = vsel %vm9614_vm13, %v2974_v54, %v2970_v30  ;;  %v2989_v21 = vor.u32 1.1754944e-38, %v2988_v1  ;;  %v3003_v16 = vand.u32 2147483648, %v9555_v17  ;;  %6026 = vrcp.f32 %v9658_v11  ;;  %v1435_v44 = vpop.f32.mrf.mxu0 }
 0x27a   : > { %13371 = vst [vmem:[#allocation21_spill] sm:$0xff] %v9691_v4  ;;  %4909 = vmatmul.bf16.gmra.mxu3 %v4312_v35  ;;  %v9703_v28 = vmul.f32 %v2945_v32, %v9227_v41  ;;  %v9706_v3 = vmul.f32 %v2960_v27, %v9233_v8  ;;  %v2994_v48 = vsub.f32 1.0, %v2993_v58  ;;  %6028 = vrcp.f32 %v9666_v55  ;;  %v1700_v58 = vpop.f32.mrf.mxu3  ;;  %v13385_v4 = vld [vmem:[#allocation36_spill] sm:$0xff] }
 0x27b   : > { %v9709_v22 = vpop.eup %6024  ;;  %v2990_v0 = vsel %vm2987_vm3, %v2989_v21, %v2985_v7  ;;  %v3008_v36 = vmul.f32 %v9688_v56, %v9594_v20  ;;  %6030 = vrcp.f32 %v9683_v31  ;;  %v5377_v54 = vmul.f32 -1.442695, %v9686_v37  ;;  %v1524_v27 = vpop.f32.mrf.mxu1 }
 0x27c   : > { %13372 = vst [vmem:[#allocation17_spill] sm:$0xff] %v9703_v28  ;;  %v9716_v41 = vmul.f32 %v2975_v59, %v9236_v9  ;;  %v3018_v8 = vand.u32 2147483648, %v9594_v20  ;;  %6032 = vrcp.f32 %v9696_v39  ;;  %v9721_v1 = vadd.f32 %v1522_v57, %v7411_v60  ;;  %v13384_v28 = vld [vmem:[#allocation34_spill] sm:$0xff] }
 0x27d   : > { %13373 = vst [vmem:[#allocation22_spill] sm:$0xff] %v9706_v3  ;;  %vm2997_vm4 = vweird.f32 %v9555_v17  ;;  %v3001_v30 = vand.u32 2147483647, %v9555_v17  ;;  %v9725_v49 = vor.u32 1.1754944e-38, %v3003_v16  ;;  %v3033_v13 = vand.u32 2147483648, %v9618_v51 }
 0x27e   : > { %13374 = vst [vmem:[#allocation18_spill] sm:$0xff] %v9716_v41  ;;  %v9729_v47 = vmul.f32 %v2990_v0, %v9277_v6  ;;  %v2995_v9 = vmul.f32 %v9635_v12, %v2994_v48  ;;  %v3016_v43 = vand.u32 2147483647, %v9594_v20  ;;  %v3048_v62 = vand.u32 2147483648, %v9658_v11 }
 0x27f   : > { %v9734_v57 = vpop.eup %6026  ;;  %v3009_v19 = vsub.f32 1.0, %v3008_v36  ;;  %v3023_v26 = vmul.f32 %v9709_v22, %v9618_v51  ;;  %v3031_v53 = vand.u32 2147483647, %v9618_v51  ;;  %6034 = vpow2.f32 %v5377_v54 }
 0x280   : > { %13375 = vst [vmem:[#allocation23_spill] sm:$0xff] %v9729_v47  ;;  %v9739_v50 = vpop.eup %6028  ;;  %vm2998_vm5 = vweird.f32 %v9635_v12  ;;  %v9742_v6 = vor.u32 1.1754944e-38, %v3018_v8  ;;  %v5378_v35 = vmul.f32 -1.442695, %v9721_v1  ;;  %v9746_v32 = vadd.f32 %v1611_v29, %v7431_v45  ;;  %v1613_v21 = vpop.f32.mrf.mxu2 }
 0x281   : > { %v9748_v15 = vpop.eup %6030  ;;  %vm9750_vm6 = vcmp.eq.f32.partialorder %v3001_v30, 8.507059e+37  ;;  %v9754_v59 = vor.u32 1.1754944e-38, %v3033_v13  ;;  %v9759_v48 = vadd.f32 %v1700_v58, %v7442_v61  ;;  %v2996_v29 = vadd.f32 %v9635_v12, %v2995_v9  ;;  %vm9786_vm8 = vmor %vm2997_vm4, %vm2998_vm5 }
 0x282   : > { %13376 = vst [vmem:[#allocation19_spill] sm:$0xff] %v9746_v32  ;;  %v9761_v0 = vpop.eup %6032  ;;  %v9764_v36 = vor.u32 1.1754944e-38, %v3048_v62  ;;  %v3063_v54 = vand.u32 2147483648, %v9666_v55  ;;  %v9768_v8 = vadd.f32 %v1435_v44, %v7405_v33  ;;  %v3010_v30 = vmul.f32 %v9688_v56, %v3009_v19 }
 0x283   : > { %13379 = vst [vmem:[#allocation24_spill] sm:$0xff] %v9759_v48  ;;  %vm3012_vm7 = vweird.f32 %v9594_v20  ;;  %v3024_v13 = vsub.f32 1.0, %v3023_v26  ;;  %v3038_v58 = vmul.f32 %v9734_v57, %v9658_v11  ;;  %v9775_v16 = vadd.f32 %v1524_v27, %v7411_v60 }
 0x284   : > { %v3053_v9 = vmul.f32 %v9739_v50, %v9666_v55  ;;  %v3068_v62 = vmul.f32 %v9748_v15, %v9683_v31  ;;  %6036 = vpow2.f32 %v5378_v35  ;;  %v5379_v44 = vmul.f32 -1.442695, %v9746_v32  ;;  %v13382_v35 = vld [vmem:[#allocation32_spill] sm:$0xff] }
 0x285   : > { %v6035_v19 = vpop.eup %6034  ;;  %vm3027_vm9 = vweird.f32 %v9618_v51  ;;  %v3083_v27 = vmul.f32 %v9761_v0, %v9696_v39  ;;  %v5380_v47 = vmul.f32 -1.442695, %v9759_v48  ;;  %v4313_v41 = vpack.c.bf16 %v8686_v14, %v13382_v35 }
 0x286   : > { %v4314_v3 = vpack.c.bf16 %v8689_v34, %v13383_v63  ;;  %v3000_v17 = vsel %vm9786_vm8, %v9635_v12, %v2996_v29  ;;  %v5381_v40 = vmul.f32 -1.442695, %v9768_v8  ;;  %v4315_v52 = vpack.c.bf16 %v13385_v4, %v13384_v28 }
 0x287   : > { %v4316_v32 = vpack.c.bf16 %v13387_v46, %v13386_v18  ;;  %vm9806_vm10 = vcmp.eq.f32.partialorder %v3016_v43, 8.507059e+37  ;;  %v3025_v14 = vmul.f32 %v9709_v22, %v3024_v13  ;;  %v3039_v35 = vsub.f32 1.0, %v3038_v58  ;;  %v1527_v13 = vpop.f32.mrf.mxu1 }
 0x288   : > { %v5382_v34 = vmul.f32 -1.442695, %v9775_v16  ;;  %v9813_v63 = vadd.f32 %v1613_v21, %v7431_v45  ;;  %4647 = vmatmul.bf16.gmra.mxu0 %v4313_v41  ;;  %4736 = vmatmul.bf16.gmra.mxu1 %v4314_v3  ;;  %vm3042_vm11 = vweird.f32 %v9658_v11  ;;  %v3054_v12 = vsub.f32 1.0, %v3053_v9 }
 0x289   : > { %v3069_v4 = vsub.f32 1.0, %v3068_v62  ;;  %v9816_v28 = vadd.f32 1.0, %v6035_v19  ;;  %6038 = vpow2.f32 %v5379_v44  ;;  %4825 = vmatmul.bf16.gmra.mxu2 %v4315_v52  ;;  %v3011_v18 = vadd.f32 %v9688_v56, %v3010_v30 }
 0x28a   : > { %4914 = vmatmul.bf16.gmra.mxu3 %v4316_v32  ;;  %vm3013_vm12 = vweird.f32 %v9688_v56  ;;  %vm9820_vm13 = vcmp.eq.f32.partialorder %v3031_v53, 8.507059e+37  ;;  %vm3057_vm14 = vweird.f32 %v9666_v55  ;;  %v3084_v3 = vsub.f32 1.0, %v3083_v27  ;;  %v6037_v41 = vpop.eup %6036 }
 0x28b   : > { %6040 = vpow2.f32 %v5380_v47  ;;  %v3005_v43 = vsel %vm9750_vm6, %v9725_v49, %v3000_v17  ;;  %vm3028_vm15 = vweird.f32 %v9709_v22  ;;  %v3076_v52 = vand.u32 2147483647, %v9683_v31  ;;  %vm9835_vm0 = vmor %vm3012_vm7, %vm3013_vm12 }
 0x28c   : > { %6042 = vpow2.f32 %v5381_v40  ;;  %v3026_v32 = vadd.f32 %v9709_v22, %v3025_v14  ;;  %v3040_v53 = vmul.f32 %v9734_v57, %v3039_v35  ;;  %v5383_v21 = vmul.f32 -1.442695, %v9813_v63  ;;  %vm9862_vm3 = vmor %vm3027_vm9, %vm3028_vm15 }
 0x28d   : > { %6044 = vpow2.f32 %v5382_v34  ;;  %v3055_v49 = vmul.f32 %v9739_v50, %v3054_v12  ;;  %v3064_v7 = vor.u32 1.1754944e-38, %v3063_v54  ;;  %v3070_v29 = vmul.f32 %v9748_v15, %v3069_v4 }
 0x28e   : > { %6046 = vrcp.f32 %v9816_v28  ;;  %v3015_v40 = vsel %vm9835_vm0, %v9688_v56, %v3011_v18  ;;  %v13394_v30 = vand.u32 2147483647, %v9658_v11  ;;  %vm3072_vm2 = vweird.f32 %v9683_v31 }
 0x28f   : > { %v3085_v20 = vmul.f32 %v9761_v0, %v3084_v3  ;;  %v9853_v58 = vadd.f32 1.0, %v6037_v41  ;;  %v6039_v54 = vpop.eup %6038  ;;  %v9856_v9 = vmul.f32 %v3005_v43, %v9387_v23  ;;  %vm3043_vm4 = vweird.f32 %v9734_v57 }
 0x290   : > { %vm9847_vm1 = vcmp.eq.f32.partialorder %v13394_v30, 8.507059e+37  ;;  %vm3058_vm5 = vweird.f32 %v9739_v50  ;;  %v13399_v62 = vand.u32 2147483647, %v9666_v55  ;;  %v3078_v23 = vand.u32 2147483648, %v9683_v31  ;;  %vm9893_vm9 = vmor %vm3042_vm11, %vm3043_vm4 }
 0x291   : > { %v6041_v19 = vpop.eup %6040  ;;  %v3030_v51 = vsel %vm9862_vm3, %v9709_v22, %v3026_v32  ;;  %v3041_v26 = vadd.f32 %v9734_v57, %v3040_v53  ;;  %vm9879_vm7 = vcmp.eq.f32.partialorder %v3076_v52, 8.507059e+37  ;;  %6048 = vpow2.f32 %v5383_v21  ;;  %v1702_v32 = vpop.f32.mrf.mxu3 }
 0x292   : > { %vm9870_vm6 = vcmp.eq.f32.partialorder %v13399_v62, 8.507059e+37  ;;  %v6043_v17 = vpop.eup %6042  ;;  %v3020_v14 = vsel %vm9806_vm10, %v9742_v6, %v3015_v40  ;;  %v3056_v35 = vadd.f32 %v9739_v50, %v3055_v49  ;;  %v3071_v34 = vadd.f32 %v9748_v15, %v3070_v29  ;;  %vm9911_vm10 = vmor %vm3057_vm14, %vm3058_vm5  ;;  %v1616_v62 = vpop.f32.mrf.mxu2 }
 0x293   : > { %vm3073_vm8 = vweird.f32 %v9748_v15  ;;  %v6045_v12 = vpop.eup %6044  ;;  %v3086_v4 = vadd.f32 %v9761_v0, %v3085_v20  ;;  %vm3088_vm12 = vweird.f32 %v9761_v0  ;;  %6050 = vrcp.f32 %v9853_v58 }
 0x294   : > { %v9900_v6 = vadd.f32 1.0, %v6039_v54  ;;  %v9902_v48 = vpop.eup %6046  ;;  %v3035_v18 = vsel %vm9820_vm13, %v9754_v59, %v3030_v51  ;;  %v3079_v3 = vor.u32 1.1754944e-38, %v3078_v23  ;;  %v3093_v41 = vand.u32 2147483648, %v9696_v39  ;;  %vm9923_vm11 = vmor %vm3072_vm2, %vm3073_vm8 }
 0x295   : > { %v9916_v43 = vadd.f32 1.0, %v6041_v19  ;;  %v3045_v52 = vsel %vm9893_vm9, %v9734_v57, %v3041_v26  ;;  %vm3087_vm13 = vweird.f32 %v9696_v39  ;;  %v3091_v55 = vand.u32 2147483647, %v9696_v39 }
 0x296   : > { %v9929_v46 = vadd.f32 1.0, %v6043_v17  ;;  %v9932_v53 = vmul.f32 %v3020_v14, %v9428_v5  ;;  %v3060_v57 = vsel %vm9911_vm10, %v9739_v50, %v3056_v35  ;;  %v3075_v31 = vsel %vm9923_vm11, %v9748_v15, %v3071_v34  ;;  %vm9942_vm14 = vmor %vm3087_vm13, %vm3088_vm12 }
 0x297   : > { %v9946_v39 = vadd.f32 1.0, %v6045_v12  ;;  %v6049_v47 = vpop.eup %6048  ;;  %v9949_v5 = vmul.f32 %v3035_v18, %v9459_v10  ;;  %v3090_v50 = vsel %vm9942_vm14, %v9761_v0, %v3086_v4  ;;  %v3098_v49 = vmul.f32 %v9902_v48, %v9816_v28  ;;  %v1438_v10 = vpop.f32.mrf.mxu0  ;;  %v13417_v4 = vld [vmem:[#allocation38_spill] sm:$0xff] }
 0x298   : > { %13410 = vst [vmem:[#allocation28_spill] sm:$0xff] %v9932_v53  ;;  %6052 = vrcp.f32 %v9900_v6  ;;  %v3050_v15 = vsel %vm9847_vm1, %v9764_v36, %v3045_v52  ;;  %v3094_v29 = vor.u32 1.1754944e-38, %v3093_v41  ;;  %v9962_v40 = vadd.f32 %v1702_v32, %v7442_v61 }
 0x299   : > { %13413 = vst [vmem:[#allocation25_spill] sm:$0xff] %v9949_v5  ;;  %6054 = vrcp.f32 %v9916_v43  ;;  %v9964_v30 = vpop.eup %6050  ;;  %v3065_v0 = vsel %vm9870_vm6, %v3064_v7, %v3060_v57  ;;  %v3080_v20 = vsel %vm9879_vm7, %v3079_v3, %v3075_v31  ;;  %vm3092_vm15 = vcmp.eq.f32.partialorder %v3091_v55, 8.507059e+37  ;;  %v1705_v52 = vpop.f32.mrf.mxu3 }
 0x29a   : > { %6056 = vrcp.f32 %v9929_v46  ;;  %v3095_v36 = vsel %vm3092_vm15, %v3094_v29, %v3090_v50  ;;  %v3108_v54 = vand.u32 2147483648, %v9816_v28  ;;  %v9973_v56 = vadd.f32 1.0, %v6049_v47 }
 0x29b   : > { %6058 = vrcp.f32 %v9946_v39  ;;  %v9976_v23 = vmul.f32 %v3050_v15, %v9490_v42  ;;  %v3099_v44 = vsub.f32 1.0, %v3098_v49  ;;  %v3123_v7 = vand.u32 2147483648, %v9853_v58 }
 0x29c   : > { %v9980_v19 = vadd.f32 %v1438_v10, %v7405_v33  ;;  %v9983_v51 = vmul.f32 %v3065_v0, %v9498_v2  ;;  %v3113_v26 = vmul.f32 %v9964_v30, %v9853_v58  ;;  %v5384_v27 = vmul.f32 -1.442695, %v9962_v40 }
 0x29d   : > { %v9989_v17 = vadd.f32 %v1527_v13, %v7411_v60  ;;  %v9994_v42 = vmul.f32 %v3080_v20, %v9517_v25  ;;  %v9997_v35 = vmul.f32 %v3095_v36, %v9521_v38  ;;  %v3106_v34 = vand.u32 2147483647, %v9816_v28 }
 0x29e   : > { %13414 = vst [vmem:[#allocation29_spill] sm:$0xff] %v9983_v51  ;;  %v9991_v14 = vpop.eup %6052  ;;  %v10001_v2 = vadd.f32 %v1616_v62, %v7431_v45  ;;  %vm3102_vm0 = vweird.f32 %v9816_v28  ;;  %v10006_v22 = vor.u32 1.1754944e-38, %v3108_v54  ;;  %6060 = vrcp.f32 %v9973_v56 }
 0x29f   : > { %13415 = vst [vmem:[#allocation26_spill] sm:$0xff] %v9994_v42  ;;  %v10003_v12 = vpop.eup %6054  ;;  %v4317_v25 = vpack.c.bf16 %v9063_v24, %v13417_v4  ;;  %v3100_v38 = vmul.f32 %v9902_v48, %v3099_v44  ;;  %v3121_v11 = vand.u32 2147483647, %v9853_v58  ;;  %v10015_v3 = vor.u32 1.1754944e-38, %v3123_v7  ;;  %v1440_v13 = vpop.f32.mrf.mxu0 }
 0x2a0   : > { %13416 = vst [vmem:[#allocation30_spill] sm:$0xff] %v9997_v35  ;;  %v10011_v18 = vpop.eup %6056  ;;  %v5385_v41 = vmul.f32 -1.442695, %v9980_v19  ;;  %v3114_v55 = vsub.f32 1.0, %v3113_v26  ;;  %v3138_v32 = vand.u32 2147483648, %v9900_v6  ;;  %6062 = vpow2.f32 %v5384_v27  ;;  %v1529_v44 = vpop.f32.mrf.mxu1 }
 0x2a1   : > { %v10018_v59 = vpop.eup %6058  ;;  %v5386_v57 = vmul.f32 -1.442695, %v9989_v17  ;;  %4652 = vmatmul.bf16.gmra.mxu0 %v4317_v25  ;;  %vm10022_vm1 = vcmp.eq.f32.partialorder %v3106_v34, 8.507059e+37  ;;  %v3128_v31 = vmul.f32 %v9991_v14, %v9900_v6  ;;  %v3136_v21 = vand.u32 2147483647, %v9900_v6 }
 0x2a2   : > { %v3143_v47 = vmul.f32 %v10003_v12, %v9916_v43  ;;  %v5387_v50 = vmul.f32 -1.442695, %v10001_v2  ;;  %vm3103_vm2 = vweird.f32 %v9902_v48  ;;  %vm3117_vm3 = vweird.f32 %v9853_v58 }
 0x2a3   : > { %v3153_v49 = vand.u32 2147483648, %v9916_v43  ;;  %v3158_v15 = vmul.f32 %v10011_v18, %v9929_v46  ;;  %v10038_v29 = vadd.f32 %v1705_v52, %v7442_v61  ;;  %v3101_v10 = vadd.f32 %v9902_v48, %v3100_v38  ;;  %vm10055_vm5 = vmor %vm3102_vm0, %vm3103_vm2 }
 0x2a4   : > { %v3151_v0 = vand.u32 2147483647, %v9916_v43  ;;  %v3173_v20 = vmul.f32 %v10018_v59, %v9946_v39  ;;  %6064 = vpow2.f32 %v5385_v41  ;;  %v10044_v36 = vpop.eup %6060  ;;  %v3115_v54 = vmul.f32 %v9964_v30, %v3114_v55 }
 0x2a5   : > { %vm3118_vm4 = vweird.f32 %v9964_v30  ;;  %v10048_v62 = vor.u32 1.1754944e-38, %v3138_v32  ;;  %6066 = vpow2.f32 %v5386_v57  ;;  %v3129_v7 = vsub.f32 1.0, %v3128_v31 }
 0x2a6   : > { %v3144_v26 = vsub.f32 1.0, %v3143_v47  ;;  %v3168_v27 = vand.u32 2147483648, %v9929_v46  ;;  %6068 = vpow2.f32 %v5387_v50  ;;  %v6063_v34 = vpop.eup %6062  ;;  %vm3132_vm6 = vweird.f32 %v9900_v6  ;;  %v1618_v50 = vpop.f32.mrf.mxu2  ;;  %vm10099_vm11 = vmor %vm3117_vm3, %vm3118_vm4 }
 0x2a7   : > { %v10060_v25 = vor.u32 1.1754944e-38, %v3153_v49  ;;  %v3159_v38 = vsub.f32 1.0, %v3158_v15  ;;  %v5388_v41 = vmul.f32 -1.442695, %v10038_v29  ;;  %v10064_v52 = vadd.f32 %v1440_v13, %v7405_v33  ;;  %v1443_v47 = vpop.f32.mrf.mxu0 }
 0x2a8   : > { %v3105_v55 = vsel %vm10055_vm5, %v9902_v48, %v3101_v10  ;;  %vm3147_vm7 = vweird.f32 %v9916_v43  ;;  %v3174_v28 = vsub.f32 1.0, %v3173_v20  ;;  %v3188_v32 = vmul.f32 %v10044_v36, %v9973_v56 }
 0x2a9   : > { %v10073_v57 = vadd.f32 %v1529_v44, %v7411_v60  ;;  %v3116_v31 = vadd.f32 %v9964_v30, %v3115_v54  ;;  %vm10076_vm8 = vcmp.eq.f32.partialorder %v3121_v11, 8.507059e+37  ;;  %vm3133_vm9 = vweird.f32 %v9991_v14 }
 0x2aa   : > { %vm3148_vm12 = vweird.f32 %v10003_v12  ;;  %vm3162_vm10 = vweird.f32 %v9929_v46  ;;  %v3166_v48 = vand.u32 2147483647, %v9929_v46  ;;  %v6065_v49 = vpop.eup %6064  ;;  %v3130_v15 = vmul.f32 %v9991_v14, %v3129_v7  ;;  %vm10140_vm2 = vmor %vm3132_vm6, %vm3133_vm9 }
 0x2ab   : > { %v3145_v10 = vmul.f32 %v10003_v12, %v3144_v26  ;;  %v10086_v20 = vor.u32 1.1754944e-38, %v3168_v27  ;;  %v10088_v11 = vadd.f32 1.0, %v6063_v34  ;;  %v6067_v13 = vpop.eup %6066  ;;  %v3110_v54 = vsel %vm10022_vm1, %v10006_v22, %v3105_v55  ;;  %vm10154_vm3 = vmor %vm3147_vm7, %vm3148_vm12 }
 0x2ac   : > { %v3160_v44 = vmul.f32 %v10011_v18, %v3159_v38  ;;  %6070 = vpow2.f32 %v5388_v41  ;;  %v5389_v4 = vmul.f32 -1.442695, %v10064_v52  ;;  %v6069_v35 = vpop.eup %6068  ;;  %vm10103_vm13 = vcmp.eq.f32.partialorder %v3136_v21, 8.507059e+37 }
 0x2ad   : > { %v3175_v22 = vmul.f32 %v10018_v59, %v3174_v28  ;;  %v3189_v24 = vsub.f32 1.0, %v3188_v32  ;;  %v5390_v27 = vmul.f32 -1.442695, %v10073_v57  ;;  %v10110_v34 = vadd.f32 %v1618_v50, %v7431_v45 }
 0x2ae   : > { %v3120_v58 = vsel %vm10099_vm11, %v9964_v30, %v3116_v31  ;;  %vm10115_vm14 = vcmp.eq.f32.partialorder %v3151_v0, 8.507059e+37  ;;  %vm3163_vm15 = vweird.f32 %v10011_v18  ;;  %v3183_v21 = vand.u32 2147483648, %v9946_v39 }
 0x2af   : > { %v10121_v41 = vadd.f32 1.0, %v6065_v49  ;;  %v3131_v55 = vadd.f32 %v9991_v14, %v3130_v15  ;;  %v3146_v28 = vadd.f32 %v10003_v12, %v3145_v10  ;;  %vm10125_vm0 = vcmp.eq.f32.partialorder %v3166_v48, 8.507059e+37  ;;  %vm10171_vm5 = vmor %vm3162_vm10, %vm3163_vm15 }
 0x2b0   : > { %6072 = vrcp.f32 %v10088_v11  ;;  %v10130_v30 = vadd.f32 1.0, %v6067_v13  ;;  %v3161_v0 = vadd.f32 %v10011_v18, %v3160_v44  ;;  %vm3178_vm1 = vweird.f32 %v10018_v59 }
 0x2b1   : > { %v10134_v31 = vadd.f32 1.0, %v6069_v35  ;;  %6074 = vpow2.f32 %v5389_v4  ;;  %v3176_v50 = vadd.f32 %v10018_v59, %v3175_v22  ;;  %v3190_v49 = vmul.f32 %v10044_v36, %v3189_v24 }
 0x2b2   : > { %6076 = vpow2.f32 %v5390_v27  ;;  %v5391_v15 = vmul.f32 -1.442695, %v10110_v34  ;;  %v6071_v10 = vpop.eup %6070  ;;  %v10148_v35 = vmul.f32 %v3110_v54, %v9686_v37  ;;  %vm3177_vm4 = vweird.f32 %v9946_v39 }
 0x2b3   : > { %v3181_v13 = vand.u32 2147483647, %v9946_v39  ;;  %6078 = vrcp.f32 %v10121_v41  ;;  %v3125_v44 = vsel %vm10076_vm8, %v10015_v3, %v3120_v58  ;;  %v3135_v37 = vsel %vm10140_vm2, %v9991_v14, %v3131_v55  ;;  %v1707_v39 = vpop.f32.mrf.mxu3  ;;  %vm10184_vm6 = vmor %vm3177_vm4, %vm3178_vm1 }
 0x2b4   : > { %13434 = vst [vmem:[#allocation27_spill] sm:$0xff] %v10148_v35  ;;  %v3184_v54 = vor.u32 1.1754944e-38, %v3183_v21  ;;  %6080 = vrcp.f32 %v10130_v30  ;;  %v3150_v3 = vsel %vm10154_vm3, %v10003_v12, %v3146_v28  ;;  %v3165_v14 = vsel %vm10171_vm5, %v10011_v18, %v3161_v0 }
 0x2b5   : > { %vm3193_vm7 = vweird.f32 %v10044_v36  ;;  %6082 = vrcp.f32 %v10134_v31  ;;  %v3180_v12 = vsel %vm10184_vm6, %v10018_v59, %v3176_v50  ;;  %v3191_v7 = vadd.f32 %v10044_v36, %v3190_v49  ;;  %v13444_v50 = vld [vmem:[#allocation19_spill] sm:$0xff] }
 0x2b6   : > { %v10190_v4 = vpop.eup %6072  ;;  %v10196_v18 = vadd.f32 1.0, %v6071_v10  ;;  %6084 = vpow2.f32 %v5391_v15  ;;  %v3140_v24 = vsel %vm10103_vm13, %v10048_v62, %v3135_v37  ;;  %v3196_v27 = vand.u32 2147483647, %v9973_v56  ;;  %v13446_v15 = vld [vmem:[#allocation24_spill] sm:$0xff] }
 0x2b7   : > { %v6075_v22 = vpop.eup %6074  ;;  %v3198_v58 = vand.u32 2147483648, %v9973_v56  ;;  %v10204_v21 = vadd.f32 %v1707_v39, %v7442_v61  ;;  %v3155_v59 = vsel %vm10115_vm14, %v10060_v25, %v3150_v3  ;;  %vm3182_vm8 = vcmp.eq.f32.partialorder %v3181_v13, 8.507059e+37 }
 0x2b8   : > { %v6077_v55 = vpop.eup %6076  ;;  %vm3192_vm9 = vweird.f32 %v9973_v56  ;;  %v10211_v28 = vadd.f32 %v1443_v47, %v7405_v33  ;;  %v10216_v62 = vmul.f32 %v3125_v44, %v9721_v1  ;;  %v3170_v0 = vsel %vm10125_vm0, %v10086_v20, %v3165_v14 }
 0x2b9   : > { %v10213_v26 = vpop.eup %6078  ;;  %v3185_v48 = vsel %vm3182_vm8, %v3184_v54, %v3180_v12  ;;  %vm10223_vm12 = vmor %vm3192_vm9, %vm3193_vm7  ;;  %v3203_v56 = vmul.f32 %v10190_v4, %v10088_v11  ;;  %v10232_v49 = vmul.f32 %v3140_v24, %v13444_v50  ;;  %6086 = vrcp.f32 %v10196_v18 }
 0x2ba   : > { %13441 = vst [vmem:[#allocation31_spill] sm:$0xff] %v10216_v62  ;;  %v10229_v38 = vpop.eup %6080  ;;  %v3195_v1 = vsel %vm10223_vm12, %v10044_v36, %v3191_v7  ;;  %v10238_v20 = vadd.f32 1.0, %v6075_v22  ;;  %v10243_v10 = vmul.f32 %v3155_v59, %v13446_v15  ;;  %vm3197_vm10 = vcmp.eq.f32.partialorder %v3196_v27, 8.507059e+37  ;;  %v1532_v59 = vpop.f32.mrf.mxu1 }
 0x2bb   : > { %13445 = vst [vmem:[#allocation32_spill] sm:$0xff] %v10232_v49  ;;  %v10240_v32 = vpop.eup %6082  ;;  %v3199_v6 = vor.u32 1.1754944e-38, %v3198_v58  ;;  %v5392_v13 = vmul.f32 -1.442695, %v10204_v21  ;;  %v10247_v37 = vmul.f32 %v3170_v0, %v9768_v8  ;;  %v10250_v43 = vmul.f32 %v3185_v48, %v9775_v16 }
 0x2bc   : > { %13447 = vst [vmem:[#allocation33_spill] sm:$0xff] %v10243_v10  ;;  %v6085_v44 = vpop.eup %6084  ;;  %v3213_v36 = vand.u32 2147483648, %v10088_v11  ;;  %v5393_v54 = vmul.f32 -1.442695, %v10211_v28  ;;  %v3204_v3 = vsub.f32 1.0, %v3203_v56  ;;  %v3218_v14 = vmul.f32 %v10213_v26, %v10121_v41 }
 0x2bd   : > { %13448 = vst [vmem:[#allocation34_spill] sm:$0xff] %v10247_v37  ;;  %v3200_v39 = vsel %vm3197_vm10, %v3199_v6, %v3195_v1  ;;  %v10256_v46 = vadd.f32 1.0, %v6077_v55  ;;  %v3228_v47 = vand.u32 2147483648, %v10121_v41  ;;  %v3233_v8 = vmul.f32 %v10229_v38, %v10130_v30 }
 0x2be   : > { %13449 = vst [vmem:[#allocation36_spill] sm:$0xff] %v10250_v43  ;;  %v3248_v16 = vmul.f32 %v10240_v32, %v10134_v31  ;;  %6088 = vrcp.f32 %v10238_v20  ;;  %vm3207_vm11 = vweird.f32 %v10088_v11  ;;  %v3211_v12 = vand.u32 2147483647, %v10088_v11 }
 0x2bf   : > { %v10266_v7 = vadd.f32 1.0, %v6085_v44  ;;  %6090 = vpow2.f32 %v5392_v13  ;;  %v10268_v22 = vpop.eup %6086  ;;  %v10271_v24 = vmul.f32 %v3200_v39, %v9813_v63  ;;  %v10273_v27 = vor.u32 1.1754944e-38, %v3213_v36  ;;  %v1621_v63 = vpop.f32.mrf.mxu2 }
 0x2c0   : > { %v3226_v58 = vand.u32 2147483647, %v10121_v41  ;;  %v3243_v55 = vand.u32 2147483648, %v10130_v30  ;;  %v3205_v0 = vmul.f32 %v10190_v4, %v3204_v3  ;;  %v3219_v48 = vsub.f32 1.0, %v3218_v14  ;;  %v1710_v44 = vpop.f32.mrf.mxu3 }
 0x2c1   : > { %13450 = vst [vmem:[#allocation35_spill] sm:$0xff] %v10271_v24  ;;  %v3258_v25 = vand.u32 2147483648, %v10134_v31  ;;  %6092 = vrcp.f32 %v10256_v46  ;;  %v10280_v56 = vor.u32 1.1754944e-38, %v3228_v47  ;;  %v3234_v50 = vsub.f32 1.0, %v3233_v8 }
 0x2c2   : > { %v3249_v1 = vsub.f32 1.0, %v3248_v16  ;;  %6094 = vpow2.f32 %v5393_v54  ;;  %vm3222_vm13 = vweird.f32 %v10121_v41  ;;  %v3241_v15 = vand.u32 2147483647, %v10130_v30 }
 0x2c3   : > { %v3263_v6 = vmul.f32 %v10268_v22, %v10196_v18  ;;  %6096 = vrcp.f32 %v10266_v7  ;;  %v10288_v13 = vadd.f32 %v1532_v59, %v7411_v60  ;;  %vm3208_vm14 = vweird.f32 %v10190_v4  ;;  %v1445_v59 = vpop.f32.mrf.mxu0 }
 0x2c4   : > { %v10290_v36 = vpop.eup %6088  ;;  %vm10293_vm15 = vcmp.eq.f32.partialorder %v3211_v12, 8.507059e+37  ;;  %vm3223_vm0 = vweird.f32 %v10213_v26  ;;  %vm3237_vm1 = vweird.f32 %v10130_v30  ;;  %v10299_v39 = vor.u32 1.1754944e-38, %v3243_v55  ;;  %vm10330_vm4 = vmor %vm3207_vm11, %vm3208_vm14 }
 0x2c5   : > { %v3256_v3 = vand.u32 2147483647, %v10134_v31  ;;  %v6091_v14 = vpop.eup %6090  ;;  %v3206_v47 = vadd.f32 %v10190_v4, %v3205_v0  ;;  %v3220_v8 = vmul.f32 %v10213_v26, %v3219_v48  ;;  %vm3252_vm2 = vweird.f32 %v10134_v31  ;;  %vm10370_vm12 = vmor %vm3222_vm13, %vm3223_vm0 }
 0x2c6   : > { %v10305_v16 = vor.u32 1.1754944e-38, %v3258_v25  ;;  %v10308_v12 = vadd.f32 %v1621_v63, %v7431_v45  ;;  %v3235_v10 = vmul.f32 %v10229_v38, %v3234_v50  ;;  %v3250_v55 = vmul.f32 %v10240_v32, %v3249_v1 }
 0x2c7   : > { %v3271_v24 = vand.u32 2147483647, %v10196_v18  ;;  %v10314_v49 = vadd.f32 %v1710_v44, %v7442_v61  ;;  %v10316_v0 = vpop.eup %6092  ;;  %vm10318_vm3 = vcmp.eq.f32.partialorder %v3226_v58, 8.507059e+37  ;;  %v3264_v25 = vsub.f32 1.0, %v3263_v6 }
 0x2c8   : > { %v3273_v63 = vand.u32 2147483648, %v10196_v18  ;;  %v3278_v43 = vmul.f32 %v10290_v36, %v10238_v20  ;;  %v5394_v50 = vmul.f32 -1.442695, %v10288_v13  ;;  %v6095_v1 = vpop.eup %6094  ;;  %vm3238_vm5 = vweird.f32 %v10229_v38 }
 0x2c9   : > { %vm10335_vm6 = vcmp.eq.f32.partialorder %v3241_v15, 8.507059e+37  ;;  %vm3253_vm7 = vweird.f32 %v10240_v32  ;;  %v10340_v6 = vadd.f32 1.0, %v6091_v14  ;;  %v10343_v62 = vadd.f32 %v1445_v59, %v7405_v33  ;;  %v10345_v37 = vpop.eup %6096  ;;  %vm10389_vm10 = vmor %vm3237_vm1, %vm3238_vm5 }
 0x2ca   : > { %v3210_v11 = vsel %vm10330_vm4, %v10190_v4, %v3206_v47  ;;  %v3221_v35 = vadd.f32 %v10213_v26, %v3220_v8  ;;  %vm10351_vm8 = vcmp.eq.f32.partialorder %v3256_v3, 8.507059e+37  ;;  %vm3267_vm9 = vweird.f32 %v10196_v18  ;;  %v1534_v47 = vpop.f32.mrf.mxu1  ;;  %vm10408_vm14 = vmor %vm3252_vm2, %vm3253_vm7  ;;  %v1623_v18 = vpop.f32.mrf.mxu2 }
 0x2cb   : > { %v3286_v14 = vand.u32 2147483647, %v10238_v20  ;;  %v5395_v5 = vmul.f32 -1.442695, %v10308_v12  ;;  %v3236_v59 = vadd.f32 %v10229_v38, %v3235_v10  ;;  %v3251_v42 = vadd.f32 %v10240_v32, %v3250_v55 }
 0x2cc   : > { %v3293_v44 = vmul.f32 %v10316_v0, %v10256_v46  ;;  %v5396_v4 = vmul.f32 -1.442695, %v10314_v49  ;;  %v3265_v3 = vmul.f32 %v10268_v22, %v3264_v25  ;;  %v3279_v8 = vsub.f32 1.0, %v3278_v43 }
 0x2cd   : > { %v10364_v53 = vadd.f32 1.0, %v6095_v1  ;;  %6098 = vpow2.f32 %v5394_v50  ;;  %v3288_v55 = vand.u32 2147483648, %v10238_v20  ;;  %v3308_v51 = vmul.f32 %v10345_v37, %v10266_v7 }
 0x2ce   : > { %6100 = vrcp.f32 %v10340_v6  ;;  %v5397_v43 = vmul.f32 -1.442695, %v10343_v62  ;;  %v3215_v25 = vsel %vm10293_vm15, %v10273_v27, %v3210_v11  ;;  %v3225_v41 = vsel %vm10370_vm12, %v10213_v26, %v3221_v35 }
 0x2cf   : > { %vm10393_vm11 = vcmp.eq.f32.partialorder %v3271_v24, 8.507059e+37  ;;  %vm3282_vm13 = vweird.f32 %v10238_v20  ;;  %6102 = vpow2.f32 %v5395_v5  ;;  %v10399_v27 = vadd.f32 %v1534_v47, %v7411_v60 }
 0x2d0   : > { %v3240_v35 = vsel %vm10389_vm10, %v10229_v38, %v3236_v59  ;;  %vm3268_vm15 = vweird.f32 %v10268_v22  ;;  %v3294_v26 = vsub.f32 1.0, %v3293_v44  ;;  %6104 = vpow2.f32 %v5396_v4 }
 0x2d1   : > { %v3255_v5 = vsel %vm10408_vm14, %v10240_v32, %v3251_v42  ;;  %v3266_v24 = vadd.f32 %v10268_v22, %v3265_v3  ;;  %v3280_v38 = vmul.f32 %v10290_v36, %v3279_v8  ;;  %6106 = vrcp.f32 %v10364_v53  ;;  %vm10444_vm1 = vmor %vm3267_vm9, %vm3268_vm15 }
 0x2d2   : > { %v3230_v31 = vsel %vm10318_vm3, %v10280_v56, %v3225_v41  ;;  %v3274_v54 = vor.u32 1.1754944e-38, %v3273_v63  ;;  %v3309_v11 = vsub.f32 1.0, %v3308_v51  ;;  %6108 = vpow2.f32 %v5397_v43  ;;  %v1537_v50 = vpop.f32.mrf.mxu1 }
 0x2d3   : > { %v6099_v59 = vpop.eup %6098  ;;  %v3245_v44 = vsel %vm10335_vm6, %v10299_v39, %v3240_v35  ;;  %vm10425_vm0 = vcmp.eq.f32.partialorder %v3286_v14, 8.507059e+37  ;;  %v3301_v32 = vand.u32 2147483647, %v10256_v46  ;;  %v3303_v4 = vand.u32 2147483648, %v10256_v46 }
 0x2d4   : > { %v5398_v47 = vmul.f32 -1.442695, %v10399_v27  ;;  %v10432_v48 = vpop.eup %6100  ;;  %v10435_v51 = vmul.f32 %v3215_v25, %v9962_v40  ;;  %v3260_v56 = vsel %vm10351_vm8, %v10305_v16, %v3255_v5  ;;  %v3289_v63 = vor.u32 1.1754944e-38, %v3288_v55 }
 0x2d5   : > { %v3295_v58 = vmul.f32 %v10316_v0, %v3294_v26  ;;  %v6103_v14 = vpop.eup %6102  ;;  %v10450_v3 = vmul.f32 %v3230_v31, %v9980_v19  ;;  %v3270_v40 = vsel %vm10444_vm1, %v10268_v22, %v3266_v24  ;;  %v3281_v16 = vadd.f32 %v10290_v36, %v3280_v38 }
 0x2d6   : > { %vm3283_vm2 = vweird.f32 %v10290_v36  ;;  %v6105_v15 = vpop.eup %6104  ;;  %v10458_v8 = vmul.f32 %v3245_v44, %v9989_v17  ;;  %vm3297_vm3 = vweird.f32 %v10256_v46  ;;  %v3310_v10 = vmul.f32 %v10345_v37, %v3309_v11  ;;  %v1712_v11 = vpop.f32.mrf.mxu3 }
 0x2d7   : > { %v10462_v55 = vadd.f32 1.0, %v6099_v59  ;;  %v10464_v19 = vpop.eup %6106  ;;  %v10467_v43 = vmul.f32 %v3260_v56, %v10001_v2  ;;  %vm10469_vm4 = vcmp.eq.f32.partialorder %v3301_v32, 8.507059e+37  ;;  %v3304_v25 = vor.u32 1.1754944e-38, %v3303_v4  ;;  %vm10477_vm5 = vmor %vm3282_vm13, %vm3283_vm2 }
 0x2d8   : > { %13473 = vst [vmem:[#allocation37_spill] sm:$0xff] %v10458_v8  ;;  %6110 = vpow2.f32 %v5398_v47  ;;  %v6109_v41 = vpop.eup %6108  ;;  %v3275_v17 = vsel %vm10393_vm11, %v3274_v54, %v3270_v40  ;;  %v3296_v35 = vadd.f32 %v10316_v0, %v3295_v58  ;;  %vm3298_vm6 = vweird.f32 %v10316_v0 }
 0x2d9   : > { %13474 = vst [vmem:[#allocation38_spill] sm:$0xff] %v10467_v43  ;;  %v10484_v2 = vadd.f32 %v1623_v18, %v7431_v45  ;;  %v3285_v30 = vsel %vm10477_vm5, %v10290_v36, %v3281_v16  ;;  %v3318_v1 = vand.u32 2147483648, %v10266_v7  ;;  %v3323_v20 = vmul.f32 %v10432_v48, %v10340_v6  ;;  %vm10501_vm8 = vmor %vm3297_vm3, %vm3298_vm6 }
 0x2da   : > { %v10492_v26 = vadd.f32 1.0, %v6103_v14  ;;  %v3311_v5 = vadd.f32 %v10345_v37, %v3310_v10  ;;  %vm3313_vm7 = vweird.f32 %v10345_v37  ;;  %6112 = vrcp.f32 %v10462_v55 }
 0x2db   : > { %v10497_v24 = vadd.f32 1.0, %v6105_v15  ;;  %vm3312_vm9 = vweird.f32 %v10266_v7  ;;  %v3316_v36 = vand.u32 2147483647, %v10266_v7  ;;  %v3338_v31 = vmul.f32 %v10464_v19, %v10364_v53 }
 0x2dc   : > { %v10509_v54 = vadd.f32 1.0, %v6109_v41  ;;  %v10512_v59 = vmul.f32 %v3275_v17, %v10038_v29  ;;  %v3290_v46 = vsel %vm10425_vm0, %v3289_v63, %v3285_v30  ;;  %v3300_v44 = vsel %vm10501_vm8, %v10316_v0, %v3296_v35  ;;  %vm10520_vm12 = vmor %vm3312_vm9, %vm3313_vm7 }
 0x2dd   : > { %v5399_v32 = vmul.f32 -1.442695, %v10484_v2  ;;  %v3319_v47 = vor.u32 1.1754944e-38, %v3318_v1  ;;  %v3324_v56 = vsub.f32 1.0, %v3323_v20  ;;  %v3331_v39 = vand.u32 2147483647, %v10340_v6 }
 0x2de   : > { %13481 = vst [vmem:[#allocation19_spill] sm:$0xff] %v10512_v59  ;;  %v6111_v4 = vpop.eup %6110  ;;  %6114 = vrcp.f32 %v10492_v26  ;;  %v3315_v29 = vsel %vm10520_vm12, %v10345_v37, %v3311_v5  ;;  %v3333_v42 = vand.u32 2147483648, %v10340_v6  ;;  %v10532_v0 = vadd.f32 %v1712_v11, %v7442_v61 }
 0x2df   : > { %6116 = vrcp.f32 %v10497_v24  ;;  %v3305_v63 = vsel %vm10469_vm4, %v3304_v25, %v3300_v44  ;;  %v3339_v58 = vsub.f32 1.0, %v3338_v31  ;;  %v3348_v14 = vand.u32 2147483648, %v10364_v53  ;;  %v1448_v25 = vpop.f32.mrf.mxu0 }
 0x2e0   : > { %6118 = vrcp.f32 %v10509_v54  ;;  %v10538_v40 = vpop.eup %6112  ;;  %v10541_v16 = vmul.f32 %v3290_v46, %v10064_v52  ;;  %vm3317_vm10 = vcmp.eq.f32.partialorder %v3316_v36, 8.507059e+37  ;;  %v10543_v37 = vadd.f32 1.0, %v6111_v4 }
 0x2e1   : > { %6120 = vpow2.f32 %v5399_v32  ;;  %v3320_v18 = vsel %vm3317_vm10, %v3319_v47, %v3315_v29  ;;  %v3325_v15 = vmul.f32 %v10432_v48, %v3324_v56  ;;  %v3346_v10 = vand.u32 2147483647, %v10364_v53  ;;  %v13492_v32 = vld [vmem:[#allocation42_spill] sm:$0xff]  ;;  %v13494_v29 = vld [vmem:[#allocation43_spill] sm:$0xff] }
 0x2e2   : > { %13484 = vst [vmem:[#allocation24_spill] sm:$0xff] %v10541_v16  ;;  %v3363_v22 = vand.u32 2147483648, %v10462_v55  ;;  %v10549_v41 = vmul.f32 %v3305_v63, %v10073_v57  ;;  %vm3327_vm11 = vweird.f32 %v10340_v6  ;;  %v3334_v17 = vor.u32 1.1754944e-38, %v3333_v42 }
 0x2e3   : > { %v5400_v52 = vmul.f32 -1.442695, %v10532_v0  ;;  %vm10555_vm13 = vcmp.eq.f32.partialorder %v3331_v39, 8.507059e+37  ;;  %v3340_v1 = vmul.f32 %v10464_v19, %v3339_v58  ;;  %vm3342_vm14 = vweird.f32 %v10364_v53  ;;  %v13493_v39 = vld [vmem:[#allocation40_spill] sm:$0xff] }
 0x2e4   : > { %13485 = vst [vmem:[#allocation55_spill] sm:$0xff] %v10549_v41  ;;  %v10553_v35 = vpop.eup %6114  ;;  %v3349_v20 = vor.u32 1.1754944e-38, %v3348_v14  ;;  %v3353_v57 = vmul.f32 %v10538_v40, %v10462_v55  ;;  %v10566_v38 = vmul.f32 %v3320_v18, %v10110_v34  ;;  %vm3328_vm15 = vweird.f32 %v10432_v48  ;;  %v13491_v34 = vld [vmem:[#allocation39_spill] sm:$0xff] }
 0x2e5   : > { %v10563_v5 = vpop.eup %6116  ;;  %v3361_v36 = vand.u32 2147483647, %v10462_v55  ;;  %6122 = vrcp.f32 %v10543_v37  ;;  %v3326_v11 = vadd.f32 %v10432_v48, %v3325_v15  ;;  %vm3343_vm0 = vweird.f32 %v10464_v19  ;;  %vm10598_vm2 = vmor %vm3327_vm11, %vm3328_vm15  ;;  %v13502_v15 = vld [vmem:[#allocation49_spill] sm:$0xff] }
 0x2e6   : > { %13488 = vst [vmem:[#allocation56_spill] sm:$0xff] %v10566_v38  ;;  %v10571_v31 = vpop.eup %6118  ;;  %vm10575_vm1 = vcmp.eq.f32.partialorder %v3346_v10, 8.507059e+37  ;;  %v10579_v44 = vor.u32 1.1754944e-38, %v3363_v22  ;;  %v4318_v4 = vpack.c.bf16 %v13492_v32, %v13491_v34  ;;  %v3378_v47 = vand.u32 2147483648, %v10492_v26  ;;  %vm10624_vm4 = vmor %vm3342_vm14, %vm3343_vm0 }
 0x2e7   : > { %v6121_v7 = vpop.eup %6120  ;;  %6124 = vpow2.f32 %v5400_v52  ;;  %v10585_v56 = vadd.f32 %v1448_v25, %v7405_v33  ;;  %v4319_v42 = vpack.c.bf16 %v13494_v29, %v13493_v39  ;;  %v3341_v63 = vadd.f32 %v10464_v19, %v3340_v1  ;;  %v13497_v52 = vld [vmem:[#allocation41_spill] sm:$0xff]  ;;  %v1450_v43 = vpop.f32.mrf.mxu0 }
 0x2e8   : > { %v3354_v58 = vsub.f32 1.0, %v3353_v57  ;;  %v3393_v14 = vand.u32 2147483648, %v10497_v24  ;;  %v10592_v18 = vadd.f32 %v1537_v50, %v7411_v60  ;;  %4741 = vmatmul.bf16.gmra.mxu1 %v4318_v4  ;;  %v3368_v10 = vmul.f32 %v10553_v35, %v10492_v26  ;;  %v13498_v50 = vld [vmem:[#allocation44_spill] sm:$0xff]  ;;  %v1626_v4 = vpop.f32.mrf.mxu2 }
 0x2e9   : > { %v3376_v22 = vand.u32 2147483647, %v10492_v26  ;;  %v3383_v25 = vmul.f32 %v10563_v5, %v10497_v24  ;;  %4830 = vmatmul.bf16.gmra.mxu2 %v4319_v42  ;;  %v4320_v1 = vpack.c.bf16 %v13498_v50, %v13497_v52  ;;  %v3330_v6 = vsel %vm10598_vm2, %v10432_v48, %v3326_v11  ;;  %v1715_v42 = vpop.f32.mrf.mxu3 }
 0x2ea   : > { %vm3357_vm3 = vweird.f32 %v10462_v55  ;;  %v3391_v57 = vand.u32 2147483647, %v10497_v24  ;;  %v3398_v34 = vmul.f32 %v10571_v31, %v10509_v54  ;;  %v10616_v32 = vadd.f32 1.0, %v6121_v7  ;;  %v13501_v7 = vld [vmem:[#allocation45_spill] sm:$0xff] }
 0x2eb   : > { %v10618_v39 = vpop.eup %6122  ;;  %vm3358_vm5 = vweird.f32 %v10538_v40  ;;  %v10629_v48 = vor.u32 1.1754944e-38, %v3378_v47  ;;  %v5401_v11 = vmul.f32 -1.442695, %v10585_v56  ;;  %4919 = vmatmul.bf16.gmra.mxu3 %v4320_v1  ;;  %v4321_v52 = vpack.c.bf16 %v13502_v15, %v13501_v7  ;;  %v1539_v7 = vpop.f32.mrf.mxu1 }
 0x2ec   : > { %v3345_v50 = vsel %vm10624_vm4, %v10464_v19, %v3341_v63  ;;  %v3355_v53 = vmul.f32 %v10538_v40, %v3354_v58  ;;  %v10638_v59 = vor.u32 1.1754944e-38, %v3393_v14  ;;  %v5402_v38 = vmul.f32 -1.442695, %v10592_v18  ;;  %vm10686_vm12 = vmor %vm3357_vm3, %vm3358_vm5 }
 0x2ed   : > { %v6125_v47 = vpop.eup %6124  ;;  %v3335_v41 = vsel %vm10555_vm13, %v3334_v17, %v3330_v6  ;;  %v3369_v8 = vsub.f32 1.0, %v3368_v10  ;;  %v3384_v1 = vsub.f32 1.0, %v3383_v25  ;;  %v10644_v16 = vadd.f32 %v1626_v4, %v7431_v45  ;;  %4657 = vmatmul.bf16.gmra.mxu0 %v4321_v52 }
 0x2ee   : > { %vm3372_vm6 = vweird.f32 %v10492_v26  ;;  %v3399_v19 = vsub.f32 1.0, %v3398_v34  ;;  %v3413_v63 = vmul.f32 %v10618_v39, %v10543_v37  ;;  %6126 = vrcp.f32 %v10616_v32 }
 0x2ef   : > { %v10651_v58 = vadd.f32 %v1715_v42, %v7442_v61  ;;  %v3350_v17 = vsel %vm10575_vm1, %v3349_v20, %v3345_v50  ;;  %vm10655_vm7 = vcmp.eq.f32.partialorder %v3361_v36, 8.507059e+37  ;;  %vm3387_vm8 = vweird.f32 %v10497_v24 }
 0x2f0   : > { %v3406_v14 = vand.u32 2147483647, %v10509_v54  ;;  %6128 = vpow2.f32 %v5401_v11  ;;  %v10662_v10 = vadd.f32 %v1450_v43, %v7405_v33  ;;  %v3356_v25 = vadd.f32 %v10538_v40, %v3355_v53  ;;  %v1628_v26 = vpop.f32.mrf.mxu2 }
 0x2f1   : > { %v10665_v6 = vadd.f32 1.0, %v6125_v47  ;;  %6130 = vpow2.f32 %v5402_v38  ;;  %v10668_v46 = vadd.f32 %v1539_v7, %v7411_v60  ;;  %v10671_v20 = vmul.f32 %v3335_v41, %v10204_v21  ;;  %v13513_v7 = vld [vmem:[#allocation46_spill] sm:$0xff]  ;;  %v13523_v21 = vld [vmem:[#allocation48_spill] sm:$0xff] }
 0x2f2   : > { %v3370_v36 = vmul.f32 %v10553_v35, %v3369_v8  ;;  %v3385_v34 = vmul.f32 %v10563_v5, %v3384_v1  ;;  %v5403_v4 = vmul.f32 -1.442695, %v10644_v16  ;;  %v3400_v43 = vmul.f32 %v10571_v31, %v3399_v19  ;;  %v13514_v19 = vld [vmem:[#allocation50_spill] sm:$0xff] }
 0x2f3   : > { %vm3402_vm9 = vweird.f32 %v10509_v54  ;;  %v3414_v29 = vsub.f32 1.0, %v3413_v63  ;;  %v5404_v11 = vmul.f32 -1.442695, %v10651_v58  ;;  %v10680_v38 = vmul.f32 %v3350_v17, %v10211_v28 }
 0x2f4   : > { %vm3373_vm10 = vweird.f32 %v10553_v35  ;;  %vm10691_vm11 = vcmp.eq.f32.partialorder %v3376_v22, 8.507059e+37  ;;  %vm3388_vm13 = vweird.f32 %v10563_v5  ;;  %vm10696_vm14 = vcmp.eq.f32.partialorder %v3391_v57, 8.507059e+37  ;;  %v10701_v42 = vpop.eup %6126 }
 0x2f5   : > { %v5405_v28 = vmul.f32 -1.442695, %v10662_v10  ;;  %v3360_v55 = vsel %vm10686_vm12, %v10538_v40, %v3356_v25  ;;  %vm10706_vm15 = vcmp.eq.f32.partialorder %v3406_v14, 8.507059e+37  ;;  %v3408_v22 = vand.u32 2147483648, %v10509_v54  ;;  %vm10724_vm1 = vmor %vm3372_vm6, %vm3373_vm10 }
 0x2f6   : > { %6132 = vrcp.f32 %v10665_v6  ;;  %v5406_v57 = vmul.f32 -1.442695, %v10668_v46  ;;  %v6129_v52 = vpop.eup %6128  ;;  %v3371_v50 = vadd.f32 %v10553_v35, %v3370_v36  ;;  %v3386_v53 = vadd.f32 %v10563_v5, %v3385_v34  ;;  %v13517_v36 = vld [vmem:[#allocation47_spill] sm:$0xff]  ;;  %vm10740_vm2 = vmor %vm3387_vm8, %vm3388_vm13 }
 0x2f7   : > { %vm3403_vm0 = vweird.f32 %v10571_v31  ;;  %6134 = vpow2.f32 %v5403_v4  ;;  %v6131_v47 = vpop.eup %6130  ;;  %v3401_v40 = vadd.f32 %v10571_v31, %v3400_v43  ;;  %v3415_v1 = vmul.f32 %v10618_v39, %v3414_v29  ;;  %v13518_v34 = vld [vmem:[#allocation51_spill] sm:$0xff] }
 0x2f8   : > { %6136 = vpow2.f32 %v5404_v11  ;;  %v4322_v63 = vpack.c.bf16 %v13514_v19, %v13513_v7  ;;  %v3421_v14 = vand.u32 2147483647, %v10543_v37  ;;  %v3428_v25 = vmul.f32 %v10701_v42, %v10616_v32  ;;  %vm10757_vm4 = vmor %vm3402_vm9, %vm3403_vm0  ;;  %v13527_v7 = vld [vmem:[#allocation53_spill] sm:$0xff] }
 0x2f9   : > { %6138 = vpow2.f32 %v5405_v28  ;;  %v4323_v4 = vpack.c.bf16 %v13518_v34, %v13517_v36  ;;  %v3365_v43 = vsel %vm10655_vm7, %v10579_v44, %v3360_v55  ;;  %vm3417_vm3 = vweird.f32 %v10543_v37  ;;  %v13524_v28 = vld [vmem:[#allocation52_spill] sm:$0xff]  ;;  %v13528_v19 = vld [vmem:[#allocation21_spill] sm:$0xff] }
 0x2fa   : > { %v10745_v29 = vadd.f32 1.0, %v6129_v52  ;;  %6140 = vpow2.f32 %v5406_v57  ;;  %4746 = vmatmul.bf16.gmra.mxu1 %v4322_v63  ;;  %v3375_v11 = vsel %vm10724_vm1, %v10553_v35, %v3371_v50  ;;  %v3390_v44 = vsel %vm10740_vm2, %v10563_v5, %v3386_v53 }
 0x2fb   : > { %v10761_v30 = vadd.f32 1.0, %v6131_v47  ;;  %4835 = vmatmul.bf16.gmra.mxu2 %v4323_v4  ;;  %v4324_v55 = vpack.c.bf16 %v13524_v28, %v13523_v21  ;;  %v3405_v35 = vsel %vm10757_vm4, %v10571_v31, %v3401_v40  ;;  %v3416_v5 = vadd.f32 %v10618_v39, %v3415_v1  ;;  %v1717_v28 = vpop.f32.mrf.mxu3 }
 0x2fc   : > { %v10765_v57 = vpop.eup %6132  ;;  %vm3418_vm5 = vweird.f32 %v10618_v39  ;;  %v3423_v54 = vand.u32 2147483648, %v10543_v37  ;;  %v3409_v50 = vor.u32 1.1754944e-38, %v3408_v22  ;;  %vm10773_vm6 = vcmp.eq.f32.partialorder %v3421_v14, 8.507059e+37 }
 0x2fd   : > { %v6135_v52 = vpop.eup %6134  ;;  %v3429_v47 = vsub.f32 1.0, %v3428_v25  ;;  %4924 = vmatmul.bf16.gmra.mxu3 %v4324_v55  ;;  %v4325_v63 = vpack.c.bf16 %v13528_v19, %v13527_v7  ;;  %v10780_v31 = vmul.f32 %v3365_v43, %v10288_v13  ;;  %v3380_v40 = vsel %vm10691_vm11, %v10629_v48, %v3375_v11  ;;  %vm10795_vm7 = vmor %vm3417_vm3, %vm3418_vm5  ;;  %v1453_v19 = vpop.f32.mrf.mxu0 }
 0x2fe   : > { %v6137_v17 = vpop.eup %6136  ;;  %v3395_v22 = vsel %vm10696_vm14, %v10638_v59, %v3390_v44  ;;  %6142 = vrcp.f32 %v10745_v29  ;;  %v3410_v14 = vsel %vm10706_vm15, %v3409_v50, %v3405_v35  ;;  %v3436_v48 = vand.u32 2147483647, %v10616_v32  ;;  %v1542_v13 = vpop.f32.mrf.mxu1 }
 0x2ff   : > { %13529 = vst [vmem:[#allocation39_spill] sm:$0xff] %v10780_v31  ;;  %v6139_v1 = vpop.eup %6138  ;;  %v3443_v8 = vmul.f32 %v10765_v57, %v10665_v6  ;;  %6144 = vrcp.f32 %v10761_v30  ;;  %4662 = vmatmul.bf16.gmra.mxu0 %v4325_v63  ;;  %v3420_v41 = vsel %vm10795_vm7, %v10618_v39, %v3416_v5  ;;  %v3424_v15 = vor.u32 1.1754944e-38, %v3423_v54 }
 0x300   : > { %v6141_v59 = vpop.eup %6140  ;;  %v3438_v37 = vand.u32 2147483648, %v10616_v32  ;;  %v10807_v25 = vadd.f32 1.0, %v6135_v52  ;;  %v10810_v36 = vmul.f32 %v3380_v40, %v10308_v12  ;;  %v10813_v34 = vmul.f32 %v3395_v22, %v10314_v49 }
 0x301   : > { %v3430_v4 = vmul.f32 %v10701_v42, %v3429_v47  ;;  %v10816_v43 = vadd.f32 1.0, %v6137_v17  ;;  %v10819_v11 = vmul.f32 %v3410_v14, %v10343_v62  ;;  %vm3432_vm8 = vweird.f32 %v10616_v32 }
 0x302   : > { %13532 = vst [vmem:[#allocation42_spill] sm:$0xff] %v10810_v36  ;;  %v3453_v39 = vand.u32 2147483648, %v10665_v6  ;;  %v10823_v44 = vadd.f32 1.0, %v6139_v1  ;;  %v3425_v12 = vsel %vm10773_vm6, %v3424_v15, %v3420_v41  ;;  %vm10827_vm9 = vcmp.eq.f32.partialorder %v3436_v48, 8.507059e+37  ;;  %v13539_v48 = vld [vmem:[#allocation54_spill] sm:$0xff] }
 0x303   : > { %13533 = vst [vmem:[#allocation40_spill] sm:$0xff] %v10813_v34  ;;  %v3444_v24 = vsub.f32 1.0, %v3443_v8  ;;  %v10831_v21 = vadd.f32 1.0, %v6141_v59  ;;  %v3439_v62 = vor.u32 1.1754944e-38, %v3438_v37  ;;  %v3451_v35 = vand.u32 2147483647, %v10665_v6 }
 0x304   : > { %v10833_v55 = vpop.eup %6142  ;;  %v3468_v5 = vand.u32 2147483648, %v10745_v29  ;;  %6146 = vrcp.f32 %v10807_v25  ;;  %v3431_v52 = vadd.f32 %v10701_v42, %v3430_v4  ;;  %vm3433_vm12 = vweird.f32 %v10701_v42  ;;  %v13540_v8 = vld [vmem:[#allocation17_spill] sm:$0xff]  ;;  %v13543_v4 = vld [vmem:[#allocation20_spill] sm:$0xff]  ;;  %v13569_v36 = vld [vmem:[#allocation26_spill] sm:$0xff] }
 0x305   : > { %v10838_v54 = vpop.eup %6144  ;;  %vm3447_vm10 = vweird.f32 %v10665_v6  ;;  %6148 = vrcp.f32 %v10816_v43  ;;  %v10845_v50 = vadd.f32 %v1628_v26, %v7431_v45  ;;  %v10848_v53 = vmul.f32 %v3425_v12, %v10399_v27  ;;  %vm10861_vm11 = vmor %vm3432_vm8, %vm3433_vm12  ;;  %v13544_v26 = vld [vmem:[#allocation22_spill] sm:$0xff] }
 0x306   : > { %v10850_v47 = vor.u32 1.1754944e-38, %v3453_v39  ;;  %v3483_v7 = vand.u32 2147483648, %v10761_v30  ;;  %6150 = vrcp.f32 %v10823_v44  ;;  %v3445_v63 = vmul.f32 %v10765_v57, %v3444_v24 }
 0x307   : > { %13536 = vst [vmem:[#allocation43_spill] sm:$0xff] %v10848_v53  ;;  %v3458_v17 = vmul.f32 %v10833_v55, %v10745_v29  ;;  %6152 = vrcp.f32 %v10831_v21  ;;  %v10865_v22 = vor.u32 1.1754944e-38, %v3468_v5  ;;  %v3473_v1 = vmul.f32 %v10838_v54, %v10761_v30 }
 0x308   : > { %v4326_v59 = vpack.c.bf16 %v13540_v8, %v13539_v48  ;;  %v3435_v41 = vsel %vm10861_vm11, %v10701_v42, %v3431_v52  ;;  %vm10875_vm13 = vcmp.eq.f32.partialorder %v3451_v35, 8.507059e+37  ;;  %v5407_v15 = vmul.f32 -1.442695, %v10845_v50  ;;  %v1631_v48 = vpop.f32.mrf.mxu2  ;;  %v13545_v8 = vld [vmem:[#allocation16_spill] sm:$0xff] }
 0x309   : > { %v10881_v37 = vadd.f32 %v1717_v28, %v7442_v61  ;;  %v4327_v39 = vpack.c.bf16 %v13544_v26, %v13543_v4  ;;  %vm3448_vm14 = vweird.f32 %v10765_v57  ;;  %v10888_v24 = vor.u32 1.1754944e-38, %v3483_v7  ;;  %v13546_v4 = vld [vmem:[#allocation18_spill] sm:$0xff] }
 0x30a   : > { %v10885_v12 = vpop.eup %6146  ;;  %v10892_v35 = vadd.f32 %v1453_v19, %v7405_v33  ;;  %4751 = vmatmul.bf16.gmra.mxu1 %v4326_v59  ;;  %v3446_v28 = vadd.f32 %v10765_v57, %v3445_v63  ;;  %v3459_v52 = vsub.f32 1.0, %v3458_v17  ;;  %v10898_v27 = vadd.f32 %v1542_v13, %v7411_v60  ;;  %vm10920_vm1 = vmor %vm3447_vm10, %vm3448_vm14 }
 0x30b   : > { %v10894_v5 = vpop.eup %6148  ;;  %4840 = vmatmul.bf16.gmra.mxu2 %v4327_v39  ;;  %v4328_v7 = vpack.c.bf16 %v13546_v4, %v13545_v8  ;;  %v3440_v19 = vsel %vm10827_vm9, %v3439_v62, %v3435_v41  ;;  %vm3463_vm15 = vweird.f32 %v10833_v55  ;;  %v3474_v59 = vsub.f32 1.0, %v3473_v1  ;;  %v1720_v39 = vpop.f32.mrf.mxu3  ;;  %v13547_v8 = vld [vmem:[#allocation23_spill] sm:$0xff] }
 0x30c   : > { %v10902_v26 = vpop.eup %6150  ;;  %v3498_v42 = vand.u32 2147483648, %v10807_v25  ;;  %vm3462_vm0 = vweird.f32 %v10745_v29  ;;  %v3488_v17 = vmul.f32 %v10885_v12, %v10807_v25  ;;  %6154 = vpow2.f32 %v5407_v15 }
 0x30d   : > { %v10908_v63 = vpop.eup %6152  ;;  %v5408_v13 = vmul.f32 -1.442695, %v10881_v37  ;;  %4929 = vmatmul.bf16.gmra.mxu3 %v4328_v7  ;;  %v4329_v49 = vpack.c.bf16 %v9976_v23, %v13547_v8  ;;  %vm3478_vm2 = vweird.f32 %v10838_v54  ;;  %v3503_v1 = vmul.f32 %v10894_v5, %v10816_v43  ;;  %vm10987_vm9 = vmor %vm3462_vm0, %vm3463_vm15 }
 0x30e   : > { %v5409_v41 = vmul.f32 -1.442695, %v10892_v35  ;;  %v10929_v15 = vadd.f32 %v1631_v48, %v7431_v45  ;;  %v3450_v23 = vsel %vm10920_vm1, %v10765_v57, %v3446_v28  ;;  %v3460_v6 = vmul.f32 %v10833_v55, %v3459_v52  ;;  %v1455_v28 = vpop.f32.mrf.mxu0 }
 0x30f   : > { %vm3477_vm3 = vweird.f32 %v10761_v30  ;;  %v3518_v4 = vmul.f32 %v10902_v26, %v10823_v44  ;;  %v5410_v7 = vmul.f32 -1.442695, %v10898_v27  ;;  %4667 = vmatmul.bf16.gmra.mxu0 %v4329_v49  ;;  %v10940_v8 = vmul.f32 %v3440_v19, %v10484_v2 }
 0x310   : > { %v10942_v14 = vor.u32 1.1754944e-38, %v3498_v42  ;;  %v3533_v48 = vmul.f32 %v10908_v63, %v10831_v21  ;;  %v10947_v57 = vadd.f32 %v1720_v39, %v7442_v61  ;;  %v3475_v52 = vmul.f32 %v10838_v54, %v3474_v59  ;;  %vm11005_vm10 = vmor %vm3477_vm3, %vm3478_vm2 }
 0x311   : > { %13550 = vst [vmem:[#allocation41_spill] sm:$0xff] %v10940_v8  ;;  %v3489_v62 = vsub.f32 1.0, %v3488_v17  ;;  %v3513_v40 = vand.u32 2147483648, %v10816_v43  ;;  %6156 = vpow2.f32 %v5408_v13  ;;  %v3455_v2 = vsel %vm10875_vm13, %v10850_v47, %v3450_v23 }
 0x312   : > { %v3504_v19 = vsub.f32 1.0, %v3503_v1  ;;  %6158 = vpow2.f32 %v5409_v41  ;;  %v5411_v42 = vmul.f32 -1.442695, %v10929_v15  ;;  %v6155_v49 = vpop.eup %6154  ;;  %v3461_v34 = vadd.f32 %v10833_v55, %v3460_v6 }
 0x313   : > { %v13551_v39 = vand.u32 2147483647, %v10745_v29  ;;  %vm3492_vm5 = vweird.f32 %v10807_v25  ;;  %v3519_v59 = vsub.f32 1.0, %v3518_v4  ;;  %6160 = vpow2.f32 %v5410_v7 }
 0x314   : > { %v10964_v32 = vadd.f32 %v1455_v28, %v7405_v33  ;;  %v13554_v47 = vand.u32 2147483647, %v10761_v30  ;;  %vm3493_vm7 = vweird.f32 %v10885_v12  ;;  %vm3507_vm8 = vweird.f32 %v10816_v43  ;;  %v13567_v30 = vld [vmem:[#allocation29_spill] sm:$0xff] }
 0x315   : > { %vm10958_vm4 = vcmp.eq.f32.partialorder %v13551_v39, 8.507059e+37  ;;  %v3511_v13 = vand.u32 2147483647, %v10816_v43  ;;  %v3534_v1 = vsub.f32 1.0, %v3533_v48  ;;  %v5412_v41 = vmul.f32 -1.442695, %v10947_v57  ;;  %vm11047_vm0 = vmor %vm3492_vm5, %vm3493_vm7 }
 0x316   : > { %vm10968_vm6 = vcmp.eq.f32.partialorder %v13554_v47, 8.507059e+37  ;;  %v10977_v23 = vmul.f32 %v3455_v2, %v10532_v0  ;;  %v3476_v6 = vadd.f32 %v10838_v54, %v3475_v52  ;;  %v3490_v4 = vmul.f32 %v10885_v12, %v3489_v62 }
 0x317   : > { %v10981_v7 = vor.u32 1.1754944e-38, %v3513_v40  ;;  %v3505_v48 = vmul.f32 %v10894_v5, %v3504_v19  ;;  %vm3522_vm12 = vweird.f32 %v10823_v44  ;;  %v10993_v0 = vadd.f32 1.0, %v6155_v49  ;;  %v6157_v52 = vpop.eup %6156 }
 0x318   : > { %13557 = vst [vmem:[#allocation44_spill] sm:$0xff] %v10977_v23  ;;  %6162 = vpow2.f32 %v5411_v42  ;;  %v3465_v40 = vsel %vm10987_vm9, %v10833_v55, %v3461_v34  ;;  %v3520_v62 = vmul.f32 %v10902_v26, %v3519_v59  ;;  %v3526_v29 = vand.u32 2147483647, %v10823_v44  ;;  %v6159_v39 = vpop.eup %6158 }
 0x319   : > { %v5413_v2 = vmul.f32 -1.442695, %v10964_v32  ;;  %v13562_v42 = vand.u32 2147483647, %v10807_v25  ;;  %vm11015_vm13 = vcmp.eq.f32.partialorder %v3511_v13, 8.507059e+37  ;;  %v3528_v55 = vand.u32 2147483648, %v10823_v44  ;;  %v6161_v28 = vpop.eup %6160 }
 0x31a   : > { %v3535_v59 = vmul.f32 %v10908_v63, %v3534_v1  ;;  %6164 = vpow2.f32 %v5412_v41  ;;  %v4330_v47 = vpack.c.bf16 %v13567_v30, %v9856_v9  ;;  %v3491_v23 = vadd.f32 %v10885_v12, %v3490_v4  ;;  %v13568_v13 = vld [vmem:[#allocation28_spill] sm:$0xff] }
 0x31b   : > { %vm11011_vm11 = vcmp.eq.f32.partialorder %v13562_v42, 8.507059e+37  ;;  %v3480_v42 = vsel %vm11005_vm10, %v10838_v54, %v3476_v6  ;;  %vm3508_vm14 = vweird.f32 %v10894_v5  ;;  %v4331_v53 = vpack.c.bf16 %v13569_v36, %v13568_v13  ;;  %v13570_v54 = vld [vmem:[#allocation25_spill] sm:$0xff]  ;;  %v13571_v6 = vld [vmem:[#allocation30_spill] sm:$0xff] }
 0x31c   : > { %v3506_v31 = vadd.f32 %v10894_v5, %v3505_v48  ;;  %vm3523_vm15 = vweird.f32 %v10902_v26  ;;  %6166 = vrcp.f32 %v10993_v0  ;;  %v11033_v1 = vadd.f32 1.0, %v6157_v52  ;;  %4756 = vmatmul.bf16.gmra.mxu1 %v4330_v47  ;;  %vm11062_vm2 = vmor %vm3507_vm8, %vm3508_vm14 }
 0x31d   : > { %v3521_v9 = vadd.f32 %v10902_v26, %v3520_v62  ;;  %v11036_v41 = vadd.f32 1.0, %v6159_v39  ;;  %6168 = vpow2.f32 %v5413_v2  ;;  %4845 = vmatmul.bf16.gmra.mxu2 %v4331_v53  ;;  %v4332_v4 = vpack.c.bf16 %v13571_v6, %v13570_v54  ;;  %v1544_v62 = vpop.f32.mrf.mxu1  ;;  %v13577_v2 = vld [vmem:[#allocation34_spill] sm:$0xff]  ;;  %v1722_v6 = vpop.f32.mrf.mxu3 }
 0x31e   : > { %v6163_v19 = vpop.eup %6162  ;;  %v3470_v36 = vsel %vm10958_vm4, %v10865_v22, %v3465_v40  ;;  %v3536_v52 = vadd.f32 %v10908_v63, %v3535_v59  ;;  %vm3538_vm1 = vweird.f32 %v10908_v63  ;;  %v11053_v53 = vadd.f32 1.0, %v6161_v28  ;;  %v13576_v40 = vld [vmem:[#allocation27_spill] sm:$0xff]  ;;  %vm11080_vm4 = vmor %vm3522_vm12, %vm3523_vm15 }
 0x31f   : > { %v3485_v8 = vsel %vm10968_vm6, %v10888_v24, %v3480_v42  ;;  %vm3537_vm3 = vweird.f32 %v10831_v21  ;;  %v3543_v22 = vand.u32 2147483648, %v10831_v21  ;;  %4934 = vmatmul.bf16.gmra.mxu3 %v4332_v4  ;;  %v4333_v39 = vpack.c.bf16 %v13577_v2, %v13576_v40 }
 0x320   : > { %v6165_v59 = vpop.eup %6164  ;;  %v3495_v24 = vsel %vm11047_vm0, %v10885_v12, %v3491_v23  ;;  %v3510_v43 = vsel %vm11062_vm2, %v10894_v5, %v3506_v31  ;;  %v3541_v30 = vand.u32 2147483647, %v10831_v21  ;;  %6170 = vrcp.f32 %v11033_v1  ;;  %vm11091_vm5 = vmor %vm3537_vm3, %vm3538_vm1 }
 0x321   : > { %v3525_v12 = vsel %vm11080_vm4, %v10902_v26, %v3521_v9  ;;  %6172 = vrcp.f32 %v11036_v41  ;;  %v11096_v44 = vadd.f32 1.0, %v6163_v19  ;;  %v11099_v5 = vadd.f32 %v1544_v62, %v7411_v60  ;;  %4672 = vmatmul.bf16.gmra.mxu0 %v4333_v39  ;;  %v1458_v39 = vpop.f32.mrf.mxu0 }
 0x322   : > { %v11101_v21 = vpop.eup %6166  ;;  %vm3527_vm6 = vcmp.eq.f32.partialorder %v3526_v29, 8.507059e+37  ;;  %v3529_v23 = vor.u32 1.1754944e-38, %v3528_v55  ;;  %v3540_v26 = vsel %vm11091_vm5, %v10908_v63, %v3536_v52  ;;  %6174 = vrcp.f32 %v11053_v53  ;;  %v1633_v29 = vpop.f32.mrf.mxu2 }
 0x323   : > { %v6169_v47 = vpop.eup %6168  ;;  %v3500_v28 = vsel %vm11011_vm11, %v10942_v14, %v3495_v24  ;;  %v3515_v42 = vsel %vm11015_vm13, %v10981_v7, %v3510_v43  ;;  %v3544_v13 = vor.u32 1.1754944e-38, %v3543_v22  ;;  %v11113_v9 = vadd.f32 1.0, %v6165_v59  ;;  %v13586_v24 = vld [vmem:[#allocation31_spill] sm:$0xff]  ;;  %v13587_v43 = vld [vmem:[#allocation36_spill] sm:$0xff] }
 0x324   : > { %v11116_v55 = vmul.f32 %v3470_v36, %v10585_v56  ;;  %v3530_v54 = vsel %vm3527_vm6, %v3529_v23, %v3525_v12  ;;  %vm3542_vm7 = vcmp.eq.f32.partialorder %v3541_v30, 8.507059e+37  ;;  %v3558_v63 = vand.u32 2147483648, %v10993_v0 }
 0x325   : > { %v3545_v4 = vsel %vm3542_vm7, %v3544_v13, %v3540_v26  ;;  %v3548_v14 = vmul.f32 %v11101_v21, %v10993_v0  ;;  %6176 = vrcp.f32 %v11096_v44  ;;  %v5414_v7 = vmul.f32 -1.442695, %v11099_v5  ;;  %v13588_v26 = vld [vmem:[#allocation32_spill] sm:$0xff] }
 0x326   : > { %v11123_v49 = vpop.eup %6170  ;;  %v11126_v34 = vmul.f32 %v3485_v8, %v10592_v18  ;;  %v11129_v56 = vmul.f32 %v3500_v28, %v10644_v16  ;;  %v11132_v19 = vmul.f32 %v3515_v42, %v10651_v58  ;;  %v11134_v36 = vadd.f32 1.0, %v6169_v47  ;;  %v13589_v47 = vld [vmem:[#allocation35_spill] sm:$0xff]  ;;  %v13596_v8 = vld [vmem:[#allocation24_spill] sm:$0xff] }
 0x327   : > { %v11136_v48 = vpop.eup %6172  ;;  %v11139_v52 = vmul.f32 %v3530_v54, %v10662_v10  ;;  %v3556_v62 = vand.u32 2147483647, %v10993_v0  ;;  %v3573_v25 = vand.u32 2147483648, %v11033_v1  ;;  %6178 = vrcp.f32 %v11113_v9 }
 0x328   : > { %13582 = vst [vmem:[#allocation45_spill] sm:$0xff] %v11126_v34  ;;  %v11144_v18 = vpop.eup %6174  ;;  %v11147_v16 = vmul.f32 %v3545_v4, %v10668_v46  ;;  %v11149_v58 = vor.u32 1.1754944e-38, %v3558_v63  ;;  %v3588_v22 = vand.u32 2147483648, %v11036_v41  ;;  %v3549_v40 = vsub.f32 1.0, %v3548_v14  ;;  %v1547_v63 = vpop.f32.mrf.mxu1 }
 0x329   : > { %13583 = vst [vmem:[#allocation49_spill] sm:$0xff] %v11129_v56  ;;  %v3603_v2 = vand.u32 2147483648, %v11053_v53  ;;  %6180 = vpow2.f32 %v5414_v7  ;;  %v3563_v59 = vmul.f32 %v11123_v49, %v11033_v1  ;;  %v3578_v46 = vmul.f32 %v11136_v48, %v11036_v41 }
 0x32a   : > { %13584 = vst [vmem:[#allocation46_spill] sm:$0xff] %v11132_v19  ;;  %6182 = vrcp.f32 %v11134_v36  ;;  %v4334_v17 = vpack.c.bf16 %v13587_v43, %v13586_v24  ;;  %v11164_v12 = vor.u32 1.1754944e-38, %v3573_v25  ;;  %v3593_v31 = vmul.f32 %v11144_v18, %v11053_v53  ;;  %v1636_v25 = vpop.f32.mrf.mxu2 }
 0x32b   : > { %13585 = vst [vmem:[#allocation50_spill] sm:$0xff] %v11147_v16  ;;  %v11162_v30 = vpop.eup %6176  ;;  %v11169_v23 = vadd.f32 %v1633_v29, %v7431_v45  ;;  %v4335_v28 = vpack.c.bf16 %v13589_v47, %v13588_v26  ;;  %vm3552_vm8 = vweird.f32 %v10993_v0  ;;  %vm3553_vm9 = vweird.f32 %v11101_v21  ;;  %v1725_v47 = vpop.f32.mrf.mxu3 }
 0x32c   : > { %v11175_v42 = vor.u32 1.1754944e-38, %v3588_v22  ;;  %v3601_v13 = vand.u32 2147483647, %v11053_v53  ;;  %v11179_v54 = vadd.f32 %v1722_v6, %v7442_v61  ;;  %4761 = vmatmul.bf16.gmra.mxu1 %v4334_v17  ;;  %v3550_v29 = vmul.f32 %v11101_v21, %v3549_v40  ;;  %v13592_v22 = vld [vmem:[#allocation33_spill] sm:$0xff]  ;;  %vm11244_vm1 = vmor %vm3552_vm8, %vm3553_vm9 }
 0x32d   : > { %v11181_v4 = vpop.eup %6178  ;;  %v11184_v14 = vor.u32 1.1754944e-38, %v3603_v2  ;;  %v11187_v7 = vadd.f32 %v1458_v39, %v7405_v33  ;;  %4850 = vmatmul.bf16.gmra.mxu2 %v4335_v28  ;;  %v4336_v24 = vpack.c.bf16 %v10435_v51, %v13592_v22  ;;  %v3564_v43 = vsub.f32 1.0, %v3563_v59 }
 0x32e   : > { %13590 = vst [vmem:[#allocation47_spill] sm:$0xff] %v11179_v54  ;;  %v3579_v26 = vsub.f32 1.0, %v3578_v46  ;;  %v3608_v6 = vmul.f32 %v11162_v30, %v11096_v44  ;;  %v3616_v17 = vand.u32 2147483647, %v11096_v44  ;;  %vm3567_vm12 = vweird.f32 %v11033_v1 }
 0x32f   : > { %13591 = vst [vmem:[#allocation51_spill] sm:$0xff] %v11187_v7  ;;  %v6181_v10 = vpop.eup %6180  ;;  %vm3568_vm10 = vweird.f32 %v11123_v49  ;;  %v3594_v40 = vsub.f32 1.0, %v3593_v31  ;;  %v5415_v2 = vmul.f32 -1.442695, %v11169_v23  ;;  %v11198_v39 = vadd.f32 %v1547_v63, %v7411_v60  ;;  %4939 = vmatmul.bf16.gmra.mxu3 %v4336_v24 }
 0x330   : > { %v11200_v51 = vpop.eup %6182  ;;  %vm11202_vm11 = vcmp.eq.f32.partialorder %v3556_v62, 8.507059e+37  ;;  %vm3582_vm13 = vweird.f32 %v11036_v41  ;;  %v3618_v46 = vand.u32 2147483648, %v11096_v44  ;;  %v3623_v28 = vmul.f32 %v11181_v4, %v11113_v9  ;;  %vm11273_vm5 = vmor %vm3567_vm12, %vm3568_vm10 }
 0x331   : > { %v5416_v31 = vmul.f32 -1.442695, %v11179_v54  ;;  %v11212_v22 = vadd.f32 %v1636_v25, %v7431_v45  ;;  %v3551_v63 = vadd.f32 %v11101_v21, %v3550_v29  ;;  %vm3597_vm14 = vweird.f32 %v11053_v53 }
 0x332   : > { %v5417_v62 = vmul.f32 -1.442695, %v11187_v7  ;;  %v11218_v24 = vadd.f32 %v1725_v47, %v7442_v61  ;;  %v4337_v19 = vpack.c.bf16 %v13596_v8, %v10450_v3  ;;  %v3565_v56 = vmul.f32 %v11123_v49, %v3564_v43  ;;  %v11230_v47 = vpop.f32.mrf.mxu0 }
 0x333   : > { %13595 = vst [vmem:[#allocation48_spill] sm:$0xff] %v11212_v22  ;;  %v3580_v16 = vmul.f32 %v11136_v48, %v3579_v26  ;;  %v3609_v34 = vsub.f32 1.0, %v3608_v6  ;;  %v11224_v54 = vadd.f32 1.0, %v6181_v10  ;;  %v3595_v25 = vmul.f32 %v11144_v18, %v3594_v40 }
 0x334   : > { %v3638_v29 = vmul.f32 %v11200_v51, %v11134_v36  ;;  %6184 = vpow2.f32 %v5415_v2  ;;  %v5418_v7 = vmul.f32 -1.442695, %v11198_v39  ;;  %4677 = vmatmul.bf16.gmra.mxu0 %v4337_v19  ;;  %v13597_v3 = vand.u32 2147483647, %v11033_v1 }
 0x335   : > { %vm3583_vm0 = vweird.f32 %v11136_v48  ;;  %v3624_v10 = vsub.f32 1.0, %v3623_v28  ;;  %6186 = vpow2.f32 %v5416_v31  ;;  %v5419_v43 = vmul.f32 -1.442695, %v11212_v22 }
 0x336   : > { %vm11234_vm15 = vcmp.eq.f32.partialorder %v13597_v3, 8.507059e+37  ;;  %v13602_v19 = vand.u32 2147483647, %v11036_v41  ;;  %vm3598_vm3 = vweird.f32 %v11144_v18  ;;  %vm11255_vm4 = vcmp.eq.f32.partialorder %v3601_v13, 8.507059e+37  ;;  %vm11286_vm7 = vmor %vm3582_vm13, %vm3583_vm0 }
 0x337   : > { %v3631_v2 = vand.u32 2147483647, %v11113_v9  ;;  %6188 = vpow2.f32 %v5417_v62  ;;  %v5420_v0 = vmul.f32 -1.442695, %v11218_v24  ;;  %v3555_v28 = vsel %vm11244_vm1, %v11101_v21, %v3551_v63  ;;  %vm11303_vm12 = vmor %vm3597_vm14, %vm3598_vm3 }
 0x338   : > { %vm11250_vm2 = vcmp.eq.f32.partialorder %v13602_v19, 8.507059e+37  ;;  %v3566_v31 = vadd.f32 %v11123_v49, %v3565_v56  ;;  %v3610_v3 = vmul.f32 %v11162_v30, %v3609_v34  ;;  %6190 = vrcp.f32 %v11224_v54 }
 0x339   : > { %v3581_v13 = vadd.f32 %v11136_v48, %v3580_v16  ;;  %v3596_v19 = vadd.f32 %v11144_v18, %v3595_v25  ;;  %v3639_v22 = vsub.f32 1.0, %v3638_v29  ;;  %6192 = vpow2.f32 %v5418_v7  ;;  %v13617_v25 = vld [vmem:[#allocation37_spill] sm:$0xff]  ;;  %v13618_v29 = vld [vmem:[#allocation55_spill] sm:$0xff] }
 0x33a   : > { %vm3612_vm6 = vweird.f32 %v11096_v44  ;;  %v3619_v21 = vor.u32 1.1754944e-38, %v3618_v46  ;;  %v3625_v34 = vmul.f32 %v11181_v4, %v3624_v10  ;;  %6194 = vpow2.f32 %v5419_v43  ;;  %v6185_v56 = vpop.eup %6184  ;;  %v11372_v40 = vpop.f32.mrf.mxu0 }
 0x33b   : > { %v3560_v16 = vsel %vm11202_vm11, %v11149_v58, %v3555_v28  ;;  %vm11290_vm8 = vcmp.eq.f32.partialorder %v3616_v17, 8.507059e+37  ;;  %vm3627_vm9 = vweird.f32 %v11113_v9  ;;  %v3633_v46 = vand.u32 2147483648, %v11113_v9  ;;  %v6187_v63 = vpop.eup %6186  ;;  %v13620_v28 = vld [vmem:[#allocation56_spill] sm:$0xff] }
 0x33c   : > { %6196 = vpow2.f32 %v5420_v0  ;;  %v3570_v58 = vsel %vm11273_vm5, %v11123_v49, %v3566_v31  ;;  %v3611_v17 = vadd.f32 %v11162_v30, %v3610_v3  ;;  %vm3613_vm10 = vweird.f32 %v11162_v30  ;;  %v13619_v0 = vld [vmem:[#allocation38_spill] sm:$0xff] }
 0x33d   : > { %vm11309_vm11 = vcmp.eq.f32.partialorder %v3631_v2, 8.507059e+37  ;;  %v4338_v10 = vpack.c.bf16 %v13618_v29, %v13617_v25  ;;  %v6189_v49 = vpop.eup %6188  ;;  %v3585_v53 = vsel %vm11286_vm7, %v11136_v48, %v3581_v13  ;;  %v3600_v43 = vsel %vm11303_vm12, %v11144_v18, %v3596_v19  ;;  %v1549_v48 = vpop.f32.mrf.mxu1  ;;  %vm11340_vm14 = vmor %vm3612_vm6, %vm3613_vm10 }
 0x33e   : > { %v3640_v26 = vmul.f32 %v11200_v51, %v3639_v22  ;;  %v4339_v2 = vpack.c.bf16 %v13620_v28, %v13619_v0  ;;  %v11324_v31 = vpop.eup %6190  ;;  %v11327_v3 = vmul.f32 %v3560_v16, %v10845_v50  ;;  %v3626_v62 = vadd.f32 %v11181_v4, %v3625_v34  ;;  %v1638_v34 = vpop.f32.mrf.mxu2 }
 0x33f   : > { %vm3628_vm13 = vweird.f32 %v11181_v4  ;;  %v11331_v1 = vadd.f32 1.0, %v6185_v56  ;;  %4766 = vmatmul.bf16.gmra.mxu1 %v4338_v10  ;;  %v6193_v13 = vpop.eup %6192  ;;  %v3575_v18 = vsel %vm11234_vm15, %v11164_v12, %v3570_v58  ;;  %v3634_v22 = vor.u32 1.1754944e-38, %v3633_v46  ;;  %v13624_v56 = vld [vmem:[#allocation19_spill] sm:$0xff] }
 0x340   : > { %13621 = vst [vmem:[#allocation52_spill] sm:$0xff] %v11327_v3  ;;  %v11344_v19 = vadd.f32 1.0, %v6187_v63  ;;  %4855 = vmatmul.bf16.gmra.mxu2 %v4339_v2  ;;  %v4340_v16 = vpack.c.bf16 %v10671_v20, %v13624_v56  ;;  %v6195_v41 = vpop.eup %6194  ;;  %v3590_v12 = vsel %vm11250_vm2, %v11175_v42, %v3585_v53  ;;  %v3605_v44 = vsel %vm11255_vm4, %v11184_v14, %v3600_v43  ;;  %vm11362_vm15 = vmor %vm3627_vm9, %vm3628_vm13 }
 0x341   : > { %v3615_v8 = vsel %vm11340_vm14, %v11162_v30, %v3611_v17  ;;  %v3648_v46 = vand.u32 2147483648, %v11134_v36  ;;  %v3641_v42 = vadd.f32 %v11200_v51, %v3640_v26  ;;  %vm3643_vm0 = vweird.f32 %v11200_v51  ;;  %v1727_v30 = vpop.f32.mrf.mxu3 }
 0x342   : > { %v6197_v63 = vpop.eup %6196  ;;  %v3653_v14 = vmul.f32 %v11324_v31, %v11224_v54  ;;  %v11370_v6 = vadd.f32 1.0, %v6189_v49  ;;  %4944 = vmatmul.bf16.gmra.mxu3 %v4340_v16  ;;  %v3630_v9 = vsel %vm11362_vm15, %v11181_v4, %v3626_v62  ;;  %6198 = vrcp.f32 %v11331_v1 }
 0x343   : > { %v11378_v58 = vadd.f32 1.0, %v6193_v13  ;;  %v11382_v17 = vadd.f32 %v11230_v47, %v7405_v33  ;;  %vm3642_vm1 = vweird.f32 %v11134_v36  ;;  %v3646_v25 = vand.u32 2147483647, %v11134_v36 }
 0x344   : > { %6200 = vrcp.f32 %v11344_v19  ;;  %v11387_v29 = vadd.f32 1.0, %v6195_v41  ;;  %v11390_v10 = vmul.f32 %v3575_v18, %v10881_v37  ;;  %v11393_v4 = vmul.f32 %v3590_v12, %v10892_v35  ;;  %vm11399_vm2 = vmor %vm3642_vm1, %vm3643_vm0 }
 0x345   : > { %v3620_v49 = vsel %vm11290_vm8, %v3619_v21, %v3615_v8  ;;  %v11403_v36 = vadd.f32 1.0, %v6197_v63  ;;  %v3635_v53 = vsel %vm11309_vm11, %v3634_v22, %v3630_v9  ;;  %v3645_v37 = vsel %vm11399_vm2, %v11200_v51, %v3641_v42 }
 0x346   : > { %13627 = vst [vmem:[#allocation53_spill] sm:$0xff] %v11390_v10  ;;  %v3654_v35 = vsub.f32 1.0, %v3653_v14  ;;  %6202 = vrcp.f32 %v11370_v6  ;;  %v11412_v21 = vmul.f32 %v3605_v44, %v10898_v27  ;;  %v3649_v7 = vor.u32 1.1754944e-38, %v3648_v46  ;;  %v1552_v46 = vpop.f32.mrf.mxu1 }
 0x347   : > { %13628 = vst [vmem:[#allocation21_spill] sm:$0xff] %v11393_v4  ;;  %6204 = vrcp.f32 %v11378_v58  ;;  %v5421_v43 = vmul.f32 -1.442695, %v11382_v17  ;;  %vm3647_vm3 = vcmp.eq.f32.partialorder %v3646_v25, 8.507059e+37  ;;  %v3661_v26 = vand.u32 2147483647, %v11224_v54 }
 0x348   : > { %13631 = vst [vmem:[#allocation54_spill] sm:$0xff] %v11412_v21  ;;  %v3663_v59 = vand.u32 2147483648, %v11224_v54  ;;  %6206 = vrcp.f32 %v11387_v29  ;;  %v11419_v0 = vpop.eup %6198  ;;  %v11422_v51 = vmul.f32 %v3620_v49, %v10929_v15  ;;  %v11425_v27 = vmul.f32 %v3635_v53, %v10947_v57 }
 0x349   : > { %v3650_v28 = vsel %vm3647_vm3, %v3649_v7, %v3645_v37  ;;  %6208 = vrcp.f32 %v11403_v36  ;;  %v3655_v62 = vmul.f32 %v11324_v31, %v3654_v35  ;;  %v3678_v13 = vand.u32 2147483648, %v11331_v1  ;;  %v1641_v7 = vpop.f32.mrf.mxu2 }
 0x34a   : > { %13632 = vst [vmem:[#allocation17_spill] sm:$0xff] %v11422_v51  ;;  %v11428_v2 = vpop.eup %6200  ;;  %v11433_v18 = vadd.f32 %v1549_v48, %v7411_v60  ;;  %v4341_v50 = vpack.c.bf16 %v10819_v11, %v10680_v38  ;;  %vm3657_vm4 = vweird.f32 %v11224_v54  ;;  %v3693_v15 = vand.u32 2147483648, %v11344_v19  ;;  %v11452_v38 = vpop.f32.mrf.mxu0 }
 0x34b   : > { %13633 = vst [vmem:[#allocation20_spill] sm:$0xff] %v11425_v27  ;;  %6210 = vpow2.f32 %v5421_v43  ;;  %v11440_v57 = vadd.f32 %v1638_v34, %v7431_v45  ;;  %vm11444_vm5 = vcmp.eq.f32.partialorder %v3661_v26, 8.507059e+37  ;;  %v3664_v16 = vor.u32 1.1754944e-38, %v3663_v59  ;;  %v11511_v26 = vpop.f32.mrf.mxu3 }
 0x34c   : > { %v11442_v22 = vpop.eup %6202  ;;  %v3676_v48 = vand.u32 2147483647, %v11331_v1  ;;  %v11450_v41 = vadd.f32 %v1727_v30, %v7442_v61  ;;  %4682 = vmatmul.bf16.gmra.mxu0 %v4341_v50  ;;  %v11457_v34 = vmul.f32 %v3650_v28, %v10964_v32  ;;  %v3668_v12 = vmul.f32 %v11419_v0, %v11331_v1 }
 0x34d   : > { %v11454_v11 = vpop.eup %6204  ;;  %v3683_v44 = vmul.f32 %v11428_v2, %v11344_v19  ;;  %v3691_v8 = vand.u32 2147483647, %v11344_v19  ;;  %v3656_v20 = vadd.f32 %v11324_v31, %v3655_v62  ;;  %vm3658_vm6 = vweird.f32 %v11324_v31 }
 0x34e   : > { %13636 = vst [vmem:[#allocation22_spill] sm:$0xff] %v11457_v34  ;;  %v11464_v63 = vpop.eup %6206  ;;  %v11468_v42 = vor.u32 1.1754944e-38, %v3678_v13  ;;  %v5422_v32 = vmul.f32 -1.442695, %v11433_v18  ;;  %v11473_v30 = vor.u32 1.1754944e-38, %v3693_v15  ;;  %v3698_v9 = vmul.f32 %v11442_v22, %v11370_v6  ;;  %vm11486_vm7 = vmor %vm3657_vm4, %vm3658_vm6 }
 0x34f   : > { %v11471_v14 = vpop.eup %6208  ;;  %v3706_v25 = vand.u32 2147483647, %v11370_v6  ;;  %v5423_v49 = vmul.f32 -1.442695, %v11440_v57  ;;  %v3708_v47 = vand.u32 2147483648, %v11370_v6  ;;  %v3713_v53 = vmul.f32 %v11454_v11, %v11378_v58 }
 0x350   : > { %v3721_v37 = vand.u32 2147483647, %v11378_v58  ;;  %v5424_v35 = vmul.f32 -1.442695, %v11450_v41  ;;  %v3669_v59 = vsub.f32 1.0, %v3668_v12  ;;  %vm3673_vm8 = vweird.f32 %v11419_v0 }
 0x351   : > { %v6211_v43 = vpop.eup %6210  ;;  %v3684_v28 = vsub.f32 1.0, %v3683_v44  ;;  %v3728_v62 = vmul.f32 %v11464_v63, %v11387_v29  ;;  %v11495_v13 = vadd.f32 %v11372_v40, %v7405_v33  ;;  %v3660_v50 = vsel %vm11486_vm7, %v11324_v31, %v3656_v20 }
 0x352   : > { %vm3688_vm9 = vweird.f32 %v11428_v2  ;;  %v3743_v54 = vmul.f32 %v11471_v14, %v11403_v36  ;;  %6212 = vpow2.f32 %v5422_v32  ;;  %v11504_v15 = vadd.f32 %v1552_v46, %v7411_v60 }
 0x353   : > { %vm3672_vm12 = vweird.f32 %v11331_v1  ;;  %v3699_v12 = vsub.f32 1.0, %v3698_v9  ;;  %v3723_v44 = vand.u32 2147483648, %v11378_v58  ;;  %6214 = vpow2.f32 %v5423_v49 }
 0x354   : > { %v11509_v40 = vadd.f32 %v1641_v7, %v7431_v45  ;;  %vm3687_vm10 = vweird.f32 %v11344_v19  ;;  %v11514_v31 = vor.u32 1.1754944e-38, %v3708_v47  ;;  %v3714_v20 = vsub.f32 1.0, %v3713_v53  ;;  %vm11577_vm6 = vmor %vm3672_vm12, %vm3673_vm8 }
 0x355   : > { %v11516_v32 = vadd.f32 1.0, %v6211_v43  ;;  %6216 = vpow2.f32 %v5424_v35  ;;  %v3665_v46 = vsel %vm11444_vm5, %v3664_v16, %v3660_v50  ;;  %v3670_v9 = vmul.f32 %v11419_v0, %v3669_v59  ;;  %v11527_v35 = vpop.f32.mrf.mxu0  ;;  %v11539_v50 = vpop.f32.mrf.mxu1  ;;  %vm11595_vm7 = vmor %vm3687_vm10, %vm3688_vm9 }
 0x356   : > { %vm3702_vm11 = vweird.f32 %v11370_v6  ;;  %v3729_v49 = vsub.f32 1.0, %v3728_v62  ;;  %v5425_v7 = vmul.f32 -1.442695, %v11495_v13  ;;  %v3685_v27 = vmul.f32 %v11428_v2, %v3684_v28 }
 0x357   : > { %vm3717_vm13 = vweird.f32 %v11378_v58  ;;  %v3736_v47 = vand.u32 2147483647, %v11387_v29  ;;  %v3744_v53 = vsub.f32 1.0, %v3743_v54  ;;  %v5426_v43 = vmul.f32 -1.442695, %v11504_v15 }
 0x358   : > { %vm11529_vm14 = vcmp.eq.f32.partialorder %v3676_v48, 8.507059e+37  ;;  %v3700_v16 = vmul.f32 %v11442_v22, %v3699_v12  ;;  %v11534_v59 = vor.u32 1.1754944e-38, %v3723_v44  ;;  %vm3732_vm15 = vweird.f32 %v11387_v29  ;;  %v6213_v54 = vpop.eup %6212 }
 0x359   : > { %v3738_v28 = vand.u32 2147483648, %v11387_v29  ;;  %v5427_v62 = vmul.f32 -1.442695, %v11509_v40  ;;  %v11542_v51 = vmul.f32 %v3665_v46, %v11099_v5  ;;  %vm11544_vm0 = vcmp.eq.f32.partialorder %v3691_v8, 8.507059e+37  ;;  %v6215_v44 = vpop.eup %6214  ;;  %v13646_v8 = vld [vmem:[#allocation39_spill] sm:$0xff] }
 0x35a   : > { %vm3703_vm1 = vweird.f32 %v11442_v22  ;;  %v3715_v12 = vmul.f32 %v11454_v11, %v3714_v20  ;;  %6218 = vrcp.f32 %v11516_v32  ;;  %v3671_v21 = vadd.f32 %v11419_v0, %v3670_v9  ;;  %v13647_v46 = vld [vmem:[#allocation43_spill] sm:$0xff] }
 0x35b   : > { %13641 = vst [vmem:[#allocation16_spill] sm:$0xff] %v11542_v51  ;;  %vm11552_vm2 = vcmp.eq.f32.partialorder %v3706_v25, 8.507059e+37  ;;  %v3730_v5 = vmul.f32 %v11464_v63, %v3729_v49  ;;  %6220 = vpow2.f32 %v5425_v7  ;;  %v4342_v51 = vpack.c.bf16 %v13647_v46, %v13646_v8  ;;  %v6217_v4 = vpop.eup %6216  ;;  %vm11614_vm9 = vmor %vm3702_vm11, %vm3703_vm1 }
 0x35c   : > { %v3686_v10 = vadd.f32 %v11428_v2, %v3685_v27  ;;  %vm3718_vm3 = vweird.f32 %v11454_v11  ;;  %vm11561_vm4 = vcmp.eq.f32.partialorder %v3721_v37, 8.507059e+37  ;;  %v3745_v25 = vmul.f32 %v11471_v14, %v3744_v53 }
 0x35d   : > { %6222 = vpow2.f32 %v5426_v43  ;;  %v3701_v9 = vadd.f32 %v11442_v22, %v3700_v16  ;;  %vm11567_vm5 = vcmp.eq.f32.partialorder %v3736_v47, 8.507059e+37  ;;  %v3739_v7 = vor.u32 1.1754944e-38, %v3738_v28  ;;  %4771 = vmatmul.bf16.gmra.mxu1 %v4342_v51  ;;  %v13654_v47 = vld [vmem:[#allocation42_spill] sm:$0xff]  ;;  %v13655_v43 = vld [vmem:[#allocation41_spill] sm:$0xff]  ;;  %v13656_v28 = vld [vmem:[#allocation40_spill] sm:$0xff]  ;;  %v11669_v27 = vpop.f32.mrf.mxu1 }
 0x35e   : > { %v11571_v8 = vadd.f32 1.0, %v6213_v54  ;;  %6224 = vpow2.f32 %v5427_v62  ;;  %v3716_v37 = vadd.f32 %v11454_v11, %v3715_v12  ;;  %v11582_v53 = vadd.f32 1.0, %v6215_v44  ;;  %v13657_v54 = vld [vmem:[#allocation44_spill] sm:$0xff]  ;;  %v1643_v44 = vpop.f32.mrf.mxu2  ;;  %vm11629_vm10 = vmor %vm3717_vm13, %vm3718_vm3 }
 0x35f   : > { %v4343_v16 = vpack.c.bf16 %v13655_v43, %v13654_v47  ;;  %v4344_v46 = vpack.c.bf16 %v13657_v54, %v13656_v28  ;;  %v3675_v51 = vsel %vm11577_vm6, %v11419_v0, %v3671_v21  ;;  %v3731_v62 = vadd.f32 %v11464_v63, %v3730_v5  ;;  %v11603_v47 = vpop.f32.mrf.mxu3 }
 0x360   : > { %vm3733_vm8 = vweird.f32 %v11464_v63  ;;  %v11601_v12 = vadd.f32 1.0, %v6217_v4  ;;  %v11605_v43 = vpop.eup %6218  ;;  %v3690_v21 = vsel %vm11595_vm7, %v11428_v2, %v3686_v10  ;;  %v3746_v4 = vadd.f32 %v11471_v14, %v3745_v25 }
 0x361   : > { %vm3748_vm12 = vweird.f32 %v11471_v14  ;;  %4860 = vmatmul.bf16.gmra.mxu2 %v4343_v16  ;;  %4949 = vmatmul.bf16.gmra.mxu3 %v4344_v46  ;;  %v4345_v0 = vpack.c.bf16 %v11139_v52, %v11116_v55  ;;  %v6221_v5 = vpop.eup %6220  ;;  %v3705_v10 = vsel %vm11614_vm9, %v11442_v22, %v3701_v9  ;;  %vm3747_vm11 = vweird.f32 %v11403_v36  ;;  %vm11646_vm13 = vmor %vm3732_vm15, %vm3733_vm8  ;;  %v11652_v9 = vpop.f32.mrf.mxu0 }
 0x362   : > { %v3753_v2 = vand.u32 2147483648, %v11403_v36  ;;  %6226 = vrcp.f32 %v11571_v8  ;;  %v3680_v52 = vsel %vm11529_vm14, %v11468_v42, %v3675_v51  ;;  %v3720_v22 = vsel %vm11629_vm10, %v11454_v11, %v3716_v37  ;;  %vm11662_vm14 = vmor %vm3747_vm11, %vm3748_vm12 }
 0x363   : > { %v6223_v55 = vpop.eup %6222  ;;  %v3751_v25 = vand.u32 2147483647, %v11403_v36  ;;  %6228 = vrcp.f32 %v11582_v53  ;;  %4687 = vmatmul.bf16.gmra.mxu0 %v4345_v0  ;;  %v3695_v11 = vsel %vm11544_vm0, %v11473_v30, %v3690_v21  ;;  %v3735_v29 = vsel %vm11646_vm13, %v11464_v63, %v3731_v62  ;;  %v13674_v0 = vld [vmem:[#allocation48_spill] sm:$0xff] }
 0x364   : > { %v6225_v42 = vpop.eup %6224  ;;  %v3758_v36 = vmul.f32 %v11605_v43, %v11516_v32  ;;  %6230 = vrcp.f32 %v11601_v12  ;;  %v3710_v30 = vsel %vm11552_vm2, %v11514_v31, %v3705_v10  ;;  %v3750_v63 = vsel %vm11662_vm14, %v11471_v14, %v3746_v4  ;;  %v13669_v31 = vld [vmem:[#allocation47_spill] sm:$0xff] }
 0x365   : > { %v11677_v48 = vadd.f32 1.0, %v6221_v5  ;;  %v11681_v37 = vadd.f32 %v11511_v26, %v7442_v61  ;;  %v11684_v16 = vmul.f32 %v3680_v52, %v11169_v23  ;;  %v3725_v28 = vsel %vm11561_vm4, %v11534_v59, %v3720_v22  ;;  %v13671_v23 = vld [vmem:[#allocation51_spill] sm:$0xff] }
 0x366   : > { %v3754_v54 = vor.u32 1.1754944e-38, %v3753_v2  ;;  %v11689_v34 = vadd.f32 1.0, %v6223_v55  ;;  %v11692_v46 = vmul.f32 %v3695_v11, %v13669_v31  ;;  %v3740_v14 = vsel %vm11567_vm5, %v3739_v7, %v3735_v29  ;;  %v1646_v10 = vpop.f32.mrf.mxu2 }
 0x367   : > { %13668 = vst [vmem:[#allocation18_spill] sm:$0xff] %v11684_v16  ;;  %vm3752_vm15 = vcmp.eq.f32.partialorder %v3751_v25, 8.507059e+37  ;;  %v11696_v51 = vadd.f32 1.0, %v6225_v42  ;;  %v11701_v1 = vmul.f32 %v3710_v30, %v13671_v23  ;;  %v3759_v20 = vsub.f32 1.0, %v3758_v36  ;;  %v11728_v6 = vpop.f32.mrf.mxu3  ;;  %v11752_v36 = vpop.f32.mrf.mxu1 }
 0x368   : > { %13670 = vst [vmem:[#allocation23_spill] sm:$0xff] %v11692_v46  ;;  %v11698_v26 = vpop.eup %6226  ;;  %v3755_v62 = vsel %vm3752_vm15, %v3754_v54, %v3750_v63  ;;  %v11705_v59 = vadd.f32 %v11452_v38, %v7405_v33  ;;  %v11710_v19 = vmul.f32 %v3725_v28, %v11198_v39  ;;  %6232 = vrcp.f32 %v11677_v48 }
 0x369   : > { %13672 = vst [vmem:[#allocation29_spill] sm:$0xff] %v11701_v1  ;;  %v11707_v21 = vpop.eup %6228  ;;  %v5428_v49 = vmul.f32 -1.442695, %v11681_v37  ;;  %v11716_v7 = vadd.f32 %v11539_v50, %v7411_v60  ;;  %v11721_v5 = vmul.f32 %v3740_v14, %v13674_v0  ;;  %v3768_v38 = vand.u32 2147483648, %v11516_v32 }
 0x36a   : > { %13673 = vst [vmem:[#allocation28_spill] sm:$0xff] %v11710_v19  ;;  %v11718_v4 = vpop.eup %6230  ;;  %6234 = vrcp.f32 %v11689_v34  ;;  %v11726_v39 = vadd.f32 %v1643_v44, %v7431_v45  ;;  %v11731_v2 = vmul.f32 %v3755_v62, %v11218_v24  ;;  %v3766_v50 = vand.u32 2147483647, %v11516_v32 }
 0x36b   : > { %13675 = vst [vmem:[#allocation26_spill] sm:$0xff] %v11721_v5  ;;  %v3783_v55 = vand.u32 2147483648, %v11571_v8  ;;  %6236 = vrcp.f32 %v11696_v51  ;;  %v3760_v52 = vmul.f32 %v11605_v43, %v3759_v20  ;;  %vm3762_vm0 = vweird.f32 %v11516_v32 }
 0x36c   : > { %13676 = vst [vmem:[#allocation25_spill] sm:$0xff] %v11731_v2  ;;  %v3773_v44 = vmul.f32 %v11698_v26, %v11571_v8  ;;  %v5429_v22 = vmul.f32 -1.442695, %v11705_v59  ;;  %v3788_v58 = vmul.f32 %v11707_v21, %v11582_v53  ;;  %v3803_v24 = vmul.f32 %v11718_v4, %v11601_v12 }
 0x36d   : > { %6238 = vpow2.f32 %v5428_v49  ;;  %v5430_v25 = vmul.f32 -1.442695, %v11716_v7  ;;  %v3769_v42 = vor.u32 1.1754944e-38, %v3768_v38  ;;  %v3781_v11 = vand.u32 2147483647, %v11571_v8 }
 0x36e   : > { %v5431_v29 = vmul.f32 -1.442695, %v11726_v39  ;;  %v11750_v56 = vadd.f32 %v11603_v47, %v7442_v61  ;;  %v11754_v30 = vpop.eup %6232  ;;  %vm11756_vm1 = vcmp.eq.f32.partialorder %v3766_v50, 8.507059e+37  ;;  %v11760_v28 = vor.u32 1.1754944e-38, %v3783_v55  ;;  %v11804_v5 = vpop.f32.mrf.mxu2 }
 0x36f   : > { %v3796_v54 = vand.u32 2147483647, %v11582_v53  ;;  %v3798_v31 = vand.u32 2147483648, %v11582_v53  ;;  %v11766_v14 = vadd.f32 %v11527_v35, %v7405_v33  ;;  %vm3763_vm2 = vweird.f32 %v11605_v43  ;;  %v11806_v19 = vpop.f32.mrf.mxu3 }
 0x370   : > { %13677 = vst [vmem:[#allocation30_spill] sm:$0xff] %v11750_v56  ;;  %v11768_v47 = vpop.eup %6234  ;;  %v3774_v23 = vsub.f32 1.0, %v3773_v44  ;;  %v3813_v62 = vand.u32 2147483648, %v11601_v12  ;;  %6240 = vpow2.f32 %v5429_v22  ;;  %v3761_v49 = vadd.f32 %v11605_v43, %v3760_v52  ;;  %vm11791_vm6 = vmor %vm3762_vm0, %vm3763_vm2 }
 0x371   : > { %13680 = vst [vmem:[#allocation27_spill] sm:$0xff] %v11766_v14  ;;  %v11772_v20 = vpop.eup %6236  ;;  %v3789_v0 = vsub.f32 1.0, %v3788_v58  ;;  %v3804_v38 = vsub.f32 1.0, %v3803_v24  ;;  %6242 = vpow2.f32 %v5430_v25  ;;  %vm3777_vm3 = vweird.f32 %v11571_v8 }
 0x372   : > { %v3811_v35 = vand.u32 2147483647, %v11601_v12  ;;  %v3818_v50 = vmul.f32 %v11754_v30, %v11677_v48  ;;  %6244 = vpow2.f32 %v5431_v29  ;;  %v5432_v55 = vmul.f32 -1.442695, %v11750_v56  ;;  %13683 = vst [vmem:[#allocation34_spill] sm:$0xff] %v11806_v19 }
 0x373   : > { %v6239_v44 = vpop.eup %6238  ;;  %vm3778_vm4 = vweird.f32 %v11698_v26  ;;  %vm3792_vm5 = vweird.f32 %v11582_v53  ;;  %v11782_v22 = vor.u32 1.1754944e-38, %v3798_v31  ;;  %v3833_v52 = vmul.f32 %v11768_v47, %v11689_v34 }
 0x374   : > { %v5433_v58 = vmul.f32 -1.442695, %v11766_v14  ;;  %vm3807_vm7 = vweird.f32 %v11601_v12  ;;  %v11796_v25 = vor.u32 1.1754944e-38, %v3813_v62  ;;  %v3828_v29 = vand.u32 2147483648, %v11677_v48  ;;  %vm11861_vm14 = vmor %vm3777_vm3, %vm3778_vm4 }
 0x375   : > { %v3848_v31 = vmul.f32 %v11772_v20, %v11696_v51  ;;  %v11802_v2 = vadd.f32 %v1646_v10, %v7431_v45  ;;  %v3765_v32 = vsel %vm11791_vm6, %v11605_v43, %v3761_v49  ;;  %v3775_v1 = vmul.f32 %v11698_v26, %v3774_v23 }
 0x376   : > { %v3790_v62 = vmul.f32 %v11707_v21, %v3789_v0  ;;  %v3805_v46 = vmul.f32 %v11718_v4, %v3804_v38  ;;  %v6241_v16 = vpop.eup %6240  ;;  %v3819_v3 = vsub.f32 1.0, %v3818_v50  ;;  %v3826_v14 = vand.u32 2147483647, %v11677_v48  ;;  %v11829_v50 = vpop.f32.mrf.mxu0 }
 0x377   : > { %v11815_v10 = vadd.f32 1.0, %v6239_v44  ;;  %6246 = vpow2.f32 %v5432_v55  ;;  %v6243_v56 = vpop.eup %6242  ;;  %vm11817_vm8 = vcmp.eq.f32.partialorder %v3781_v11, 8.507059e+37  ;;  %vm3793_vm9 = vweird.f32 %v11707_v21  ;;  %v11831_v55 = vpop.f32.mrf.mxu1 }
 0x378   : > { %vm3808_vm12 = vweird.f32 %v11718_v4  ;;  %v3834_v43 = vsub.f32 1.0, %v3833_v52  ;;  %6248 = vpow2.f32 %v5433_v58  ;;  %v6245_v23 = vpop.eup %6244  ;;  %v3770_v49 = vsel %vm11756_vm1, %v3769_v42, %v3765_v32  ;;  %vm11873_vm0 = vmor %vm3792_vm5, %vm3793_vm9  ;;  %v11908_v12 = vpop.f32.mrf.mxu3 }
 0x379   : > { %vm3822_vm10 = vweird.f32 %v11677_v48  ;;  %v11826_v0 = vor.u32 1.1754944e-38, %v3828_v29  ;;  %v3849_v38 = vsub.f32 1.0, %v3848_v31  ;;  %v5435_v11 = vmul.f32 -1.442695, %v11802_v2  ;;  %vm11894_vm3 = vmor %vm3807_vm7, %vm3808_vm12 }
 0x37a   : > { %v3776_v44 = vadd.f32 %v11698_v26, %v3775_v1  ;;  %v3791_v52 = vadd.f32 %v11707_v21, %v3790_v62  ;;  %vm11835_vm11 = vcmp.eq.f32.partialorder %v3796_v54, 8.507059e+37  ;;  %v3806_v42 = vadd.f32 %v11718_v4, %v3805_v46 }
 0x37b   : > { %vm11840_vm13 = vcmp.eq.f32.partialorder %v3811_v35, 8.507059e+37  ;;  %v11844_v24 = vadd.f32 1.0, %v6241_v16  ;;  %v3820_v29 = vmul.f32 %v11754_v30, %v3819_v3  ;;  %6250 = vrcp.f32 %v11815_v10 }
 0x37c   : > { %v11848_v31 = vadd.f32 1.0, %v6243_v56  ;;  %v11852_v1 = vadd.f32 %v11669_v27, %v7411_v60  ;;  %v11855_v54 = vmul.f32 %v3770_v49, %v11382_v17  ;;  %v3835_v3 = vmul.f32 %v11768_v47, %v3834_v43  ;;  %v11906_v49 = vpop.f32.mrf.mxu2 }
 0x37d   : > { %vm3837_vm15 = vweird.f32 %v11689_v34  ;;  %v11867_v46 = vadd.f32 1.0, %v6245_v23  ;;  %v6247_v56 = vpop.eup %6246  ;;  %vm3823_vm1 = vweird.f32 %v11754_v30  ;;  %vm11878_vm2 = vcmp.eq.f32.partialorder %v3826_v14, 8.507059e+37 }
 0x37e   : > { %13690 = vst [vmem:[#allocation31_spill] sm:$0xff] %v11852_v1  ;;  %v3841_v27 = vand.u32 2147483647, %v11689_v34  ;;  %v3850_v35 = vmul.f32 %v11772_v20, %v3849_v38  ;;  %6252 = vpow2.f32 %v5435_v11  ;;  %v6249_v32 = vpop.eup %6248  ;;  %v3780_v53 = vsel %vm11861_vm14, %v11698_v26, %v3776_v44  ;;  %vm11928_vm6 = vmor %vm3822_vm10, %vm3823_vm1 }
 0x37f   : > { %13691 = vst [vmem:[#allocation36_spill] sm:$0xff] %v11855_v54  ;;  %v3795_v62 = vsel %vm11873_vm0, %v11707_v21, %v3791_v52  ;;  %v3843_v43 = vand.u32 2147483648, %v11689_v34  ;;  %6254 = vrcp.f32 %v11844_v24  ;;  %v3810_v26 = vsel %vm11894_vm3, %v11718_v4, %v3806_v42 }
 0x380   : > { %v3821_v23 = vadd.f32 %v11754_v30, %v3820_v29  ;;  %6256 = vrcp.f32 %v11848_v31  ;;  %v5434_v21 = vmul.f32 -1.442695, %v11852_v1  ;;  %v3836_v38 = vadd.f32 %v11768_v47, %v3835_v3  ;;  %v12019_v16 = vpop.f32.mrf.mxu3 }
 0x381   : > { %vm3838_vm4 = vweird.f32 %v11768_v47  ;;  %6258 = vrcp.f32 %v11867_v46  ;;  %v11913_v11 = vadd.f32 1.0, %v6247_v56  ;;  %v11915_v44 = vpop.eup %6250  ;;  %v3785_v4 = vsel %vm11817_vm8, %v11760_v28, %v3780_v53 }
 0x382   : > { %v3851_v52 = vadd.f32 %v11772_v20, %v3850_v35  ;;  %vm3853_vm5 = vweird.f32 %v11772_v20  ;;  %v11922_v42 = vadd.f32 1.0, %v6249_v32  ;;  %vm11932_vm7 = vcmp.eq.f32.partialorder %v3841_v27, 8.507059e+37  ;;  %vm11952_vm9 = vmor %vm3837_vm15, %vm3838_vm4 }
 0x383   : > { %vm3852_vm8 = vweird.f32 %v11696_v51  ;;  %v3856_v19 = vand.u32 2147483647, %v11696_v51  ;;  %v3858_v28 = vand.u32 2147483648, %v11696_v51  ;;  %v3800_v56 = vsel %vm11835_vm11, %v11782_v22, %v3795_v62  ;;  %v11956_v51 = vpop.f32.mrf.mxu0  ;;  %v11958_v22 = vpop.f32.mrf.mxu1 }
 0x384   : > { %v6253_v3 = vpop.eup %6252  ;;  %v3815_v48 = vsel %vm11840_vm13, %v11796_v25, %v3810_v26  ;;  %v3825_v17 = vsel %vm11928_vm6, %v11754_v30, %v3821_v23  ;;  %6260 = vpow2.f32 %v5434_v21  ;;  %v3840_v25 = vsel %vm11952_vm9, %v11768_v47, %v3836_v38  ;;  %vm11967_vm12 = vmor %vm3852_vm8, %vm3853_vm5  ;;  %v12017_v29 = vpop.f32.mrf.mxu2 }
 0x385   : > { %v11960_v58 = vpop.eup %6254  ;;  %v3863_v34 = vmul.f32 %v11915_v44, %v11815_v10  ;;  %6262 = vrcp.f32 %v11913_v11  ;;  %v11976_v63 = vadd.f32 %v11652_v9, %v7405_v33  ;;  %v11981_v32 = vmul.f32 %v3785_v4, %v11433_v18 }
 0x386   : > { %v11978_v35 = vpop.eup %6256  ;;  %v3844_v47 = vor.u32 1.1754944e-38, %v3843_v43  ;;  %v3855_v53 = vsel %vm11967_vm12, %v11772_v20, %v3851_v52  ;;  %6264 = vrcp.f32 %v11922_v42  ;;  %v11990_v14 = vmul.f32 %v3800_v56, %v11440_v57 }
 0x387   : > { %13708 = vst [vmem:[#allocation32_spill] sm:$0xff] %v11981_v32  ;;  %v11987_v62 = vpop.eup %6258  ;;  %v3830_v9 = vsel %vm11878_vm2, %v11826_v0, %v3825_v17  ;;  %v3859_v26 = vor.u32 1.1754944e-38, %v3858_v28  ;;  %v11997_v18 = vadd.f32 %v11728_v6, %v7442_v61  ;;  %v12000_v43 = vmul.f32 %v3815_v48, %v11450_v41 }
 0x388   : > { %13709 = vst [vmem:[#allocation35_spill] sm:$0xff] %v11990_v14  ;;  %v3845_v20 = vsel %vm11932_vm7, %v3844_v47, %v3840_v25  ;;  %vm3857_vm10 = vcmp.eq.f32.partialorder %v3856_v19, 8.507059e+37  ;;  %v3873_v23 = vand.u32 2147483648, %v11815_v10  ;;  %v3864_v21 = vsub.f32 1.0, %v3863_v34 }
 0x389   : > { %13710 = vst [vmem:[#allocation33_spill] sm:$0xff] %v11997_v18  ;;  %v3860_v57 = vsel %vm3857_vm10, %v3859_v26, %v3855_v53  ;;  %v3878_v8 = vmul.f32 %v11960_v58, %v11844_v24  ;;  %v5437_v0 = vmul.f32 -1.442695, %v11976_v63  ;;  %v12009_v6 = vmul.f32 %v3830_v9, %v11495_v13 }
 0x38a   : > { %13711 = vst [vmem:[#allocation24_spill] sm:$0xff] %v12000_v43  ;;  %v6261_v38 = vpop.eup %6260  ;;  %v3893_v41 = vmul.f32 %v11978_v35, %v11848_v31  ;;  %v3908_v4 = vmul.f32 %v11987_v62, %v11867_v46  ;;  %v12015_v52 = vadd.f32 1.0, %v6253_v3  ;;  %v12024_v28 = vmul.f32 %v3845_v20, %v11504_v15 }
 0x38b   : > { %13712 = vst [vmem:[#allocation37_spill] sm:$0xff] %v12009_v6  ;;  %v12021_v19 = vpop.eup %6262  ;;  %vm3867_vm11 = vweird.f32 %v11815_v10  ;;  %v12028_v13 = vmul.f32 -1.442695, %v11997_v18  ;;  %v12032_v56 = vadd.f32 %v11752_v36, %v7411_v60  ;;  %v12037_v48 = vmul.f32 %v3860_v57, %v11509_v40  ;;  %v12052_v53 = vpop.f32.mrf.mxu0 }
 0x38c   : > { %13713 = vst [vmem:[#allocation55_spill] sm:$0xff] %v12024_v28  ;;  %v12034_v3 = vpop.eup %6264  ;;  %v3871_v17 = vand.u32 2147483647, %v11815_v10  ;;  %v12040_v27 = vor.u32 1.1754944e-38, %v3873_v23  ;;  %v12044_v15 = vadd.f32 %v11804_v5, %v7431_v45  ;;  %v3865_v25 = vmul.f32 %v11915_v44, %v3864_v21  ;;  %v12054_v9 = vpop.f32.mrf.mxu1 }
 0x38d   : > { %13714 = vst [vmem:[#allocation38_spill] sm:$0xff] %v12032_v56  ;;  %v3879_v30 = vsub.f32 1.0, %v3878_v8  ;;  %v3888_v34 = vand.u32 2147483648, %v11844_v24  ;;  %6266 = vpow2.f32 %v5437_v0  ;;  %vm3882_vm13 = vweird.f32 %v11844_v24  ;;  %v12102_v10 = vpop.f32.mrf.mxu3 }
 0x38e   : > { %13715 = vst [vmem:[#allocation56_spill] sm:$0xff] %v12037_v48  ;;  %v3894_v36 = vsub.f32 1.0, %v3893_v41  ;;  %v3909_v47 = vsub.f32 1.0, %v3908_v4  ;;  %v3923_v40 = vmul.f32 %v12021_v19, %v11913_v11  ;;  %6268 = vrcp.f32 %v12015_v52 }
 0x38f   : > { %v3886_v5 = vand.u32 2147483647, %v11844_v24  ;;  %v3903_v26 = vand.u32 2147483648, %v11848_v31  ;;  %v3938_v20 = vmul.f32 %v12034_v3, %v11922_v42  ;;  %v12060_v23 = vadd.f32 1.0, %v6261_v38 }
 0x390   : > { %vm12062_vm14 = vcmp.eq.f32.partialorder %v3871_v17, 8.507059e+37  ;;  %vm3897_vm15 = vweird.f32 %v11848_v31  ;;  %v3901_v21 = vand.u32 2147483647, %v11848_v31  ;;  %v3916_v8 = vand.u32 2147483647, %v11867_v46 }
 0x391   : > { %13716 = vst [vmem:[#allocation19_spill] sm:$0xff] %v12060_v23  ;;  %v5439_v0 = vmul.f32 -1.442695, %v12044_v15  ;;  %v3866_v41 = vadd.f32 %v11915_v44, %v3865_v25  ;;  %vm3868_vm0 = vweird.f32 %v11915_v44  ;;  %v3880_v4 = vmul.f32 %v11960_v58, %v3879_v30 }
 0x392   : > { %vm3912_vm1 = vweird.f32 %v11867_v46  ;;  %v3889_v38 = vor.u32 1.1754944e-38, %v3888_v34  ;;  %v3895_v17 = vmul.f32 %v11978_v35, %v3894_v36  ;;  %v3910_v18 = vmul.f32 %v11987_v62, %v3909_v47  ;;  %vm12086_vm3 = vmor %vm3867_vm11, %vm3868_vm0 }
 0x393   : > { %v3924_v1 = vsub.f32 1.0, %v3923_v40  ;;  %v6267_v48 = vpop.eup %6266  ;;  %vm12076_vm2 = vcmp.eq.f32.partialorder %v3886_v5, 8.507059e+37  ;;  %v3904_v6 = vor.u32 1.1754944e-38, %v3903_v26  ;;  %v3918_v25 = vand.u32 2147483648, %v11867_v46  ;;  %v12100_v40 = vpop.f32.mrf.mxu2 }
 0x394   : > { %v3939_v43 = vsub.f32 1.0, %v3938_v20  ;;  %6270 = vrcp.f32 %v12060_v23  ;;  %v12082_v30 = vpop.eup %6268  ;;  %vm3883_vm4 = vweird.f32 %v11960_v58  ;;  %vm3898_vm5 = vweird.f32 %v11978_v35  ;;  %v12115_v32 = vpop.f32.mrf.mxu0 }
 0x395   : > { %vm12092_vm6 = vcmp.eq.f32.partialorder %v3901_v21, 8.507059e+37  ;;  %vm12096_vm7 = vcmp.eq.f32.partialorder %v3916_v8, 8.507059e+37  ;;  %6272 = vpow2.f32 %v5439_v0  ;;  %v3870_v5 = vsel %vm12086_vm3, %v11915_v44, %v3866_v41  ;;  %v12117_v54 = vpop.f32.mrf.mxu1  ;;  %vm12123_vm9 = vmor %vm3882_vm13, %vm3883_vm4 }
 0x396   : > { %v3881_v26 = vadd.f32 %v11960_v58, %v3880_v4  ;;  %vm3913_vm8 = vweird.f32 %v11987_v62  ;;  %v5438_v20 = vmul.f32 -1.442695, %v12032_v56  ;;  %v3896_v21 = vadd.f32 %v11978_v35, %v3895_v17  ;;  %vm12135_vm12 = vmor %vm3897_vm15, %vm3898_vm5 }
 0x397   : > { %v3911_v8 = vadd.f32 %v11987_v62, %v3910_v18  ;;  %v3925_v0 = vmul.f32 %v12021_v19, %v3924_v1  ;;  %v12113_v14 = vadd.f32 1.0, %v6267_v48  ;;  %v3919_v41 = vor.u32 1.1754944e-38, %v3918_v25  ;;  %vm12155_vm10 = vmor %vm3912_vm1, %vm3913_vm8 }
 0x398   : > { %v3931_v4 = vand.u32 2147483647, %v11913_v11  ;;  %v3940_v18 = vmul.f32 %v12034_v3, %v3939_v43  ;;  %v3968_v1 = vmul.f32 %v12082_v30, %v12015_v52  ;;  %v3933_v24 = vand.u32 2147483648, %v11913_v11 }
 0x399   : > { %v3946_v17 = vand.u32 2147483647, %v11922_v42  ;;  %v3948_v25 = vand.u32 2147483648, %v11922_v42  ;;  %6274 = vpow2.f32 %v12028_v13  ;;  %v3875_v34 = vsel %vm12062_vm14, %v12040_v27, %v3870_v5 }
 0x39a   : > { %v12143_v43 = vpop.eup %6270  ;;  %v3885_v31 = vsel %vm12123_vm9, %v11960_v58, %v3881_v26  ;;  %vm3928_vm11 = vweird.f32 %v12021_v19  ;;  %6276 = vpow2.f32 %v5438_v20  ;;  %v3900_v27 = vsel %vm12135_vm12, %v11978_v35, %v3896_v21  ;;  %v12184_v20 = vpop.f32.mrf.mxu3 }
 0x39b   : > { %v6273_v13 = vpop.eup %6272  ;;  %v3915_v58 = vsel %vm12155_vm10, %v11987_v62, %v3911_v8  ;;  %v3926_v57 = vadd.f32 %v12021_v19, %v3925_v0  ;;  %6278 = vrcp.f32 %v12113_v14  ;;  %v3941_v46 = vadd.f32 %v12034_v3, %v3940_v18  ;;  %v12182_v56 = vpop.f32.mrf.mxu2 }
 0x39c   : > { %vm3943_vm13 = vweird.f32 %v12034_v3  ;;  %v3969_v5 = vsub.f32 1.0, %v3968_v1  ;;  %v12172_v26 = vadd.f32 %v11829_v50, %v7405_v33  ;;  %v3890_v35 = vsel %vm12076_vm2, %v3889_v38, %v3885_v31  ;;  %v12216_v44 = vpop.f32.mrf.mxu0  ;;  %v13745_v31 = vld [vmem:[#allocation34_spill] sm:$0xff] }
 0x39d   : > { %vm3927_vm14 = vweird.f32 %v11913_v11  ;;  %vm12177_vm15 = vcmp.eq.f32.partialorder %v3931_v4, 8.507059e+37  ;;  %vm3942_vm0 = vweird.f32 %v11922_v42  ;;  %v3905_v21 = vsel %vm12092_vm6, %v3904_v6, %v3900_v27 }
 0x39e   : > { %13733 = vst [vmem:[#allocation39_spill] sm:$0xff] %v12172_v26  ;;  %v3920_v50 = vsel %vm12096_vm7, %v3919_v41, %v3915_v58  ;;  %vm12192_vm1 = vmor %vm3927_vm14, %vm3928_vm11  ;;  %v3953_v28 = vmul.f32 %v12143_v43, %v12060_v23  ;;  %v12198_v42 = vadd.f32 1.0, %v6273_v13  ;;  %v12201_v8 = vmul.f32 %v3875_v34, %v11681_v37  ;;  %v12218_v41 = vpop.f32.mrf.mxu1  ;;  %v13764_v23 = vld [vmem:[#allocation49_spill] sm:$0xff] }
 0x39f   : > { %v6275_v38 = vpop.eup %6274  ;;  %v3930_v6 = vsel %vm12192_vm1, %v12021_v19, %v3926_v57  ;;  %v3934_v36 = vor.u32 1.1754944e-38, %v3933_v24  ;;  %vm12208_vm2 = vmor %vm3942_vm0, %vm3943_vm13  ;;  %vm12212_vm3 = vcmp.eq.f32.partialorder %v3946_v17, 8.507059e+37  ;;  %v3949_v4 = vor.u32 1.1754944e-38, %v3948_v25 }
 0x3a0   : > { %13738 = vst [vmem:[#allocation43_spill] sm:$0xff] %v12201_v8  ;;  %v6277_v37 = vpop.eup %6276  ;;  %v3945_v19 = vsel %vm12208_vm2, %v12034_v3, %v3941_v46  ;;  %v3970_v18 = vmul.f32 %v12082_v30, %v3969_v5  ;;  %v5441_v1 = vmul.f32 -1.442695, %v12172_v26  ;;  %v12228_v24 = vmul.f32 %v3890_v35, %v11705_v59 }
 0x3a1   : > { %v12225_v48 = vpop.eup %6278  ;;  %v12231_v17 = vmul.f32 %v3905_v21, %v11716_v7  ;;  %v12234_v34 = vmul.f32 %v3920_v50, %v11726_v39  ;;  %v12238_v13 = vadd.f32 %v13745_v31, %v7442_v61  ;;  %v3935_v3 = vsel %vm12177_vm15, %v3934_v36, %v3930_v6  ;;  %v13753_v36 = vld [vmem:[#allocation27_spill] sm:$0xff] }
 0x3a2   : > { %v3954_v25 = vsub.f32 1.0, %v3953_v28  ;;  %6280 = vrcp.f32 %v12198_v42  ;;  %v12245_v59 = vadd.f32 %v11831_v55, %v7411_v60  ;;  %v3950_v7 = vsel %vm12212_vm3, %v3949_v4, %v3945_v19  ;;  %v12270_v21 = vpop.f32.mrf.mxu3 }
 0x3a3   : > { %13743 = vst [vmem:[#allocation42_spill] sm:$0xff] %v12231_v17  ;;  %vm3973_vm4 = vweird.f32 %v12082_v30  ;;  %v12250_v39 = vadd.f32 1.0, %v6275_v38  ;;  %v12254_v27 = vadd.f32 %v11906_v49, %v7431_v45  ;;  %v3971_v58 = vadd.f32 %v12082_v30, %v3970_v18  ;;  %v12268_v49 = vpop.f32.mrf.mxu2  ;;  %v13751_v38 = vld [vmem:[#allocation30_spill] sm:$0xff] }
 0x3a4   : > { %13744 = vst [vmem:[#allocation41_spill] sm:$0xff] %v12234_v34  ;;  %v3998_v57 = vmul.f32 %v12225_v48, %v12113_v14  ;;  %v12259_v46 = vadd.f32 1.0, %v6277_v37  ;;  %6282 = vpow2.f32 %v5441_v1  ;;  %v3978_v5 = vand.u32 2147483648, %v12015_v52  ;;  %v4645_v37 = vpop.f32.mrf.mxu0 }
 0x3a5   : > { %13746 = vst [vmem:[#allocation40_spill] sm:$0xff] %v12238_v13  ;;  %v5440_v35 = vmul.f32 -1.442695, %v12238_v13  ;;  %v12266_v62 = vadd.f32 %v11908_v12, %v7442_v61  ;;  %v3955_v50 = vmul.f32 %v12143_v43, %v3954_v25  ;;  %vm3972_vm5 = vweird.f32 %v12015_v52 }
 0x3a6   : > { %13747 = vst [vmem:[#allocation44_spill] sm:$0xff] %v12245_v59  ;;  %v3976_v11 = vand.u32 2147483647, %v12015_v52  ;;  %v5442_v28 = vmul.f32 -1.442695, %v12245_v59  ;;  %v12277_v6 = vmul.f32 %v3935_v3, %v13751_v38  ;;  %v12280_v47 = vmul.f32 %v3950_v7, %v13753_v36  ;;  %vm12284_vm6 = vmor %vm3972_vm5, %vm3973_vm4  ;;  %v12290_v52 = vpop.f32.mrf.mxu1 }
 0x3a7   : > { %13748 = vst [vmem:[#allocation47_spill] sm:$0xff] %v12250_v39  ;;  %6284 = vrcp.f32 %v12250_v39  ;;  %v5443_v0 = vmul.f32 -1.442695, %v12254_v27  ;;  %v3975_v4 = vsel %vm12284_vm6, %v12082_v30, %v3971_v58  ;;  %v3999_v18 = vsub.f32 1.0, %v3998_v57  ;;  %v12311_v58 = vld [vmem:[%s12994_s6] ss:$0 sm:$0xff] }
 0x3a8   : > { %13749 = vst [vmem:[#allocation51_spill] sm:$0xff] %v12254_v27  ;;  %v12292_v19 = vpop.eup %6280  ;;  %6286 = vrcp.f32 %v12259_v46  ;;  %v12300_v1 = vadd.f32 %v11956_v51, %v7405_v33  ;;  %v3979_v31 = vor.u32 1.1754944e-38, %v3978_v5  ;;  %v4008_v3 = vand.u32 2147483648, %v12113_v14 }
 0x3a9   : > { %13750 = vst [vmem:[#allocation48_spill] sm:$0xff] %v12266_v62  ;;  %6288 = vpow2.f32 %v5440_v35  ;;  %v5444_v25 = vmul.f32 -1.442695, %v12266_v62  ;;  %v12305_v38 = vadd.f32 %v12143_v43, %v3955_v50  ;;  %vm3977_vm7 = vcmp.eq.f32.partialorder %v3976_v11, 8.507059e+37 }
 0x3aa   : > { %13752 = vst [vmem:[#allocation34_spill] sm:$0xff] %v12277_v6  ;;  %v6283_v7 = vpop.eup %6282  ;;  %v4006_v30 = vand.u32 2147483647, %v12113_v14  ;;  %6290 = vpow2.f32 %v5442_v28  ;;  %v3980_v33 = vsel %vm3977_vm7, %v3979_v31, %v3975_v4  ;;  %v4028_v51 = vmul.f32 %v12292_v19, %v12198_v42  ;;  %v12336_v12 = vpop.f32.mrf.mxu3 }
 0x3ab   : > { %13756 = vst [vmem:[#allocation30_spill] sm:$0xff] %v12305_v38  ;;  %6292 = vpow2.f32 %v5443_v0  ;;  %v12317_v57 = vadd.f32 %v11958_v22, %v7411_v60  ;;  %v4000_v5 = vmul.f32 %v12225_v48, %v3999_v18  ;;  %vm4002_vm8 = vweird.f32 %v12113_v14  ;;  %v12334_v22 = vpop.f32.mrf.mxu2 }
 0x3ac   : > { %v5445_v35 = vmul.f32 -1.442695, %v12300_v1  ;;  %v12324_v50 = vadd.f32 %v12017_v29, %v7431_v45  ;;  %v4009_v28 = vor.u32 1.1754944e-38, %v4008_v3  ;;  %v12328_v36 = vadd.f32 1.0, %v6283_v7  ;;  %v13762_v7 = vld [vmem:[#allocation45_spill] sm:$0xff] }
 0x3ad   : > { %v12326_v11 = vpop.eup %6284  ;;  %6294 = vpow2.f32 %v5444_v25  ;;  %v12332_v60 = vadd.f32 %v12019_v16, %v7442_v61  ;;  %v12341_v4 = vmul.f32 %v3980_v33, %v11802_v2  ;;  %vm4003_vm9 = vweird.f32 %v12225_v48  ;;  %v12354_v2 = vpop.f32.mrf.mxu0 }
 0x3ae   : > { %13757 = vst [vmem:[#allocation27_spill] sm:$0xff] %v12326_v11  ;;  %v12338_v0 = vpop.eup %6286  ;;  %vm12344_vm12 = vcmp.eq.f32.partialorder %v4006_v30, 8.507059e+37  ;;  %v4036_v29 = vand.u32 2147483647, %v12198_v42  ;;  %v4639_v61 = vadd.f32 %v12311_v58, %v12052_v53  ;;  %v4029_v18 = vsub.f32 1.0, %v4028_v51  ;;  %v12356_v25 = vpop.f32.mrf.mxu1  ;;  %v13763_v30 = vld [vmem:[#allocation50_spill] sm:$0xff]  ;;  %vm12379_vm11 = vmor %vm4002_vm8, %vm4003_vm9 }
 0x3af   : > { %13758 = vst [vmem:[#allocation57_spill] sm:$0xff] %v12332_v60  ;;  %v6289_v16 = vpop.eup %6288  ;;  %v5446_v31 = vmul.f32 -1.442695, %v12317_v57  ;;  %v4641_v3 = vadd.f32 %v12311_v58, %v12115_v32  ;;  %v4346_v33 = vpack.c.bf16 %v13763_v30, %v13762_v7  ;;  %v4001_v13 = vadd.f32 %v12225_v48, %v4000_v5  ;;  %v13765_v7 = vld [vmem:[#allocation52_spill] sm:$0xff] }
 0x3b0   : > { %13759 = vst [vmem:[#allocation58_spill] sm:$0xff] %v12338_v0  ;;  %v6291_v55 = vpop.eup %6290  ;;  %v4038_v38 = vand.u32 2147483648, %v12198_v42  ;;  %v5447_v53 = vmul.f32 -1.442695, %v12324_v50  ;;  %v4728_v51 = vadd.f32 %v12054_v9, %v4639_v61  ;;  %v4013_v32 = vmul.f32 %v12338_v0, %v12259_v46 }
 0x3b1   : > { %v6293_v11 = vpop.eup %6292  ;;  %6296 = vrcp.f32 %v12328_v36  ;;  %v5448_v39 = vmul.f32 -1.442695, %v12332_v60  ;;  %4776 = vmatmul.bf16.gmra.mxu1 %v4346_v33  ;;  %v4347_v30 = vpack.c.bf16 %v13765_v7, %v13764_v23  ;;  %vm4032_vm10 = vweird.f32 %v12198_v42  ;;  %v13779_v42 = vld [vmem:[#allocation16_spill] sm:$0xff] }
 0x3b2   : > { %6298 = vpow2.f32 %v5445_v35  ;;  %v4817_v5 = vadd.f32 %v12100_v40, %v4728_v51  ;;  %v4644_v9 = vadd.f32 %v12311_v58, %v12216_v44  ;;  %v4646_v61 = vadd.f32 %v12311_v58, %v4645_v37 }
 0x3b3   : > { %v6295_v62 = vpop.eup %6294  ;;  %v4030_v23 = vmul.f32 %v12292_v19, %v4029_v18  ;;  %v12384_v7 = vadd.f32 1.0, %v6291_v55  ;;  %6300 = vpow2.f32 %v5446_v31  ;;  %v4730_v40 = vadd.f32 %v12117_v54, %v4641_v3  ;;  %4865 = vmatmul.bf16.gmra.mxu2 %v4347_v30  ;;  %v12396_v18 = vpop.f32.mrf.mxu2 }
 0x3b4   : > { %v4005_v44 = vsel %vm12379_vm11, %v12225_v48, %v4001_v13  ;;  %v12390_v37 = vadd.f32 1.0, %v6293_v11  ;;  %6302 = vpow2.f32 %v5447_v53  ;;  %v4906_v14 = vadd.f32 %v12102_v10, %v4817_v5  ;;  %v12398_v54 = vpop.f32.mrf.mxu3 }
 0x3b5   : > { %v4014_v35 = vsub.f32 1.0, %v4013_v32  ;;  %v12393_v51 = vadd.f32 1.0, %v6289_v16  ;;  %6304 = vpow2.f32 %v5448_v39  ;;  %v4819_v55 = vadd.f32 %v12182_v56, %v4730_v40  ;;  %v6350_v56 = vld [vmem:[%s6780_s18] sm:$0xff]  ;;  %v4650_v3 = vpop.f32.mrf.mxu0 }
 0x3b6   : > { %vm4033_vm13 = vweird.f32 %v12292_v19  ;;  %v4068_v48 = vand.u32 2147483648, %v12328_v36  ;;  %v4733_v13 = vadd.f32 %v12218_v41, %v4644_v9  ;;  %v4735_v11 = vadd.f32 %v12290_v52, %v4646_v61  ;;  %v4739_v53 = vpop.f32.mrf.mxu1 }
 0x3b7   : > { %13768 = vst [vmem:[#allocation45_spill] sm:$0xff] %v12393_v51  ;;  %v12404_v31 = vpop.eup %6296  ;;  %v4010_v10 = vsel %vm12344_vm12, %v4009_v28, %v4005_v44  ;;  %v4031_v39 = vadd.f32 %v12292_v19, %v4030_v23  ;;  %6306 = vrcp.f32 %v12384_v7  ;;  %v4985_v16 = vadd.f32 %v6350_v56, %v4906_v14  ;;  %vm12440_vm15 = vmor %vm4032_vm10, %vm4033_vm13  ;;  %v6351_v23 = vld [vmem:[%s6780_s18 + $0x8] sm:$0xff] }
 0x3b8   : > { %v6299_v32 = vpop.eup %6298  ;;  %6308 = vrcp.f32 %v12390_v37  ;;  %v4908_v41 = vadd.f32 %v12184_v20, %v4819_v55  ;;  %v4822_v52 = vadd.f32 %v12268_v49, %v4733_v13  ;;  %v4824_v30 = vadd.f32 %v12334_v22, %v4735_v11  ;;  %v6352_v13 = vld [vmem:[%s6780_s18 + $0x10] sm:$0xff] }
 0x3b9   : > { %v6301_v45 = vpop.eup %6300  ;;  %vm12415_vm14 = vcmp.eq.f32.partialorder %v4036_v29, 8.507059e+37  ;;  %v4039_v5 = vor.u32 1.1754944e-38, %v4038_v38  ;;  %6310 = vrcp.f32 %v12393_v51  ;;  %v12420_v9 = vadd.f32 1.0, %v6295_v62  ;;  %5017 = vst [vmem:[%s12424_s11] sm:$0xff] %v4985_v16  ;;  %v13791_v51 = vld [vmem:[#allocation24_spill] sm:$0xff] }
 0x3ba   : > { %v6303_v20 = vpop.eup %6302  ;;  %v12428_v49 = vmul.f32 %v4010_v10, %v11976_v63  ;;  %v12431_v22 = vmul.f32 %v12338_v0, %v4014_v35  ;;  %v4649_v38 = vadd.f32 %v12311_v58, %v12354_v2  ;;  %v12444_v63 = vor.u32 1.1754944e-38, %v4068_v48 }
 0x3bb   : > { %v6305_v62 = vpop.eup %6304  ;;  %v12446_v33 = vadd.f32 1.0, %v6299_v32  ;;  %v4986_v40 = vadd.f32 %v6351_v23, %v4908_v41  ;;  %v4911_v44 = vadd.f32 %v12270_v21, %v4822_v52  ;;  %v4035_v2 = vsel %vm12440_vm15, %v12292_v19, %v4031_v39  ;;  %v4828_v19 = vpop.f32.mrf.mxu2  ;;  %v13773_v41 = vld [vmem:[#allocation46_spill] sm:$0xff]  ;;  %v13774_v52 = vld [vmem:[#allocation53_spill] sm:$0xff] }
 0x3bc   : > { %v12454_v14 = vadd.f32 1.0, %v6301_v45  ;;  %v4913_v35 = vadd.f32 %v12336_v12, %v4824_v30  ;;  %v4058_v48 = vmul.f32 %v12404_v31, %v12328_v36  ;;  %6312 = vrcp.f32 %v12420_v9  ;;  %v4917_v10 = vpop.f32.mrf.mxu3  ;;  %v6353_v12 = vld [vmem:[%s6780_s18 + $0x18] sm:$0xff] }
 0x3bd   : > { %v12457_v55 = vpop.eup %6306  ;;  %v12462_v21 = vadd.f32 1.0, %v6303_v20  ;;  %5018 = vst [vmem:[%s12424_s11 + $0x8] sm:$0xff] %v4986_v40  ;;  %v4987_v11 = vadd.f32 %v6352_v13, %v4911_v44  ;;  %v12468_v56 = vadd.f32 1.0, %v6305_v62  ;;  %v4738_v32 = vadd.f32 %v12356_v25, %v4649_v38  ;;  %v4653_v61 = vpop.f32.mrf.mxu0  ;;  %v13776_v40 = vld [vmem:[#allocation21_spill] sm:$0xff]  ;;  %v13777_v62 = vld [vmem:[#allocation22_spill] sm:$0xff] }
 0x3be   : > { %v12466_v39 = vpop.eup %6308  ;;  %v4988_v16 = vadd.f32 %v6353_v12, %v4913_v35  ;;  %v4348_v30 = vpack.c.bf16 %v13774_v52, %v13773_v41  ;;  %6314 = vrcp.f32 %v12446_v33  ;;  %v4651_v20 = vadd.f32 %v12311_v58, %v4650_v3  ;;  %v4742_v23 = vpop.f32.mrf.mxu1  ;;  %v13778_v13 = vld [vmem:[#allocation54_spill] sm:$0xff] }
 0x3bf   : > { %v12474_v45 = vpop.eup %6310  ;;  %5019 = vst [vmem:[%s12424_s11 + $0x10] sm:$0xff] %v4987_v11  ;;  %v4349_v44 = vpack.c.bf16 %v13777_v62, %v13776_v40  ;;  %v4350_v35 = vpack.c.bf16 %v13779_v42, %v13778_v13  ;;  %v4040_v25 = vsel %vm12415_vm14, %v4039_v5, %v4035_v2  ;;  %v4073_v38 = vmul.f32 %v12457_v55, %v12384_v7  ;;  %v13780_v2 = vld [vmem:[#allocation17_spill] sm:$0xff]  ;;  %v13783_v40 = vld [vmem:[#allocation23_spill] sm:$0xff] }
 0x3c0   : > { %13775 = vst [vmem:[#allocation50_spill] sm:$0xff] %v12474_v45  ;;  %6316 = vrcp.f32 %v12454_v14  ;;  %4954 = vmatmul.bf16.gmra.mxu3 %v4348_v30  ;;  %v4827_v3 = vadd.f32 %v12396_v18, %v4738_v32  ;;  %v4088_v11 = vmul.f32 %v12466_v39, %v12390_v37  ;;  %v4740_v12 = vadd.f32 %v4739_v53, %v4651_v20  ;;  %v6354_v20 = vld [vmem:[%s6780_s18 + $0x20] sm:$0xff]  ;;  %v13790_v45 = vld [vmem:[#allocation25_spill] sm:$0xff] }
 0x3c1   : > { %5020 = vst [vmem:[%s12424_s11 + $0x18] sm:$0xff] %v4988_v16  ;;  %6318 = vrcp.f32 %v12462_v21  ;;  %v4654_v42 = vadd.f32 %v12311_v58, %v4653_v61  ;;  %4692 = vmatmul.bf16.gmra.mxu0 %v4349_v44  ;;  %4781 = vmatmul.bf16.gmra.mxu1 %v4350_v35  ;;  %v4059_v28 = vsub.f32 1.0, %v4058_v48  ;;  %v13781_v16 = vld [vmem:[#allocation18_spill] sm:$0xff]  ;;  %v12501_v32 = vmul.f32 %v4040_v25, %v12044_v15 }
 0x3c2   : > { %6320 = vrcp.f32 %v12468_v56  ;;  %v4916_v5 = vadd.f32 %v12398_v54, %v4827_v3  ;;  %v4351_v41 = vpack.c.bf16 %v13781_v16, %v13780_v2  ;;  %v12498_v18 = vpop.eup %6312  ;;  %vm4063_vm0 = vweird.f32 %v12404_v31  ;;  %v13782_v54 = vld [vmem:[#allocation20_spill] sm:$0xff]  ;;  %v13784_v3 = vld [vmem:[#allocation29_spill] sm:$0xff] }
 0x3c3   : > { %v4083_v53 = vand.u32 2147483648, %v12384_v7  ;;  %v4829_v52 = vadd.f32 %v4828_v19, %v4740_v12  ;;  %v4074_v30 = vsub.f32 1.0, %v4073_v38  ;;  %v4743_v61 = vadd.f32 %v4742_v23, %v4654_v42  ;;  %v4831_v35 = vpop.f32.mrf.mxu2  ;;  %v13785_v19 = vld [vmem:[#allocation36_spill] sm:$0xff] }
 0x3c4   : > { %v4989_v48 = vadd.f32 %v6354_v20, %v4916_v5  ;;  %4870 = vmatmul.bf16.gmra.mxu2 %v4351_v41  ;;  %v12508_v44 = vpop.eup %6314  ;;  %vm4062_vm1 = vweird.f32 %v12328_v36  ;;  %v4089_v15 = vsub.f32 1.0, %v4088_v11  ;;  %v4920_v25 = vpop.f32.mrf.mxu3  ;;  %v13786_v12 = vld [vmem:[#allocation28_spill] sm:$0xff]  ;;  %v4060_v42 = vmul.f32 %v12404_v31, %v4059_v28  ;;  %v13788_v41 = vld [vmem:[#allocation26_spill] sm:$0xff] }
 0x3c5   : > { %v4918_v13 = vadd.f32 %v4917_v10, %v4829_v52  ;;  %v13787_v5 = vld [vmem:[#allocation32_spill] sm:$0xff]  ;;  %vm4077_vm2 = vweird.f32 %v12384_v7  ;;  %v4098_v16 = vand.u32 2147483648, %v12390_v37  ;;  %v4832_v11 = vadd.f32 %v4831_v35, %v4743_v61  ;;  %v13789_v10 = vld [vmem:[#allocation35_spill] sm:$0xff]  ;;  %v4655_v28 = vpop.f32.mrf.mxu0  ;;  %vm12576_vm7 = vmor %vm4062_vm1, %vm4063_vm0 }
 0x3c6   : > { %v12515_v23 = vpop.eup %6316  ;;  %5021 = vst [vmem:[%s12424_s11 + $0x20] sm:$0xff] %v4989_v48  ;;  %vm4092_vm3 = vweird.f32 %v12390_v37  ;;  %v4103_v29 = vmul.f32 %v12498_v18, %v12420_v9  ;;  %v6355_v2 = vld [vmem:[%s6780_s18 + $0x28] sm:$0xff]  ;;  %v4744_v62 = vpop.f32.mrf.mxu1  ;;  %v4075_v27 = vmul.f32 %v12457_v55, %v4074_v30  ;;  %v4656_v26 = vadd.f32 %v12311_v58, %v4655_v28 }
 0x3c7   : > { %v12523_v20 = vpop.eup %6318  ;;  %v4990_v38 = vadd.f32 %v6355_v2, %v4918_v13  ;;  %v4921_v59 = vadd.f32 %v4920_v25, %v4832_v11  ;;  %v4090_v13 = vmul.f32 %v12466_v39, %v4089_v15  ;;  %v4118_v2 = vmul.f32 %v12508_v44, %v12446_v33  ;;  %v6356_v15 = vld [vmem:[%s6780_s18 + $0x30] sm:$0xff] }
 0x3c8   : > { %v12533_v52 = vpop.eup %6320  ;;  %vm4078_vm4 = vweird.f32 %v12457_v55  ;;  %v4133_v30 = vmul.f32 %v12515_v23, %v12454_v14  ;;  %v4148_v25 = vmul.f32 %v12523_v20, %v12462_v21  ;;  %v12553_v28 = vor.u32 1.1754944e-38, %v4083_v53 }
 0x3c9   : > { %5022 = vst [vmem:[%s12424_s11 + $0x28] sm:$0xff] %v4990_v38  ;;  %v4991_v11 = vadd.f32 %v6356_v15, %v4921_v59  ;;  %v4096_v38 = vand.u32 2147483647, %v12390_v37  ;;  %v4104_v0 = vsub.f32 1.0, %v4103_v29  ;;  %v4163_v35 = vmul.f32 %v12533_v52, %v12468_v56  ;;  %vm12585_vm8 = vmor %vm4077_vm2, %vm4078_vm4 }
 0x3ca   : > { %v12559_v61 = vadd.f32 %v12404_v31, %v4060_v42  ;;  %v12562_v8 = vadd.f32 %v12457_v55, %v4075_v27  ;;  %v12564_v6 = vor.u32 1.1754944e-38, %v4098_v16  ;;  %v4745_v48 = vadd.f32 %v4744_v62, %v4656_v26 }
 0x3cb   : > { %5023 = vst [vmem:[%s12424_s11 + $0x30] sm:$0xff] %v4991_v11  ;;  %v12568_v59 = vadd.f32 %v12466_v39, %v4090_v13  ;;  %vm4093_vm5 = vweird.f32 %v12466_v39  ;;  %vm4107_vm6 = vweird.f32 %v12420_v9  ;;  %v4119_v29 = vsub.f32 1.0, %v4118_v2  ;;  %v4833_v53 = vpop.f32.mrf.mxu2  ;;  %v13831_v13 = vld [vmem:[#allocation58_spill] sm:$0xff] }
 0x3cc   : > { %v4922_v15 = vpop.f32.mrf.mxu3  ;;  %v4134_v62 = vsub.f32 1.0, %v4133_v30  ;;  %v4149_v42 = vsub.f32 1.0, %v4148_v25  ;;  %v4834_v16 = vadd.f32 %v4833_v53, %v4745_v48  ;;  %v4105_v2 = vmul.f32 %v12498_v18, %v4104_v0  ;;  %vm12604_vm9 = vmor %vm4092_vm3, %vm4093_vm5 }
 0x3cd   : > { %v4126_v34 = vand.u32 2147483647, %v12446_v33  ;;  %v4164_v60 = vsub.f32 1.0, %v4163_v35  ;;  %v4658_v17 = vpop.f32.mrf.mxu0  ;;  %v13801_v35 = vpack.c.bf16 %v13783_v40, %v13782_v54  ;;  %v4095_v30 = vsel %vm12604_vm9, %v12466_v39, %v12568_v59 }
 0x3ce   : > { %v4747_v26 = vpop.f32.mrf.mxu1  ;;  %v4923_v25 = vadd.f32 %v4922_v15, %v4834_v16  ;;  %v4659_v53 = vadd.f32 %v12311_v58, %v4658_v17  ;;  %v4120_v48 = vmul.f32 %v12508_v44, %v4119_v29  ;;  %vm4122_vm12 = vweird.f32 %v12446_v33  ;;  %v6357_v15 = vld [vmem:[%s6780_s18 + $0x38] sm:$0xff] }
 0x3cf   : > { %v4128_v37 = vand.u32 2147483648, %v12446_v33  ;;  %v13802_v11 = vpack.c.bf16 %v13785_v19, %v13784_v3  ;;  %v13803_v54 = vpack.c.bf16 %v13787_v5, %v13786_v12  ;;  %vm4108_vm10 = vweird.f32 %v12498_v18 }
 0x3d0   : > { %4959 = vmatmul.bf16.gmra.mxu3 %v13801_v35  ;;  %v4135_v17 = vmul.f32 %v12515_v23, %v4134_v62  ;;  %v4150_v40 = vmul.f32 %v12523_v20, %v4149_v42  ;;  %v4992_v29 = vadd.f32 %v6357_v15, %v4923_v25  ;;  %v12630_v16 = vadd.f32 %v12498_v18, %v4105_v2  ;;  %vm12671_vm3 = vmor %vm4107_vm6, %vm4108_vm10 }
 0x3d1   : > { %4697 = vmatmul.bf16.gmra.mxu0 %v13802_v11  ;;  %4786 = vmatmul.bf16.gmra.mxu1 %v13803_v54  ;;  %vm4123_vm11 = vweird.f32 %v12508_v44  ;;  %vm12633_vm13 = vcmp.eq.f32.partialorder %v4126_v34, 8.507059e+37  ;;  %v4165_v19 = vmul.f32 %v12533_v52, %v4164_v60  ;;  %vm4137_vm14 = vweird.f32 %v12454_v14 }
 0x3d2   : > { %5024 = vst [vmem:[%s12424_s11 + $0x38] sm:$0xff] %v4992_v29  ;;  %v4748_v12 = vadd.f32 %v4747_v26, %v4659_v53  ;;  %v13806_v5 = vpack.c.bf16 %v13789_v10, %v13788_v41  ;;  %v4361_v62 = vpack.c.bf16 %v12428_v49, %v12280_v47  ;;  %v4363_v42 = vpack.c.bf16 %v12501_v32, %v12341_v4  ;;  %vm12682_vm5 = vmor %vm4122_vm12, %vm4123_vm11 }
 0x3d3   : > { %v13807_v34 = vand.u32 2147483647, %v12328_v36  ;;  %v4121_v60 = vadd.f32 %v12508_v44, %v4120_v48  ;;  %vm4138_vm0 = vweird.f32 %v12515_v23  ;;  %v4141_v26 = vand.u32 2147483647, %v12454_v14  ;;  %v4836_v10 = vpop.f32.mrf.mxu2  ;;  %v13838_v36 = vld [vmem:[#allocation39_spill] sm:$0xff] }
 0x3d4   : > { %4875 = vmatmul.bf16.gmra.mxu2 %v13806_v5  ;;  %v4143_v41 = vand.u32 2147483648, %v12454_v14  ;;  %v4925_v11 = vpop.f32.mrf.mxu3  ;;  %v13810_v35 = vand.u32 2147483647, %v12384_v7  ;;  %vm12663_vm2 = vcmp.eq.f32.partialorder %v4096_v38, 8.507059e+37  ;;  %v4136_v53 = vadd.f32 %v12515_v23, %v4135_v17  ;;  %vm12694_vm4 = vmor %vm4137_vm14, %vm4138_vm0 }
 0x3d5   : > { %vm12649_vm15 = vcmp.eq.f32.partialorder %v13807_v34, 8.507059e+37  ;;  %v4151_v7 = vadd.f32 %v12523_v20, %v4150_v40  ;;  %v4837_v54 = vadd.f32 %v4836_v10, %v4748_v12  ;;  %vm4152_vm6 = vweird.f32 %v12462_v21  ;;  %v4660_v17 = vpop.f32.mrf.mxu0 }
 0x3d6   : > { %vm12659_vm1 = vcmp.eq.f32.partialorder %v13810_v35, 8.507059e+37  ;;  %v4158_v15 = vand.u32 2147483648, %v12462_v21  ;;  %v4166_v29 = vadd.f32 %v12533_v52, %v4165_v19  ;;  %vm4168_vm10 = vweird.f32 %v12533_v52  ;;  %v4749_v40 = vpop.f32.mrf.mxu1 }
 0x3d7   : > { %v4156_v12 = vand.u32 2147483647, %v12462_v21  ;;  %v4173_v5 = vand.u32 2147483648, %v12468_v56  ;;  %v4926_v34 = vadd.f32 %v4925_v11, %v4837_v54  ;;  %v4661_v19 = vadd.f32 %v12311_v58, %v4660_v17 }
 0x3d8   : > { %v4125_v10 = vsel %vm12682_vm5, %v12508_v44, %v4121_v60  ;;  %v4129_v35 = vor.u32 1.1754944e-38, %v4128_v37  ;;  %vm13821_vm12 = vweird.f32 %v12523_v20  ;;  %vm4167_vm14 = vweird.f32 %v12468_v56 }
 0x3d9   : > { %vm12706_vm11 = vmor %vm4152_vm6, %vm13821_vm12  ;;  %v4171_v21 = vand.u32 2147483647, %v12468_v56  ;;  %v4110_v11 = vsel %vm12671_vm3, %v12498_v18, %v12630_v16  ;;  %v4140_v44 = vsel %vm12694_vm4, %v12515_v23, %v4136_v53  ;;  %v6358_v56 = vld [vmem:[%s6780_s18 + $0x40] sm:$0xff]  ;;  %vm3958_vm5 = vweird.f32 %v12143_v43 }
 0x3da   : > { %v4155_v37 = vsel %vm12706_vm11, %v12523_v20, %v4151_v7  ;;  %vm12724_vm0 = vmor %vm4167_vm14, %vm4168_vm10  ;;  %v4993_v54 = vadd.f32 %v6358_v56, %v4926_v34  ;;  %vm4017_vm3 = vweird.f32 %v12259_v46  ;;  %vm4142_vm6 = vcmp.eq.f32.partialorder %v4141_v26, 8.507059e+37 }
 0x3db   : > { %v4144_v18 = vor.u32 1.1754944e-38, %v4143_v41  ;;  %v4159_v16 = vor.u32 1.1754944e-38, %v4158_v15  ;;  %v4170_v23 = vsel %vm12724_vm0, %v12533_v52, %v4166_v29  ;;  %v4130_v20 = vsel %vm12633_vm13, %v4129_v35, %v4125_v10  ;;  %v4838_v26 = vpop.f32.mrf.mxu2  ;;  %v6359_v35 = vld [vmem:[%s6780_s18 + $0x48] sm:$0xff] }
 0x3dc   : > { %vm4157_vm4 = vcmp.eq.f32.partialorder %v4156_v12, 8.507059e+37  ;;  %v4174_v48 = vor.u32 1.1754944e-38, %v4173_v5  ;;  %5025 = vst [vmem:[%s12424_s11 + $0x40] sm:$0xff] %v4993_v54  ;;  %v4750_v53 = vadd.f32 %v4749_v40, %v4661_v19  ;;  %v13826_v7 = vand.u32 2147483648, %v12420_v9  ;;  %v4927_v41 = vpop.f32.mrf.mxu3  ;;  %v13840_v19 = vld [vmem:[#allocation51_spill] sm:$0xff] }
 0x3dd   : > { %v4145_v17 = vsel %vm4142_vm6, %v4144_v18, %v4140_v44  ;;  %v4160_v33 = vsel %vm4157_vm4, %v4159_v16, %v4155_v37  ;;  %vm4172_vm10 = vcmp.eq.f32.partialorder %v4171_v21, 8.507059e+37  ;;  %v13827_v52 = vsel %vm12576_vm7, %v12404_v31, %v12559_v61  ;;  %v4663_v61 = vpop.f32.mrf.mxu0  ;;  %v13843_v37 = vld [vmem:[#allocation48_spill] sm:$0xff]  ;;  %v13846_v18 = vld [vmem:[#allocation41_spill] sm:$0xff]  ;;  %v13857_v54 = vld [vmem:[#allocation43_spill] sm:$0xff] }
 0x3de   : > { %v4114_v38 = vor.u32 1.1754944e-38, %v13826_v7  ;;  %v4070_v3 = vsel %vm12649_vm15, %v12444_v63, %v13827_v52  ;;  %v13828_v15 = vand.u32 2147483647, %v12420_v9  ;;  %v4175_v29 = vsel %vm4172_vm10, %v4174_v48, %v4170_v23  ;;  %v13847_v16 = vld [vmem:[#allocation56_spill] sm:$0xff]  ;;  %v13849_v7 = vld [vmem:[#allocation19_spill] sm:$0xff] }
 0x3df   : > { %v4839_v40 = vadd.f32 %v4838_v26, %v4750_v53  ;;  %v13829_v12 = vsel %vm12585_vm8, %v12457_v55, %v12562_v8  ;;  %v4100_v31 = vsel %vm12663_vm2, %v12564_v6, %v4095_v30  ;;  %v12766_v63 = vmul.f32 %v4130_v20, %v12300_v1  ;;  %v4752_v8 = vpop.f32.mrf.mxu1  ;;  %v13851_v52 = vld [vmem:[#allocation27_spill] sm:$0xff] }
 0x3e0   : > { %vm4112_vm13 = vcmp.eq.f32.partialorder %v13828_v15, 8.507059e+37  ;;  %v4085_v27 = vsel %vm12659_vm1, %v12553_v28, %v13829_v12  ;;  %v12769_v55 = vmul.f32 %v4145_v17, %v12317_v57  ;;  %v12772_v28 = vmul.f32 %v4160_v33, %v12324_v50  ;;  %v13832_v57 = vld [vmem:[#allocation57_spill] sm:$0xff] }
 0x3e1   : > { %v4115_v9 = vsel %vm4112_vm13, %v4114_v38, %v4110_v11  ;;  %v13830_v39 = vpack.c.bf16 %v13791_v51, %v13790_v45  ;;  %v4928_v59 = vadd.f32 %v4927_v41, %v4839_v40  ;;  %v4664_v6 = vadd.f32 %v12311_v58, %v4663_v61  ;;  %v13833_v50 = vld [vmem:[#allocation37_spill] sm:$0xff]  ;;  %v13835_v51 = vld [vmem:[#allocation42_spill] sm:$0xff]  ;;  %v13836_v45 = vld [vmem:[#allocation55_spill] sm:$0xff] }
 0x3e2   : > { %v4016_v1 = vadd.f32 %v13831_v13, %v12431_v22  ;;  %vm4018_vm7 = vweird.f32 %v13831_v13  ;;  %v4023_v30 = vand.u32 2147483648, %v12259_v46  ;;  %v12783_v0 = vmul.f32 %v4175_v29, %v13832_v57  ;;  %v13839_v22 = vld [vmem:[#allocation44_spill] sm:$0xff]  ;;  %v13841_v11 = vld [vmem:[#allocation45_spill] sm:$0xff]  ;;  %v13850_v41 = vld [vmem:[#allocation47_spill] sm:$0xff] }
 0x3e3   : > { %4964 = vmatmul.bf16.gmra.mxu3 %v13830_v39  ;;  %v13834_v2 = vpack.c.bf16 %v12228_v24, %v13833_v50  ;;  %v13837_v25 = vpack.c.bf16 %v13835_v51, %v13836_v45  ;;  %v12792_v5 = vmul.f32 %v4070_v3, %v13838_v36  ;;  %v12795_v34 = vmul.f32 %v4085_v27, %v13839_v22  ;;  %v13842_v24 = vld [vmem:[#allocation50_spill] sm:$0xff]  ;;  %vm12809_vm8 = vmor %vm4017_vm3, %vm4018_vm7  ;;  %v4841_v17 = vpop.f32.mrf.mxu2  ;;  %v13855_v45 = vld [vmem:[#allocation31_spill] sm:$0xff] }
 0x3e4   : > { %v12798_v10 = vmul.f32 %v4100_v31, %v13840_v19  ;;  %v4994_v14 = vadd.f32 %v6359_v35, %v4928_v59  ;;  %v4021_v21 = vand.u32 2147483647, %v12259_v46  ;;  %v4043_v44 = vmul.f32 %v13842_v24, %v13841_v11  ;;  %v4930_v33 = vpop.f32.mrf.mxu3  ;;  %v13852_v40 = vld [vmem:[#allocation30_spill] sm:$0xff] }
 0x3e5   : > { %4702 = vmatmul.bf16.gmra.mxu0 %v13834_v2  ;;  %4791 = vmatmul.bf16.gmra.mxu1 %v13837_v25  ;;  %v12805_v60 = vmul.f32 %v4115_v9, %v13843_v37  ;;  %v4753_v56 = vadd.f32 %v4752_v8, %v4664_v6  ;;  %v13848_v23 = vpack.c.bf16 %v13846_v18, %v13847_v16  ;;  %vm3957_vm9 = vweird.f32 %v13849_v7  ;;  %v4665_v9 = vpop.f32.mrf.mxu0  ;;  %v13854_v50 = vld [vmem:[#allocation38_spill] sm:$0xff] }
 0x3e6   : > { %5026 = vst [vmem:[%s12424_s11 + $0x48] sm:$0xff] %v4994_v14  ;;  %v4365_v20 = vpack.c.bf16 %v12766_v63, %v12792_v5  ;;  %v4366_v48 = vpack.c.bf16 %v12769_v55, %v12795_v34  ;;  %v4367_v53 = vpack.c.bf16 %v12772_v28, %v12798_v10  ;;  %v3961_v46 = vand.u32 2147483647, %v13849_v7  ;;  %vm3959_vm15 = vmor %vm3957_vm9, %vm3958_vm5  ;;  %v6364_v34 = vld [vmem:[%s6780_s18 + $0x70] sm:$0xff] }
 0x3e7   : > { %4880 = vmatmul.bf16.gmra.mxu2 %v13848_v23  ;;  %v4020_v38 = vsel %vm12809_vm8, %v13831_v13, %v4016_v1  ;;  %v4368_v26 = vpack.c.bf16 %v12783_v0, %v12805_v60  ;;  %v3983_v3 = vmul.f32 %v13851_v52, %v13850_v41  ;;  %v4024_v15 = vor.u32 1.1754944e-38, %v4023_v30  ;;  %v4754_v61 = vpop.f32.mrf.mxu1  ;;  %v6360_v30 = vld [vmem:[%s6780_s18 + $0x50] sm:$0xff]  ;;  %v6366_v0 = vld [vmem:[%s6780_s18 + $0x80] sm:$0xff] }
 0x3e8   : > { %v4842_v29 = vadd.f32 %v4841_v17, %v4753_v56  ;;  %v3960_v12 = vsel %vm3959_vm15, %v12143_v43, %v13852_v40  ;;  %v13853_v27 = vand.u32 2147483648, %v13849_v7  ;;  %vm4022_vm1 = vcmp.eq.f32.partialorder %v4021_v21, 8.507059e+37  ;;  %v13856_v56 = vld [vmem:[#allocation34_spill] sm:$0xff] }
 0x3e9   : > { %v4025_v8 = vsel %vm4022_vm1, %v4024_v15, %v4020_v38  ;;  %v4044_v39 = vsub.f32 1.0, %v4043_v44  ;;  %v4666_v6 = vadd.f32 %v12311_v58, %v4665_v9  ;;  %vm3962_vm2 = vcmp.eq.f32.partialorder %v3961_v46, 8.507059e+37  ;;  %v6361_v17 = vld [vmem:[%s6780_s18 + $0x58] sm:$0xff] }
 0x3ea   : > { %v3964_v31 = vor.u32 1.1754944e-38, %v13853_v27  ;;  %v4931_v59 = vadd.f32 %v4930_v33, %v4842_v29  ;;  %v3984_v1 = vsub.f32 1.0, %v3983_v3  ;;  %v4294_v2 = vmul.f32 %v4025_v8, %v13854_v50 }
 0x3eb   : > { %v4045_v43 = vmul.f32 %v13842_v24, %v4044_v39  ;;  %v4755_v51 = vadd.f32 %v4754_v61, %v4666_v6  ;;  %v4843_v36 = vpop.f32.mrf.mxu2  ;;  %vm4048_vm12 = vweird.f32 %v13842_v24  ;;  %v13858_v18 = vpack.c.bf16 %v13856_v56, %v13857_v54  ;;  %v6362_v39 = vld [vmem:[%s6780_s18 + $0x60] sm:$0xff]  ;;  %v13862_v6 = vld [vmem:[#allocation33_spill] sm:$0xff] }
 0x3ec   : > { %v3965_v13 = vsel %vm3962_vm2, %v3964_v31, %v3960_v12  ;;  %v4995_v57 = vadd.f32 %v6360_v30, %v4931_v59  ;;  %v4932_v22 = vpop.f32.mrf.mxu3  ;;  %v3985_v19 = vmul.f32 %v13851_v52, %v3984_v1  ;;  %vm3988_vm11 = vweird.f32 %v13851_v52 }
 0x3ed   : > { %v4290_v25 = vmul.f32 %v3965_v13, %v13855_v45  ;;  %v4844_v35 = vadd.f32 %v4843_v36, %v4755_v51  ;;  %v4668_v14 = vpop.f32.mrf.mxu0  ;;  %v4046_v37 = vadd.f32 %v13842_v24, %v4045_v43  ;;  %v4053_v7 = vand.u32 2147483648, %v13841_v11 }
 0x3ee   : > { %5027 = vst [vmem:[%s12424_s11 + $0x50] sm:$0xff] %v4995_v57  ;;  %v4669_v23 = vadd.f32 %v12311_v58, %v4668_v14  ;;  %v3986_v46 = vadd.f32 %v13851_v52, %v3985_v19  ;;  %vm4047_vm14 = vweird.f32 %v13841_v11  ;;  %v4051_v38 = vand.u32 2147483647, %v13841_v11 }
 0x3ef   : > { %v4757_v21 = vpop.f32.mrf.mxu1  ;;  %v4362_v44 = vpack.c.bf16 %v4294_v2, %v4290_v25  ;;  %v4933_v16 = vadd.f32 %v4932_v22, %v4844_v35  ;;  %v3993_v3 = vand.u32 2147483648, %v13850_v41  ;;  %vm12861_vm0 = vmor %vm4047_vm14, %vm4048_vm12  ;;  %vm3987_vm5 = vweird.f32 %v13850_v41  ;;  %v6363_v25 = vld [vmem:[%s6780_s18 + $0x68] sm:$0xff] }
 0x3f0   : > { %v3991_v47 = vand.u32 2147483647, %v13850_v41  ;;  %v4050_v49 = vsel %vm12861_vm0, %v13842_v24, %v4046_v37  ;;  %vm3989_vm3 = vmor %vm3987_vm5, %vm3988_vm11  ;;  %v4054_v11 = vor.u32 1.1754944e-38, %v4053_v7  ;;  %vm4052_vm6 = vcmp.eq.f32.partialorder %v4051_v38, 8.507059e+37 }
 0x3f1   : > { %v4996_v33 = vadd.f32 %v6361_v17, %v4933_v16  ;;  %v3990_v41 = vsel %vm3989_vm3, %v13851_v52, %v3986_v46  ;;  %v3994_v27 = vor.u32 1.1754944e-38, %v3993_v3 }
 0x3f2   : > { %v4055_v24 = vsel %vm4052_vm6, %v4054_v11, %v4050_v49  ;;  %vm3992_vm4 = vcmp.eq.f32.partialorder %v3991_v47, 8.507059e+37 }
 0x3f3   : > { %4969 = vmatmul.bf16.gmra.mxu3 %v13858_v18  ;;  %5028 = vst [vmem:[%s12424_s11 + $0x58] sm:$0xff] %v4996_v33  ;;  %v4846_v29 = vpop.f32.mrf.mxu2  ;;  %v3995_v32 = vsel %vm3992_vm4, %v3994_v27, %v3990_v41  ;;  %v6365_v18 = vld [vmem:[%s6780_s18 + $0x78] sm:$0xff] }
 0x3f4   : > { %v4935_v40 = vpop.f32.mrf.mxu3  ;;  %v4292_v13 = vmul.f32 %v3995_v32, %v13862_v6 }
 0x3f5   : > { %4707 = vmatmul.bf16.gmra.mxu0 %v4361_v62  ;;  %4796 = vmatmul.bf16.gmra.mxu1 %v4362_v44  ;;  %v4758_v62 = vadd.f32 %v4757_v21, %v4669_v23  ;;  %v4670_v31 = vpop.f32.mrf.mxu0 }
 0x3f6   : > { %v4671_v4 = vadd.f32 %v12311_v58, %v4670_v31 }
 0x3f7   : > { %4885 = vmatmul.bf16.gmra.mxu2 %v4363_v42  ;;  %v4847_v12 = vadd.f32 %v4846_v29, %v4758_v62  ;;  %v4759_v9 = vpop.f32.mrf.mxu1  ;;  %v13861_v42 = vld [vmem:[#allocation40_spill] sm:$0xff] }
 0x3f8   : > { %v4296_v8 = vmul.f32 %v4055_v24, %v13861_v42  ;;  %v4760_v52 = vadd.f32 %v4759_v9, %v4671_v4 }
 0x3f9   : > { %v4936_v61 = vadd.f32 %v4935_v40, %v4847_v12  ;;  %v6367_v12 = vld [vmem:[%s6780_s18 + $0x88] sm:$0xff] }
 0x3fa   : > { %v4364_v57 = vpack.c.bf16 %v4296_v8, %v4292_v13 }
 0x3fb   : > { %v4997_v59 = vadd.f32 %v6362_v39, %v4936_v61  ;;  %v4848_v1 = vpop.f32.mrf.mxu2  ;;  %v6368_v39 = vld [vmem:[%s6780_s18 + $0x90] sm:$0xff] }
 0x3fc   : > { %v4937_v30 = vpop.f32.mrf.mxu3  ;;  %v4849_v50 = vadd.f32 %v4848_v1, %v4760_v52 }
 0x3fd   : > { %5029 = vst [vmem:[%s12424_s11 + $0x60] sm:$0xff] %v4997_v59  ;;  %v4673_v2 = vpop.f32.mrf.mxu0 }
 0x3fe   : > { %v4938_v51 = vadd.f32 %v4937_v30, %v4849_v50  ;;  %v4674_v45 = vadd.f32 %v12311_v58, %v4673_v2  ;;  %v6369_v2 = vld [vmem:[%s6780_s18 + $0x98] sm:$0xff] }
 0x3ff   : > { %v4762_v43 = vpop.f32.mrf.mxu1 }
 0x400   : > { %v4998_v36 = vadd.f32 %v6363_v25, %v4938_v51  ;;  %v4763_v22 = vadd.f32 %v4762_v43, %v4674_v45 }
 0x402   : > { %5030 = vst [vmem:[%s12424_s11 + $0x68] sm:$0xff] %v4998_v36 }
 0x403   : > { %4974 = vmatmul.bf16.gmra.mxu3 %v4364_v57  ;;  %v4851_v19 = vpop.f32.mrf.mxu2 }
 0x404   : > { %v4940_v35 = vpop.f32.mrf.mxu3  ;;  %v4852_v14 = vadd.f32 %v4851_v19, %v4763_v22 }
 0x405   : > { %4712 = vmatmul.bf16.gmra.mxu0 %v4365_v20  ;;  %4801 = vmatmul.bf16.gmra.mxu1 %v4366_v48  ;;  %v4675_v21 = vpop.f32.mrf.mxu0 }
 0x406   : > { %v4941_v5 = vadd.f32 %v4940_v35, %v4852_v14  ;;  %v4676_v55 = vadd.f32 %v12311_v58, %v4675_v21 }
 0x407   : > { %4890 = vmatmul.bf16.gmra.mxu2 %v4367_v53  ;;  %v4764_v63 = vpop.f32.mrf.mxu1 }
 0x408   : > { %v4999_v20 = vadd.f32 %v6364_v34, %v4941_v5  ;;  %v4765_v48 = vadd.f32 %v4764_v63, %v4676_v55  ;;  %v6370_v34 = vld [vmem:[%s6780_s18 + $0xa0] sm:$0xff] }
 0x40a   : > { %5031 = vst [vmem:[%s12424_s11 + $0x70] sm:$0xff] %v4999_v20 }
 0x40b   : > { %v4853_v44 = vpop.f32.mrf.mxu2 }
 0x40c   : > { %v4942_v37 = vpop.f32.mrf.mxu3  ;;  %v4854_v56 = vadd.f32 %v4853_v44, %v4765_v48 }
 0x40d   : > { %v4678_v54 = vpop.f32.mrf.mxu0 }
 0x40e   : > { %v4943_v10 = vadd.f32 %v4942_v37, %v4854_v56  ;;  %v4679_v53 = vadd.f32 %v12311_v58, %v4678_v54 }
 0x40f   : > { %v4767_v28 = vpop.f32.mrf.mxu1 }
 0x410   : > { %v5000_v16 = vadd.f32 %v6365_v18, %v4943_v10  ;;  %v4768_v23 = vadd.f32 %v4767_v28, %v4679_v53  ;;  %v6371_v18 = vld [vmem:[%s6780_s18 + $0xa8] sm:$0xff] }
 0x412   : > { %5032 = vst [vmem:[%s12424_s11 + $0x78] sm:$0xff] %v5000_v16 }
 0x413   : > { %4979 = vmatmul.bf16.gmra.mxu3 %v4368_v26  ;;  %v4856_v7 = vpop.f32.mrf.mxu2 }
 0x414   : > { %v4945_v46 = vpop.f32.mrf.mxu3  ;;  %v4857_v38 = vadd.f32 %v4856_v7, %v4768_v23 }
 0x415   : > { %v4680_v17 = vpop.f32.mrf.mxu0 }
 0x416   : > { %v4946_v3 = vadd.f32 %v4945_v46, %v4857_v38  ;;  %v4681_v15 = vadd.f32 %v12311_v58, %v4680_v17 }
 0x417   : > { %v4769_v33 = vpop.f32.mrf.mxu1 }
 0x418   : > { %v5001_v60 = vadd.f32 %v6366_v0, %v4946_v3  ;;  %v4770_v26 = vadd.f32 %v4769_v33, %v4681_v15  ;;  %v6372_v0 = vld [vmem:[%s6780_s18 + $0xb0] sm:$0xff] }
 0x41a   : > { %5033 = vst [vmem:[%s12424_s11 + $0x80] sm:$0xff] %v5001_v60 }
 0x41b   : > { %v4858_v47 = vpop.f32.mrf.mxu2 }
 0x41c   : > { %v4947_v49 = vpop.f32.mrf.mxu3  ;;  %v4859_v62 = vadd.f32 %v4858_v47, %v4770_v26 }
 0x41d   : > { %v4683_v11 = vpop.f32.mrf.mxu0 }
 0x41e   : > { %v4948_v40 = vadd.f32 %v4947_v49, %v4859_v62  ;;  %v4684_v41 = vadd.f32 %v12311_v58, %v4683_v11 }
 0x41f   : > { %v4772_v29 = vpop.f32.mrf.mxu1 }
 0x420   : > { %v5002_v27 = vadd.f32 %v6367_v12, %v4948_v40  ;;  %v4773_v24 = vadd.f32 %v4772_v29, %v4684_v41  ;;  %v12927_v29 = vld [vmem:[%s12994_s6] ss:$0 sm:$0xff]  ;;  %v6374_v12 = vld [vmem:[%s6780_s18 + $0xb8] sm:$0xff] }
 0x422   : > { %5034 = vst [vmem:[%s12424_s11 + $0x88] sm:$0xff] %v5002_v27 }
 0x423   : > { %v4861_v31 = vpop.f32.mrf.mxu2 }
 0x424   : > { %v4950_v9 = vpop.f32.mrf.mxu3  ;;  %v4862_v61 = vadd.f32 %v4861_v31, %v4773_v24 }
 0x425   : > { %v4685_v4 = vpop.f32.mrf.mxu0 }
 0x426   : > { %v4951_v42 = vadd.f32 %v4950_v9, %v4862_v61  ;;  %v4686_v8 = vadd.f32 %v12311_v58, %v4685_v4 }
 0x427   : > { %v4774_v32 = vpop.f32.mrf.mxu1 }
 0x428   : > { %v5003_v59 = vadd.f32 %v6368_v39, %v4951_v42  ;;  %v4775_v6 = vadd.f32 %v4774_v32, %v4686_v8  ;;  %v6375_v39 = vld [vmem:[%s6780_s18 + $0xc0] sm:$0xff] }
 0x42a   : > { %5035 = vst [vmem:[%s12424_s11 + $0x90] sm:$0xff] %v5003_v59 }
 0x42b   : > { %v4863_v13 = vpop.f32.mrf.mxu2 }
 0x42c   : > { %v4864_v52 = vadd.f32 %v4863_v13, %v4775_v6  ;;  %v4952_v1 = vpop.f32.mrf.mxu3 }
 0x42d   : > { %v4688_v30 = vpop.f32.mrf.mxu0 }
 0x42e   : > { %v4953_v50 = vadd.f32 %v4952_v1, %v4864_v52  ;;  %v4689_v36 = vadd.f32 %v12311_v58, %v4688_v30 }
 0x42f   : > { %v4777_v57 = vpop.f32.mrf.mxu1 }
 0x430   : > { %v5004_v43 = vadd.f32 %v6369_v2, %v4953_v50  ;;  %v4778_v22 = vadd.f32 %v4777_v57, %v4689_v36 }
 0x432   : > { %5036 = vst [vmem:[%s12424_s11 + $0x98] sm:$0xff] %v5004_v43  ;;  %v6376_v43 = vld [vmem:[%s6780_s18 + $0xc8] sm:$0xff] }
 0x435   : > { %v4690_v45 = vpop.f32.mrf.mxu0 }
 0x436   : > { %v4866_v51 = vpop.f32.mrf.mxu2  ;;  %v4691_v63 = vadd.f32 %v12311_v58, %v4690_v45 }
 0x437   : > { %v4779_v25 = vpop.f32.mrf.mxu1  ;;  %v4867_v21 = vadd.f32 %v4866_v51, %v4778_v22 }
 0x438   : > { %v4780_v48 = vadd.f32 %v4779_v25, %v4691_v63 }
 0x43e   : > { %v4868_v19 = vpop.f32.mrf.mxu2  ;;  %v4693_v35 = vpop.f32.mrf.mxu0 }
 0x43f   : > { %v4782_v14 = vpop.f32.mrf.mxu1  ;;  %v4869_v56 = vadd.f32 %v4868_v19, %v4780_v48  ;;  %v4694_v28 = vadd.f32 %v12311_v58, %v4693_v35 }
 0x441   : > { %v4783_v23 = vadd.f32 %v4782_v14, %v4694_v28 }
 0x443   : > { %v4955_v5 = vpop.f32.mrf.mxu3 }
 0x444   : > { %v4956_v55 = vadd.f32 %v4955_v5, %v4867_v21  ;;  %v6377_v21 = vld [vmem:[%s6780_s18 + $0xd0] sm:$0xff] }
 0x446   : > { %v5005_v20 = vadd.f32 %v6370_v34, %v4956_v55  ;;  %v4695_v37 = vpop.f32.mrf.mxu0 }
 0x447   : > { %v4871_v44 = vpop.f32.mrf.mxu2  ;;  %v4784_v54 = vpop.f32.mrf.mxu1  ;;  %v4696_v33 = vadd.f32 %v12311_v58, %v4695_v37 }
 0x448   : > { %5037 = vst [vmem:[%s12424_s11 + $0xa0] sm:$0xff] %v5005_v20  ;;  %v4872_v38 = vadd.f32 %v4871_v44, %v4783_v23 }
 0x449   : > { %v4785_v26 = vadd.f32 %v4784_v54, %v4696_v33  ;;  %v6378_v54 = vld [vmem:[%s6780_s18 + $0xd8] sm:$0xff] }
 0x44b   : > { %v4957_v10 = vpop.f32.mrf.mxu3 }
 0x44c   : > { %v4958_v53 = vadd.f32 %v4957_v10, %v4869_v56 }
 0x44e   : > { %v5006_v16 = vadd.f32 %v6371_v18, %v4958_v53  ;;  %v4698_v46 = vpop.f32.mrf.mxu0 }
 0x44f   : > { %v4873_v7 = vpop.f32.mrf.mxu2  ;;  %v4787_v17 = vpop.f32.mrf.mxu1  ;;  %v4699_v40 = vadd.f32 %v12927_v29, %v4698_v46 }
 0x450   : > { %5038 = vst [vmem:[%s12424_s11 + $0xa8] sm:$0xff] %v5006_v16  ;;  %v4874_v62 = vadd.f32 %v4873_v7, %v4785_v26 }
 0x451   : > { %v4788_v24 = vadd.f32 %v4787_v17, %v4699_v40  ;;  %v6379_v17 = vld [vmem:[%s6780_s18 + $0xe0] sm:$0xff] }
 0x453   : > { %v4960_v3 = vpop.f32.mrf.mxu3 }
 0x454   : > { %v4961_v15 = vadd.f32 %v4960_v3, %v4872_v38 }
 0x456   : > { %v5007_v60 = vadd.f32 %v6372_v0, %v4961_v15  ;;  %v4700_v49 = vpop.f32.mrf.mxu0 }
 0x457   : > { %v4876_v47 = vpop.f32.mrf.mxu2  ;;  %v4789_v11 = vpop.f32.mrf.mxu1  ;;  %v4701_v4 = vadd.f32 %v12927_v29, %v4700_v49 }
 0x458   : > { %5039 = vst [vmem:[%s12424_s11 + $0xb0] sm:$0xff] %v5007_v60  ;;  %v4877_v61 = vadd.f32 %v4876_v47, %v4788_v24 }
 0x459   : > { %v4790_v6 = vadd.f32 %v4789_v11, %v4701_v4 }
 0x45b   : > { %v4962_v58 = vpop.f32.mrf.mxu3 }
 0x45c   : > { %v4963_v41 = vadd.f32 %v4962_v58, %v4874_v62  ;;  %v6380_v62 = vld [vmem:[%s6780_s18 + $0xe8] sm:$0xff] }
 0x45e   : > { %v5008_v27 = vadd.f32 %v6374_v12, %v4963_v41 }
 0x45f   : > { %v4878_v31 = vpop.f32.mrf.mxu2 }
 0x460   : > { %5040 = vst [vmem:[%s12424_s11 + $0xb8] sm:$0xff] %v5008_v27  ;;  %v4879_v1 = vadd.f32 %v4878_v31, %v4790_v6 }
 0x462   : > { %v4703_v9 = vpop.f32.mrf.mxu0  ;;  %v4792_v32 = vpop.f32.mrf.mxu1 }
 0x463   : > { %v4704_v30 = vadd.f32 %v12927_v29, %v4703_v9 }
 0x465   : > { %v4793_v45 = vadd.f32 %v4792_v32, %v4704_v30 }
 0x466   : > { %v4965_v42 = vpop.f32.mrf.mxu3 }
 0x467   : > { %v4966_v8 = vadd.f32 %v4965_v42, %v4877_v61  ;;  %v6381_v61 = vld [vmem:[%s6780_s18 + $0xf0] sm:$0xff] }
 0x469   : > { %v5009_v59 = vadd.f32 %v6375_v39, %v4966_v8  ;;  %v6382_v39 = vld [vmem:[%s6780_s18 + $0xf8] sm:$0xff] }
 0x46a   : > { %v4881_v13 = vpop.f32.mrf.mxu2  ;;  %v4705_v52 = vpop.f32.mrf.mxu0 }
 0x46b   : > { %5041 = vst [vmem:[%s12424_s11 + $0xc0] sm:$0xff] %v5009_v59  ;;  %v4794_v2 = vpop.f32.mrf.mxu1  ;;  %v4882_v36 = vadd.f32 %v4881_v13, %v4793_v45  ;;  %v4706_v19 = vadd.f32 %v12927_v29, %v4705_v52 }
 0x46d   : > { %v4795_v5 = vadd.f32 %v4794_v2, %v4706_v19 }
 0x46e   : > { %v4967_v57 = vpop.f32.mrf.mxu3 }
 0x46f   : > { %v4968_v50 = vadd.f32 %v4967_v57, %v4879_v1 }
 0x471   : > { %v5010_v51 = vadd.f32 %v6376_v43, %v4968_v50 }
 0x472   : > { %v4883_v25 = vpop.f32.mrf.mxu2  ;;  %v4708_v22 = vpop.f32.mrf.mxu0 }
 0x473   : > { %5042 = vst [vmem:[%s12424_s11 + $0xc8] sm:$0xff] %v5010_v51  ;;  %v4797_v55 = vpop.f32.mrf.mxu1  ;;  %v4884_v20 = vadd.f32 %v4883_v25, %v4795_v5  ;;  %v4709_v48 = vadd.f32 %v12927_v29, %v4708_v22 }
 0x475   : > { %v4798_v10 = vadd.f32 %v4797_v55, %v4709_v48 }
 0x476   : > { %v4970_v35 = vpop.f32.mrf.mxu3 }
 0x477   : > { %v4971_v14 = vadd.f32 %v4970_v35, %v4882_v36 }
 0x479   : > { %v5011_v63 = vadd.f32 %v6377_v21, %v4971_v14 }
 0x47a   : > { %v4886_v34 = vpop.f32.mrf.mxu2  ;;  %v4710_v37 = vpop.f32.mrf.mxu0 }
 0x47b   : > { %5043 = vst [vmem:[%s12424_s11 + $0xd0] sm:$0xff] %v5011_v63  ;;  %v4887_v53 = vadd.f32 %v4886_v34, %v4798_v10  ;;  %v4799_v18 = vpop.f32.mrf.mxu1  ;;  %v4711_v23 = vadd.f32 %v12927_v29, %v4710_v37 }
 0x47d   : > { %v4800_v3 = vadd.f32 %v4799_v18, %v4711_v23 }
 0x47e   : > { %v4972_v44 = vpop.f32.mrf.mxu3 }
 0x47f   : > { %v4973_v56 = vadd.f32 %v4972_v44, %v4884_v20 }
 0x481   : > { %v5012_v28 = vadd.f32 %v6378_v54, %v4973_v56 }
 0x482   : > { %v4888_v16 = vpop.f32.mrf.mxu2  ;;  %v4713_v38 = vpop.f32.mrf.mxu0 }
 0x483   : > { %5044 = vst [vmem:[%s12424_s11 + $0xd8] sm:$0xff] %v5012_v28  ;;  %v4889_v15 = vadd.f32 %v4888_v16, %v4800_v3  ;;  %v4714_v0 = vadd.f32 %v12927_v29, %v4713_v38  ;;  %v4802_v60 = vpop.f32.mrf.mxu1 }
 0x485   : > { %v4803_v40 = vadd.f32 %v4802_v60, %v4714_v0 }
 0x486   : > { %v4975_v7 = vpop.f32.mrf.mxu3 }
 0x487   : > { %v4976_v46 = vadd.f32 %v4975_v7, %v4887_v53 }
 0x489   : > { %v5013_v33 = vadd.f32 %v6379_v17, %v4976_v46 }
 0x48a   : > { %v4891_v47 = vpop.f32.mrf.mxu2  ;;  %v4715_v58 = vpop.f32.mrf.mxu0 }
 0x48b   : > { %5045 = vst [vmem:[%s12424_s11 + $0xe0] sm:$0xff] %v5013_v33  ;;  %v4892_v41 = vadd.f32 %v4891_v47, %v4803_v40  ;;  %v4716_v12 = vadd.f32 %v12927_v29, %v4715_v58  ;;  %v4804_v31 = vpop.f32.mrf.mxu1 }
 0x48d   : > { %v4805_v32 = vadd.f32 %v4804_v31, %v4716_v12 }
 0x48e   : > { %v4977_v26 = vpop.f32.mrf.mxu3 }
 0x48f   : > { %v4978_v49 = vadd.f32 %v4977_v26, %v4889_v15 }
 0x491   : > { %v5014_v11 = vadd.f32 %v6380_v62, %v4978_v49 }
 0x492   : > { %v4893_v9 = vpop.f32.mrf.mxu2 }
 0x493   : > { %5046 = vst [vmem:[%s12424_s11 + $0xe8] sm:$0xff] %v5014_v11  ;;  %v4894_v42 = vadd.f32 %v4893_v9, %v4805_v32 }
 0x496   : > { %v4980_v27 = vpop.f32.mrf.mxu3 }
 0x497   : > { %v4981_v24 = vadd.f32 %v4980_v27, %v4892_v41 }
 0x499   : > { %v5015_v4 = vadd.f32 %v6381_v61, %v4981_v24 }
 0x49b   : > { %5047 = vst [vmem:[%s12424_s11 + $0xf0] sm:$0xff] %v5015_v4 }
 0x49e   : > { %v4982_v29 = vpop.f32.mrf.mxu3 }
 0x49f   : > { %v4983_v8 = vadd.f32 %v4982_v29, %v4894_v42 }
 0x4a1   : > { %v5016_v59 = vadd.f32 %v6382_v39, %v4983_v8 }
 0x4a3   : > { %5048 = vst [vmem:[%s12424_s11 + $0xf8] sm:$0xff] %v5016_v59 }
 0x4a4   : > { %6560 = shalt.err (!%p6557_p10)
}
 0x4a5   : > { %s6619_s13 = smov 128   ;;  %s6620_s18 = smov 8  }
 0x4a6   : > { %5666 = dma.vmem_to_hbm [thread:$0]  (%p6747_p3), %s5063_s17, 4096, %s5065_s19, %s5050_s28, %s6619_s13, %s6619_s13, %s6620_s18  }
 0x4a7 PF: > { %p5698_p11 = scmp.ge.s32.totalorder %s6607_s27, 2  ;;  %s5079_s11 = sand.u32 1, %s6595_s24  }
 0x4a8   : > { %s5080_s1 = scalar_lea.sflag [#allocation4], %s5079_s11 }
 0x4a9   : > { %p5686_p12 = pnand %p5698_p11, %p6696_p6 }
 0x4ab   : > { %p5687_p13 = pneg %p5686_p12 }
 0x4ad   : > { %6590 = dma.done.wait (%p5687_p13), %s5080_s1, 4096  }
 0x4ae   : > { %6592 = vsyncadd (%p5687_p13), %s5080_s1, 4294963200  ;;  %p22_p0 = scmp.ge.s32.totalorder %s6734_s22, 6   ;;  %s13863_s24 = smov %s6599_s25 }
 0x4af   : > { %s13864_s25 = smov %s6603_s26  ;;  %s13865_s26 = smov %s6743_s21 }
 0x4b0   : > { %s13866_s27 = smov %s6734_s22  ;;  %24 = sbr.rel (!%p22_p0) target bundleno = 9 (0x9), region = 109 }
 0x4b5   :  { %5086 = vsyncpa [#allocation3], 1 }
 0x4b6   :  { %5088 = vsyncpa [#allocation3 + $0x1], 1 }
 0x4b7   :  { %5089 = vsyncpa [#allocation6], 1 }
 0x4b8   :  { %5090 = vsyncpa [#allocation9], 1 }
 0x4b9   :  { %5091 = vsyncpa [#allocation4], 1 }
 0x4ba   :  { %5093 = vsyncpa [#allocation4 + $0x1], 1 }

</bundles_post_ra>
